<compile_context>
chip_gen: v7x
topology: tpu7x:2x2x1
jax: 0.10.0
libtpu: 0.0.40
codegen_flags: <defaults>
</compile_context>

<pallas_src>
import math

import jax
import jax.numpy as jnp
from jax.experimental import pallas as pl
from jax.experimental.pallas import tpu as pltpu


def _round_up(x, m):
    return ((x + m - 1) // m) * m


# ------------------------------------------------------------------ kernel ---
def _perceptron_kernel(x_ref, w_ref, b_ref, a_ref, o_ref, acc_ref):
    """One K-chunk of  o = PReLU(x @ w + b).

    x_ref : (B,  tk) f32   current K-slice of the flattened input
    w_ref : (tk, N)  bf16  current K-slice of the weight
    b_ref : (1,  N)  f32   bias
    a_ref : (1,  N)  f32   PReLU slope (single shared parameter, broadcast)
    o_ref : (B,  N)  f32   output (resident across the whole K grid)
    acc_ref: (B, N)  f32   VMEM accumulator scratch
    """
    k = pl.program_id(0)

    @pl.when(k == 0)
    def _init():
        acc_ref[...] = jnp.zeros_like(acc_ref)

    # bf16 MXU matmul, f32 accumulation (cast x in-register; weight already bf16).
    acc_ref[...] += jnp.dot(
        x_ref[...].astype(jnp.bfloat16),
        w_ref[...],
        preferred_element_type=jnp.float32,
    )

    @pl.when(k == pl.num_programs(0) - 1)
    def _finalize():
        y = acc_ref[...] + b_ref[...]
        alpha = a_ref[...]
        # PReLU: y if y >= 0 else alpha * y   (epilogue kept in f32)
        y = jnp.where(y >= 0.0, y, alpha * y)
        o_ref[...] = y.astype(o_ref.dtype)


# ----------------------------------------------------------------- wrapper ---
def perceptron_forward(params, x, *, k_tile=32768):
    """x: (B, C, H, W)  ->  PReLU(Linear(flatten(x)))  of shape (B, n_classes)."""
    w = params["w"]          # (K, N) bf16
    b = params["b"]          # (N,)   f32
    alpha = params["alpha"]  # scalar f32 (nn.PReLU default: one shared parameter)

    B = x.shape[0]
    x2 = x.reshape(B, -1).astype(jnp.float32)     # torch: x.view(x.size(0), -1)
    K = x2.shape[1]
    N = w.shape[1]
    assert w.shape[0] == K, (w.shape, K)

    # Lane-aligned K tile; zero-pad K if it does not divide (zeros add nothing).
    tk = min(k_tile, _round_up(K, 512))
    Kp = _round_up(K, tk)
    if Kp != K:
        x2 = jnp.pad(x2, ((0, 0), (0, Kp - K)))
        w = jnp.pad(w, ((0, Kp - K), (0, 0)))

    bias2 = b.reshape(1, N).astype(jnp.float32)
    alpha2 = jnp.broadcast_to(jnp.asarray(alpha, jnp.float32).reshape(1, 1), (1, N))

    grid = (Kp // tk,)
    out = pl.pallas_call(
        _perceptron_kernel,
        out_shape=jax.ShapeDtypeStruct((B, N), jnp.float32),
        grid=grid,
        in_specs=[
            pl.BlockSpec((B, tk), lambda k: (0, k)),   # stream x along K
            pl.BlockSpec((tk, N), lambda k: (k, 0)),   # stream w along K
            pl.BlockSpec((1, N), lambda k: (0, 0)),    # bias (resident)
            pl.BlockSpec((1, N), lambda k: (0, 0)),    # PReLU slope (resident)
        ],
        out_specs=pl.BlockSpec((B, N), lambda k: (0, 0)),  # accumulator-style output
        scratch_shapes=[pltpu.VMEM((B, N), jnp.float32)],
        compiler_params=pltpu.CompilerParams(
            dimension_semantics=("arbitrary",),        # K is a reduction axis
            vmem_limit_bytes=32 * 1024 * 1024,         # headroom for double-buffered blocks
        ),
    )(x2, w, bias2, alpha2)
    return out


# -------------------------------------------------------------------- init ---
def init_params(key, in_features, n_classes):
    k_w, k_b = jax.random.split(key)
    bound = 1.0 / math.sqrt(in_features)
    # PyTorch nn.Linear default init: U(-1/sqrt(fan_in), 1/sqrt(fan_in)).
    # Weight cast to bf16 once here (one-time cost, halves per-call HBM traffic).
    w = jax.random.uniform(k_w, (in_features, n_classes), jnp.float32, -bound, bound)
    b = jax.random.uniform(k_b, (n_classes,), jnp.float32, -bound, bound)
    return {
        "w": w.astype(jnp.bfloat16),
        "b": b,
        "alpha": jnp.float32(0.25),   # nn.PReLU() default single parameter
    }


# -------------------------------------------------------------------- main ---
if __name__ == "__main__":
    key = jax.random.PRNGKey(0)
    pkey, xkey = jax.random.split(key)

    # Shapes implied by the module: fc1.in_features = 786432 = 3 * 512 * 512.
    n_classes = 3
    batch, C, H, W = 2, 3, 512, 512
    in_features = C * H * W

    params = init_params(pkey, in_features, n_classes)
    x = jax.random.normal(xkey, (batch, C, H, W), jnp.float32)

    fwd = jax.jit(perceptron_forward)
    out = jax.block_until_ready(fwd(params, x))

    # Pure-JAX reference (f32 matmul) for a sanity check; bf16 weights are
    # common to both paths, only x's in-kernel bf16 cast differs.
    z = x.reshape(batch, -1) @ params["w"].astype(jnp.float32) + params["b"]
    ref = jnp.where(z >= 0.0, z, params["alpha"] * z)

    assert out.shape == (batch, n_classes), out.shape
    assert bool(jnp.all(jnp.isfinite(out)))
    assert bool(jnp.allclose(out, ref, rtol=5e-2, atol=5e-2))
    print("KERNEL_OK")
</pallas_src>

<mosaic_0001>
module attributes {stable_mosaic.version = 11 : i64} {
  func.func @_perceptron_kernel(%arg0: i32, %arg1: memref<2x32768xf32, #tpu.memory_space<vmem>>, %arg2: memref<32768x3xbf16, #tpu.memory_space<vmem>>, %arg3: memref<1x3xf32, #tpu.memory_space<vmem>>, %arg4: memref<1x3xf32, #tpu.memory_space<vmem>>, %arg5: memref<2x3xf32, #tpu.memory_space<vmem>>, %arg6: memref<2x3xf32, #tpu.memory_space<vmem>>) attributes {dimension_semantics = [#tpu.dimension_semantics<arbitrary>], iteration_bounds = array<i64: 24>, scalar_prefetch = 0 : i64, scratch_operands = 1 : i64, tpu.core_type = #tpu.core_type<tc>, window_params = [{transform_indices = @transform_0, window_bounds = array<i64: 2, 32768>}, {transform_indices = @transform_1, window_bounds = array<i64: 32768, 3>}, {pipeline_mode = #tpu.pipeline_mode<synchronous>, transform_indices = @transform_2, window_bounds = array<i64: 1, 3>}, {pipeline_mode = #tpu.pipeline_mode<synchronous>, transform_indices = @transform_3, window_bounds = array<i64: 1, 3>}, {pipeline_mode = #tpu.pipeline_mode<synchronous>, transform_indices = @transform_4, window_bounds = array<i64: 2, 3>}]} {
    %c0_i32 = arith.constant 0 : i32
    %0 = arith.cmpi eq, %arg0, %c0_i32 : i32
    %1 = arith.extui %0 : i1 to i32
    %c0_i32_0 = arith.constant 0 : i32
    %2 = arith.cmpi ne, %1, %c0_i32_0 : i32
    scf.if %2 {
      %cst_9 = arith.constant 0.000000e+00 : f32
      %13 = vector.broadcast %cst_9 : f32 to vector<2x3xf32>
      %c0_10 = arith.constant 0 : index
      %c0_11 = arith.constant 0 : index
      %14 = vector.load %arg6[%c0_10, %c0_11] : memref<2x3xf32, #tpu.memory_space<vmem>>, vector<2x3xf32>
      tpu.vector_store %arg6[%c0_10, %c0_11], %13 {strides = array<i32>} : memref<2x3xf32, #tpu.memory_space<vmem>>, vector<2x3xf32>,
    } else {
    }
    %c0 = arith.constant 0 : index
    %c0_1 = arith.constant 0 : index
    %3 = vector.load %arg6[%c0, %c0_1] : memref<2x3xf32, #tpu.memory_space<vmem>>, vector<2x3xf32>
    %c0_2 = arith.constant 0 : index
    %c0_3 = arith.constant 0 : index
    %4 = vector.load %arg1[%c0_2, %c0_3] : memref<2x32768xf32, #tpu.memory_space<vmem>>, vector<2x32768xf32>
    %5 = arith.truncf %4 : vector<2x32768xf32> to vector<2x32768xbf16>
    %c0_4 = arith.constant 0 : index
    %c0_5 = arith.constant 0 : index
    %6 = vector.load %arg2[%c0_4, %c0_5] : memref<32768x3xbf16, #tpu.memory_space<vmem>>, vector<32768x3xbf16>
    %cst = arith.constant dense<0.000000e+00> : vector<2x3xf32>
    %7 = tpu.matmul %5, %6, %cst {dimension_numbers = #tpu.dot_dimension_numbers<[1], [0], [0], [1], [0, 0, 1, 1], [], []>} : vector<2x32768xbf16>, vector<32768x3xbf16>, vector<2x3xf32> -> vector<2x3xf32>
    %8 = arith.addf %3, %7 : vector<2x3xf32>
    %c0_6 = arith.constant 0 : index
    %c0_7 = arith.constant 0 : index
    %9 = vector.load %arg6[%c0_6, %c0_7] : memref<2x3xf32, #tpu.memory_space<vmem>>, vector<2x3xf32>
    tpu.vector_store %arg6[%c0_6, %c0_7], %8 {strides = array<i32>} : memref<2x3xf32, #tpu.memory_space<vmem>>, vector<2x3xf32>,
    %c23_i32 = arith.constant 23 : i32
    %10 = arith.cmpi eq, %arg0, %c23_i32 : i32
    %11 = arith.extui %10 : i1 to i32
    %c0_i32_8 = arith.constant 0 : i32
    %12 = arith.cmpi ne, %11, %c0_i32_8 : i32
    scf.if %12 {
      %c0_9 = arith.constant 0 : index
      %c0_10 = arith.constant 0 : index
      %13 = vector.load %arg6[%c0_9, %c0_10] : memref<2x3xf32, #tpu.memory_space<vmem>>, vector<2x3xf32>
      %c0_11 = arith.constant 0 : index
      %c0_12 = arith.constant 0 : index
      %14 = vector.load %arg3[%c0_11, %c0_12] : memref<1x3xf32, #tpu.memory_space<vmem>>, vector<1x3xf32>
      %15 = vector.broadcast %14 : vector<1x3xf32> to vector<2x3xf32>
      %16 = arith.addf %13, %15 : vector<2x3xf32>
      %c0_13 = arith.constant 0 : index
      %c0_14 = arith.constant 0 : index
      %17 = vector.load %arg4[%c0_13, %c0_14] : memref<1x3xf32, #tpu.memory_space<vmem>>, vector<1x3xf32>
      %cst_15 = arith.constant 0.000000e+00 : f32
      %18 = vector.broadcast %cst_15 : f32 to vector<2x3xf32>
      %19 = arith.cmpf oge, %16, %18 : vector<2x3xf32>
      %20 = vector.broadcast %17 : vector<1x3xf32> to vector<2x3xf32>
      %21 = arith.mulf %20, %16 : vector<2x3xf32>
      %22 = arith.select %19, %16, %21 : vector<2x3xi1>, vector<2x3xf32>
      %c0_16 = arith.constant 0 : index
      %c0_17 = arith.constant 0 : index
      %23 = vector.load %arg5[%c0_16, %c0_17] : memref<2x3xf32, #tpu.memory_space<vmem>>, vector<2x3xf32>
      tpu.vector_store %arg5[%c0_16, %c0_17], %22 {strides = array<i32>} : memref<2x3xf32, #tpu.memory_space<vmem>>, vector<2x3xf32>,
    } else {
    }
    return
  }
  func.func @transform_0(%arg0: i32) -> (i32, i32) {
    %c0_i32 = arith.constant 0 : i32
    %c0_i32_0 = arith.constant 0 : i32
    return %c0_i32, %arg0 : i32, i32
  }
  func.func @transform_1(%arg0: i32) -> (i32, i32) {
    %c0_i32 = arith.constant 0 : i32
    %c0_i32_0 = arith.constant 0 : i32
    return %arg0, %c0_i32 : i32, i32
  }
  func.func @transform_2(%arg0: i32) -> (i32, i32) {
    %c0_i32 = arith.constant 0 : i32
    %c0_i32_0 = arith.constant 0 : i32
    %c0_i32_1 = arith.constant 0 : i32
    return %c0_i32, %c0_i32_0 : i32, i32
  }
  func.func @transform_3(%arg0: i32) -> (i32, i32) {
    %c0_i32 = arith.constant 0 : i32
    %c0_i32_0 = arith.constant 0 : i32
    %c0_i32_1 = arith.constant 0 : i32
    return %c0_i32, %c0_i32_0 : i32, i32
  }
  func.func @transform_4(%arg0: i32) -> (i32, i32) {
    %c0_i32 = arith.constant 0 : i32
    %c0_i32_0 = arith.constant 0 : i32
    %c0_i32_1 = arith.constant 0 : i32
    return %c0_i32, %c0_i32_0 : i32, i32
  }
}

</mosaic_0001>

<bundles_post_ra>
// kernel: perceptron_forward.1
= control target key start
LH: loop header
LB: loop body
LE: loop exit
PB: predicated region body
PF: predicated region fallthrough
CT: control target
= control target key end

     0   :  { %9 = vsyncpa [#allocation4], 0  ;;  %s33287_s0 = inlined_call_operand.vmem [shape: f32[2,786432], index: 0, kind: input, shape index: {}]   ;;  %s33288_s1 = inlined_call_operand.hbm [shape: bf16[786432,3], index: 1, kind: input, shape index: {}]   ;;  %s33289_s2 = inlined_call_operand.vmem [shape: f32[1,3], index: 2, kind: input, shape index: {}]   ;;  %s33290_s3 = inlined_call_operand.vmem [shape: f32[1,3], index: 3, kind: input, shape index: {}]   ;;  %s33291_s4 = inlined_call_operand.hbm [shape: f32[2,3], index: 4, kind: output, shape index: {}]  }
   0x1   :  { %11 = vsyncpa [#allocation4 + $0x1], 0 }
   0x2   :  { %12 = vsyncpa [#allocation5], 0  ;;  %s30735_s15 = smov 0   ;;  %s30737_s16 = smov 0  }
   0x3   :  { %s30739_s17 = smov 0   ;;  %s30741_s18 = smov 0  }
   0x4 LB: > { %s30754_s19 = sadd.s32 4294967295, %s30702_s18   ;;  %s30757_s20 = sadd.s32 1, %s30702_s18   ;;  %s30702_s18 = sphi %s30741_s18, %s33298_s18   ;;  %s30698_s17 = sphi %s30739_s17, %s33297_s17   ;;  %s30694_s16 = sphi %s30737_s16, %s33296_s16   ;;  %s30690_s15 = sphi %s30735_s15, %s33295_s15  }
   0x5   : > { %s48_s21 = ssub.s32 %s30702_s18, %s30757_s20  ;;  %s51_s22 = sadd.s32 1, %s30698_s17 }
   0x6   : > { %p49_p0 = scmp.eq.s32.totalorder %s48_s21, 0  ;;  %p58_p1 = scmp.ne.s32.totalorder %s30698_s17, %s30694_s16 }
   0x7   : > { %p59_p2 = scmp.eq.s32.totalorder %s30702_s18, 0  ;;  %p64_p3 = scmp.ne.s32.totalorder %s30694_s16, %s30690_s15 }
   0x8   : > { %s30767_s23 = scalar_select %p49_p0, %s30698_s17, %s51_s22  }
   0x9   : > { %p60_p4 = por %p59_p2, %p58_p1  ;;  %p65_p5 = scmp.eq.s32.totalorder %s30754_s19, 0 }
   0xa   : > { %p28456_p6 = scmp.lt.s32.totalorder %s30702_s18, 24  ;;  %s166_s25 = sand.u32 1, %s30698_s17  }
   0xb   : > { %p30771_p7 = por %p65_p5, %p64_p3  ;;  %s23566_s26 = sshll.u32 %s166_s25, 14 }
   0xc   : > { %s25629_s27 = sshll.u32 %s30702_s18, 18  ;;  %s170_s5 = scalar_lea.vmem [#allocation3], %s23566_s26 }
   0xd   : > { %s30780_s30 = scalar_lea.hbm %s33288_s1, %s25629_s27  ;;  %s177_s6 = sshll.u32 %s170_s5, 4  ;;  %s30782_s6 = int_to_ptr.vmem [resolvable:$true] %s177_s6 }
   0xe   : > { %p30784_p8 = pnand %p28456_p6, %p60_p4  ;;  %s30789_s8 = scalar_lea.sflag [#allocation4], %s166_s25 }
   0xf   : > { %s30608_s9 = scalar_lea.hbm %s30780_s30, 262144  ;;  %s30613_s12 = scalar_lea.hbm %s33288_s1, 6291456 }
  0x10   : > { %p30609_p10 = scmp.ne.s32.totalorder %s30780_s30, %s30608_s9  ;;  %p30610_p11 = pneg %p30784_p8 }
  0x11   : > { %p30614_p0 = scmp.lt.u32.totalorder %s30780_s30, %s33288_s1  ;;  %p30615_p1 = scmp.lt.u32.totalorder %s30613_s12, %s30608_s9 }
  0x12   : > { %p30611_p12 = pnand %p30610_p11, %p30609_p10  ;;  %p30617_p3 = scmp.lt.u32.totalorder %s30608_s9, %s30780_s30 }
  0x13   : > { %p30616_p2 = por %p30615_p1, %p30614_p0 }
  0x14   : > { %p30612_p13 = pneg %p30611_p12 }
  0x15   : > { %p30618_p4 = por %p30617_p3, %p30616_p2 }
  0x17   : > { %p30619_p5 = pnand %p30618_p4, %p30612_p13 }
  0x19   : > { %30622 = shalt.err (!%p30619_p5)
}
  0x1a   : > { %s30623_s15 = scalar_lea.vmem %s30782_s6, 262144  ;;  %s30704_s21 = smov [#allocation3]  }
  0x1b   : > { %p30624_p6 = scmp.ne.s32.totalorder %s30782_s6, %s30623_s15  ;;  %s30628_s22 = sshll.u32 %s30704_s21, 4  ;;  %s30629_s22 = int_to_ptr.vmem [resolvable:$false] %s30628_s22 }
  0x1c   : > { %s30630_s25 = scalar_lea.vmem %s30629_s22, 524288  ;;  %p30631_p9 = scmp.lt.s32.totalorder %s30782_s6, %s30629_s22 }
  0x1d   : > { %p30626_p10 = pnand %p30624_p6, %p30610_p11  ;;  %p30632_p0 = scmp.lt.s32.totalorder %s30630_s25, %s30623_s15 }
  0x1f   : > { %p30627_p12 = pneg %p30626_p10  ;;  %p30633_p1 = por %p30632_p0, %p30631_p9 }
  0x21   : > { %p30634_p2 = pnand %p30633_p1, %p30627_p12 }
  0x23   : > { %30637 = shalt.err (!%p30634_p2)
}
  0x24   : > { %s30705_s26 = smov 64   ;;  %s30706_s27 = smov 4  }
  0x25   : > { %28455 = dma.hbm_to_vmem [thread:$0]  (!%p30784_p8), %s30780_s30, 262144, %s30782_s6, %s30789_s8, %s30705_s26, %s30705_s26, %s30706_s27  }
  0x26   : > { %p185_p11 = scmp.lt.s32.totalorder %s30702_s18, 25  ;;  %p33294_p13 = scmp.ge.s32.totalorder %s30702_s18, 1 }
  0x28   : > { %p186_p3 = pnand %p33294_p13, %p185_p11 }
  0x29   : > { %s191_s28 = sand.u32 (!%p186_p3), 1, %s30694_s16  }
  0x2a   : > { %189 = sbr.rel (%p186_p3) target bundleno = 2369 (0x941), region = 36  ;;  %s23570_s29 = sshll.u32 (!%p186_p3), %s191_s28, 14 }
  0x2b   : > { %s192_s5 = scalar_lea.sflag (!%p186_p3), [#allocation4], %s191_s28  ;;  %s30821_s9 = scalar_lea.vmem (!%p186_p3), [#allocation3], %s23570_s29 }
  0x31   : > { %30681 = dma.done.wait (%p30771_p7), %s192_s5, 262144  }
  0x32   : > { %30683 = vsyncadd (%p30771_p7), %s192_s5, 4294705152  ;;  %s23571_s10 = sshll.u32 %s30754_s19, 8  ;;  %p23573_p8 = scmp.ne.s32.totalorder %s30754_s19, 0 }
  0x33   : > { %p221_p9 = scmp.lt.s32.totalorder %s23571_s10, 6143  ;;  %vm232_vm0 = vcmask (!%p23573_p8), 17408   ;;  %v30707_v0 = vmov (!%p23573_p8), 0.0  }
  0x34   : > { %231 = sbr.rel (%p23573_p8) target bundleno = 59 (0x3b), region = 44  ;;  %233 = vst.msk [vmem:[#allocation2] sm:$0x3] (!%p23573_p8), %vm232_vm0, %v30707_v0 }
  0x35   : > { %s33300_s10 = smov (!%p221_p9, %s23571_s10), 6143 }
  0x36   : > { %s23572_s30 = sshll.u32 %s33300_s10, 1 }
  0x37   : > { %s30831_s7 = scalar_lea.vmem %s33287_s0, %s23572_s30 }
  0x3b PF: > { %v28496_v1 = vld [vmem:[%s30821_s9 + $0x40] sm:$0xff]   ;;  %v28500_v5 = vld [vmem:[%s30821_s9 + $0x48] sm:$0xff]   ;;  %v28504_v9 = vld [vmem:[%s30821_s9 + $0x50] sm:$0xff]   ;;  %v367_v29 = vlaneseq  ;;  %v30708_v37 = vmov 1983009808   ;;  %vm23468_vm1 = vcmask 17408  }
  0x3c   : > { %v28497_v2 = vld [vmem:[%s30821_s9 + $0xc0] sm:$0xff]   ;;  %25630 = vmatprep.subr.bf16.mxu0 %v28496_v1  ;;  %v28501_v6 = vld [vmem:[%s30821_s9 + $0xc8] sm:$0xff]   ;;  %v28505_v10 = vld [vmem:[%s30821_s9 + $0xd0] sm:$0xff]   ;;  %v365_v38 = vunpack.c.l.s4 %v30708_v37  ;;  %p25622_p7 = scmp.ne.s32.totalorder %s30754_s19, 23 }
  0x3d   : > { %v28498_v3 = vld [vmem:[%s30821_s9] sm:$0xff]   ;;  %25652 = vmatprep.subr.bf16.mxu1 %v28497_v2  ;;  %v28502_v7 = vld [vmem:[%s30821_s9 + $0x8] sm:$0xff]   ;;  %v28506_v11 = vld [vmem:[%s30821_s9 + $0x10] sm:$0xff]   ;;  %v368_v34 = vshrl.u32 %v367_v29, 7 }
  0x3e   : > { %v28499_v4 = vld [vmem:[%s30821_s9 + $0x80] sm:$0xff]   ;;  %25631 = vmatpush3.bf16.msra.mxu0 %v28498_v3  ;;  %v28503_v8 = vld [vmem:[%s30821_s9 + $0x88] sm:$0xff]   ;;  %v28507_v12 = vld [vmem:[%s30821_s9 + $0x90] sm:$0xff]   ;;  %v366_v40 = vunpack.c.0.s8 %v365_v38 }
  0x3f   : > { %25653 = vmatpush3.bf16.msra.mxu1 %v28499_v4  ;;  %25632 = vmatprep.subr.bf16.mxu0 %v28500_v5  ;;  %v28508_v13 = vld [vmem:[%s30821_s9 + $0x58] sm:$0xff]   ;;  %v28512_v17 = vld [vmem:[%s30821_s9 + $0x60] sm:$0xff]   ;;  %v28516_v21 = vld [vmem:[%s30821_s9 + $0x68] sm:$0xff]  }
  0x40   : > { %25654 = vmatprep.subr.bf16.mxu1 %v28501_v6  ;;  %v28509_v14 = vld [vmem:[%s30821_s9 + $0xd8] sm:$0xff]   ;;  %v28513_v18 = vld [vmem:[%s30821_s9 + $0xe0] sm:$0xff]   ;;  %v28517_v22 = vld [vmem:[%s30821_s9 + $0xe8] sm:$0xff]   ;;  %v30869_v42 = vsub.s32 %v366_v40, %v368_v34 }
  0x41   : > { %v28510_v15 = vld [vmem:[%s30821_s9 + $0x18] sm:$0xff]   ;;  %v28514_v19 = vld [vmem:[%s30821_s9 + $0x20] sm:$0xff]   ;;  %v28518_v23 = vld [vmem:[%s30821_s9 + $0x28] sm:$0xff]  }
  0x42   : > { %25633 = vmatpush3.bf16.msra.mxu0 %v28502_v7  ;;  %v28511_v16 = vld [vmem:[%s30821_s9 + $0x98] sm:$0xff]   ;;  %v28515_v20 = vld [vmem:[%s30821_s9 + $0xa0] sm:$0xff]   ;;  %v28519_v24 = vld [vmem:[%s30821_s9 + $0xa8] sm:$0xff]  }
  0x43   : > { %25655 = vmatpush3.bf16.msra.mxu1 %v28503_v8  ;;  %25634 = vmatprep.subr.bf16.mxu0 %v28504_v9  ;;  %v28520_v25 = vld [vmem:[%s30821_s9 + $0x70] sm:$0xff]   ;;  %v28524_v30 = vld [vmem:[%s30821_s9 + $0x78] sm:$0xff]   ;;  %v28529_v36 = vld [vmem:[%s30821_s9 + $0x140] sm:$0xff]  }
  0x44   : > { %25656 = vmatprep.subr.bf16.mxu1 %v28505_v10  ;;  %v28521_v26 = vld [vmem:[%s30821_s9 + $0xf0] sm:$0xff]   ;;  %v28525_v31 = vld [vmem:[%s30821_s9 + $0xf8] sm:$0xff]   ;;  %v28530_v39 = vld [vmem:[%s30821_s9 + $0x1c0] sm:$0xff]  }
  0x45   : > { %v28522_v27 = vld [vmem:[%s30821_s9 + $0x30] sm:$0xff]   ;;  %v28526_v32 = vld [vmem:[%s30821_s9 + $0x38] sm:$0xff]   ;;  %v28531_v47 = vld [vmem:[%s30821_s9 + $0x100] sm:$0xff]  }
  0x46   : > { %25635 = vmatpush3.bf16.msra.mxu0 %v28506_v11  ;;  %v28523_v28 = vld [vmem:[%s30821_s9 + $0xb0] sm:$0xff]   ;;  %v28527_v33 = vld [vmem:[%s30821_s9 + $0xb8] sm:$0xff]   ;;  %v28532_v50 = vld [vmem:[%s30821_s9 + $0x180] sm:$0xff]  }
  0x47   : > { %25657 = vmatpush3.bf16.msra.mxu1 %v28507_v12  ;;  %25636 = vmatprep.subr.bf16.mxu0 %v28508_v13  ;;  %v235_v35 = vld [vmem:[%s30831_s7] sm:$0xff]  ;;  %v28533_v53 = vld [vmem:[%s30821_s9 + $0x148] sm:$0xff]   ;;  %v28537_v57 = vld [vmem:[%s30821_s9 + $0x150] sm:$0xff]  }
  0x48   : > { %25658 = vmatprep.subr.bf16.mxu1 %v28509_v14  ;;  %v363_v41 = vcombine.high %v235_v35, %v235_v35  ;;  %v370_v43 = vrot.slane %v235_v35, %v30869_v42  ;;  %v28534_v54 = vld [vmem:[%s30821_s9 + $0x1c8] sm:$0xff]   ;;  %v28538_v58 = vld [vmem:[%s30821_s9 + $0x1d0] sm:$0xff]   ;;  %v28541_v61 = vld [vmem:[%s30821_s9 + $0x158] sm:$0xff]  }
  0x49   : > { %v28535_v55 = vld [vmem:[%s30821_s9 + $0x108] sm:$0xff]   ;;  %v28539_v59 = vld [vmem:[%s30821_s9 + $0x110] sm:$0xff]   ;;  %v28542_v62 = vld [vmem:[%s30821_s9 + $0x1d8] sm:$0xff]  }
  0x4a   : > { %25637 = vmatpush3.bf16.msra.mxu0 %v28510_v15  ;;  %v377_v44 = vrot.slane %v363_v41, %v30869_v42  ;;  %v378_v45 = vcombine.high %v370_v43, %v370_v43  ;;  %v1707_v48 = vpack.c.bf16 %v370_v43, %v370_v43  ;;  %v28536_v56 = vld [vmem:[%s30821_s9 + $0x188] sm:$0xff]   ;;  %v28540_v60 = vld [vmem:[%s30821_s9 + $0x190] sm:$0xff]   ;;  %v28543_v63 = vld [vmem:[%s30821_s9 + $0x118] sm:$0xff]  }
  0x4b   : > { %25659 = vmatpush3.bf16.msra.mxu1 %v28511_v16  ;;  %25638 = vmatprep.subr.bf16.mxu0 %v28512_v17  ;;  %v28544_v0 = vld [vmem:[%s30821_s9 + $0x198] sm:$0xff]   ;;  %v28545_v1 = vld [vmem:[%s30821_s9 + $0x160] sm:$0xff]   ;;  %v28549_v5 = vld [vmem:[%s30821_s9 + $0x168] sm:$0xff]  }
  0x4c   : > { %25660 = vmatprep.subr.bf16.mxu1 %v28513_v18  ;;  %v379_v46 = vcombine.high %v377_v44, %v377_v44  ;;  %v1709_v49 = vpack.c.bf16 %v377_v44, %v377_v44  ;;  %v1708_v51 = vpack.c.bf16 %v378_v45, %v378_v45  ;;  %v28546_v2 = vld [vmem:[%s30821_s9 + $0x1e0] sm:$0xff]   ;;  %v28550_v6 = vld [vmem:[%s30821_s9 + $0x1e8] sm:$0xff]   ;;  %v28553_v9 = vld [vmem:[%s30821_s9 + $0x170] sm:$0xff]  }
  0x4d   : > { %v28547_v3 = vld [vmem:[%s30821_s9 + $0x120] sm:$0xff]   ;;  %v28551_v7 = vld [vmem:[%s30821_s9 + $0x128] sm:$0xff]   ;;  %v28554_v10 = vld [vmem:[%s30821_s9 + $0x1f0] sm:$0xff]  }
  0x4e   : > { %25639 = vmatpush3.bf16.msra.mxu0 %v28514_v19  ;;  %v1710_v52 = vpack.c.bf16 %v379_v46, %v379_v46  ;;  %18379 = vmatprep.mubr.bf16.mxu0 %v1708_v51  ;;  %v28548_v4 = vld [vmem:[%s30821_s9 + $0x1a0] sm:$0xff]   ;;  %v28552_v8 = vld [vmem:[%s30821_s9 + $0x1a8] sm:$0xff]   ;;  %v28555_v12 = vld [vmem:[%s30821_s9 + $0x130] sm:$0xff]  }
  0x4f   : > { %25661 = vmatpush3.bf16.msra.mxu1 %v28515_v20  ;;  %25640 = vmatprep.subr.bf16.mxu0 %v28516_v21  ;;  %v236_v11 = vld [vmem:[%s30831_s7 + $0x8] sm:$0xff]  ;;  %v28556_v15 = vld [vmem:[%s30821_s9 + $0x1b0] sm:$0xff]   ;;  %v28557_v16 = vld [vmem:[%s30821_s9 + $0x178] sm:$0xff]  }
  0x50   : > { %25662 = vmatprep.subr.bf16.mxu1 %v28517_v22  ;;  %18419 = vmatprep.mubr.bf16.mxu1 %v1710_v52  ;;  %v387_v13 = vrot.slane %v236_v11, %v30869_v42  ;;  %v380_v14 = vcombine.high %v236_v11, %v236_v11  ;;  %v28558_v19 = vld [vmem:[%s30821_s9 + $0x1f8] sm:$0xff]   ;;  %v28569_v34 = vld [vmem:[%s30821_s9 + $0x288] sm:$0xff]   ;;  %v28570_v35 = vld [vmem:[%s30821_s9 + $0x250] sm:$0xff]  }
  0x51   : > { %v28559_v20 = vld [vmem:[%s30821_s9 + $0x138] sm:$0xff]   ;;  %v28572_v37 = vld [vmem:[%s30821_s9 + $0x210] sm:$0xff]   ;;  %v28578_v44 = vld [vmem:[%s30821_s9 + $0x260] sm:$0xff]  }
  0x52   : > { %25641 = vmatpush3.bf16.msra.mxu0 %v28518_v23  ;;  %v395_v17 = vcombine.high %v387_v13, %v387_v13  ;;  %v394_v18 = vrot.slane %v380_v14, %v30869_v42  ;;  %v28560_v23 = vld [vmem:[%s30821_s9 + $0x1b8] sm:$0xff]   ;;  %v28573_v38 = vld [vmem:[%s30821_s9 + $0x290] sm:$0xff]   ;;  %v28579_v45 = vld [vmem:[%s30821_s9 + $0x2e0] sm:$0xff]  }
  0x53   : > { %25663 = vmatpush3.bf16.msra.mxu1 %v28519_v24  ;;  %25642 = vmatprep.subr.bf16.mxu0 %v28520_v25  ;;  %v28562_v25 = vld [vmem:[%s30821_s9 + $0x240] sm:$0xff]   ;;  %v28575_v40 = vld [vmem:[%s30821_s9 + $0x2d8] sm:$0xff]   ;;  %v28585_v51 = vld [vmem:[%s30821_s9 + $0x2a8] sm:$0xff]  }
  0x54   : > { %25664 = vmatprep.subr.bf16.mxu1 %v28521_v26  ;;  %v1712_v21 = vpack.c.bf16 %v395_v17, %v395_v17  ;;  %v396_v22 = vcombine.high %v394_v18, %v394_v18  ;;  %v28563_v26 = vld [vmem:[%s30821_s9 + $0x2c0] sm:$0xff]   ;;  %v1713_v29 = vpack.c.bf16 %v394_v18, %v394_v18  ;;  %v28576_v41 = vld [vmem:[%s30821_s9 + $0x218] sm:$0xff]   ;;  %v28586_v52 = vld [vmem:[%s30821_s9 + $0x270] sm:$0xff]  }
  0x55   : > { %v28577_v43 = vld [vmem:[%s30821_s9 + $0x298] sm:$0xff]   ;;  %v28580_v46 = vld [vmem:[%s30821_s9 + $0x220] sm:$0xff]   ;;  %v28600_v11 = vld [vmem:[%s30821_s9 + $0x3c8] sm:$0xff]  }
  0x56   : > { %25643 = vmatpush3.bf16.msra.mxu0 %v28522_v27  ;;  %v1714_v24 = vpack.c.bf16 %v396_v22, %v396_v22  ;;  %v28564_v27 = vld [vmem:[%s30821_s9 + $0x200] sm:$0xff]   ;;  %v28603_v14 = vld [vmem:[%s30821_s9 + $0x350] sm:$0xff]   ;;  %v28607_v18 = vld [vmem:[%s30821_s9 + $0x358] sm:$0xff]  }
  0x57   : > { %25665 = vmatpush3.bf16.msra.mxu1 %v28523_v28  ;;  %25644 = vmatprep.subr.bf16.mxu0 %v28524_v30  ;;  %v1711_v28 = vpack.c.bf16 %v387_v13, %v387_v13  ;;  %v28565_v30 = vld [vmem:[%s30821_s9 + $0x280] sm:$0xff]   ;;  %v28602_v13 = vld [vmem:[%s30821_s9 + $0x388] sm:$0xff]   ;;  %v28606_v17 = vld [vmem:[%s30821_s9 + $0x390] sm:$0xff]  }
  0x58   : > { %25666 = vmatprep.subr.bf16.mxu1 %v28525_v31  ;;  %v28566_v31 = vld [vmem:[%s30821_s9 + $0x248] sm:$0xff]   ;;  %v28611_v22 = vld [vmem:[%s30821_s9 + $0x360] sm:$0xff]  }
  0x5a   : > { %25645 = vmatpush3.bf16.msra.mxu0 %v28526_v32  ;;  %v28567_v32 = vld [vmem:[%s30821_s9 + $0x2c8] sm:$0xff]  }
  0x5b   : > { %25667 = vmatpush3.bf16.msra.mxu1 %v28527_v33  ;;  %25674 = vmatprep.subr.bf16.mxu0 %v28529_v36  ;;  %v28568_v33 = vld [vmem:[%s30821_s9 + $0x208] sm:$0xff]   ;;  %v28571_v36 = vld [vmem:[%s30821_s9 + $0x2d0] sm:$0xff]  }
  0x5c   : > { %25696 = vmatprep.subr.bf16.mxu1 %v28530_v39  ;;  %v28574_v39 = vld [vmem:[%s30821_s9 + $0x258] sm:$0xff]  }
  0x5d   : > { %18380 = vmatmul.mubr.bf16.vlgmr.msra.gmra.mrb[0].mxu0 %v1707_v48  ;;  %v28582_v48 = vld [vmem:[%s30821_s9 + $0x268] sm:$0xff]  }
  0x5e   : > { %18420 = vmatmul.mubr.bf16.vlgmr.msra.gmra.mrb[0].mxu1 %v1709_v49  ;;  %25675 = vmatpush3.bf16.msra.mxu0 %v28531_v47  ;;  %v28581_v47 = vld [vmem:[%s30821_s9 + $0x2a0] sm:$0xff]   ;;  %v28583_v49 = vld [vmem:[%s30821_s9 + $0x2e8] sm:$0xff]  }
  0x5f   : > { %25697 = vmatpush3.bf16.msra.mxu1 %v28532_v50  ;;  %25676 = vmatprep.subr.bf16.mxu0 %v28533_v53  ;;  %v28584_v50 = vld [vmem:[%s30821_s9 + $0x228] sm:$0xff]   ;;  %v28587_v53 = vld [vmem:[%s30821_s9 + $0x2f0] sm:$0xff]  }
  0x60   : > { %25698 = vmatprep.subr.bf16.mxu1 %v28534_v54  ;;  %18459 = vmatprep.mubr.bf16.mxu0 %v1712_v21  ;;  %v237_v54 = vld [vmem:[%s30831_s7 + $0x10] sm:$0xff]  ;;  %v28610_v21 = vld [vmem:[%s30821_s9 + $0x398] sm:$0xff]  }
  0x61   : > { %18499 = vmatprep.mubr.bf16.mxu1 %v1714_v24  ;;  %v28613_v24 = vld [vmem:[%s30821_s9 + $0x320] sm:$0xff]  }
  0x62   : > { %25677 = vmatpush3.bf16.msra.mxu0 %v28535_v55  ;;  %v28588_v55 = vld [vmem:[%s30821_s9 + $0x230] sm:$0xff]  }
  0x63   : > { %25699 = vmatpush3.bf16.msra.mxu1 %v28536_v56  ;;  %25678 = vmatprep.subr.bf16.mxu0 %v28537_v57  ;;  %v404_v56 = vrot.slane %v237_v54, %v30869_v42  ;;  %v397_v57 = vcombine.high %v237_v54, %v237_v54  ;;  %v28633_v54 = vld [vmem:[%s30821_s9 + $0x4c8] sm:$0xff]  }
  0x64   : > { %25700 = vmatprep.subr.bf16.mxu1 %v28538_v58  ;;  %v28589_v58 = vld [vmem:[%s30821_s9 + $0x2b0] sm:$0xff]  }
  0x66   : > { %25679 = vmatpush3.bf16.msra.mxu0 %v28539_v59  ;;  %v28590_v59 = vld [vmem:[%s30821_s9 + $0x278] sm:$0xff]  }
  0x67   : > { %25701 = vmatpush3.bf16.msra.mxu1 %v28540_v60  ;;  %25680 = vmatprep.subr.bf16.mxu0 %v28541_v61  ;;  %v412_v60 = vcombine.high %v404_v56, %v404_v56  ;;  %v411_v61 = vrot.slane %v397_v57, %v30869_v42  ;;  %v28636_v57 = vld [vmem:[%s30821_s9 + $0x450] sm:$0xff]  }
  0x68   : > { %25702 = vmatprep.subr.bf16.mxu1 %v28542_v62  ;;  %v28591_v62 = vld [vmem:[%s30821_s9 + $0x2f8] sm:$0xff]  }
  0x6a   : > { %25681 = vmatpush3.bf16.msra.mxu0 %v28543_v63  ;;  %v28592_v63 = vld [vmem:[%s30821_s9 + $0x238] sm:$0xff]  }
  0x6b   : > { %25703 = vmatpush3.bf16.msra.mxu1 %v28544_v0  ;;  %25682 = vmatprep.subr.bf16.mxu0 %v28545_v1  ;;  %v1716_v0 = vpack.c.bf16 %v412_v60, %v412_v60  ;;  %v413_v1 = vcombine.high %v411_v61, %v411_v61  ;;  %v28639_v60 = vld [vmem:[%s30821_s9 + $0x490] sm:$0xff]  }
  0x6c   : > { %25704 = vmatprep.subr.bf16.mxu1 %v28546_v2  ;;  %v28593_v2 = vld [vmem:[%s30821_s9 + $0x2b8] sm:$0xff]  }
  0x6e   : > { %25683 = vmatpush3.bf16.msra.mxu0 %v28547_v3  ;;  %v1718_v3 = vpack.c.bf16 %v413_v1, %v413_v1  ;;  %v28644_v1 = vld [vmem:[%s30821_s9 + $0x460] sm:$0xff]  }
  0x6f   : > { %25705 = vmatpush3.bf16.msra.mxu1 %v28548_v4  ;;  %25684 = vmatprep.subr.bf16.mxu0 %v28549_v5  ;;  %v28595_v4 = vld [vmem:[%s30821_s9 + $0x340] sm:$0xff]  }
  0x70   : > { %25706 = vmatprep.subr.bf16.mxu1 %v28550_v6  ;;  %v28596_v5 = vld [vmem:[%s30821_s9 + $0x3c0] sm:$0xff]  }
  0x71   : > { %v28597_v6 = vld [vmem:[%s30821_s9 + $0x300] sm:$0xff]  }
  0x72   : > { %25685 = vmatpush3.bf16.msra.mxu0 %v28551_v7  ;;  %v1715_v7 = vpack.c.bf16 %v404_v56, %v404_v56  ;;  %v28635_v56 = vld [vmem:[%s30821_s9 + $0x488] sm:$0xff]  }
  0x73   : > { %25707 = vmatpush3.bf16.msra.mxu1 %v28552_v8  ;;  %25686 = vmatprep.subr.bf16.mxu0 %v28553_v9  ;;  %v1717_v8 = vpack.c.bf16 %v411_v61, %v411_v61  ;;  %v28598_v9 = vld [vmem:[%s30821_s9 + $0x380] sm:$0xff]   ;;  %v28640_v61 = vld [vmem:[%s30821_s9 + $0x458] sm:$0xff]  }
  0x74   : > { %25708 = vmatprep.subr.bf16.mxu1 %v28554_v10  ;;  %v28599_v10 = vld [vmem:[%s30821_s9 + $0x348] sm:$0xff]  }
  0x76   : > { %25687 = vmatpush3.bf16.msra.mxu0 %v28555_v12  ;;  %v28601_v12 = vld [vmem:[%s30821_s9 + $0x308] sm:$0xff]  }
  0x77   : > { %25709 = vmatpush3.bf16.msra.mxu1 %v28556_v15  ;;  %25688 = vmatprep.subr.bf16.mxu0 %v28557_v16  ;;  %v28604_v15 = vld [vmem:[%s30821_s9 + $0x3d0] sm:$0xff]  }
  0x78   : > { %25710 = vmatprep.subr.bf16.mxu1 %v28558_v19  ;;  %v28605_v16 = vld [vmem:[%s30821_s9 + $0x310] sm:$0xff]   ;;  %v28608_v19 = vld [vmem:[%s30821_s9 + $0x3d8] sm:$0xff]  }
  0x7a   : > { %25689 = vmatpush3.bf16.msra.mxu0 %v28559_v20  ;;  %v28609_v20 = vld [vmem:[%s30821_s9 + $0x318] sm:$0xff]  }
  0x7b   : > { %25711 = vmatpush3.bf16.msra.mxu1 %v28560_v23  ;;  %25718 = vmatprep.subr.bf16.mxu0 %v28562_v25  ;;  %v28612_v23 = vld [vmem:[%s30821_s9 + $0x3e0] sm:$0xff]  }
  0x7c   : > { %25740 = vmatprep.subr.bf16.mxu1 %v28563_v26  ;;  %v28614_v25 = vld [vmem:[%s30821_s9 + $0x3a0] sm:$0xff]   ;;  %v28615_v26 = vld [vmem:[%s30821_s9 + $0x368] sm:$0xff]  }
  0x7d   : > { %18460 = vmatmul.mubr.bf16.vlgmr.msra.gmra.mrb[4].mxu0 %v1711_v28  ;;  %v28617_v28 = vld [vmem:[%s30821_s9 + $0x328] sm:$0xff]  }
  0x7e   : > { %18500 = vmatmul.mubr.bf16.vlgmr.msra.gmra.mrb[4].mxu1 %v1713_v29  ;;  %25719 = vmatpush3.bf16.msra.mxu0 %v28564_v27  ;;  %v28616_v27 = vld [vmem:[%s30821_s9 + $0x3e8] sm:$0xff]  }
  0x7f   : > { %25741 = vmatpush3.bf16.msra.mxu1 %v28565_v30  ;;  %25720 = vmatprep.subr.bf16.mxu0 %v28566_v31  ;;  %v28618_v29 = vld [vmem:[%s30821_s9 + $0x3a8] sm:$0xff]   ;;  %v28619_v30 = vld [vmem:[%s30821_s9 + $0x370] sm:$0xff]  }
  0x80   : > { %25742 = vmatprep.subr.bf16.mxu1 %v28567_v32  ;;  %18539 = vmatprep.mubr.bf16.mxu0 %v1716_v0  ;;  %v28620_v31 = vld [vmem:[%s30821_s9 + $0x3f0] sm:$0xff]   ;;  %v28643_v0 = vld [vmem:[%s30821_s9 + $0x498] sm:$0xff]  }
  0x81   : > { %18579 = vmatprep.mubr.bf16.mxu1 %v1718_v3  ;;  %v28621_v32 = vld [vmem:[%s30821_s9 + $0x330] sm:$0xff]   ;;  %v28646_v3 = vld [vmem:[%s30821_s9 + $0x420] sm:$0xff]  }
  0x82   : > { %25721 = vmatpush3.bf16.msra.mxu0 %v28568_v33  ;;  %v238_v33 = vld [vmem:[%s30831_s7 + $0x18] sm:$0xff] }
  0x83   : > { %25743 = vmatpush3.bf16.msra.mxu1 %v28569_v34  ;;  %25722 = vmatprep.subr.bf16.mxu0 %v28570_v35  ;;  %v28622_v34 = vld [vmem:[%s30821_s9 + $0x3b0] sm:$0xff]   ;;  %v421_v35 = vrot.slane %v238_v33, %v30869_v42 }
  0x84   : > { %25744 = vmatprep.subr.bf16.mxu1 %v28571_v36  ;;  %v414_v36 = vcombine.high %v238_v33, %v238_v33  ;;  %v28667_v33 = vld [vmem:[%s30821_s9 + $0x508] sm:$0xff]  }
  0x86   : > { %25723 = vmatpush3.bf16.msra.mxu0 %v28572_v37  ;;  %v28623_v37 = vld [vmem:[%s30821_s9 + $0x378] sm:$0xff]  }
  0x87   : > { %25745 = vmatpush3.bf16.msra.mxu1 %v28573_v38  ;;  %25724 = vmatprep.subr.bf16.mxu0 %v28574_v39  ;;  %v28624_v38 = vld [vmem:[%s30821_s9 + $0x3f8] sm:$0xff]   ;;  %v429_v39 = vcombine.high %v421_v35, %v421_v35 }
  0x88   : > { %25746 = vmatprep.subr.bf16.mxu1 %v28575_v40  ;;  %v428_v40 = vrot.slane %v414_v36, %v30869_v42  ;;  %v28670_v36 = vld [vmem:[%s30821_s9 + $0x5d0] sm:$0xff]  }
  0x8a   : > { %25725 = vmatpush3.bf16.msra.mxu0 %v28576_v41  ;;  %v28625_v41 = vld [vmem:[%s30821_s9 + $0x338] sm:$0xff]  }
  0x8b   : > { %25747 = vmatpush3.bf16.msra.mxu1 %v28577_v43  ;;  %25726 = vmatprep.subr.bf16.mxu0 %v28578_v44  ;;  %v28626_v43 = vld [vmem:[%s30821_s9 + $0x3b8] sm:$0xff]   ;;  %v1720_v44 = vpack.c.bf16 %v429_v39, %v429_v39 }
  0x8c   : > { %25748 = vmatprep.subr.bf16.mxu1 %v28579_v45  ;;  %v430_v45 = vcombine.high %v428_v40, %v428_v40  ;;  %v28673_v39 = vld [vmem:[%s30821_s9 + $0x558] sm:$0xff]  }
  0x8e   : > { %25727 = vmatpush3.bf16.msra.mxu0 %v28580_v46  ;;  %v28628_v46 = vld [vmem:[%s30821_s9 + $0x440] sm:$0xff]  }
  0x8f   : > { %25749 = vmatpush3.bf16.msra.mxu1 %v28581_v47  ;;  %25728 = vmatprep.subr.bf16.mxu0 %v28582_v48  ;;  %v1722_v47 = vpack.c.bf16 %v430_v45, %v430_v45  ;;  %v28629_v48 = vld [vmem:[%s30821_s9 + $0x4c0] sm:$0xff]  }
  0x90   : > { %25750 = vmatprep.subr.bf16.mxu1 %v28583_v49  ;;  %v28630_v49 = vld [vmem:[%s30821_s9 + $0x400] sm:$0xff]  }
  0x91   : > { %v28678_v45 = vld [vmem:[%s30821_s9 + $0x5e0] sm:$0xff]  }
  0x92   : > { %25729 = vmatpush3.bf16.msra.mxu0 %v28584_v50  ;;  %v1719_v50 = vpack.c.bf16 %v421_v35, %v421_v35  ;;  %v28669_v35 = vld [vmem:[%s30821_s9 + $0x550] sm:$0xff]  }
  0x93   : > { %25751 = vmatpush3.bf16.msra.mxu1 %v28585_v51  ;;  %25730 = vmatprep.subr.bf16.mxu0 %v28586_v52  ;;  %v1721_v51 = vpack.c.bf16 %v428_v40, %v428_v40  ;;  %v28631_v52 = vld [vmem:[%s30821_s9 + $0x480] sm:$0xff]   ;;  %v28674_v40 = vld [vmem:[%s30821_s9 + $0x5d8] sm:$0xff]  }
  0x94   : > { %25752 = vmatprep.subr.bf16.mxu1 %v28587_v53  ;;  %v28632_v53 = vld [vmem:[%s30821_s9 + $0x448] sm:$0xff]  }
  0x96   : > { %25731 = vmatpush3.bf16.msra.mxu0 %v28588_v55  ;;  %v28634_v55 = vld [vmem:[%s30821_s9 + $0x408] sm:$0xff]  }
  0x97   : > { %25753 = vmatpush3.bf16.msra.mxu1 %v28589_v58  ;;  %25732 = vmatprep.subr.bf16.mxu0 %v28590_v59  ;;  %v28637_v58 = vld [vmem:[%s30821_s9 + $0x4d0] sm:$0xff]  }
  0x98   : > { %25754 = vmatprep.subr.bf16.mxu1 %v28591_v62  ;;  %v28638_v59 = vld [vmem:[%s30821_s9 + $0x410] sm:$0xff]   ;;  %v28641_v62 = vld [vmem:[%s30821_s9 + $0x4d8] sm:$0xff]  }
  0x9a   : > { %25733 = vmatpush3.bf16.msra.mxu0 %v28592_v63  ;;  %v28642_v63 = vld [vmem:[%s30821_s9 + $0x418] sm:$0xff]  }
  0x9b   : > { %25755 = vmatpush3.bf16.msra.mxu1 %v28593_v2  ;;  %25762 = vmatprep.subr.bf16.mxu0 %v28595_v4  ;;  %v28645_v2 = vld [vmem:[%s30821_s9 + $0x4e0] sm:$0xff]  }
  0x9c   : > { %25784 = vmatprep.subr.bf16.mxu1 %v28596_v5  ;;  %v28647_v4 = vld [vmem:[%s30821_s9 + $0x4a0] sm:$0xff]   ;;  %v28648_v5 = vld [vmem:[%s30821_s9 + $0x468] sm:$0xff]  }
  0x9d   : > { %18540 = vmatmul.mubr.bf16.vlgmr.msra.gmra.mrb[8].mxu0 %v1715_v7  ;;  %v28650_v7 = vld [vmem:[%s30821_s9 + $0x428] sm:$0xff]  }
  0x9e   : > { %18580 = vmatmul.mubr.bf16.vlgmr.msra.gmra.mrb[8].mxu1 %v1717_v8  ;;  %25763 = vmatpush3.bf16.msra.mxu0 %v28597_v6  ;;  %v28649_v6 = vld [vmem:[%s30821_s9 + $0x4e8] sm:$0xff]  }
  0x9f   : > { %25785 = vmatpush3.bf16.msra.mxu1 %v28598_v9  ;;  %25764 = vmatprep.subr.bf16.mxu0 %v28599_v10  ;;  %v28651_v8 = vld [vmem:[%s30821_s9 + $0x4a8] sm:$0xff]   ;;  %v28652_v9 = vld [vmem:[%s30821_s9 + $0x470] sm:$0xff]  }
  0xa0   : > { %25786 = vmatprep.subr.bf16.mxu1 %v28600_v11  ;;  %18619 = vmatprep.mubr.bf16.mxu0 %v1720_v44  ;;  %v28653_v10 = vld [vmem:[%s30821_s9 + $0x4f0] sm:$0xff]   ;;  %v28677_v44 = vld [vmem:[%s30821_s9 + $0x560] sm:$0xff]  }
  0xa1   : > { %18659 = vmatprep.mubr.bf16.mxu1 %v1722_v47  ;;  %v28654_v11 = vld [vmem:[%s30821_s9 + $0x430] sm:$0xff]   ;;  %v28680_v47 = vld [vmem:[%s30821_s9 + $0x5a0] sm:$0xff]  }
  0xa2   : > { %25765 = vmatpush3.bf16.msra.mxu0 %v28601_v12  ;;  %v239_v12 = vld [vmem:[%s30831_s7 + $0x20] sm:$0xff] }
  0xa3   : > { %25787 = vmatpush3.bf16.msra.mxu1 %v28602_v13  ;;  %25766 = vmatprep.subr.bf16.mxu0 %v28603_v14  ;;  %v28655_v13 = vld [vmem:[%s30821_s9 + $0x4b0] sm:$0xff]   ;;  %v438_v14 = vrot.slane %v239_v12, %v30869_v42 }
  0xa4   : > { %25788 = vmatprep.subr.bf16.mxu1 %v28604_v15  ;;  %v431_v15 = vcombine.high %v239_v12, %v239_v12  ;;  %v28700_v12 = vld [vmem:[%s30821_s9 + $0x608] sm:$0xff]  }
  0xa6   : > { %25767 = vmatpush3.bf16.msra.mxu0 %v28605_v16  ;;  %v28656_v16 = vld [vmem:[%s30821_s9 + $0x478] sm:$0xff]  }
  0xa7   : > { %25789 = vmatpush3.bf16.msra.mxu1 %v28606_v17  ;;  %25768 = vmatprep.subr.bf16.mxu0 %v28607_v18  ;;  %v28657_v17 = vld [vmem:[%s30821_s9 + $0x4f8] sm:$0xff]   ;;  %v446_v18 = vcombine.high %v438_v14, %v438_v14 }
  0xa8   : > { %25790 = vmatprep.subr.bf16.mxu1 %v28608_v19  ;;  %v445_v19 = vrot.slane %v431_v15, %v30869_v42  ;;  %v28703_v15 = vld [vmem:[%s30821_s9 + $0x6d0] sm:$0xff]  }
  0xaa   : > { %25769 = vmatpush3.bf16.msra.mxu0 %v28609_v20  ;;  %v28658_v20 = vld [vmem:[%s30821_s9 + $0x438] sm:$0xff]  }
  0xab   : > { %25791 = vmatpush3.bf16.msra.mxu1 %v28610_v21  ;;  %25770 = vmatprep.subr.bf16.mxu0 %v28611_v22  ;;  %v28659_v21 = vld [vmem:[%s30821_s9 + $0x4b8] sm:$0xff]   ;;  %v1724_v22 = vpack.c.bf16 %v446_v18, %v446_v18 }
  0xac   : > { %25792 = vmatprep.subr.bf16.mxu1 %v28612_v23  ;;  %v447_v23 = vcombine.high %v445_v19, %v445_v19  ;;  %v28706_v18 = vld [vmem:[%s30821_s9 + $0x658] sm:$0xff]  }
  0xae   : > { %25771 = vmatpush3.bf16.msra.mxu0 %v28613_v24  ;;  %v28661_v24 = vld [vmem:[%s30821_s9 + $0x540] sm:$0xff]  }
  0xaf   : > { %25793 = vmatpush3.bf16.msra.mxu1 %v28614_v25  ;;  %25772 = vmatprep.subr.bf16.mxu0 %v28615_v26  ;;  %v1726_v25 = vpack.c.bf16 %v447_v23, %v447_v23  ;;  %v28662_v26 = vld [vmem:[%s30821_s9 + $0x5c0] sm:$0xff]  }
  0xb0   : > { %25794 = vmatprep.subr.bf16.mxu1 %v28616_v27  ;;  %v28663_v27 = vld [vmem:[%s30821_s9 + $0x500] sm:$0xff]  }
  0xb1   : > { %v28711_v23 = vld [vmem:[%s30821_s9 + $0x6e0] sm:$0xff]  }
  0xb2   : > { %25773 = vmatpush3.bf16.msra.mxu0 %v28617_v28  ;;  %v1723_v28 = vpack.c.bf16 %v438_v14, %v438_v14  ;;  %v28702_v14 = vld [vmem:[%s30821_s9 + $0x650] sm:$0xff]  }
  0xb3   : > { %25795 = vmatpush3.bf16.msra.mxu1 %v28618_v29  ;;  %25774 = vmatprep.subr.bf16.mxu0 %v28619_v30  ;;  %v1725_v29 = vpack.c.bf16 %v445_v19, %v445_v19  ;;  %v28664_v30 = vld [vmem:[%s30821_s9 + $0x580] sm:$0xff]   ;;  %v28707_v19 = vld [vmem:[%s30821_s9 + $0x6d8] sm:$0xff]  }
  0xb4   : > { %25796 = vmatprep.subr.bf16.mxu1 %v28620_v31  ;;  %v28665_v31 = vld [vmem:[%s30821_s9 + $0x548] sm:$0xff]  }
  0xb6   : > { %25775 = vmatpush3.bf16.msra.mxu0 %v28621_v32  ;;  %v28666_v32 = vld [vmem:[%s30821_s9 + $0x5c8] sm:$0xff]  }
  0xb7   : > { %25797 = vmatpush3.bf16.msra.mxu1 %v28622_v34  ;;  %25776 = vmatprep.subr.bf16.mxu0 %v28623_v37  ;;  %v28668_v34 = vld [vmem:[%s30821_s9 + $0x588] sm:$0xff]   ;;  %v28671_v37 = vld [vmem:[%s30821_s9 + $0x510] sm:$0xff]  }
  0xb8   : > { %25798 = vmatprep.subr.bf16.mxu1 %v28624_v38  ;;  %v28672_v38 = vld [vmem:[%s30821_s9 + $0x590] sm:$0xff]  }
  0xba   : > { %25777 = vmatpush3.bf16.msra.mxu0 %v28625_v41  ;;  %v28675_v41 = vld [vmem:[%s30821_s9 + $0x518] sm:$0xff]  }
  0xbb   : > { %25799 = vmatpush3.bf16.msra.mxu1 %v28626_v43  ;;  %25806 = vmatprep.subr.bf16.mxu0 %v28628_v46  ;;  %v28676_v43 = vld [vmem:[%s30821_s9 + $0x598] sm:$0xff]   ;;  %v28679_v46 = vld [vmem:[%s30821_s9 + $0x520] sm:$0xff]  }
  0xbc   : > { %25828 = vmatprep.subr.bf16.mxu1 %v28629_v48  ;;  %v28681_v48 = vld [vmem:[%s30821_s9 + $0x568] sm:$0xff]  }
  0xbd   : > { %18620 = vmatmul.mubr.bf16.vlgmr.msra.gmra.mrb[12].mxu0 %v1719_v50  ;;  %v28683_v50 = vld [vmem:[%s30821_s9 + $0x528] sm:$0xff]  }
  0xbe   : > { %18660 = vmatmul.mubr.bf16.vlgmr.msra.gmra.mrb[12].mxu1 %v1721_v51  ;;  %25807 = vmatpush3.bf16.msra.mxu0 %v28630_v49  ;;  %v28682_v49 = vld [vmem:[%s30821_s9 + $0x5e8] sm:$0xff]  }
  0xbf   : > { %25829 = vmatpush3.bf16.msra.mxu1 %v28631_v52  ;;  %25808 = vmatprep.subr.bf16.mxu0 %v28632_v53  ;;  %v28684_v51 = vld [vmem:[%s30821_s9 + $0x5a8] sm:$0xff]   ;;  %v28685_v52 = vld [vmem:[%s30821_s9 + $0x570] sm:$0xff]  }
  0xc0   : > { %25830 = vmatprep.subr.bf16.mxu1 %v28633_v54  ;;  %18699 = vmatprep.mubr.bf16.mxu0 %v1724_v22  ;;  %v28686_v53 = vld [vmem:[%s30821_s9 + $0x5f0] sm:$0xff]   ;;  %v28710_v22 = vld [vmem:[%s30821_s9 + $0x660] sm:$0xff]  }
  0xc1   : > { %18739 = vmatprep.mubr.bf16.mxu1 %v1726_v25  ;;  %v28687_v54 = vld [vmem:[%s30821_s9 + $0x530] sm:$0xff]   ;;  %v28713_v25 = vld [vmem:[%s30821_s9 + $0x6a0] sm:$0xff]  }
  0xc2   : > { %25809 = vmatpush3.bf16.msra.mxu0 %v28634_v55  ;;  %v240_v55 = vld [vmem:[%s30831_s7 + $0x28] sm:$0xff] }
  0xc3   : > { %25831 = vmatpush3.bf16.msra.mxu1 %v28635_v56  ;;  %25810 = vmatprep.subr.bf16.mxu0 %v28636_v57  ;;  %v28688_v56 = vld [vmem:[%s30821_s9 + $0x5b0] sm:$0xff]   ;;  %v455_v57 = vrot.slane %v240_v55, %v30869_v42 }
  0xc4   : > { %25832 = vmatprep.subr.bf16.mxu1 %v28637_v58  ;;  %v448_v58 = vcombine.high %v240_v55, %v240_v55  ;;  %v28733_v55 = vld [vmem:[%s30821_s9 + $0x708] sm:$0xff]  }
  0xc6   : > { %25811 = vmatpush3.bf16.msra.mxu0 %v28638_v59  ;;  %v28689_v59 = vld [vmem:[%s30821_s9 + $0x578] sm:$0xff]  }
  0xc7   : > { %25833 = vmatpush3.bf16.msra.mxu1 %v28639_v60  ;;  %25812 = vmatprep.subr.bf16.mxu0 %v28640_v61  ;;  %v28690_v60 = vld [vmem:[%s30821_s9 + $0x5f8] sm:$0xff]   ;;  %v463_v61 = vcombine.high %v455_v57, %v455_v57 }
  0xc8   : > { %25834 = vmatprep.subr.bf16.mxu1 %v28641_v62  ;;  %v462_v62 = vrot.slane %v448_v58, %v30869_v42  ;;  %v28736_v58 = vld [vmem:[%s30821_s9 + $0x7d0] sm:$0xff]  }
  0xca   : > { %25813 = vmatpush3.bf16.msra.mxu0 %v28642_v63  ;;  %v28691_v63 = vld [vmem:[%s30821_s9 + $0x538] sm:$0xff]  }
  0xcb   : > { %25835 = vmatpush3.bf16.msra.mxu1 %v28643_v0  ;;  %25814 = vmatprep.subr.bf16.mxu0 %v28644_v1  ;;  %v28692_v0 = vld [vmem:[%s30821_s9 + $0x5b8] sm:$0xff]   ;;  %v1728_v1 = vpack.c.bf16 %v463_v61, %v463_v61 }
  0xcc   : > { %25836 = vmatprep.subr.bf16.mxu1 %v28645_v2  ;;  %v464_v2 = vcombine.high %v462_v62, %v462_v62  ;;  %v28739_v61 = vld [vmem:[%s30821_s9 + $0x758] sm:$0xff]  }
  0xce   : > { %25815 = vmatpush3.bf16.msra.mxu0 %v28646_v3  ;;  %v28694_v3 = vld [vmem:[%s30821_s9 + $0x640] sm:$0xff]  }
  0xcf   : > { %25837 = vmatpush3.bf16.msra.mxu1 %v28647_v4  ;;  %25816 = vmatprep.subr.bf16.mxu0 %v28648_v5  ;;  %v1730_v4 = vpack.c.bf16 %v464_v2, %v464_v2  ;;  %v28695_v5 = vld [vmem:[%s30821_s9 + $0x6c0] sm:$0xff]  }
  0xd0   : > { %25838 = vmatprep.subr.bf16.mxu1 %v28649_v6  ;;  %v28696_v6 = vld [vmem:[%s30821_s9 + $0x600] sm:$0xff]  }
  0xd1   : > { %v28744_v2 = vld [vmem:[%s30821_s9 + $0x7e0] sm:$0xff]  }
  0xd2   : > { %25817 = vmatpush3.bf16.msra.mxu0 %v28650_v7  ;;  %v1727_v7 = vpack.c.bf16 %v455_v57, %v455_v57  ;;  %v28735_v57 = vld [vmem:[%s30821_s9 + $0x750] sm:$0xff]  }
  0xd3   : > { %25839 = vmatpush3.bf16.msra.mxu1 %v28651_v8  ;;  %25818 = vmatprep.subr.bf16.mxu0 %v28652_v9  ;;  %v1729_v8 = vpack.c.bf16 %v462_v62, %v462_v62  ;;  %v28697_v9 = vld [vmem:[%s30821_s9 + $0x680] sm:$0xff]   ;;  %v28740_v62 = vld [vmem:[%s30821_s9 + $0x7d8] sm:$0xff]  }
  0xd4   : > { %25840 = vmatprep.subr.bf16.mxu1 %v28653_v10  ;;  %v28698_v10 = vld [vmem:[%s30821_s9 + $0x648] sm:$0xff]  }
  0xd6   : > { %25819 = vmatpush3.bf16.msra.mxu0 %v28654_v11  ;;  %v28699_v11 = vld [vmem:[%s30821_s9 + $0x6c8] sm:$0xff]  }
  0xd7   : > { %25841 = vmatpush3.bf16.msra.mxu1 %v28655_v13  ;;  %25820 = vmatprep.subr.bf16.mxu0 %v28656_v16  ;;  %v28701_v13 = vld [vmem:[%s30821_s9 + $0x688] sm:$0xff]   ;;  %v28704_v16 = vld [vmem:[%s30821_s9 + $0x610] sm:$0xff]  }
  0xd8   : > { %25842 = vmatprep.subr.bf16.mxu1 %v28657_v17  ;;  %v28705_v17 = vld [vmem:[%s30821_s9 + $0x690] sm:$0xff]  }
  0xda   : > { %25821 = vmatpush3.bf16.msra.mxu0 %v28658_v20  ;;  %v28708_v20 = vld [vmem:[%s30821_s9 + $0x618] sm:$0xff]  }
  0xdb   : > { %25843 = vmatpush3.bf16.msra.mxu1 %v28659_v21  ;;  %25850 = vmatprep.subr.bf16.mxu0 %v28661_v24  ;;  %v28709_v21 = vld [vmem:[%s30821_s9 + $0x698] sm:$0xff]   ;;  %v28712_v24 = vld [vmem:[%s30821_s9 + $0x620] sm:$0xff]  }
  0xdc   : > { %25872 = vmatprep.subr.bf16.mxu1 %v28662_v26  ;;  %v28714_v26 = vld [vmem:[%s30821_s9 + $0x668] sm:$0xff]  }
  0xdd   : > { %18700 = vmatmul.mubr.bf16.vlgmr.msra.gmra.mrb[16].mxu0 %v1723_v28  ;;  %v28716_v28 = vld [vmem:[%s30821_s9 + $0x628] sm:$0xff]  }
  0xde   : > { %18740 = vmatmul.mubr.bf16.vlgmr.msra.gmra.mrb[16].mxu1 %v1725_v29  ;;  %25851 = vmatpush3.bf16.msra.mxu0 %v28663_v27  ;;  %v28715_v27 = vld [vmem:[%s30821_s9 + $0x6e8] sm:$0xff]  }
  0xdf   : > { %25873 = vmatpush3.bf16.msra.mxu1 %v28664_v30  ;;  %25852 = vmatprep.subr.bf16.mxu0 %v28665_v31  ;;  %v28717_v29 = vld [vmem:[%s30821_s9 + $0x6a8] sm:$0xff]   ;;  %v28718_v30 = vld [vmem:[%s30821_s9 + $0x670] sm:$0xff]  }
  0xe0   : > { %25874 = vmatprep.subr.bf16.mxu1 %v28666_v32  ;;  %18779 = vmatprep.mubr.bf16.mxu0 %v1728_v1  ;;  %v28719_v31 = vld [vmem:[%s30821_s9 + $0x6f0] sm:$0xff]   ;;  %v28743_v1 = vld [vmem:[%s30821_s9 + $0x760] sm:$0xff]  }
  0xe1   : > { %18819 = vmatprep.mubr.bf16.mxu1 %v1730_v4  ;;  %v28720_v32 = vld [vmem:[%s30821_s9 + $0x630] sm:$0xff]   ;;  %v28746_v4 = vld [vmem:[%s30821_s9 + $0x7a0] sm:$0xff]  }
  0xe2   : > { %25853 = vmatpush3.bf16.msra.mxu0 %v28667_v33  ;;  %v28721_v33 = vld [vmem:[%s30821_s9 + $0x6b0] sm:$0xff]  }
  0xe3   : > { %25875 = vmatpush3.bf16.msra.mxu1 %v28668_v34  ;;  %25854 = vmatprep.subr.bf16.mxu0 %v28669_v35  ;;  %v241_v34 = vld [vmem:[%s30831_s7 + $0x30] sm:$0xff]  ;;  %v28722_v35 = vld [vmem:[%s30821_s9 + $0x678] sm:$0xff]  }
  0xe4   : > { %25876 = vmatprep.subr.bf16.mxu1 %v28670_v36  ;;  %v472_v36 = vrot.slane %v241_v34, %v30869_v42 }
  0xe6   : > { %25855 = vmatpush3.bf16.msra.mxu0 %v28671_v37  ;;  %v465_v37 = vcombine.high %v241_v34, %v241_v34  ;;  %v28760_v34 = vld [vmem:[%s30821_s9 + $0x840] sm:$0xff]  }
  0xe7   : > { %25877 = vmatpush3.bf16.msra.mxu1 %v28672_v38  ;;  %25856 = vmatprep.subr.bf16.mxu0 %v28673_v39  ;;  %v28723_v38 = vld [vmem:[%s30821_s9 + $0x6f8] sm:$0xff]  }
  0xe8   : > { %25878 = vmatprep.subr.bf16.mxu1 %v28674_v40  ;;  %v28724_v39 = vld [vmem:[%s30821_s9 + $0x638] sm:$0xff]   ;;  %v480_v40 = vcombine.high %v472_v36, %v472_v36 }
  0xea   : > { %25857 = vmatpush3.bf16.msra.mxu0 %v28675_v41  ;;  %v479_v41 = vrot.slane %v465_v37, %v30869_v42  ;;  %v28762_v37 = vld [vmem:[%s30821_s9 + $0x800] sm:$0xff]  }
  0xeb   : > { %25879 = vmatpush3.bf16.msra.mxu1 %v28676_v43  ;;  %25858 = vmatprep.subr.bf16.mxu0 %v28677_v44  ;;  %v28725_v43 = vld [vmem:[%s30821_s9 + $0x6b8] sm:$0xff]   ;;  %v1732_v44 = vpack.c.bf16 %v480_v40, %v480_v40 }
  0xec   : > { %25880 = vmatprep.subr.bf16.mxu1 %v28678_v45  ;;  %v481_v45 = vcombine.high %v479_v41, %v479_v41 }
  0xee   : > { %25859 = vmatpush3.bf16.msra.mxu0 %v28679_v46  ;;  %v28727_v46 = vld [vmem:[%s30821_s9 + $0x740] sm:$0xff]  }
  0xef   : > { %25881 = vmatpush3.bf16.msra.mxu1 %v28680_v47  ;;  %25860 = vmatprep.subr.bf16.mxu0 %v28681_v48  ;;  %v28728_v47 = vld [vmem:[%s30821_s9 + $0x7c0] sm:$0xff]   ;;  %v1734_v48 = vpack.c.bf16 %v481_v45, %v481_v45  ;;  %v28766_v45 = vld [vmem:[%s30821_s9 + $0x808] sm:$0xff]  }
  0xf0   : > { %25882 = vmatprep.subr.bf16.mxu1 %v28682_v49  ;;  %v28729_v49 = vld [vmem:[%s30821_s9 + $0x700] sm:$0xff]  }
  0xf2   : > { %25861 = vmatpush3.bf16.msra.mxu0 %v28683_v50  ;;  %v1731_v50 = vpack.c.bf16 %v472_v36, %v472_v36  ;;  %v28761_v36 = vld [vmem:[%s30821_s9 + $0x8c0] sm:$0xff]  }
  0xf3   : > { %25883 = vmatpush3.bf16.msra.mxu1 %v28684_v51  ;;  %25862 = vmatprep.subr.bf16.mxu0 %v28685_v52  ;;  %v1733_v51 = vpack.c.bf16 %v479_v41, %v479_v41  ;;  %v28730_v52 = vld [vmem:[%s30821_s9 + $0x780] sm:$0xff]  }
  0xf4   : > { %25884 = vmatprep.subr.bf16.mxu1 %v28686_v53  ;;  %v28731_v53 = vld [vmem:[%s30821_s9 + $0x748] sm:$0xff]   ;;  %v28763_v41 = vld [vmem:[%s30821_s9 + $0x880] sm:$0xff]  }
  0xf6   : > { %25863 = vmatpush3.bf16.msra.mxu0 %v28687_v54  ;;  %v28732_v54 = vld [vmem:[%s30821_s9 + $0x7c8] sm:$0xff]  }
  0xf7   : > { %25885 = vmatpush3.bf16.msra.mxu1 %v28688_v56  ;;  %25864 = vmatprep.subr.bf16.mxu0 %v28689_v59  ;;  %v28734_v56 = vld [vmem:[%s30821_s9 + $0x788] sm:$0xff]   ;;  %v28737_v59 = vld [vmem:[%s30821_s9 + $0x710] sm:$0xff]  }
  0xf8   : > { %25886 = vmatprep.subr.bf16.mxu1 %v28690_v60  ;;  %v28738_v60 = vld [vmem:[%s30821_s9 + $0x790] sm:$0xff]  }
  0xfa   : > { %25865 = vmatpush3.bf16.msra.mxu0 %v28691_v63  ;;  %v28741_v63 = vld [vmem:[%s30821_s9 + $0x718] sm:$0xff]  }
  0xfb   : > { %25887 = vmatpush3.bf16.msra.mxu1 %v28692_v0  ;;  %25894 = vmatprep.subr.bf16.mxu0 %v28694_v3  ;;  %v28742_v0 = vld [vmem:[%s30821_s9 + $0x798] sm:$0xff]   ;;  %v28745_v3 = vld [vmem:[%s30821_s9 + $0x720] sm:$0xff]  }
  0xfc   : > { %25916 = vmatprep.subr.bf16.mxu1 %v28695_v5  ;;  %v28747_v5 = vld [vmem:[%s30821_s9 + $0x768] sm:$0xff]  }
  0xfd   : > { %18780 = vmatmul.mubr.bf16.vlgmr.msra.gmra.mrb[20].mxu0 %v1727_v7  ;;  %v28749_v7 = vld [vmem:[%s30821_s9 + $0x728] sm:$0xff]  }
  0xfe   : > { %18820 = vmatmul.mubr.bf16.vlgmr.msra.gmra.mrb[20].mxu1 %v1729_v8  ;;  %25895 = vmatpush3.bf16.msra.mxu0 %v28696_v6  ;;  %v28748_v6 = vld [vmem:[%s30821_s9 + $0x7e8] sm:$0xff]  }
  0xff   : > { %25917 = vmatpush3.bf16.msra.mxu1 %v28697_v9  ;;  %25896 = vmatprep.subr.bf16.mxu0 %v28698_v10  ;;  %v28750_v8 = vld [vmem:[%s30821_s9 + $0x7a8] sm:$0xff]   ;;  %v28751_v9 = vld [vmem:[%s30821_s9 + $0x770] sm:$0xff]  }
 0x100   : > { %25918 = vmatprep.subr.bf16.mxu1 %v28699_v11  ;;  %18859 = vmatprep.mubr.bf16.mxu0 %v1732_v44  ;;  %v28752_v10 = vld [vmem:[%s30821_s9 + $0x7f0] sm:$0xff]   ;;  %v28765_v44 = vld [vmem:[%s30821_s9 + $0x8c8] sm:$0xff]  }
 0x101   : > { %18899 = vmatprep.mubr.bf16.mxu1 %v1734_v48  ;;  %v28769_v48 = vld [vmem:[%s30821_s9 + $0x8d0] sm:$0xff]  }
 0x102   : > { %25897 = vmatpush3.bf16.msra.mxu0 %v28700_v12 }
 0x103   : > { %25919 = vmatpush3.bf16.msra.mxu1 %v28701_v13  ;;  %25898 = vmatprep.subr.bf16.mxu0 %v28702_v14  ;;  %v28753_v13 = vld [vmem:[%s30821_s9 + $0x730] sm:$0xff]  }
 0x104   : > { %25920 = vmatprep.subr.bf16.mxu1 %v28703_v15  ;;  %v28754_v14 = vld [vmem:[%s30821_s9 + $0x7b0] sm:$0xff]  }
 0x106   : > { %25899 = vmatpush3.bf16.msra.mxu0 %v28704_v16 }
 0x107   : > { %25921 = vmatpush3.bf16.msra.mxu1 %v28705_v17  ;;  %25900 = vmatprep.subr.bf16.mxu0 %v28706_v18  ;;  %v28755_v17 = vld [vmem:[%s30821_s9 + $0x778] sm:$0xff]  }
 0x108   : > { %25922 = vmatprep.subr.bf16.mxu1 %v28707_v19  ;;  %v28756_v18 = vld [vmem:[%s30821_s9 + $0x7f8] sm:$0xff]  }
 0x109   : > { %v242_v19 = vld [vmem:[%s30831_s7 + $0x38] sm:$0xff] }
 0x10a   : > { %25901 = vmatpush3.bf16.msra.mxu0 %v28708_v20 }
 0x10b   : > { %25923 = vmatpush3.bf16.msra.mxu1 %v28709_v21  ;;  %25902 = vmatprep.subr.bf16.mxu0 %v28710_v22 }
 0x10c   : > { %25924 = vmatprep.subr.bf16.mxu1 %v28711_v23 }
 0x10e   : > { %25903 = vmatpush3.bf16.msra.mxu0 %v28712_v24  ;;  %v489_v24 = vrot.slane %v242_v19, %v30869_v42 }
 0x10f   : > { %25925 = vmatpush3.bf16.msra.mxu1 %v28713_v25  ;;  %25904 = vmatprep.subr.bf16.mxu0 %v28714_v26 }
 0x110   : > { %25926 = vmatprep.subr.bf16.mxu1 %v28715_v27  ;;  %v482_v27 = vcombine.high %v242_v19, %v242_v19  ;;  %v28790_v19 = vld [vmem:[%s30821_s9 + $0x838] sm:$0xff]  }
 0x112   : > { %25905 = vmatpush3.bf16.msra.mxu0 %v28716_v28 }
 0x113   : > { %25927 = vmatpush3.bf16.msra.mxu1 %v28717_v29  ;;  %25906 = vmatprep.subr.bf16.mxu0 %v28718_v30  ;;  %v28757_v29 = vld [vmem:[%s30821_s9 + $0x738] sm:$0xff]   ;;  %v497_v30 = vcombine.high %v489_v24, %v489_v24 }
 0x114   : > { %25928 = vmatprep.subr.bf16.mxu1 %v28719_v31  ;;  %v28758_v31 = vld [vmem:[%s30821_s9 + $0x7b8] sm:$0xff]  }
 0x116   : > { %25907 = vmatpush3.bf16.msra.mxu0 %v28720_v32  ;;  %v496_v32 = vrot.slane %v482_v27, %v30869_v42  ;;  %v28794_v27 = vld [vmem:[%s30821_s9 + $0x9c0] sm:$0xff]  }
 0x117   : > { %25929 = vmatpush3.bf16.msra.mxu1 %v28721_v33  ;;  %25908 = vmatprep.subr.bf16.mxu0 %v28722_v35  ;;  %v1736_v33 = vpack.c.bf16 %v497_v30, %v497_v30 }
 0x118   : > { %25930 = vmatprep.subr.bf16.mxu1 %v28723_v38  ;;  %v498_v35 = vcombine.high %v496_v32, %v496_v32  ;;  %v1737_v40 = vpack.c.bf16 %v496_v32, %v496_v32  ;;  %v28796_v32 = vld [vmem:[%s30821_s9 + $0x980] sm:$0xff]  }
 0x11a   : > { %25909 = vmatpush3.bf16.msra.mxu0 %v28724_v39  ;;  %v1738_v38 = vpack.c.bf16 %v498_v35, %v498_v35  ;;  %v1735_v39 = vpack.c.bf16 %v489_v24, %v489_v24  ;;  %v28793_v24 = vld [vmem:[%s30821_s9 + $0x940] sm:$0xff]   ;;  %v28799_v35 = vld [vmem:[%s30821_s9 + $0x908] sm:$0xff]  }
 0x11b   : > { %25931 = vmatpush3.bf16.msra.mxu1 %v28725_v43  ;;  %25938 = vmatprep.subr.bf16.mxu0 %v28727_v46  ;;  %v28764_v43 = vld [vmem:[%s30821_s9 + $0x848] sm:$0xff]  }
 0x11c   : > { %25960 = vmatprep.subr.bf16.mxu1 %v28728_v47  ;;  %v28767_v46 = vld [vmem:[%s30821_s9 + $0x888] sm:$0xff]   ;;  %v28768_v47 = vld [vmem:[%s30821_s9 + $0x850] sm:$0xff]  }
 0x11d   : > { %18860 = vmatmul.mubr.bf16.vlgmr.msra.gmra.mrb[24].mxu0 %v1731_v50  ;;  %v28771_v50 = vld [vmem:[%s30821_s9 + $0x890] sm:$0xff]  }
 0x11e   : > { %18900 = vmatmul.mubr.bf16.vlgmr.msra.gmra.mrb[24].mxu1 %v1733_v51  ;;  %25939 = vmatpush3.bf16.msra.mxu0 %v28729_v49  ;;  %v28770_v49 = vld [vmem:[%s30821_s9 + $0x810] sm:$0xff]   ;;  %v28772_v51 = vld [vmem:[%s30821_s9 + $0x858] sm:$0xff]  }
 0x11f   : > { %25961 = vmatpush3.bf16.msra.mxu1 %v28730_v52  ;;  %25940 = vmatprep.subr.bf16.mxu0 %v28731_v53  ;;  %v28773_v52 = vld [vmem:[%s30821_s9 + $0x8d8] sm:$0xff]  }
 0x120   : > { %25962 = vmatprep.subr.bf16.mxu1 %v28732_v54  ;;  %18939 = vmatprep.mubr.bf16.mxu0 %v1736_v33  ;;  %v28774_v53 = vld [vmem:[%s30821_s9 + $0x818] sm:$0xff]   ;;  %v28797_v33 = vld [vmem:[%s30821_s9 + $0x948] sm:$0xff]  }
 0x121   : > { %18979 = vmatprep.mubr.bf16.mxu1 %v1738_v38  ;;  %v28775_v54 = vld [vmem:[%s30821_s9 + $0x898] sm:$0xff]   ;;  %v28802_v38 = vld [vmem:[%s30821_s9 + $0x9d0] sm:$0xff]  }
 0x122   : > { %25941 = vmatpush3.bf16.msra.mxu0 %v28733_v55  ;;  %v28776_v55 = vld [vmem:[%s30821_s9 + $0x860] sm:$0xff]  }
 0x123   : > { %25963 = vmatpush3.bf16.msra.mxu1 %v28734_v56  ;;  %25942 = vmatprep.subr.bf16.mxu0 %v28735_v57  ;;  %v28777_v56 = vld [vmem:[%s30821_s9 + $0x8e0] sm:$0xff]  }
 0x124   : > { %25964 = vmatprep.subr.bf16.mxu1 %v28736_v58  ;;  %v28778_v57 = vld [vmem:[%s30821_s9 + $0x820] sm:$0xff]  }
 0x125   : > { %v28779_v58 = vld [vmem:[%s30821_s9 + $0x8a0] sm:$0xff]  }
 0x126   : > { %25943 = vmatpush3.bf16.msra.mxu0 %v28737_v59  ;;  %v28780_v59 = vld [vmem:[%s30821_s9 + $0x868] sm:$0xff]  }
 0x127   : > { %25965 = vmatpush3.bf16.msra.mxu1 %v28738_v60  ;;  %25944 = vmatprep.subr.bf16.mxu0 %v28739_v61  ;;  %v28781_v60 = vld [vmem:[%s30821_s9 + $0x8e8] sm:$0xff]  }
 0x128   : > { %25966 = vmatprep.subr.bf16.mxu1 %v28740_v62  ;;  %v28782_v61 = vld [vmem:[%s30821_s9 + $0x828] sm:$0xff]  }
 0x129   : > { %v28783_v62 = vld [vmem:[%s30821_s9 + $0x8a8] sm:$0xff]  }
 0x12a   : > { %25945 = vmatpush3.bf16.msra.mxu0 %v28741_v63  ;;  %v28784_v63 = vld [vmem:[%s30821_s9 + $0x870] sm:$0xff]  }
 0x12b   : > { %25967 = vmatpush3.bf16.msra.mxu1 %v28742_v0  ;;  %25946 = vmatprep.subr.bf16.mxu0 %v28743_v1  ;;  %v28785_v0 = vld [vmem:[%s30821_s9 + $0x8f0] sm:$0xff]  }
 0x12c   : > { %25968 = vmatprep.subr.bf16.mxu1 %v28744_v2 }
 0x12e   : > { %25947 = vmatpush3.bf16.msra.mxu0 %v28745_v3  ;;  %v28786_v3 = vld [vmem:[%s30821_s9 + $0x830] sm:$0xff]  }
 0x12f   : > { %25969 = vmatpush3.bf16.msra.mxu1 %v28746_v4  ;;  %25948 = vmatprep.subr.bf16.mxu0 %v28747_v5  ;;  %v28787_v4 = vld [vmem:[%s30821_s9 + $0x8b0] sm:$0xff]  }
 0x130   : > { %25970 = vmatprep.subr.bf16.mxu1 %v28748_v6  ;;  %v25646_v11 = vpop.f32.mrb[0].mxu0 }
 0x131   : > { %v25668_v12 = vpop.f32.mrb[0].mxu1  ;;  %v25647_v15 = vpop.f32.mrb[1].mxu0 }
 0x132   : > { %v25669_v16 = vpop.f32.mrb[1].mxu1  ;;  %v25648_v20 = vadd.f32 %v25647_v15, %v25646_v11  ;;  %v25649_v22 = vpop.f32.mrb[2].mxu0  ;;  %25949 = vmatpush3.bf16.msra.mxu0 %v28749_v7  ;;  %v28788_v7 = vld [vmem:[%s30821_s9 + $0x878] sm:$0xff]  }
 0x133   : > { %v25670_v21 = vadd.f32 %v25669_v16, %v25668_v12  ;;  %v25671_v23 = vpop.f32.mrb[2].mxu1  ;;  %25971 = vmatpush3.bf16.msra.mxu1 %v28750_v8  ;;  %v25650_v25 = vpop.f32.mrb[3].mxu0  ;;  %25950 = vmatprep.subr.bf16.mxu0 %v28751_v9  ;;  %v28789_v12 = vld [vmem:[%s30821_s9 + $0x8f8] sm:$0xff]  }
 0x134   : > { %v25672_v26 = vpop.f32.mrb[3].mxu1  ;;  %25972 = vmatprep.subr.bf16.mxu1 %v28752_v10 }
 0x135   : > { %v31113_v28 = vadd.f32 %v25670_v21, %v25648_v20  ;;  %v28791_v20 = vld [vmem:[%s30821_s9 + $0x8b8] sm:$0xff]  }
 0x136   : > { %25951 = vmatpush3.bf16.msra.mxu0 %v28753_v13  ;;  %v243_v13 = vld [vmem:[%s30831_s7 + $0x40] sm:$0xff] }
 0x137   : > { %25973 = vmatpush3.bf16.msra.mxu1 %v28754_v14  ;;  %25952 = vmatprep.subr.bf16.mxu0 %v28755_v17  ;;  %v506_v16 = vrot.slane %v243_v13, %v30869_v42  ;;  %v499_v17 = vcombine.high %v243_v13, %v243_v13 }
 0x138   : > { %25974 = vmatprep.subr.bf16.mxu1 %v28756_v18 }
 0x139   : > { %v514_v21 = vcombine.high %v506_v16, %v506_v16  ;;  %v513_v22 = vrot.slane %v499_v17, %v30869_v42  ;;  %v1739_v30 = vpack.c.bf16 %v506_v16, %v506_v16  ;;  %v28827_v16 = vld [vmem:[%s30821_s9 + $0xac0] sm:$0xff]  }
 0x13a   : > { %25953 = vmatpush3.bf16.msra.mxu0 %v28757_v29 }
 0x13b   : > { %25975 = vmatpush3.bf16.msra.mxu1 %v28758_v31  ;;  %25982 = vmatprep.subr.bf16.mxu0 %v28760_v34  ;;  %v1740_v25 = vpack.c.bf16 %v514_v21, %v514_v21  ;;  %v515_v26 = vcombine.high %v513_v22, %v513_v22  ;;  %v1741_v31 = vpack.c.bf16 %v513_v22, %v513_v22  ;;  %v28798_v34 = vld [vmem:[%s30821_s9 + $0x9c8] sm:$0xff]   ;;  %v28829_v22 = vld [vmem:[%s30821_s9 + $0xa80] sm:$0xff]  }
 0x13c   : > { %26004 = vmatprep.subr.bf16.mxu1 %v28761_v36  ;;  %v28800_v36 = vld [vmem:[%s30821_s9 + $0x988] sm:$0xff]  }
 0x13d   : > { %18940 = vmatmul.mubr.bf16.vlgmr.msra.gmra.mrb[28].mxu0 %v1735_v39  ;;  %v1742_v29 = vpack.c.bf16 %v515_v26, %v515_v26  ;;  %v28803_v39 = vld [vmem:[%s30821_s9 + $0x910] sm:$0xff]   ;;  %v28832_v26 = vld [vmem:[%s30821_s9 + $0xa08] sm:$0xff]  }
 0x13e   : > { %18980 = vmatmul.mubr.bf16.vlgmr.msra.gmra.mrb[28].mxu1 %v1737_v40  ;;  %25983 = vmatpush3.bf16.msra.mxu0 %v28762_v37  ;;  %v28801_v37 = vld [vmem:[%s30821_s9 + $0x950] sm:$0xff]  }
 0x13f   : > { %26005 = vmatpush3.bf16.msra.mxu1 %v28763_v41  ;;  %25984 = vmatprep.subr.bf16.mxu0 %v28764_v43  ;;  %v28804_v40 = vld [vmem:[%s30821_s9 + $0x990] sm:$0xff]   ;;  %v28805_v41 = vld [vmem:[%s30821_s9 + $0x958] sm:$0xff]  }
 0x140   : > { %26006 = vmatprep.subr.bf16.mxu1 %v28765_v44  ;;  %19019 = vmatprep.mubr.bf16.mxu0 %v1740_v25  ;;  %v28806_v43 = vld [vmem:[%s30821_s9 + $0x9d8] sm:$0xff]   ;;  %v28831_v25 = vld [vmem:[%s30821_s9 + $0xac8] sm:$0xff]  }
 0x141   : > { %19059 = vmatprep.mubr.bf16.mxu1 %v1742_v29  ;;  %v28807_v44 = vld [vmem:[%s30821_s9 + $0x918] sm:$0xff]   ;;  %v28835_v29 = vld [vmem:[%s30821_s9 + $0xad0] sm:$0xff]  }
 0x142   : > { %25985 = vmatpush3.bf16.msra.mxu0 %v28766_v45  ;;  %v28808_v45 = vld [vmem:[%s30821_s9 + $0x998] sm:$0xff]  }
 0x143   : > { %26007 = vmatpush3.bf16.msra.mxu1 %v28767_v46  ;;  %25986 = vmatprep.subr.bf16.mxu0 %v28768_v47  ;;  %v28809_v46 = vld [vmem:[%s30821_s9 + $0x960] sm:$0xff]  }
 0x144   : > { %26008 = vmatprep.subr.bf16.mxu1 %v28769_v48  ;;  %v28810_v47 = vld [vmem:[%s30821_s9 + $0x9e0] sm:$0xff]  }
 0x145   : > { %v28811_v48 = vld [vmem:[%s30821_s9 + $0x920] sm:$0xff]  }
 0x146   : > { %25987 = vmatpush3.bf16.msra.mxu0 %v28770_v49  ;;  %v28812_v49 = vld [vmem:[%s30821_s9 + $0x9a0] sm:$0xff]  }
 0x147   : > { %26009 = vmatpush3.bf16.msra.mxu1 %v28771_v50  ;;  %25988 = vmatprep.subr.bf16.mxu0 %v28772_v51  ;;  %v28813_v50 = vld [vmem:[%s30821_s9 + $0x968] sm:$0xff]  }
 0x148   : > { %26010 = vmatprep.subr.bf16.mxu1 %v28773_v52  ;;  %v28814_v51 = vld [vmem:[%s30821_s9 + $0x9e8] sm:$0xff]  }
 0x149   : > { %v28815_v52 = vld [vmem:[%s30821_s9 + $0x928] sm:$0xff]  }
 0x14a   : > { %25989 = vmatpush3.bf16.msra.mxu0 %v28774_v53  ;;  %v28816_v53 = vld [vmem:[%s30821_s9 + $0x9a8] sm:$0xff]  }
 0x14b   : > { %26011 = vmatpush3.bf16.msra.mxu1 %v28775_v54  ;;  %25990 = vmatprep.subr.bf16.mxu0 %v28776_v55  ;;  %v28817_v54 = vld [vmem:[%s30821_s9 + $0x970] sm:$0xff]  }
 0x14c   : > { %26012 = vmatprep.subr.bf16.mxu1 %v28777_v56  ;;  %v28818_v55 = vld [vmem:[%s30821_s9 + $0x9f0] sm:$0xff]  }
 0x14e   : > { %25991 = vmatpush3.bf16.msra.mxu0 %v28778_v57 }
 0x14f   : > { %26013 = vmatpush3.bf16.msra.mxu1 %v28779_v58  ;;  %25992 = vmatprep.subr.bf16.mxu0 %v28780_v59  ;;  %v28819_v58 = vld [vmem:[%s30821_s9 + $0x930] sm:$0xff]  }
 0x150   : > { %26014 = vmatprep.subr.bf16.mxu1 %v28781_v60  ;;  %v25690_v1 = vpop.f32.mrb[4].mxu0  ;;  %v28820_v59 = vld [vmem:[%s30821_s9 + $0x9b0] sm:$0xff]  }
 0x151   : > { %v25712_v2 = vpop.f32.mrb[4].mxu1  ;;  %v25691_v5 = vpop.f32.mrb[5].mxu0 }
 0x152   : > { %v25713_v6 = vpop.f32.mrb[5].mxu1  ;;  %v25692_v8 = vadd.f32 %v25691_v5, %v25690_v1  ;;  %v25693_v10 = vpop.f32.mrb[6].mxu0  ;;  %25993 = vmatpush3.bf16.msra.mxu0 %v28782_v61 }
 0x153   : > { %v25714_v9 = vadd.f32 %v25713_v6, %v25712_v2  ;;  %v25715_v11 = vpop.f32.mrb[6].mxu1  ;;  %26015 = vmatpush3.bf16.msra.mxu1 %v28783_v62  ;;  %v25694_v14 = vpop.f32.mrb[7].mxu0  ;;  %25994 = vmatprep.subr.bf16.mxu0 %v28784_v63  ;;  %v28821_v2 = vld [vmem:[%s30821_s9 + $0x978] sm:$0xff]  }
 0x154   : > { %v25716_v15 = vpop.f32.mrb[7].mxu1  ;;  %26016 = vmatprep.subr.bf16.mxu1 %v28785_v0  ;;  %v18462_v18 = vadd.f32 %v25692_v8, %v31113_v28  ;;  %v28795_v28 = vld [vmem:[%s30821_s9 + $0x900] sm:$0xff]   ;;  %v28823_v8 = vld [vmem:[%s30821_s9 + $0x938] sm:$0xff]  }
 0x155   : > { %v28826_v15 = vld [vmem:[%s30821_s9 + $0xa40] sm:$0xff]  }
 0x156   : > { %v31154_v23 = vadd.f32 %v25714_v9, %v18462_v18  ;;  %25995 = vmatpush3.bf16.msra.mxu0 %v28786_v3  ;;  %v28822_v3 = vld [vmem:[%s30821_s9 + $0x9f8] sm:$0xff]  }
 0x157   : > { %26017 = vmatpush3.bf16.msra.mxu1 %v28787_v4  ;;  %25996 = vmatprep.subr.bf16.mxu0 %v28788_v7  ;;  %v244_v7 = vld [vmem:[%s30831_s7 + $0x48] sm:$0xff] }
 0x158   : > { %26018 = vmatprep.subr.bf16.mxu1 %v28789_v12  ;;  %v523_v9 = vrot.slane %v244_v7, %v30869_v42  ;;  %v516_v10 = vcombine.high %v244_v7, %v244_v7  ;;  %v28824_v12 = vld [vmem:[%s30821_s9 + $0x9b8] sm:$0xff]   ;;  %v28860_v7 = vld [vmem:[%s30821_s9 + $0xbc0] sm:$0xff]  }
 0x15a   : > { %25997 = vmatpush3.bf16.msra.mxu0 %v28790_v19  ;;  %v531_v13 = vcombine.high %v523_v9, %v523_v9  ;;  %v530_v14 = vrot.slane %v516_v10, %v30869_v42  ;;  %v1743_v19 = vpack.c.bf16 %v523_v9, %v523_v9  ;;  %v28861_v9 = vld [vmem:[%s30821_s9 + $0xb00] sm:$0xff]  }
 0x15b   : > { %26019 = vmatpush3.bf16.msra.mxu1 %v28791_v20  ;;  %26026 = vmatprep.subr.bf16.mxu0 %v28793_v24  ;;  %v28828_v20 = vld [vmem:[%s30821_s9 + $0xa00] sm:$0xff]   ;;  %v28830_v24 = vld [vmem:[%s30821_s9 + $0xa48] sm:$0xff]  }
 0x15c   : > { %26048 = vmatprep.subr.bf16.mxu1 %v28794_v27  ;;  %v1744_v17 = vpack.c.bf16 %v531_v13, %v531_v13  ;;  %v532_v18 = vcombine.high %v530_v14, %v530_v14  ;;  %v1745_v21 = vpack.c.bf16 %v530_v14, %v530_v14  ;;  %v28833_v27 = vld [vmem:[%s30821_s9 + $0xa88] sm:$0xff]  }
 0x15d   : > { %19020 = vmatmul.mubr.bf16.vlgmr.msra.gmra.mrb[32].mxu0 %v1739_v30  ;;  %v28836_v30 = vld [vmem:[%s30821_s9 + $0xa10] sm:$0xff]   ;;  %v28863_v14 = vld [vmem:[%s30821_s9 + $0xb48] sm:$0xff]  }
 0x15e   : > { %19060 = vmatmul.mubr.bf16.vlgmr.msra.gmra.mrb[32].mxu1 %v1741_v31  ;;  %26027 = vmatpush3.bf16.msra.mxu0 %v28795_v28  ;;  %v28834_v28 = vld [vmem:[%s30821_s9 + $0xa50] sm:$0xff]  }
 0x15f   : > { %26049 = vmatpush3.bf16.msra.mxu1 %v28796_v32  ;;  %26028 = vmatprep.subr.bf16.mxu0 %v28797_v33  ;;  %v28837_v31 = vld [vmem:[%s30821_s9 + $0xa90] sm:$0xff]   ;;  %v28838_v32 = vld [vmem:[%s30821_s9 + $0xa58] sm:$0xff]  }
 0x160   : > { %26050 = vmatprep.subr.bf16.mxu1 %v28798_v34  ;;  %19099 = vmatprep.mubr.bf16.mxu0 %v1744_v17  ;;  %v28839_v33 = vld [vmem:[%s30821_s9 + $0xad8] sm:$0xff]   ;;  %v28865_v17 = vld [vmem:[%s30821_s9 + $0xb08] sm:$0xff]  }
 0x161   : > { %v28840_v34 = vld [vmem:[%s30821_s9 + $0xa18] sm:$0xff]  }
 0x162   : > { %26029 = vmatpush3.bf16.msra.mxu0 %v28799_v35  ;;  %v28841_v35 = vld [vmem:[%s30821_s9 + $0xa98] sm:$0xff]  }
 0x163   : > { %26051 = vmatpush3.bf16.msra.mxu1 %v28800_v36  ;;  %26030 = vmatprep.subr.bf16.mxu0 %v28801_v37  ;;  %v28842_v36 = vld [vmem:[%s30821_s9 + $0xa60] sm:$0xff]  }
 0x164   : > { %26052 = vmatprep.subr.bf16.mxu1 %v28802_v38  ;;  %v28843_v37 = vld [vmem:[%s30821_s9 + $0xae0] sm:$0xff]  }
 0x165   : > { %v28844_v38 = vld [vmem:[%s30821_s9 + $0xa20] sm:$0xff]  }
 0x166   : > { %26031 = vmatpush3.bf16.msra.mxu0 %v28803_v39  ;;  %v28845_v39 = vld [vmem:[%s30821_s9 + $0xaa0] sm:$0xff]  }
 0x167   : > { %26053 = vmatpush3.bf16.msra.mxu1 %v28804_v40  ;;  %26032 = vmatprep.subr.bf16.mxu0 %v28805_v41  ;;  %v28846_v40 = vld [vmem:[%s30821_s9 + $0xa68] sm:$0xff]  }
 0x168   : > { %26054 = vmatprep.subr.bf16.mxu1 %v28806_v43  ;;  %v28847_v41 = vld [vmem:[%s30821_s9 + $0xae8] sm:$0xff]  }
 0x169   : > { %v28848_v43 = vld [vmem:[%s30821_s9 + $0xa28] sm:$0xff]  }
 0x16a   : > { %26033 = vmatpush3.bf16.msra.mxu0 %v28807_v44  ;;  %v28849_v44 = vld [vmem:[%s30821_s9 + $0xaa8] sm:$0xff]  }
 0x16b   : > { %26055 = vmatpush3.bf16.msra.mxu1 %v28808_v45  ;;  %26034 = vmatprep.subr.bf16.mxu0 %v28809_v46  ;;  %v28850_v45 = vld [vmem:[%s30821_s9 + $0xa70] sm:$0xff]  }
 0x16c   : > { %26056 = vmatprep.subr.bf16.mxu1 %v28810_v47 }
 0x16e   : > { %26035 = vmatpush3.bf16.msra.mxu0 %v28811_v48  ;;  %v28851_v48 = vld [vmem:[%s30821_s9 + $0xaf0] sm:$0xff]  }
 0x16f   : > { %26057 = vmatpush3.bf16.msra.mxu1 %v28812_v49  ;;  %26036 = vmatprep.subr.bf16.mxu0 %v28813_v50  ;;  %v28852_v49 = vld [vmem:[%s30821_s9 + $0xa30] sm:$0xff]  }
 0x170   : > { %26058 = vmatprep.subr.bf16.mxu1 %v28814_v51  ;;  %v25734_v56 = vpop.f32.mrb[8].mxu0 }
 0x171   : > { %v25756_v57 = vpop.f32.mrb[8].mxu1  ;;  %v25735_v60 = vpop.f32.mrb[9].mxu0 }
 0x172   : > { %v25757_v61 = vpop.f32.mrb[9].mxu1  ;;  %v25736_v62 = vadd.f32 %v25735_v60, %v25734_v56  ;;  %v25737_v0 = vpop.f32.mrb[10].mxu0  ;;  %26037 = vmatpush3.bf16.msra.mxu0 %v28815_v52  ;;  %v28853_v52 = vld [vmem:[%s30821_s9 + $0xab0] sm:$0xff]  }
 0x173   : > { %v25758_v63 = vadd.f32 %v25757_v61, %v25756_v57  ;;  %v25759_v1 = vpop.f32.mrb[10].mxu1  ;;  %26059 = vmatpush3.bf16.msra.mxu1 %v28816_v53  ;;  %v25738_v4 = vpop.f32.mrb[11].mxu0  ;;  %26038 = vmatprep.subr.bf16.mxu0 %v28817_v54  ;;  %v28854_v57 = vld [vmem:[%s30821_s9 + $0xa78] sm:$0xff]  }
 0x174   : > { %v25760_v5 = vpop.f32.mrb[11].mxu1  ;;  %26060 = vmatprep.subr.bf16.mxu1 %v28818_v55  ;;  %v18542_v6 = vadd.f32 %v25736_v62, %v31154_v23  ;;  %v1746_v23 = vpack.c.bf16 %v532_v18, %v532_v18  ;;  %v28856_v62 = vld [vmem:[%s30821_s9 + $0xa38] sm:$0xff]   ;;  %v28859_v4 = vld [vmem:[%s30821_s9 + $0xb40] sm:$0xff]   ;;  %v28866_v18 = vld [vmem:[%s30821_s9 + $0xb88] sm:$0xff]  }
 0x175   : > { %v28857_v1 = vld [vmem:[%s30821_s9 + $0xab8] sm:$0xff]  }
 0x176   : > { %v31190_v11 = vadd.f32 %v25758_v63, %v18542_v6  ;;  %26039 = vmatpush3.bf16.msra.mxu0 %v28819_v58  ;;  %19139 = vmatprep.mubr.bf16.mxu1 %v1746_v23  ;;  %v28855_v58 = vld [vmem:[%s30821_s9 + $0xaf8] sm:$0xff]   ;;  %v245_v63 = vld [vmem:[%s30831_s7 + $0x50] sm:$0xff] }
 0x177   : > { %26061 = vmatpush3.bf16.msra.mxu1 %v28820_v59  ;;  %26040 = vmatprep.subr.bf16.mxu0 %v28821_v2  ;;  %v540_v2 = vrot.slane %v245_v63, %v30869_v42  ;;  %v28871_v23 = vld [vmem:[%s30821_s9 + $0xb58] sm:$0xff]  }
 0x178   : > { %26062 = vmatprep.subr.bf16.mxu1 %v28822_v3  ;;  %v533_v3 = vcombine.high %v245_v63, %v245_v63 }
 0x179   : > { %v548_v5 = vcombine.high %v540_v2, %v540_v2 }
 0x17a   : > { %26041 = vmatpush3.bf16.msra.mxu0 %v28823_v8  ;;  %v547_v6 = vrot.slane %v533_v3, %v30869_v42  ;;  %v1747_v8 = vpack.c.bf16 %v540_v2, %v540_v2  ;;  %v28894_v2 = vld [vmem:[%s30821_s9 + $0xc00] sm:$0xff]  }
 0x17b   : > { %26063 = vmatpush3.bf16.msra.mxu1 %v28824_v12  ;;  %26070 = vmatprep.subr.bf16.mxu0 %v28826_v15  ;;  %v1748_v10 = vpack.c.bf16 %v548_v5, %v548_v5  ;;  %v28862_v12 = vld [vmem:[%s30821_s9 + $0xb80] sm:$0xff]  }
 0x17c   : > { %26092 = vmatprep.subr.bf16.mxu1 %v28827_v16  ;;  %v1749_v13 = vpack.c.bf16 %v547_v6, %v547_v6  ;;  %v28864_v16 = vld [vmem:[%s30821_s9 + $0xbc8] sm:$0xff]  }
 0x17d   : > { %19100 = vmatmul.mubr.bf16.vlgmr.msra.gmra.mrb[36].mxu0 %v1743_v19  ;;  %v28867_v19 = vld [vmem:[%s30821_s9 + $0xb50] sm:$0xff]  }
 0x17e   : > { %19140 = vmatmul.mubr.bf16.vlgmr.msra.gmra.mrb[36].mxu1 %v1745_v21  ;;  %26071 = vmatpush3.bf16.msra.mxu0 %v28828_v20  ;;  %v28868_v20 = vld [vmem:[%s30821_s9 + $0xbd0] sm:$0xff]  }
 0x17f   : > { %26093 = vmatpush3.bf16.msra.mxu1 %v28829_v22  ;;  %26072 = vmatprep.subr.bf16.mxu0 %v28830_v24  ;;  %v28869_v21 = vld [vmem:[%s30821_s9 + $0xb10] sm:$0xff]   ;;  %v28872_v24 = vld [vmem:[%s30821_s9 + $0xbd8] sm:$0xff]  }
 0x180   : > { %26094 = vmatprep.subr.bf16.mxu1 %v28831_v25  ;;  %19179 = vmatprep.mubr.bf16.mxu0 %v1748_v10  ;;  %v28870_v22 = vld [vmem:[%s30821_s9 + $0xb90] sm:$0xff]   ;;  %v28873_v25 = vld [vmem:[%s30821_s9 + $0xb18] sm:$0xff]   ;;  %v28899_v10 = vld [vmem:[%s30821_s9 + $0xc88] sm:$0xff]  }
 0x182   : > { %26073 = vmatpush3.bf16.msra.mxu0 %v28832_v26  ;;  %v28874_v26 = vld [vmem:[%s30821_s9 + $0xb98] sm:$0xff]  }
 0x183   : > { %26095 = vmatpush3.bf16.msra.mxu1 %v28833_v27  ;;  %26074 = vmatprep.subr.bf16.mxu0 %v28834_v28  ;;  %v28875_v27 = vld [vmem:[%s30821_s9 + $0xb60] sm:$0xff]  }
 0x184   : > { %26096 = vmatprep.subr.bf16.mxu1 %v28835_v29  ;;  %v28876_v28 = vld [vmem:[%s30821_s9 + $0xbe0] sm:$0xff]  }
 0x185   : > { %v28877_v29 = vld [vmem:[%s30821_s9 + $0xb20] sm:$0xff]  }
 0x186   : > { %26075 = vmatpush3.bf16.msra.mxu0 %v28836_v30  ;;  %v28878_v30 = vld [vmem:[%s30821_s9 + $0xba0] sm:$0xff]  }
 0x187   : > { %26097 = vmatpush3.bf16.msra.mxu1 %v28837_v31  ;;  %26076 = vmatprep.subr.bf16.mxu0 %v28838_v32  ;;  %v28879_v31 = vld [vmem:[%s30821_s9 + $0xb68] sm:$0xff]  }
 0x188   : > { %26098 = vmatprep.subr.bf16.mxu1 %v28839_v33  ;;  %v28880_v32 = vld [vmem:[%s30821_s9 + $0xbe8] sm:$0xff]  }
 0x189   : > { %v28881_v33 = vld [vmem:[%s30821_s9 + $0xb28] sm:$0xff]  }
 0x18a   : > { %26077 = vmatpush3.bf16.msra.mxu0 %v28840_v34  ;;  %v28882_v34 = vld [vmem:[%s30821_s9 + $0xba8] sm:$0xff]  }
 0x18b   : > { %26099 = vmatpush3.bf16.msra.mxu1 %v28841_v35  ;;  %26078 = vmatprep.subr.bf16.mxu0 %v28842_v36  ;;  %v28883_v35 = vld [vmem:[%s30821_s9 + $0xb70] sm:$0xff]  }
 0x18c   : > { %26100 = vmatprep.subr.bf16.mxu1 %v28843_v37 }
 0x18e   : > { %26079 = vmatpush3.bf16.msra.mxu0 %v28844_v38  ;;  %v28884_v38 = vld [vmem:[%s30821_s9 + $0xbf0] sm:$0xff]  }
 0x18f   : > { %26101 = vmatpush3.bf16.msra.mxu1 %v28845_v39  ;;  %26080 = vmatprep.subr.bf16.mxu0 %v28846_v40  ;;  %v28885_v39 = vld [vmem:[%s30821_s9 + $0xb30] sm:$0xff]  }
 0x190   : > { %v25778_v46 = vpop.f32.mrb[12].mxu0  ;;  %26102 = vmatprep.subr.bf16.mxu1 %v28847_v41 }
 0x191   : > { %v25800_v47 = vpop.f32.mrb[12].mxu1  ;;  %v25779_v50 = vpop.f32.mrb[13].mxu0 }
 0x192   : > { %v25801_v51 = vpop.f32.mrb[13].mxu1  ;;  %v25780_v53 = vadd.f32 %v25779_v50, %v25778_v46  ;;  %v25781_v55 = vpop.f32.mrb[14].mxu0  ;;  %26081 = vmatpush3.bf16.msra.mxu0 %v28848_v43 }
 0x193   : > { %v25802_v54 = vadd.f32 %v25801_v51, %v25800_v47  ;;  %v25803_v56 = vpop.f32.mrb[14].mxu1  ;;  %26103 = vmatpush3.bf16.msra.mxu1 %v28849_v44  ;;  %v25782_v59 = vpop.f32.mrb[15].mxu0  ;;  %26082 = vmatprep.subr.bf16.mxu0 %v28850_v45  ;;  %v28886_v47 = vld [vmem:[%s30821_s9 + $0xbb0] sm:$0xff]  }
 0x194   : > { %v25804_v60 = vpop.f32.mrb[15].mxu1  ;;  %v18622_v61 = vadd.f32 %v25780_v53, %v31190_v11  ;;  %26104 = vmatprep.subr.bf16.mxu1 %v28851_v48  ;;  %v549_v11 = vcombine.high %v547_v6, %v547_v6  ;;  %v28887_v48 = vld [vmem:[%s30821_s9 + $0xb78] sm:$0xff]   ;;  %v28895_v6 = vld [vmem:[%s30821_s9 + $0xc80] sm:$0xff]  }
 0x195   : > { %v28889_v53 = vld [vmem:[%s30821_s9 + $0xb38] sm:$0xff]  }
 0x196   : > { %v31227_v0 = vadd.f32 %v25802_v54, %v18622_v61  ;;  %26083 = vmatpush3.bf16.msra.mxu0 %v28852_v49  ;;  %v1750_v15 = vpack.c.bf16 %v549_v11, %v549_v11  ;;  %v246_v55 = vld [vmem:[%s30831_s7 + $0x58] sm:$0xff] }
 0x197   : > { %26105 = vmatpush3.bf16.msra.mxu1 %v28853_v52  ;;  %26084 = vmatprep.subr.bf16.mxu0 %v28854_v57  ;;  %v28888_v52 = vld [vmem:[%s30821_s9 + $0xbf8] sm:$0xff]   ;;  %v557_v56 = vrot.slane %v246_v55, %v30869_v42  ;;  %v550_v57 = vcombine.high %v246_v55, %v246_v55  ;;  %v28901_v11 = vld [vmem:[%s30821_s9 + $0xcd0] sm:$0xff]   ;;  %v28927_v55 = vld [vmem:[%s30821_s9 + $0xd00] sm:$0xff]  }
 0x198   : > { %26106 = vmatprep.subr.bf16.mxu1 %v28855_v58  ;;  %19219 = vmatprep.mubr.bf16.mxu1 %v1750_v15  ;;  %v28892_v58 = vld [vmem:[%s30821_s9 + $0xc40] sm:$0xff]   ;;  %v28890_v59 = vld [vmem:[%s30821_s9 + $0xbb8] sm:$0xff]  }
 0x199   : > { %v565_v60 = vcombine.high %v557_v56, %v557_v56  ;;  %v564_v61 = vrot.slane %v550_v57, %v30869_v42  ;;  %v1751_v63 = vpack.c.bf16 %v557_v56, %v557_v56  ;;  %v28905_v15 = vld [vmem:[%s30821_s9 + $0xcd8] sm:$0xff]  }
 0x19a   : > { %26085 = vmatpush3.bf16.msra.mxu0 %v28856_v62  ;;  %v28893_v62 = vld [vmem:[%s30821_s9 + $0xcc0] sm:$0xff]  }
 0x19b   : > { %26107 = vmatpush3.bf16.msra.mxu1 %v28857_v1  ;;  %26114 = vmatprep.subr.bf16.mxu0 %v28859_v4  ;;  %v566_v1 = vcombine.high %v564_v61, %v564_v61  ;;  %v1753_v3 = vpack.c.bf16 %v564_v61, %v564_v61  ;;  %v28896_v4 = vld [vmem:[%s30821_s9 + $0xc48] sm:$0xff]  }
 0x19c   : > { %26136 = vmatprep.subr.bf16.mxu1 %v28860_v7  ;;  %v28897_v7 = vld [vmem:[%s30821_s9 + $0xcc8] sm:$0xff]  }
 0x19d   : > { %19180 = vmatmul.mubr.bf16.vlgmr.msra.gmra.mrb[40].mxu0 %v1747_v8  ;;  %v1754_v5 = vpack.c.bf16 %v566_v1, %v566_v1  ;;  %v28898_v8 = vld [vmem:[%s30821_s9 + $0xc08] sm:$0xff]   ;;  %v28933_v1 = vld [vmem:[%s30821_s9 + $0xd50] sm:$0xff]  }
 0x19e   : > { %26115 = vmatpush3.bf16.msra.mxu0 %v28861_v9  ;;  %19220 = vmatmul.mubr.bf16.vlgmr.msra.gmra.mrb[40].mxu1 %v1749_v13  ;;  %v28900_v9 = vld [vmem:[%s30821_s9 + $0xc50] sm:$0xff]   ;;  %v28904_v13 = vld [vmem:[%s30821_s9 + $0xc58] sm:$0xff]  }
 0x19f   : > { %26116 = vmatprep.subr.bf16.mxu0 %v28863_v14  ;;  %26137 = vmatpush3.bf16.msra.mxu1 %v28862_v12  ;;  %v28902_v12 = vld [vmem:[%s30821_s9 + $0xc10] sm:$0xff]  }
 0x1a0   : > { %26138 = vmatprep.subr.bf16.mxu1 %v28864_v16  ;;  %19299 = vmatprep.mubr.bf16.mxu1 %v1754_v5  ;;  %v28903_v14 = vld [vmem:[%s30821_s9 + $0xc90] sm:$0xff]   ;;  %v28906_v16 = vld [vmem:[%s30821_s9 + $0xc18] sm:$0xff]  }
 0x1a1   : > { %v28937_v5 = vld [vmem:[%s30821_s9 + $0xd58] sm:$0xff]  }
 0x1a2   : > { %26117 = vmatpush3.bf16.msra.mxu0 %v28865_v17  ;;  %v28908_v17 = vld [vmem:[%s30821_s9 + $0xc60] sm:$0xff]  }
 0x1a3   : > { %26118 = vmatprep.subr.bf16.mxu0 %v28867_v19  ;;  %26139 = vmatpush3.bf16.msra.mxu1 %v28866_v18  ;;  %v28907_v18 = vld [vmem:[%s30821_s9 + $0xc98] sm:$0xff]   ;;  %v28909_v19 = vld [vmem:[%s30821_s9 + $0xce0] sm:$0xff]  }
 0x1a4   : > { %26140 = vmatprep.subr.bf16.mxu1 %v28868_v20  ;;  %v28910_v20 = vld [vmem:[%s30821_s9 + $0xc20] sm:$0xff]  }
 0x1a6   : > { %26119 = vmatpush3.bf16.msra.mxu0 %v28869_v21  ;;  %v28912_v21 = vld [vmem:[%s30821_s9 + $0xc68] sm:$0xff]  }
 0x1a7   : > { %26120 = vmatprep.subr.bf16.mxu0 %v28871_v23  ;;  %26141 = vmatpush3.bf16.msra.mxu1 %v28870_v22  ;;  %v28911_v22 = vld [vmem:[%s30821_s9 + $0xca0] sm:$0xff]   ;;  %v28913_v23 = vld [vmem:[%s30821_s9 + $0xce8] sm:$0xff]  }
 0x1a8   : > { %26142 = vmatprep.subr.bf16.mxu1 %v28872_v24  ;;  %v28914_v24 = vld [vmem:[%s30821_s9 + $0xc28] sm:$0xff]  }
 0x1aa   : > { %26121 = vmatpush3.bf16.msra.mxu0 %v28873_v25 }
 0x1ab   : > { %26122 = vmatprep.subr.bf16.mxu0 %v28875_v27  ;;  %26143 = vmatpush3.bf16.msra.mxu1 %v28874_v26  ;;  %v28915_v27 = vld [vmem:[%s30821_s9 + $0xca8] sm:$0xff]  }
 0x1ac   : > { %26144 = vmatprep.subr.bf16.mxu1 %v28876_v28  ;;  %v28916_v28 = vld [vmem:[%s30821_s9 + $0xc70] sm:$0xff]  }
 0x1ae   : > { %26123 = vmatpush3.bf16.msra.mxu0 %v28877_v29 }
 0x1af   : > { %26124 = vmatprep.subr.bf16.mxu0 %v28879_v31  ;;  %26145 = vmatpush3.bf16.msra.mxu1 %v28878_v30 }
 0x1b0   : > { %v25822_v36 = vpop.f32.mrb[16].mxu0  ;;  %26146 = vmatprep.subr.bf16.mxu1 %v28880_v32 }
 0x1b1   : > { %v25844_v37 = vpop.f32.mrb[16].mxu1  ;;  %v25823_v40 = vpop.f32.mrb[17].mxu0 }
 0x1b2   : > { %v25845_v41 = vpop.f32.mrb[17].mxu1  ;;  %v25824_v43 = vadd.f32 %v25823_v40, %v25822_v36  ;;  %v25825_v45 = vpop.f32.mrb[18].mxu0  ;;  %26125 = vmatpush3.bf16.msra.mxu0 %v28881_v33  ;;  %v28918_v36 = vld [vmem:[%s30821_s9 + $0xc30] sm:$0xff]  }
 0x1b3   : > { %v25846_v44 = vadd.f32 %v25845_v41, %v25844_v37  ;;  %v25847_v46 = vpop.f32.mrb[18].mxu1  ;;  %v25826_v49 = vpop.f32.mrb[19].mxu0  ;;  %26126 = vmatprep.subr.bf16.mxu0 %v28883_v35  ;;  %26147 = vmatpush3.bf16.msra.mxu1 %v28882_v34  ;;  %v28917_v35 = vld [vmem:[%s30821_s9 + $0xcf0] sm:$0xff]   ;;  %v28920_v41 = vld [vmem:[%s30821_s9 + $0xc78] sm:$0xff]  }
 0x1b4   : > { %v25848_v50 = vpop.f32.mrb[19].mxu1  ;;  %v18702_v51 = vadd.f32 %v25824_v43, %v31227_v0  ;;  %26148 = vmatprep.subr.bf16.mxu1 %v28884_v38  ;;  %v1752_v0 = vpack.c.bf16 %v565_v60, %v565_v60  ;;  %v28921_v43 = vld [vmem:[%s30821_s9 + $0xcf8] sm:$0xff]   ;;  %v28925_v49 = vld [vmem:[%s30821_s9 + $0xd40] sm:$0xff]   ;;  %v28929_v60 = vld [vmem:[%s30821_s9 + $0xd48] sm:$0xff]  }
 0x1b5   : > { %v28922_v45 = vld [vmem:[%s30821_s9 + $0xc38] sm:$0xff]  }
 0x1b6   : > { %v31264_v54 = vadd.f32 %v25846_v44, %v18702_v51  ;;  %26127 = vmatpush3.bf16.msra.mxu0 %v28885_v39  ;;  %19259 = vmatprep.mubr.bf16.mxu0 %v1752_v0  ;;  %v28919_v39 = vld [vmem:[%s30821_s9 + $0xcb0] sm:$0xff]   ;;  %v247_v46 = vld [vmem:[%s30831_s7 + $0x60] sm:$0xff]  ;;  %v28932_v0 = vld [vmem:[%s30821_s9 + $0xd88] sm:$0xff]  }
 0x1b7   : > { %26128 = vmatprep.subr.bf16.mxu0 %v28887_v48  ;;  %26149 = vmatpush3.bf16.msra.mxu1 %v28886_v47  ;;  %v574_v47 = vrot.slane %v247_v46, %v30869_v42  ;;  %v567_v48 = vcombine.high %v247_v46, %v247_v46  ;;  %v28923_v50 = vld [vmem:[%s30821_s9 + $0xcb8] sm:$0xff]  }
 0x1b8   : > { %26150 = vmatprep.subr.bf16.mxu1 %v28888_v52 }
 0x1b9   : > { %v582_v51 = vcombine.high %v574_v47, %v574_v47  ;;  %v581_v52 = vrot.slane %v567_v48, %v30869_v42  ;;  %v28960_v48 = vld [vmem:[%s30821_s9 + $0xe00] sm:$0xff]  }
 0x1ba   : > { %26129 = vmatpush3.bf16.msra.mxu0 %v28889_v53  ;;  %v28926_v53 = vld [vmem:[%s30821_s9 + $0xdc0] sm:$0xff]  }
 0x1bb   : > { %26158 = vmatprep.subr.bf16.mxu0 %v28892_v58  ;;  %26151 = vmatpush3.bf16.msra.mxu1 %v28890_v59  ;;  %v1756_v56 = vpack.c.bf16 %v582_v51, %v582_v51  ;;  %v583_v57 = vcombine.high %v581_v52, %v581_v52  ;;  %v28928_v58 = vld [vmem:[%s30821_s9 + $0xd80] sm:$0xff]   ;;  %v1757_v59 = vpack.c.bf16 %v581_v52, %v581_v52 }
 0x1bc   : > { %26180 = vmatprep.subr.bf16.mxu1 %v28893_v62  ;;  %v28930_v62 = vld [vmem:[%s30821_s9 + $0xdc8] sm:$0xff]   ;;  %v28961_v52 = vld [vmem:[%s30821_s9 + $0xe80] sm:$0xff]  }
 0x1bd   : > { %19260 = vmatmul.mubr.bf16.vlgmr.msra.gmra.mrb[44].mxu0 %v1751_v63  ;;  %v1758_v61 = vpack.c.bf16 %v583_v57, %v583_v57  ;;  %v28931_v63 = vld [vmem:[%s30821_s9 + $0xd08] sm:$0xff]   ;;  %v28967_v57 = vld [vmem:[%s30821_s9 + $0xed0] sm:$0xff]  }
 0x1be   : > { %26159 = vmatpush3.bf16.msra.mxu0 %v28894_v2  ;;  %19300 = vmatmul.mubr.bf16.vlgmr.msra.gmra.mrb[44].mxu1 %v1753_v3  ;;  %v28934_v2 = vld [vmem:[%s30821_s9 + $0xdd0] sm:$0xff]  }
 0x1bf   : > { %26160 = vmatprep.subr.bf16.mxu0 %v28896_v4  ;;  %26181 = vmatpush3.bf16.msra.mxu1 %v28895_v6  ;;  %v28935_v3 = vld [vmem:[%s30821_s9 + $0xd10] sm:$0xff]   ;;  %v28938_v6 = vld [vmem:[%s30821_s9 + $0xdd8] sm:$0xff]  }
 0x1c0   : > { %26182 = vmatprep.subr.bf16.mxu1 %v28897_v7  ;;  %19339 = vmatprep.mubr.bf16.mxu0 %v1756_v56  ;;  %v28936_v4 = vld [vmem:[%s30821_s9 + $0xd90] sm:$0xff]   ;;  %v28939_v7 = vld [vmem:[%s30821_s9 + $0xd18] sm:$0xff]   ;;  %v28965_v56 = vld [vmem:[%s30821_s9 + $0xe88] sm:$0xff]  }
 0x1c1   : > { %19379 = vmatprep.mubr.bf16.mxu1 %v1758_v61  ;;  %v28971_v61 = vld [vmem:[%s30821_s9 + $0xed8] sm:$0xff]  }
 0x1c2   : > { %26161 = vmatpush3.bf16.msra.mxu0 %v28898_v8  ;;  %v28940_v8 = vld [vmem:[%s30821_s9 + $0xd98] sm:$0xff]  }
 0x1c3   : > { %26162 = vmatprep.subr.bf16.mxu0 %v28900_v9  ;;  %26183 = vmatpush3.bf16.msra.mxu1 %v28899_v10  ;;  %v28941_v9 = vld [vmem:[%s30821_s9 + $0xd60] sm:$0xff]  }
 0x1c4   : > { %26184 = vmatprep.subr.bf16.mxu1 %v28901_v11  ;;  %v28942_v10 = vld [vmem:[%s30821_s9 + $0xde0] sm:$0xff]  }
 0x1c5   : > { %v28943_v11 = vld [vmem:[%s30821_s9 + $0xd20] sm:$0xff]  }
 0x1c6   : > { %26163 = vmatpush3.bf16.msra.mxu0 %v28902_v12  ;;  %v28944_v12 = vld [vmem:[%s30821_s9 + $0xda0] sm:$0xff]  }
 0x1c7   : > { %26164 = vmatprep.subr.bf16.mxu0 %v28904_v13  ;;  %26185 = vmatpush3.bf16.msra.mxu1 %v28903_v14  ;;  %v28945_v13 = vld [vmem:[%s30821_s9 + $0xd68] sm:$0xff]  }
 0x1c8   : > { %26186 = vmatprep.subr.bf16.mxu1 %v28905_v15  ;;  %v28946_v14 = vld [vmem:[%s30821_s9 + $0xde8] sm:$0xff]  }
 0x1c9   : > { %v28947_v15 = vld [vmem:[%s30821_s9 + $0xd28] sm:$0xff]  }
 0x1ca   : > { %26165 = vmatpush3.bf16.msra.mxu0 %v28906_v16 }
 0x1cb   : > { %26166 = vmatprep.subr.bf16.mxu0 %v28908_v17  ;;  %26187 = vmatpush3.bf16.msra.mxu1 %v28907_v18  ;;  %v28948_v18 = vld [vmem:[%s30821_s9 + $0xda8] sm:$0xff]  }
 0x1cc   : > { %26188 = vmatprep.subr.bf16.mxu1 %v28909_v19  ;;  %v28949_v19 = vld [vmem:[%s30821_s9 + $0xd70] sm:$0xff]  }
 0x1ce   : > { %26167 = vmatpush3.bf16.msra.mxu0 %v28910_v20 }
 0x1cf   : > { %26168 = vmatprep.subr.bf16.mxu0 %v28912_v21  ;;  %26189 = vmatpush3.bf16.msra.mxu1 %v28911_v22 }
 0x1d0   : > { %v25866_v25 = vpop.f32.mrb[20].mxu0  ;;  %26190 = vmatprep.subr.bf16.mxu1 %v28913_v23 }
 0x1d1   : > { %v25888_v26 = vpop.f32.mrb[20].mxu1  ;;  %v25867_v29 = vpop.f32.mrb[21].mxu0 }
 0x1d2   : > { %v25889_v30 = vpop.f32.mrb[21].mxu1  ;;  %v25868_v31 = vadd.f32 %v25867_v29, %v25866_v25  ;;  %v25869_v33 = vpop.f32.mrb[22].mxu0  ;;  %26169 = vmatpush3.bf16.msra.mxu0 %v28914_v24 }
 0x1d3   : > { %v25890_v32 = vadd.f32 %v25889_v30, %v25888_v26  ;;  %v25891_v34 = vpop.f32.mrb[22].mxu1  ;;  %v25870_v37 = vpop.f32.mrb[23].mxu0  ;;  %26170 = vmatprep.subr.bf16.mxu0 %v28916_v28  ;;  %26191 = vmatpush3.bf16.msra.mxu1 %v28915_v27  ;;  %v28950_v26 = vld [vmem:[%s30821_s9 + $0xdf0] sm:$0xff]  }
 0x1d4   : > { %v25892_v38 = vpop.f32.mrb[23].mxu1  ;;  %v18782_v40 = vadd.f32 %v25868_v31, %v31264_v54  ;;  %26192 = vmatprep.subr.bf16.mxu1 %v28917_v35  ;;  %v1755_v54 = vpack.c.bf16 %v574_v47, %v574_v47  ;;  %v28951_v27 = vld [vmem:[%s30821_s9 + $0xd30] sm:$0xff]   ;;  %v28954_v34 = vld [vmem:[%s30821_s9 + $0xdf8] sm:$0xff]  }
 0x1d5   : > { %v28952_v31 = vld [vmem:[%s30821_s9 + $0xdb0] sm:$0xff]   ;;  %v28955_v35 = vld [vmem:[%s30821_s9 + $0xd38] sm:$0xff]  }
 0x1d6   : > { %v31301_v44 = vadd.f32 %v25890_v32, %v18782_v40  ;;  %26171 = vmatpush3.bf16.msra.mxu0 %v28918_v36  ;;  %v28953_v32 = vld [vmem:[%s30821_s9 + $0xd78] sm:$0xff]   ;;  %v248_v36 = vld [vmem:[%s30831_s7 + $0x68] sm:$0xff] }
 0x1d7   : > { %26172 = vmatprep.subr.bf16.mxu0 %v28920_v41  ;;  %26193 = vmatpush3.bf16.msra.mxu1 %v28919_v39  ;;  %v591_v37 = vrot.slane %v248_v36, %v30869_v42  ;;  %v584_v38 = vcombine.high %v248_v36, %v248_v36  ;;  %v28958_v39 = vld [vmem:[%s30821_s9 + $0xe40] sm:$0xff]   ;;  %v28956_v40 = vld [vmem:[%s30821_s9 + $0xdb8] sm:$0xff]  }
 0x1d8   : > { %26194 = vmatprep.subr.bf16.mxu1 %v28921_v43  ;;  %v28993_v36 = vld [vmem:[%s30821_s9 + $0xf00] sm:$0xff]  }
 0x1d9   : > { %v599_v41 = vcombine.high %v591_v37, %v591_v37  ;;  %v598_v43 = vrot.slane %v584_v38, %v30869_v42 }
 0x1da   : > { %26173 = vmatpush3.bf16.msra.mxu0 %v28922_v45  ;;  %v1759_v45 = vpack.c.bf16 %v591_v37, %v591_v37 }
 0x1db   : > { %26202 = vmatprep.subr.bf16.mxu0 %v28925_v49  ;;  %26195 = vmatpush3.bf16.msra.mxu1 %v28923_v50  ;;  %v1760_v46 = vpack.c.bf16 %v599_v41, %v599_v41  ;;  %v600_v47 = vcombine.high %v598_v43, %v598_v43  ;;  %v1761_v49 = vpack.c.bf16 %v598_v43, %v598_v43  ;;  %v28962_v50 = vld [vmem:[%s30821_s9 + $0xe48] sm:$0xff]  }
 0x1dc   : > { %26224 = vmatprep.subr.bf16.mxu1 %v28926_v53  ;;  %v28963_v53 = vld [vmem:[%s30821_s9 + $0xec8] sm:$0xff]  }
 0x1dd   : > { %19340 = vmatmul.mubr.bf16.vlgmr.msra.gmra.mrb[48].mxu0 %v1755_v54  ;;  %v1762_v51 = vpack.c.bf16 %v600_v47, %v600_v47  ;;  %v28964_v54 = vld [vmem:[%s30821_s9 + $0xe08] sm:$0xff]   ;;  %v28999_v47 = vld [vmem:[%s30821_s9 + $0xf50] sm:$0xff]  }
 0x1de   : > { %26203 = vmatpush3.bf16.msra.mxu0 %v28927_v55  ;;  %19380 = vmatmul.mubr.bf16.vlgmr.msra.gmra.mrb[48].mxu1 %v1757_v59  ;;  %v28966_v55 = vld [vmem:[%s30821_s9 + $0xe50] sm:$0xff]   ;;  %v28970_v59 = vld [vmem:[%s30821_s9 + $0xe58] sm:$0xff]   ;;  %v28995_v41 = vld [vmem:[%s30821_s9 + $0xf48] sm:$0xff]  }
 0x1df   : > { %26204 = vmatprep.subr.bf16.mxu0 %v28929_v60  ;;  %26225 = vmatpush3.bf16.msra.mxu1 %v28928_v58  ;;  %v28968_v58 = vld [vmem:[%s30821_s9 + $0xe10] sm:$0xff]  }
 0x1e0   : > { %26226 = vmatprep.subr.bf16.mxu1 %v28930_v62  ;;  %19419 = vmatprep.mubr.bf16.mxu0 %v1760_v46  ;;  %v28969_v60 = vld [vmem:[%s30821_s9 + $0xe90] sm:$0xff]   ;;  %v28972_v62 = vld [vmem:[%s30821_s9 + $0xe18] sm:$0xff]   ;;  %v28998_v46 = vld [vmem:[%s30821_s9 + $0xf88] sm:$0xff]  }
 0x1e1   : > { %19459 = vmatprep.mubr.bf16.mxu1 %v1762_v51  ;;  %v29003_v51 = vld [vmem:[%s30821_s9 + $0xf58] sm:$0xff]  }
 0x1e2   : > { %26205 = vmatpush3.bf16.msra.mxu0 %v28931_v63  ;;  %v28974_v63 = vld [vmem:[%s30821_s9 + $0xe60] sm:$0xff]  }
 0x1e3   : > { %26206 = vmatprep.subr.bf16.mxu0 %v28933_v1  ;;  %26227 = vmatpush3.bf16.msra.mxu1 %v28932_v0  ;;  %v28973_v0 = vld [vmem:[%s30821_s9 + $0xe98] sm:$0xff]   ;;  %v28975_v1 = vld [vmem:[%s30821_s9 + $0xee0] sm:$0xff]  }
 0x1e4   : > { %26228 = vmatprep.subr.bf16.mxu1 %v28934_v2  ;;  %v28976_v2 = vld [vmem:[%s30821_s9 + $0xe20] sm:$0xff]  }
 0x1e6   : > { %26207 = vmatpush3.bf16.msra.mxu0 %v28935_v3  ;;  %v28978_v3 = vld [vmem:[%s30821_s9 + $0xe68] sm:$0xff]  }
 0x1e7   : > { %26208 = vmatprep.subr.bf16.mxu0 %v28937_v5  ;;  %26229 = vmatpush3.bf16.msra.mxu1 %v28936_v4  ;;  %v28977_v4 = vld [vmem:[%s30821_s9 + $0xea0] sm:$0xff]  }
 0x1e8   : > { %26230 = vmatprep.subr.bf16.mxu1 %v28938_v6 }
 0x1ea   : > { %26209 = vmatpush3.bf16.msra.mxu0 %v28939_v7  ;;  %v28979_v7 = vld [vmem:[%s30821_s9 + $0xee8] sm:$0xff]  }
 0x1eb   : > { %26210 = vmatprep.subr.bf16.mxu0 %v28941_v9  ;;  %26231 = vmatpush3.bf16.msra.mxu1 %v28940_v8  ;;  %v28980_v8 = vld [vmem:[%s30821_s9 + $0xe28] sm:$0xff]  }
 0x1ec   : > { %26232 = vmatprep.subr.bf16.mxu1 %v28942_v10 }
 0x1ee   : > { %26211 = vmatpush3.bf16.msra.mxu0 %v28943_v11  ;;  %v28981_v11 = vld [vmem:[%s30821_s9 + $0xea8] sm:$0xff]  }
 0x1ef   : > { %26212 = vmatprep.subr.bf16.mxu0 %v28945_v13  ;;  %26233 = vmatpush3.bf16.msra.mxu1 %v28944_v12 }
 0x1f0   : > { %v25910_v16 = vpop.f32.mrb[24].mxu0  ;;  %26234 = vmatprep.subr.bf16.mxu1 %v28946_v14 }
 0x1f1   : > { %v25932_v17 = vpop.f32.mrb[24].mxu1  ;;  %v25911_v20 = vpop.f32.mrb[25].mxu0 }
 0x1f2   : > { %v25933_v21 = vpop.f32.mrb[25].mxu1  ;;  %v25912_v22 = vadd.f32 %v25911_v20, %v25910_v16  ;;  %v25913_v24 = vpop.f32.mrb[26].mxu0  ;;  %26213 = vmatpush3.bf16.msra.mxu0 %v28947_v15  ;;  %v28982_v16 = vld [vmem:[%s30821_s9 + $0xe70] sm:$0xff]  }
 0x1f3   : > { %v25934_v23 = vadd.f32 %v25933_v21, %v25932_v17  ;;  %v25935_v25 = vpop.f32.mrb[26].mxu1  ;;  %v25914_v28 = vpop.f32.mrb[27].mxu0  ;;  %26214 = vmatprep.subr.bf16.mxu0 %v28949_v19  ;;  %26235 = vmatpush3.bf16.msra.mxu1 %v28948_v18  ;;  %v28983_v17 = vld [vmem:[%s30821_s9 + $0xef0] sm:$0xff]   ;;  %v28986_v24 = vld [vmem:[%s30821_s9 + $0xe78] sm:$0xff]  }
 0x1f4   : > { %v25936_v29 = vpop.f32.mrb[27].mxu1  ;;  %v18862_v30 = vadd.f32 %v25912_v22, %v31301_v44  ;;  %26236 = vmatprep.subr.bf16.mxu1 %v28950_v26  ;;  %v28959_v44 = vld [vmem:[%s30821_s9 + $0xec0] sm:$0xff]   ;;  %v28984_v21 = vld [vmem:[%s30821_s9 + $0xe30] sm:$0xff]   ;;  %v28987_v25 = vld [vmem:[%s30821_s9 + $0xef8] sm:$0xff]  }
 0x1f5   : > { %v28985_v22 = vld [vmem:[%s30821_s9 + $0xeb0] sm:$0xff]   ;;  %v28988_v26 = vld [vmem:[%s30821_s9 + $0xe38] sm:$0xff]  }
 0x1f6   : > { %v31338_v33 = vadd.f32 %v25934_v23, %v18862_v30  ;;  %26215 = vmatpush3.bf16.msra.mxu0 %v28951_v27  ;;  %v249_v27 = vld [vmem:[%s30831_s7 + $0x70] sm:$0xff]  ;;  %v28991_v30 = vld [vmem:[%s30821_s9 + $0xf40] sm:$0xff]  }
 0x1f7   : > { %26216 = vmatprep.subr.bf16.mxu0 %v28953_v32  ;;  %26237 = vmatpush3.bf16.msra.mxu1 %v28952_v31  ;;  %v608_v28 = vrot.slane %v249_v27, %v30869_v42  ;;  %v601_v29 = vcombine.high %v249_v27, %v249_v27  ;;  %v28989_v31 = vld [vmem:[%s30821_s9 + $0xeb8] sm:$0xff]   ;;  %v29026_v27 = vld [vmem:[%s30821_s9 + $0x1000] sm:$0xff]  }
 0x1f8   : > { %26238 = vmatprep.subr.bf16.mxu1 %v28954_v34  ;;  %v28992_v34 = vld [vmem:[%s30821_s9 + $0xfc0] sm:$0xff]  }
 0x1f9   : > { %v616_v32 = vcombine.high %v608_v28, %v608_v28 }
 0x1fa   : > { %26217 = vmatpush3.bf16.msra.mxu0 %v28955_v35  ;;  %v1763_v35 = vpack.c.bf16 %v608_v28, %v608_v28 }
 0x1fb   : > { %26246 = vmatprep.subr.bf16.mxu0 %v28958_v39  ;;  %26239 = vmatpush3.bf16.msra.mxu1 %v28956_v40  ;;  %v1764_v37 = vpack.c.bf16 %v616_v32, %v616_v32  ;;  %v28994_v39 = vld [vmem:[%s30821_s9 + $0xf80] sm:$0xff]   ;;  %v29028_v32 = vld [vmem:[%s30821_s9 + $0x1048] sm:$0xff]  }
 0x1fc   : > { %26268 = vmatprep.subr.bf16.mxu1 %v28959_v44  ;;  %v28996_v44 = vld [vmem:[%s30821_s9 + $0xfc8] sm:$0xff]  }
 0x1fd   : > { %19420 = vmatmul.mubr.bf16.vlgmr.msra.gmra.mrb[52].mxu0 %v1759_v45  ;;  %v28997_v45 = vld [vmem:[%s30821_s9 + $0xf08] sm:$0xff]  }
 0x1fe   : > { %26247 = vmatpush3.bf16.msra.mxu0 %v28960_v48  ;;  %19460 = vmatmul.mubr.bf16.vlgmr.msra.gmra.mrb[52].mxu1 %v1761_v49  ;;  %v29000_v48 = vld [vmem:[%s30821_s9 + $0xfd0] sm:$0xff]  }
 0x1ff   : > { %26248 = vmatprep.subr.bf16.mxu0 %v28962_v50  ;;  %26269 = vmatpush3.bf16.msra.mxu1 %v28961_v52  ;;  %v29001_v49 = vld [vmem:[%s30821_s9 + $0xf10] sm:$0xff]   ;;  %v29004_v52 = vld [vmem:[%s30821_s9 + $0xfd8] sm:$0xff]  }
 0x200   : > { %26270 = vmatprep.subr.bf16.mxu1 %v28963_v53  ;;  %19499 = vmatprep.mubr.bf16.mxu0 %v1764_v37  ;;  %v29002_v50 = vld [vmem:[%s30821_s9 + $0xf90] sm:$0xff]   ;;  %v29005_v53 = vld [vmem:[%s30821_s9 + $0xf18] sm:$0xff]  }
 0x201   : > { %v29032_v37 = vld [vmem:[%s30821_s9 + $0x1050] sm:$0xff]  }
 0x202   : > { %26249 = vmatpush3.bf16.msra.mxu0 %v28964_v54  ;;  %v29006_v54 = vld [vmem:[%s30821_s9 + $0xf98] sm:$0xff]  }
 0x203   : > { %26250 = vmatprep.subr.bf16.mxu0 %v28966_v55  ;;  %26271 = vmatpush3.bf16.msra.mxu1 %v28965_v56  ;;  %v29007_v55 = vld [vmem:[%s30821_s9 + $0xf60] sm:$0xff]  }
 0x204   : > { %26272 = vmatprep.subr.bf16.mxu1 %v28967_v57  ;;  %v29008_v56 = vld [vmem:[%s30821_s9 + $0xfe0] sm:$0xff]  }
 0x205   : > { %v29009_v57 = vld [vmem:[%s30821_s9 + $0xf20] sm:$0xff]  }
 0x206   : > { %26251 = vmatpush3.bf16.msra.mxu0 %v28968_v58  ;;  %v29010_v58 = vld [vmem:[%s30821_s9 + $0xfa0] sm:$0xff]  }
 0x207   : > { %26252 = vmatprep.subr.bf16.mxu0 %v28970_v59  ;;  %26273 = vmatpush3.bf16.msra.mxu1 %v28969_v60  ;;  %v29011_v59 = vld [vmem:[%s30821_s9 + $0xf68] sm:$0xff]  }
 0x208   : > { %26274 = vmatprep.subr.bf16.mxu1 %v28971_v61 }
 0x20a   : > { %26253 = vmatpush3.bf16.msra.mxu0 %v28972_v62  ;;  %v29012_v62 = vld [vmem:[%s30821_s9 + $0xfe8] sm:$0xff]  }
 0x20b   : > { %26254 = vmatprep.subr.bf16.mxu0 %v28974_v63  ;;  %26275 = vmatpush3.bf16.msra.mxu1 %v28973_v0  ;;  %v29013_v63 = vld [vmem:[%s30821_s9 + $0xf28] sm:$0xff]  }
 0x20c   : > { %26276 = vmatprep.subr.bf16.mxu1 %v28975_v1 }
 0x20e   : > { %26255 = vmatpush3.bf16.msra.mxu0 %v28976_v2 }
 0x20f   : > { %26256 = vmatprep.subr.bf16.mxu0 %v28978_v3  ;;  %26277 = vmatpush3.bf16.msra.mxu1 %v28977_v4 }
 0x210   : > { %v25954_v5 = vpop.f32.mrb[28].mxu0  ;;  %26278 = vmatprep.subr.bf16.mxu1 %v28979_v7  ;;  %v29015_v7 = vld [vmem:[%s30821_s9 + $0xf70] sm:$0xff]  }
 0x211   : > { %v25976_v6 = vpop.f32.mrb[28].mxu1  ;;  %v25955_v9 = vpop.f32.mrb[29].mxu0 }
 0x212   : > { %v25977_v10 = vpop.f32.mrb[29].mxu1  ;;  %v25956_v12 = vadd.f32 %v25955_v9, %v25954_v5  ;;  %v25957_v14 = vpop.f32.mrb[30].mxu0  ;;  %26257 = vmatpush3.bf16.msra.mxu0 %v28980_v8 }
 0x213   : > { %v25978_v13 = vadd.f32 %v25977_v10, %v25976_v6  ;;  %v25979_v15 = vpop.f32.mrb[30].mxu1  ;;  %v25958_v18 = vpop.f32.mrb[31].mxu0  ;;  %26258 = vmatprep.subr.bf16.mxu0 %v28982_v16  ;;  %26279 = vmatpush3.bf16.msra.mxu1 %v28981_v11  ;;  %v29014_v6 = vld [vmem:[%s30821_s9 + $0xfa8] sm:$0xff]   ;;  %v29016_v11 = vld [vmem:[%s30821_s9 + $0xff0] sm:$0xff]   ;;  %v29020_v16 = vld [vmem:[%s30821_s9 + $0xff8] sm:$0xff]  }
 0x214   : > { %v25980_v19 = vpop.f32.mrb[31].mxu1  ;;  %v18942_v20 = vadd.f32 %v25956_v12, %v31338_v33  ;;  %26280 = vmatprep.subr.bf16.mxu1 %v28983_v17  ;;  %v615_v33 = vrot.slane %v601_v29, %v30869_v42  ;;  %v29017_v12 = vld [vmem:[%s30821_s9 + $0xf30] sm:$0xff]   ;;  %v29019_v15 = vld [vmem:[%s30821_s9 + $0xf78] sm:$0xff]  }
 0x215   : > { %v29018_v14 = vld [vmem:[%s30821_s9 + $0xfb0] sm:$0xff]   ;;  %v29021_v17 = vld [vmem:[%s30821_s9 + $0xf38] sm:$0xff]  }
 0x216   : > { %v31375_v23 = vadd.f32 %v25978_v13, %v18942_v20  ;;  %26259 = vmatpush3.bf16.msra.mxu0 %v28984_v21  ;;  %v617_v38 = vcombine.high %v615_v33, %v615_v33  ;;  %v1765_v40 = vpack.c.bf16 %v615_v33, %v615_v33  ;;  %v250_v18 = vld [vmem:[%s30831_s7 + $0x78] sm:$0xff]  ;;  %v29024_v21 = vld [vmem:[%s30821_s9 + $0x1040] sm:$0xff]  }
 0x217   : > { %26260 = vmatprep.subr.bf16.mxu0 %v28986_v24  ;;  %26281 = vmatpush3.bf16.msra.mxu1 %v28985_v22  ;;  %v625_v19 = vrot.slane %v250_v18, %v30869_v42  ;;  %v618_v20 = vcombine.high %v250_v18, %v250_v18  ;;  %v29022_v22 = vld [vmem:[%s30821_s9 + $0xfb8] sm:$0xff]   ;;  %v29059_v18 = vld [vmem:[%s30821_s9 + $0x1100] sm:$0xff]  }
 0x218   : > { %26282 = vmatprep.subr.bf16.mxu1 %v28987_v25  ;;  %v1766_v43 = vpack.c.bf16 %v617_v38, %v617_v38  ;;  %v29025_v25 = vld [vmem:[%s30821_s9 + $0x10c0] sm:$0xff]   ;;  %v29033_v38 = vld [vmem:[%s30821_s9 + $0x10d0] sm:$0xff]  }
 0x219   : > { %v632_v24 = vrot.slane %v618_v20, %v30869_v42 }
 0x21a   : > { %26261 = vmatpush3.bf16.msra.mxu0 %v28988_v26  ;;  %19539 = vmatprep.mubr.bf16.mxu1 %v1766_v43  ;;  %v1767_v26 = vpack.c.bf16 %v625_v19, %v625_v19  ;;  %v29037_v43 = vld [vmem:[%s30821_s9 + $0x10d8] sm:$0xff]  }
 0x21b   : > { %26290 = vmatprep.subr.bf16.mxu0 %v28991_v30  ;;  %26283 = vmatpush3.bf16.msra.mxu1 %v28989_v31  ;;  %v634_v29 = vcombine.high %v632_v24, %v632_v24  ;;  %v29027_v30 = vld [vmem:[%s30821_s9 + $0x1080] sm:$0xff]   ;;  %v1769_v31 = vpack.c.bf16 %v632_v24, %v632_v24 }
 0x21c   : > { %26312 = vmatprep.subr.bf16.mxu1 %v28992_v34  ;;  %v29029_v34 = vld [vmem:[%s30821_s9 + $0x10c8] sm:$0xff]  }
 0x21d   : > { %19500 = vmatmul.mubr.bf16.vlgmr.msra.gmra.mrb[56].mxu0 %v1763_v35  ;;  %v1770_v33 = vpack.c.bf16 %v634_v29, %v634_v29  ;;  %v29030_v35 = vld [vmem:[%s30821_s9 + $0x1008] sm:$0xff]   ;;  %v29066_v29 = vld [vmem:[%s30821_s9 + $0x11d0] sm:$0xff]  }
 0x21e   : > { %26291 = vmatpush3.bf16.msra.mxu0 %v28993_v36  ;;  %19540 = vmatmul.mubr.bf16.vlgmr.msra.gmra.mrb[56].mxu1 %v1765_v40  ;;  %v29031_v36 = vld [vmem:[%s30821_s9 + $0x1088] sm:$0xff]   ;;  %v29035_v40 = vld [vmem:[%s30821_s9 + $0x1090] sm:$0xff]  }
 0x21f   : > { %26292 = vmatprep.subr.bf16.mxu0 %v28995_v41  ;;  %26313 = vmatpush3.bf16.msra.mxu1 %v28994_v39  ;;  %v29034_v39 = vld [vmem:[%s30821_s9 + $0x1010] sm:$0xff]   ;;  %v29036_v41 = vld [vmem:[%s30821_s9 + $0x1058] sm:$0xff]  }
 0x220   : > { %26314 = vmatprep.subr.bf16.mxu1 %v28996_v44  ;;  %19619 = vmatprep.mubr.bf16.mxu1 %v1770_v33  ;;  %v29038_v44 = vld [vmem:[%s30821_s9 + $0x1018] sm:$0xff]  }
 0x221   : > { %v29070_v33 = vld [vmem:[%s30821_s9 + $0x11d8] sm:$0xff]  }
 0x222   : > { %26293 = vmatpush3.bf16.msra.mxu0 %v28997_v45  ;;  %v29039_v45 = vld [vmem:[%s30821_s9 + $0x1098] sm:$0xff]  }
 0x223   : > { %26294 = vmatprep.subr.bf16.mxu0 %v28999_v47  ;;  %26315 = vmatpush3.bf16.msra.mxu1 %v28998_v46  ;;  %v29040_v46 = vld [vmem:[%s30821_s9 + $0x1060] sm:$0xff]  }
 0x224   : > { %26316 = vmatprep.subr.bf16.mxu1 %v29000_v48  ;;  %v29041_v47 = vld [vmem:[%s30821_s9 + $0x10e0] sm:$0xff]  }
 0x225   : > { %v29042_v48 = vld [vmem:[%s30821_s9 + $0x1020] sm:$0xff]  }
 0x226   : > { %26295 = vmatpush3.bf16.msra.mxu0 %v29001_v49  ;;  %v29043_v49 = vld [vmem:[%s30821_s9 + $0x10a0] sm:$0xff]  }
 0x227   : > { %26296 = vmatprep.subr.bf16.mxu0 %v29003_v51  ;;  %26317 = vmatpush3.bf16.msra.mxu1 %v29002_v50  ;;  %v29044_v51 = vld [vmem:[%s30821_s9 + $0x1068] sm:$0xff]  }
 0x228   : > { %26318 = vmatprep.subr.bf16.mxu1 %v29004_v52 }
 0x22a   : > { %26297 = vmatpush3.bf16.msra.mxu0 %v29005_v53 }
 0x22b   : > { %26298 = vmatprep.subr.bf16.mxu0 %v29007_v55  ;;  %26319 = vmatpush3.bf16.msra.mxu1 %v29006_v54  ;;  %v29045_v54 = vld [vmem:[%s30821_s9 + $0x10e8] sm:$0xff]  }
 0x22c   : > { %26320 = vmatprep.subr.bf16.mxu1 %v29008_v56  ;;  %v29046_v55 = vld [vmem:[%s30821_s9 + $0x1028] sm:$0xff]  }
 0x22e   : > { %26299 = vmatpush3.bf16.msra.mxu0 %v29009_v57 }
 0x22f   : > { %26300 = vmatprep.subr.bf16.mxu0 %v29011_v59  ;;  %26321 = vmatpush3.bf16.msra.mxu1 %v29010_v58 }
 0x230   : > { %v25998_v60 = vpop.f32.mrb[32].mxu0  ;;  %26322 = vmatprep.subr.bf16.mxu1 %v29012_v62 }
 0x231   : > { %v26020_v61 = vpop.f32.mrb[32].mxu1  ;;  %v25999_v0 = vpop.f32.mrb[33].mxu0 }
 0x232   : > { %v26021_v1 = vpop.f32.mrb[33].mxu1  ;;  %v26000_v2 = vadd.f32 %v25999_v0, %v25998_v60  ;;  %v26001_v4 = vpop.f32.mrb[34].mxu0  ;;  %26301 = vmatpush3.bf16.msra.mxu0 %v29013_v63  ;;  %v29048_v63 = vld [vmem:[%s30821_s9 + $0x1070] sm:$0xff]  }
 0x233   : > { %v26022_v3 = vadd.f32 %v26021_v1, %v26020_v61  ;;  %v26023_v5 = vpop.f32.mrb[34].mxu1  ;;  %v26002_v8 = vpop.f32.mrb[35].mxu0  ;;  %26302 = vmatprep.subr.bf16.mxu0 %v29015_v7  ;;  %26323 = vmatpush3.bf16.msra.mxu1 %v29014_v6  ;;  %v29047_v61 = vld [vmem:[%s30821_s9 + $0x10a8] sm:$0xff]   ;;  %v29050_v4 = vld [vmem:[%s30821_s9 + $0x1030] sm:$0xff]   ;;  %v29052_v6 = vld [vmem:[%s30821_s9 + $0x1078] sm:$0xff]  }
 0x234   : > { %v26024_v9 = vpop.f32.mrb[35].mxu1  ;;  %v19022_v10 = vadd.f32 %v26000_v2, %v31375_v23  ;;  %26324 = vmatprep.subr.bf16.mxu1 %v29016_v11  ;;  %v633_v23 = vcombine.high %v625_v19, %v625_v19  ;;  %v29049_v2 = vld [vmem:[%s30821_s9 + $0x10f0] sm:$0xff]   ;;  %v29053_v7 = vld [vmem:[%s30821_s9 + $0x10f8] sm:$0xff]  }
 0x235   : > { %v29051_v5 = vld [vmem:[%s30821_s9 + $0x10b0] sm:$0xff]   ;;  %v29054_v8 = vld [vmem:[%s30821_s9 + $0x1038] sm:$0xff]  }
 0x236   : > { %v31412_v13 = vadd.f32 %v26022_v3, %v19022_v10  ;;  %26303 = vmatpush3.bf16.msra.mxu0 %v29017_v12  ;;  %v1768_v28 = vpack.c.bf16 %v633_v23, %v633_v23  ;;  %v251_v9 = vld [vmem:[%s30831_s7 + $0x80] sm:$0xff]  ;;  %v29061_v23 = vld [vmem:[%s30821_s9 + $0x1148] sm:$0xff]  }
 0x237   : > { %26304 = vmatprep.subr.bf16.mxu0 %v29019_v15  ;;  %26325 = vmatpush3.bf16.msra.mxu1 %v29018_v14  ;;  %v29055_v10 = vld [vmem:[%s30821_s9 + $0x10b8] sm:$0xff]   ;;  %v642_v11 = vrot.slane %v251_v9, %v30869_v42  ;;  %v635_v12 = vcombine.high %v251_v9, %v251_v9 }
 0x238   : > { %26326 = vmatprep.subr.bf16.mxu1 %v29020_v16  ;;  %19579 = vmatprep.mubr.bf16.mxu0 %v1768_v28  ;;  %v29058_v16 = vld [vmem:[%s30821_s9 + $0x11c0] sm:$0xff]   ;;  %v29065_v28 = vld [vmem:[%s30821_s9 + $0x1150] sm:$0xff]  }
 0x239   : > { %v650_v14 = vcombine.high %v642_v11, %v642_v11  ;;  %v649_v15 = vrot.slane %v635_v12, %v30869_v42 }
 0x23a   : > { %26305 = vmatpush3.bf16.msra.mxu0 %v29021_v17  ;;  %v1771_v17 = vpack.c.bf16 %v642_v11, %v642_v11  ;;  %v29092_v11 = vld [vmem:[%s30821_s9 + $0x1200] sm:$0xff]  }
 0x23b   : > { %26334 = vmatprep.subr.bf16.mxu0 %v29024_v21  ;;  %26327 = vmatpush3.bf16.msra.mxu1 %v29022_v22  ;;  %v1772_v19 = vpack.c.bf16 %v650_v14, %v650_v14  ;;  %v651_v20 = vcombine.high %v649_v15, %v649_v15  ;;  %v29060_v21 = vld [vmem:[%s30821_s9 + $0x1180] sm:$0xff]   ;;  %v1773_v22 = vpack.c.bf16 %v649_v15, %v649_v15 }
 0x23c   : > { %26356 = vmatprep.subr.bf16.mxu1 %v29025_v25  ;;  %v29062_v25 = vld [vmem:[%s30821_s9 + $0x11c8] sm:$0xff]   ;;  %v29093_v15 = vld [vmem:[%s30821_s9 + $0x1280] sm:$0xff]  }
 0x23d   : > { %19580 = vmatmul.mubr.bf16.vlgmr.msra.gmra.mrb[60].mxu0 %v1767_v26  ;;  %v1774_v24 = vpack.c.bf16 %v651_v20, %v651_v20  ;;  %v29063_v26 = vld [vmem:[%s30821_s9 + $0x1108] sm:$0xff]   ;;  %v29099_v20 = vld [vmem:[%s30821_s9 + $0x12d0] sm:$0xff]  }
 0x23e   : > { %26335 = vmatpush3.bf16.msra.mxu0 %v29026_v27  ;;  %19620 = vmatmul.mubr.bf16.vlgmr.msra.gmra.mrb[60].mxu1 %v1769_v31  ;;  %v29064_v27 = vld [vmem:[%s30821_s9 + $0x1188] sm:$0xff]   ;;  %v29068_v31 = vld [vmem:[%s30821_s9 + $0x1190] sm:$0xff]  }
 0x23f   : > { %26336 = vmatprep.subr.bf16.mxu0 %v29028_v32  ;;  %26357 = vmatpush3.bf16.msra.mxu1 %v29027_v30  ;;  %v29067_v30 = vld [vmem:[%s30821_s9 + $0x1110] sm:$0xff]   ;;  %v29069_v32 = vld [vmem:[%s30821_s9 + $0x1158] sm:$0xff]  }
 0x240   : > { %26358 = vmatprep.subr.bf16.mxu1 %v29029_v34  ;;  %19659 = vmatprep.mubr.bf16.mxu0 %v1772_v19  ;;  %v29071_v34 = vld [vmem:[%s30821_s9 + $0x1118] sm:$0xff]   ;;  %v29097_v19 = vld [vmem:[%s30821_s9 + $0x1288] sm:$0xff]  }
 0x241   : > { %19699 = vmatprep.mubr.bf16.mxu1 %v1774_v24  ;;  %v29103_v24 = vld [vmem:[%s30821_s9 + $0x12d8] sm:$0xff]  }
 0x242   : > { %26337 = vmatpush3.bf16.msra.mxu0 %v29030_v35  ;;  %v29072_v35 = vld [vmem:[%s30821_s9 + $0x1198] sm:$0xff]  }
 0x243   : > { %26338 = vmatprep.subr.bf16.mxu0 %v29032_v37  ;;  %26359 = vmatpush3.bf16.msra.mxu1 %v29031_v36  ;;  %v29073_v36 = vld [vmem:[%s30821_s9 + $0x1160] sm:$0xff]  }
 0x244   : > { %26360 = vmatprep.subr.bf16.mxu1 %v29033_v38  ;;  %v29074_v37 = vld [vmem:[%s30821_s9 + $0x11e0] sm:$0xff]  }
 0x245   : > { %v29075_v38 = vld [vmem:[%s30821_s9 + $0x1120] sm:$0xff]  }
 0x246   : > { %26339 = vmatpush3.bf16.msra.mxu0 %v29034_v39  ;;  %v29076_v39 = vld [vmem:[%s30821_s9 + $0x11a0] sm:$0xff]  }
 0x247   : > { %26340 = vmatprep.subr.bf16.mxu0 %v29036_v41  ;;  %26361 = vmatpush3.bf16.msra.mxu1 %v29035_v40  ;;  %v29077_v41 = vld [vmem:[%s30821_s9 + $0x1168] sm:$0xff]  }
 0x248   : > { %26362 = vmatprep.subr.bf16.mxu1 %v29037_v43 }
 0x24a   : > { %26341 = vmatpush3.bf16.msra.mxu0 %v29038_v44  ;;  %v29078_v44 = vld [vmem:[%s30821_s9 + $0x11e8] sm:$0xff]  }
 0x24b   : > { %26342 = vmatprep.subr.bf16.mxu0 %v29040_v46  ;;  %26363 = vmatpush3.bf16.msra.mxu1 %v29039_v45 }
 0x24c   : > { %26364 = vmatprep.subr.bf16.mxu1 %v29041_v47 }
 0x24e   : > { %26343 = vmatpush3.bf16.msra.mxu0 %v29042_v48 }
 0x24f   : > { %26344 = vmatprep.subr.bf16.mxu0 %v29044_v51  ;;  %26365 = vmatpush3.bf16.msra.mxu1 %v29043_v49  ;;  %v29079_v49 = vld [vmem:[%s30821_s9 + $0x1128] sm:$0xff]  }
 0x250   : > { %v26042_v50 = vpop.f32.mrb[36].mxu0  ;;  %26366 = vmatprep.subr.bf16.mxu1 %v29045_v54 }
 0x251   : > { %v26064_v52 = vpop.f32.mrb[36].mxu1  ;;  %v26043_v53 = vpop.f32.mrb[37].mxu0 }
 0x252   : > { %v26044_v56 = vadd.f32 %v26043_v53, %v26042_v50  ;;  %v26065_v57 = vpop.f32.mrb[37].mxu1  ;;  %v26045_v58 = vpop.f32.mrb[38].mxu0  ;;  %26345 = vmatpush3.bf16.msra.mxu0 %v29046_v55  ;;  %v29080_v50 = vld [vmem:[%s30821_s9 + $0x11a8] sm:$0xff]   ;;  %v29081_v55 = vld [vmem:[%s30821_s9 + $0x1170] sm:$0xff]  }
 0x253   : > { %v26066_v59 = vadd.f32 %v26065_v57, %v26064_v52  ;;  %v26067_v60 = vpop.f32.mrb[38].mxu1  ;;  %v26046_v62 = vpop.f32.mrb[39].mxu0  ;;  %26346 = vmatprep.subr.bf16.mxu0 %v29048_v63  ;;  %26367 = vmatpush3.bf16.msra.mxu1 %v29047_v61  ;;  %v29082_v57 = vld [vmem:[%s30821_s9 + $0x11f0] sm:$0xff]   ;;  %v29087_v63 = vld [vmem:[%s30821_s9 + $0x1138] sm:$0xff]  }
 0x254   : > { %v19102_v0 = vadd.f32 %v26044_v56, %v31412_v13  ;;  %v26068_v1 = vpop.f32.mrb[39].mxu1  ;;  %26368 = vmatprep.subr.bf16.mxu1 %v29049_v2  ;;  %v29057_v13 = vld [vmem:[%s30821_s9 + $0x1140] sm:$0xff]   ;;  %v29085_v60 = vld [vmem:[%s30821_s9 + $0x1178] sm:$0xff]   ;;  %v29084_v61 = vld [vmem:[%s30821_s9 + $0x11b0] sm:$0xff]  }
 0x255   : > { %v29086_v62 = vld [vmem:[%s30821_s9 + $0x11f8] sm:$0xff]  }
 0x256   : > { %v31449_v3 = vadd.f32 %v26066_v59, %v19102_v0  ;;  %26347 = vmatpush3.bf16.msra.mxu0 %v29050_v4  ;;  %v29083_v59 = vld [vmem:[%s30821_s9 + $0x1130] sm:$0xff]   ;;  %v252_v0 = vld [vmem:[%s30831_s7 + $0x88] sm:$0xff]  ;;  %v29088_v4 = vld [vmem:[%s30821_s9 + $0x11b8] sm:$0xff]  }
 0x257   : > { %26348 = vmatprep.subr.bf16.mxu0 %v29052_v6  ;;  %26369 = vmatpush3.bf16.msra.mxu1 %v29051_v5  ;;  %v659_v1 = vrot.slane %v252_v0, %v30869_v42  ;;  %v652_v2 = vcombine.high %v252_v0, %v252_v0 }
 0x258   : > { %26370 = vmatprep.subr.bf16.mxu1 %v29053_v7  ;;  %v29091_v7 = vld [vmem:[%s30821_s9 + $0x12c0] sm:$0xff]  }
 0x259   : > { %v667_v5 = vcombine.high %v659_v1, %v659_v1  ;;  %v666_v6 = vrot.slane %v652_v2, %v30869_v42  ;;  %v29125_v2 = vld [vmem:[%s30821_s9 + $0x1300] sm:$0xff]  }
 0x25a   : > { %26349 = vmatpush3.bf16.msra.mxu0 %v29054_v8  ;;  %v1775_v8 = vpack.c.bf16 %v659_v1, %v659_v1 }
 0x25b   : > { %26378 = vmatprep.subr.bf16.mxu0 %v29057_v13  ;;  %26371 = vmatpush3.bf16.msra.mxu1 %v29055_v10  ;;  %v1776_v9 = vpack.c.bf16 %v667_v5, %v667_v5  ;;  %v668_v10 = vcombine.high %v666_v6, %v666_v6  ;;  %v1777_v12 = vpack.c.bf16 %v666_v6, %v666_v6  ;;  %v29094_v13 = vld [vmem:[%s30821_s9 + $0x1248] sm:$0xff]   ;;  %v29126_v6 = vld [vmem:[%s30821_s9 + $0x1380] sm:$0xff]  }
 0x25c   : > { %26400 = vmatprep.subr.bf16.mxu1 %v29058_v16  ;;  %v29095_v16 = vld [vmem:[%s30821_s9 + $0x12c8] sm:$0xff]  }
 0x25d   : > { %19660 = vmatmul.mubr.bf16.vlgmr.msra.gmra.mrb[64].mxu0 %v1771_v17  ;;  %v1778_v14 = vpack.c.bf16 %v668_v10, %v668_v10  ;;  %v29096_v17 = vld [vmem:[%s30821_s9 + $0x1208] sm:$0xff]  }
 0x25e   : > { %26379 = vmatpush3.bf16.msra.mxu0 %v29059_v18  ;;  %19700 = vmatmul.mubr.bf16.vlgmr.msra.gmra.mrb[64].mxu1 %v1773_v22  ;;  %v29098_v18 = vld [vmem:[%s30821_s9 + $0x1250] sm:$0xff]   ;;  %v29102_v22 = vld [vmem:[%s30821_s9 + $0x1258] sm:$0xff]   ;;  %v29130_v10 = vld [vmem:[%s30821_s9 + $0x1388] sm:$0xff]  }
 0x25f   : > { %26380 = vmatprep.subr.bf16.mxu0 %v29061_v23  ;;  %26401 = vmatpush3.bf16.msra.mxu1 %v29060_v21  ;;  %v29100_v21 = vld [vmem:[%s30821_s9 + $0x1210] sm:$0xff]  }
 0x260   : > { %26402 = vmatprep.subr.bf16.mxu1 %v29062_v25  ;;  %19739 = vmatprep.mubr.bf16.mxu0 %v1776_v9  ;;  %v29101_v23 = vld [vmem:[%s30821_s9 + $0x1290] sm:$0xff]   ;;  %v29104_v25 = vld [vmem:[%s30821_s9 + $0x1218] sm:$0xff]  }
 0x261   : > { %19779 = vmatprep.mubr.bf16.mxu1 %v1778_v14  ;;  %v29131_v9 = vld [vmem:[%s30821_s9 + $0x1350] sm:$0xff]  }
 0x262   : > { %26381 = vmatpush3.bf16.msra.mxu0 %v29063_v26  ;;  %v29106_v26 = vld [vmem:[%s30821_s9 + $0x1260] sm:$0xff]   ;;  %v29134_v14 = vld [vmem:[%s30821_s9 + $0x1390] sm:$0xff]  }
 0x263   : > { %26382 = vmatprep.subr.bf16.mxu0 %v29065_v28  ;;  %26403 = vmatpush3.bf16.msra.mxu1 %v29064_v27  ;;  %v29105_v27 = vld [vmem:[%s30821_s9 + $0x1298] sm:$0xff]   ;;  %v29107_v28 = vld [vmem:[%s30821_s9 + $0x12e0] sm:$0xff]  }
 0x264   : > { %26404 = vmatprep.subr.bf16.mxu1 %v29066_v29  ;;  %v29108_v29 = vld [vmem:[%s30821_s9 + $0x1220] sm:$0xff]  }
 0x266   : > { %26383 = vmatpush3.bf16.msra.mxu0 %v29067_v30 }
 0x267   : > { %26384 = vmatprep.subr.bf16.mxu0 %v29069_v32  ;;  %26405 = vmatpush3.bf16.msra.mxu1 %v29068_v31  ;;  %v29110_v31 = vld [vmem:[%s30821_s9 + $0x1268] sm:$0xff]   ;;  %v29109_v32 = vld [vmem:[%s30821_s9 + $0x12a0] sm:$0xff]  }
 0x268   : > { %26406 = vmatprep.subr.bf16.mxu1 %v29070_v33 }
 0x26a   : > { %26385 = vmatpush3.bf16.msra.mxu0 %v29071_v34 }
 0x26b   : > { %26386 = vmatprep.subr.bf16.mxu0 %v29073_v36  ;;  %26407 = vmatpush3.bf16.msra.mxu1 %v29072_v35  ;;  %v29111_v36 = vld [vmem:[%s30821_s9 + $0x12e8] sm:$0xff]  }
 0x26c   : > { %26408 = vmatprep.subr.bf16.mxu1 %v29074_v37 }
 0x26e   : > { %26387 = vmatpush3.bf16.msra.mxu0 %v29075_v38  ;;  %v29112_v38 = vld [vmem:[%s30821_s9 + $0x1228] sm:$0xff]  }
 0x26f   : > { %26388 = vmatprep.subr.bf16.mxu0 %v29077_v41  ;;  %26409 = vmatpush3.bf16.msra.mxu1 %v29076_v39 }
 0x270   : > { %v26086_v40 = vpop.f32.mrb[40].mxu0  ;;  %26410 = vmatprep.subr.bf16.mxu1 %v29078_v44 }
 0x271   : > { %v26087_v43 = vpop.f32.mrb[41].mxu0  ;;  %v26108_v45 = vpop.f32.mrb[40].mxu1 }
 0x272   : > { %v26088_v46 = vadd.f32 %v26087_v43, %v26086_v40  ;;  %v26089_v47 = vpop.f32.mrb[42].mxu0  ;;  %v26109_v48 = vpop.f32.mrb[41].mxu1  ;;  %26389 = vmatpush3.bf16.msra.mxu0 %v29079_v49  ;;  %v29113_v40 = vld [vmem:[%s30821_s9 + $0x12a8] sm:$0xff]  }
 0x273   : > { %v26090_v51 = vpop.f32.mrb[43].mxu0  ;;  %v26110_v53 = vadd.f32 %v26109_v48, %v26108_v45  ;;  %v26111_v54 = vpop.f32.mrb[42].mxu1  ;;  %26390 = vmatprep.subr.bf16.mxu0 %v29081_v55  ;;  %26411 = vmatpush3.bf16.msra.mxu1 %v29080_v50  ;;  %v29115_v48 = vld [vmem:[%s30821_s9 + $0x12f0] sm:$0xff]  }
 0x274   : > { %v19182_v52 = vadd.f32 %v26088_v46, %v31449_v3  ;;  %v26112_v56 = vpop.f32.mrb[43].mxu1  ;;  %26412 = vmatprep.subr.bf16.mxu1 %v29082_v57  ;;  %v29090_v3 = vld [vmem:[%s30821_s9 + $0x1240] sm:$0xff]   ;;  %v29114_v46 = vld [vmem:[%s30821_s9 + $0x1270] sm:$0xff]   ;;  %v29120_v54 = vld [vmem:[%s30821_s9 + $0x1238] sm:$0xff]  }
 0x275   : > { %v29116_v50 = vld [vmem:[%s30821_s9 + $0x1230] sm:$0xff]  }
 0x276   : > { %v31487_v58 = vadd.f32 %v26110_v53, %v19182_v52  ;;  %26391 = vmatpush3.bf16.msra.mxu0 %v29083_v59  ;;  %v29117_v51 = vld [vmem:[%s30821_s9 + $0x12b0] sm:$0xff]   ;;  %v29118_v52 = vld [vmem:[%s30821_s9 + $0x1278] sm:$0xff]  }
 0x277   : > { %26392 = vmatprep.subr.bf16.mxu0 %v29085_v60  ;;  %26413 = vmatpush3.bf16.msra.mxu1 %v29084_v61  ;;  %v29119_v53 = vld [vmem:[%s30821_s9 + $0x12f8] sm:$0xff]   ;;  %v253_v55 = vld [vmem:[%s30831_s7 + $0x90] sm:$0xff] }
 0x278   : > { %26414 = vmatprep.subr.bf16.mxu1 %v29086_v62  ;;  %v676_v56 = vrot.slane %v253_v55, %v30869_v42  ;;  %v669_v57 = vcombine.high %v253_v55, %v253_v55  ;;  %v29121_v59 = vld [vmem:[%s30821_s9 + $0x12b8] sm:$0xff]   ;;  %v29124_v62 = vld [vmem:[%s30821_s9 + $0x13c0] sm:$0xff]  }
 0x279   : > { %v29158_v55 = vld [vmem:[%s30821_s9 + $0x1400] sm:$0xff]  }
 0x27a   : > { %26393 = vmatpush3.bf16.msra.mxu0 %v29087_v63  ;;  %v684_v60 = vcombine.high %v676_v56, %v676_v56  ;;  %v683_v61 = vrot.slane %v669_v57, %v30869_v42  ;;  %v1779_v63 = vpack.c.bf16 %v676_v56, %v676_v56 }
 0x27b   : > { %26422 = vmatprep.subr.bf16.mxu0 %v29090_v3  ;;  %26415 = vmatpush3.bf16.msra.mxu1 %v29088_v4  ;;  %v29127_v4 = vld [vmem:[%s30821_s9 + $0x1348] sm:$0xff]  }
 0x27c   : > { %26444 = vmatprep.subr.bf16.mxu1 %v29091_v7  ;;  %v1780_v0 = vpack.c.bf16 %v684_v60, %v684_v60  ;;  %v685_v1 = vcombine.high %v683_v61, %v683_v61  ;;  %v1781_v3 = vpack.c.bf16 %v683_v61, %v683_v61  ;;  %v29128_v7 = vld [vmem:[%s30821_s9 + $0x13c8] sm:$0xff]  }
 0x27d   : > { %19740 = vmatmul.mubr.bf16.vlgmr.msra.gmra.mrb[68].mxu0 %v1775_v8  ;;  %v29129_v8 = vld [vmem:[%s30821_s9 + $0x1308] sm:$0xff]  }
 0x27e   : > { %26423 = vmatpush3.bf16.msra.mxu0 %v29092_v11  ;;  %19780 = vmatmul.mubr.bf16.vlgmr.msra.gmra.mrb[68].mxu1 %v1777_v12  ;;  %v1782_v5 = vpack.c.bf16 %v685_v1, %v685_v1  ;;  %v29132_v11 = vld [vmem:[%s30821_s9 + $0x13d0] sm:$0xff]   ;;  %v29160_v60 = vld [vmem:[%s30821_s9 + $0x1448] sm:$0xff]  }
 0x27f   : > { %26424 = vmatprep.subr.bf16.mxu0 %v29094_v13  ;;  %26445 = vmatpush3.bf16.msra.mxu1 %v29093_v15  ;;  %v29133_v12 = vld [vmem:[%s30821_s9 + $0x1310] sm:$0xff]   ;;  %v29135_v13 = vld [vmem:[%s30821_s9 + $0x1358] sm:$0xff]  }
 0x280   : > { %26446 = vmatprep.subr.bf16.mxu1 %v29095_v16  ;;  %19819 = vmatprep.mubr.bf16.mxu0 %v1780_v0  ;;  %v29136_v15 = vld [vmem:[%s30821_s9 + $0x13d8] sm:$0xff]   ;;  %v29163_v0 = vld [vmem:[%s30821_s9 + $0x1488] sm:$0xff]   ;;  %v29164_v1 = vld [vmem:[%s30821_s9 + $0x1450] sm:$0xff]  }
 0x281   : > { %19859 = vmatprep.mubr.bf16.mxu1 %v1782_v5  ;;  %v29137_v16 = vld [vmem:[%s30821_s9 + $0x1318] sm:$0xff]  }
 0x282   : > { %26425 = vmatpush3.bf16.msra.mxu0 %v29096_v17  ;;  %v29139_v17 = vld [vmem:[%s30821_s9 + $0x1360] sm:$0xff]   ;;  %v29168_v5 = vld [vmem:[%s30821_s9 + $0x1458] sm:$0xff]  }
 0x283   : > { %26426 = vmatprep.subr.bf16.mxu0 %v29098_v18  ;;  %26447 = vmatpush3.bf16.msra.mxu1 %v29097_v19  ;;  %v29138_v18 = vld [vmem:[%s30821_s9 + $0x1398] sm:$0xff]   ;;  %v29140_v19 = vld [vmem:[%s30821_s9 + $0x13e0] sm:$0xff]  }
 0x284   : > { %26448 = vmatprep.subr.bf16.mxu1 %v29099_v20  ;;  %v29141_v20 = vld [vmem:[%s30821_s9 + $0x1320] sm:$0xff]  }
 0x286   : > { %26427 = vmatpush3.bf16.msra.mxu0 %v29100_v21 }
 0x287   : > { %26428 = vmatprep.subr.bf16.mxu0 %v29102_v22  ;;  %26449 = vmatpush3.bf16.msra.mxu1 %v29101_v23  ;;  %v29143_v22 = vld [vmem:[%s30821_s9 + $0x1368] sm:$0xff]   ;;  %v29142_v23 = vld [vmem:[%s30821_s9 + $0x13a0] sm:$0xff]  }
 0x288   : > { %26450 = vmatprep.subr.bf16.mxu1 %v29103_v24 }
 0x28a   : > { %26429 = vmatpush3.bf16.msra.mxu0 %v29104_v25 }
 0x28b   : > { %26430 = vmatprep.subr.bf16.mxu0 %v29106_v26  ;;  %26451 = vmatpush3.bf16.msra.mxu1 %v29105_v27  ;;  %v29144_v27 = vld [vmem:[%s30821_s9 + $0x13e8] sm:$0xff]  }
 0x28c   : > { %26452 = vmatprep.subr.bf16.mxu1 %v29107_v28 }
 0x28e   : > { %26431 = vmatpush3.bf16.msra.mxu0 %v29108_v29  ;;  %v29145_v29 = vld [vmem:[%s30821_s9 + $0x1328] sm:$0xff]  }
 0x28f   : > { %26432 = vmatprep.subr.bf16.mxu0 %v29110_v31  ;;  %26453 = vmatpush3.bf16.msra.mxu1 %v29109_v32  ;;  %v29146_v31 = vld [vmem:[%s30821_s9 + $0x13a8] sm:$0xff]  }
 0x290   : > { %v26130_v30 = vpop.f32.mrb[44].mxu0  ;;  %26454 = vmatprep.subr.bf16.mxu1 %v29111_v36  ;;  %v29147_v36 = vld [vmem:[%s30821_s9 + $0x1370] sm:$0xff]  }
 0x291   : > { %v26131_v33 = vpop.f32.mrb[45].mxu0  ;;  %v26152_v34 = vpop.f32.mrb[44].mxu1 }
 0x292   : > { %v26132_v35 = vadd.f32 %v26131_v33, %v26130_v30  ;;  %v26133_v37 = vpop.f32.mrb[46].mxu0  ;;  %v26153_v39 = vpop.f32.mrb[45].mxu1  ;;  %26433 = vmatpush3.bf16.msra.mxu0 %v29112_v38  ;;  %v29148_v38 = vld [vmem:[%s30821_s9 + $0x13f0] sm:$0xff]  }
 0x293   : > { %v26134_v41 = vpop.f32.mrb[47].mxu0  ;;  %v26154_v44 = vadd.f32 %v26153_v39, %v26152_v34  ;;  %v26155_v45 = vpop.f32.mrb[46].mxu1  ;;  %26434 = vmatprep.subr.bf16.mxu0 %v29114_v46  ;;  %26455 = vmatpush3.bf16.msra.mxu1 %v29113_v40  ;;  %v29149_v40 = vld [vmem:[%s30821_s9 + $0x1330] sm:$0xff]  }
 0x294   : > { %v19262_v43 = vadd.f32 %v26132_v35, %v31487_v58  ;;  %v26156_v47 = vpop.f32.mrb[47].mxu1  ;;  %26456 = vmatprep.subr.bf16.mxu1 %v29115_v48  ;;  %v29123_v58 = vld [vmem:[%s30821_s9 + $0x1340] sm:$0xff]   ;;  %v29150_v41 = vld [vmem:[%s30821_s9 + $0x13b0] sm:$0xff]   ;;  %v29153_v45 = vld [vmem:[%s30821_s9 + $0x1338] sm:$0xff]  }
 0x295   : > { %v254_v46 = vld [vmem:[%s30831_s7 + $0x98] sm:$0xff] }
 0x296   : > { %v31525_v49 = vadd.f32 %v26154_v44, %v19262_v43  ;;  %26435 = vmatpush3.bf16.msra.mxu0 %v29116_v50  ;;  %v29151_v43 = vld [vmem:[%s30821_s9 + $0x1378] sm:$0xff]   ;;  %v693_v48 = vrot.slane %v254_v46, %v30869_v42  ;;  %v29156_v50 = vld [vmem:[%s30821_s9 + $0x1440] sm:$0xff]  }
 0x297   : > { %26436 = vmatprep.subr.bf16.mxu0 %v29118_v52  ;;  %26457 = vmatpush3.bf16.msra.mxu1 %v29117_v51  ;;  %v29152_v44 = vld [vmem:[%s30821_s9 + $0x13f8] sm:$0xff]  }
 0x298   : > { %26458 = vmatprep.subr.bf16.mxu1 %v29119_v53  ;;  %v29154_v47 = vld [vmem:[%s30821_s9 + $0x13b8] sm:$0xff]   ;;  %v701_v51 = vcombine.high %v693_v48, %v693_v48  ;;  %v29157_v53 = vld [vmem:[%s30821_s9 + $0x14c0] sm:$0xff]  }
 0x29a   : > { %26437 = vmatpush3.bf16.msra.mxu0 %v29120_v54  ;;  %v1783_v54 = vpack.c.bf16 %v693_v48, %v693_v48  ;;  %v1784_v56 = vpack.c.bf16 %v701_v51, %v701_v51  ;;  %v29193_v51 = vld [vmem:[%s30821_s9 + $0x1548] sm:$0xff]  }
 0x29b   : > { %26466 = vmatprep.subr.bf16.mxu0 %v29123_v58  ;;  %26459 = vmatpush3.bf16.msra.mxu1 %v29121_v59  ;;  %v29159_v58 = vld [vmem:[%s30821_s9 + $0x1480] sm:$0xff]  }
 0x29c   : > { %26488 = vmatprep.subr.bf16.mxu1 %v29124_v62  ;;  %v29161_v62 = vld [vmem:[%s30821_s9 + $0x14c8] sm:$0xff]  }
 0x29d   : > { %19820 = vmatmul.mubr.bf16.vlgmr.msra.gmra.mrb[72].mxu0 %v1779_v63  ;;  %v29162_v63 = vld [vmem:[%s30821_s9 + $0x1408] sm:$0xff]  }
 0x29e   : > { %26467 = vmatpush3.bf16.msra.mxu0 %v29125_v2  ;;  %19860 = vmatmul.mubr.bf16.vlgmr.msra.gmra.mrb[72].mxu1 %v1781_v3  ;;  %v29165_v2 = vld [vmem:[%s30821_s9 + $0x14d0] sm:$0xff]  }
 0x29f   : > { %26468 = vmatprep.subr.bf16.mxu0 %v29127_v4  ;;  %26489 = vmatpush3.bf16.msra.mxu1 %v29126_v6  ;;  %v29166_v3 = vld [vmem:[%s30821_s9 + $0x1410] sm:$0xff]   ;;  %v29169_v6 = vld [vmem:[%s30821_s9 + $0x14d8] sm:$0xff]  }
 0x2a0   : > { %26490 = vmatprep.subr.bf16.mxu1 %v29128_v7  ;;  %19899 = vmatprep.mubr.bf16.mxu0 %v1784_v56  ;;  %v29167_v4 = vld [vmem:[%s30821_s9 + $0x1490] sm:$0xff]   ;;  %v29170_v7 = vld [vmem:[%s30821_s9 + $0x1418] sm:$0xff]  }
 0x2a1   : > { %v29197_v56 = vld [vmem:[%s30821_s9 + $0x1550] sm:$0xff]  }
 0x2a2   : > { %26469 = vmatpush3.bf16.msra.mxu0 %v29129_v8  ;;  %v29171_v8 = vld [vmem:[%s30821_s9 + $0x1498] sm:$0xff]  }
 0x2a3   : > { %26470 = vmatprep.subr.bf16.mxu0 %v29131_v9  ;;  %26491 = vmatpush3.bf16.msra.mxu1 %v29130_v10  ;;  %v29172_v9 = vld [vmem:[%s30821_s9 + $0x1460] sm:$0xff]  }
 0x2a4   : > { %26492 = vmatprep.subr.bf16.mxu1 %v29132_v11  ;;  %v29173_v10 = vld [vmem:[%s30821_s9 + $0x14e0] sm:$0xff]  }
 0x2a5   : > { %v29174_v11 = vld [vmem:[%s30821_s9 + $0x1420] sm:$0xff]  }
 0x2a6   : > { %26471 = vmatpush3.bf16.msra.mxu0 %v29133_v12  ;;  %v29175_v12 = vld [vmem:[%s30821_s9 + $0x14a0] sm:$0xff]  }
 0x2a7   : > { %26472 = vmatprep.subr.bf16.mxu0 %v29135_v13  ;;  %26493 = vmatpush3.bf16.msra.mxu1 %v29134_v14  ;;  %v29176_v13 = vld [vmem:[%s30821_s9 + $0x1468] sm:$0xff]  }
 0x2a8   : > { %26494 = vmatprep.subr.bf16.mxu1 %v29136_v15  ;;  %v29177_v15 = vld [vmem:[%s30821_s9 + $0x14e8] sm:$0xff]  }
 0x2aa   : > { %26473 = vmatpush3.bf16.msra.mxu0 %v29137_v16 }
 0x2ab   : > { %26474 = vmatprep.subr.bf16.mxu0 %v29139_v17  ;;  %26495 = vmatpush3.bf16.msra.mxu1 %v29138_v18  ;;  %v29178_v17 = vld [vmem:[%s30821_s9 + $0x1428] sm:$0xff]  }
 0x2ac   : > { %26496 = vmatprep.subr.bf16.mxu1 %v29140_v19 }
 0x2ae   : > { %26475 = vmatpush3.bf16.msra.mxu0 %v29141_v20 }
 0x2af   : > { %26476 = vmatprep.subr.bf16.mxu0 %v29143_v22  ;;  %26497 = vmatpush3.bf16.msra.mxu1 %v29142_v23  ;;  %v29179_v22 = vld [vmem:[%s30821_s9 + $0x14a8] sm:$0xff]  }
 0x2b0   : > { %v26174_v21 = vpop.f32.mrb[48].mxu0  ;;  %26498 = vmatprep.subr.bf16.mxu1 %v29144_v27 }
 0x2b1   : > { %v26175_v24 = vpop.f32.mrb[49].mxu0  ;;  %v26196_v25 = vpop.f32.mrb[48].mxu1 }
 0x2b2   : > { %v26176_v26 = vadd.f32 %v26175_v24, %v26174_v21  ;;  %v26177_v28 = vpop.f32.mrb[50].mxu0  ;;  %v26197_v30 = vpop.f32.mrb[49].mxu1  ;;  %26477 = vmatpush3.bf16.msra.mxu0 %v29145_v29  ;;  %v29180_v24 = vld [vmem:[%s30821_s9 + $0x1470] sm:$0xff]  }
 0x2b3   : > { %v26178_v32 = vpop.f32.mrb[51].mxu0  ;;  %v26198_v34 = vadd.f32 %v26197_v30, %v26196_v25  ;;  %v26199_v35 = vpop.f32.mrb[50].mxu1  ;;  %26478 = vmatprep.subr.bf16.mxu0 %v29147_v36  ;;  %26499 = vmatpush3.bf16.msra.mxu1 %v29146_v31  ;;  %v29181_v28 = vld [vmem:[%s30821_s9 + $0x14f0] sm:$0xff]   ;;  %v255_v36 = vld [vmem:[%s30831_s7 + $0xa0] sm:$0xff] }
 0x2b4   : > { %v19342_v33 = vadd.f32 %v26176_v26, %v31525_v49  ;;  %v26200_v37 = vpop.f32.mrb[51].mxu1  ;;  %26500 = vmatprep.subr.bf16.mxu1 %v29148_v38  ;;  %v686_v49 = vcombine.high %v254_v46, %v254_v46  ;;  %v29182_v30 = vld [vmem:[%s30821_s9 + $0x1430] sm:$0xff]   ;;  %v29184_v32 = vld [vmem:[%s30821_s9 + $0x1478] sm:$0xff]   ;;  %v703_v38 = vcombine.high %v255_v36, %v255_v36  ;;  %v29191_v46 = vld [vmem:[%s30821_s9 + $0x1500] sm:$0xff]  }
 0x2b5   : > { %v29186_v35 = vld [vmem:[%s30821_s9 + $0x1438] sm:$0xff]   ;;  %v710_v37 = vrot.slane %v255_v36, %v30869_v42  ;;  %v29224_v36 = vld [vmem:[%s30821_s9 + $0x1600] sm:$0xff]  }
 0x2b6   : > { %v31563_v39 = vadd.f32 %v26198_v34, %v19342_v33  ;;  %26479 = vmatpush3.bf16.msra.mxu0 %v29149_v40  ;;  %v700_v52 = vrot.slane %v686_v49, %v30869_v42  ;;  %v29183_v33 = vld [vmem:[%s30821_s9 + $0x14b0] sm:$0xff]   ;;  %v29185_v34 = vld [vmem:[%s30821_s9 + $0x14f8] sm:$0xff]   ;;  %v29192_v49 = vld [vmem:[%s30821_s9 + $0x1580] sm:$0xff]  }
 0x2b7   : > { %26480 = vmatprep.subr.bf16.mxu0 %v29151_v43  ;;  %26501 = vmatpush3.bf16.msra.mxu1 %v29150_v41  ;;  %v29187_v40 = vld [vmem:[%s30821_s9 + $0x14b8] sm:$0xff]   ;;  %v718_v41 = vcombine.high %v710_v37, %v710_v37  ;;  %v717_v43 = vrot.slane %v703_v38, %v30869_v42 }
 0x2b8   : > { %26502 = vmatprep.subr.bf16.mxu1 %v29152_v44  ;;  %v702_v57 = vcombine.high %v700_v52, %v700_v52  ;;  %v1785_v59 = vpack.c.bf16 %v700_v52, %v700_v52  ;;  %v29190_v44 = vld [vmem:[%s30821_s9 + $0x15c0] sm:$0xff]  }
 0x2b9   : > { %v719_v48 = vcombine.high %v717_v43, %v717_v43 }
 0x2ba   : > { %26481 = vmatpush3.bf16.msra.mxu0 %v29153_v45  ;;  %v1786_v61 = vpack.c.bf16 %v702_v57, %v702_v57  ;;  %v1787_v45 = vpack.c.bf16 %v710_v37, %v710_v37  ;;  %v29198_v57 = vld [vmem:[%s30821_s9 + $0x15d0] sm:$0xff]  }
 0x2bb   : > { %26510 = vmatprep.subr.bf16.mxu0 %v29156_v50  ;;  %26503 = vmatpush3.bf16.msra.mxu1 %v29154_v47  ;;  %v1788_v47 = vpack.c.bf16 %v718_v41, %v718_v41  ;;  %v1789_v50 = vpack.c.bf16 %v717_v43, %v717_v43  ;;  %v1790_v52 = vpack.c.bf16 %v719_v48, %v719_v48  ;;  %v29226_v41 = vld [vmem:[%s30821_s9 + $0x1648] sm:$0xff]   ;;  %v29231_v48 = vld [vmem:[%s30821_s9 + $0x16d0] sm:$0xff]  }
 0x2bc   : > { %26532 = vmatprep.subr.bf16.mxu1 %v29157_v53  ;;  %19939 = vmatprep.mubr.bf16.mxu1 %v1786_v61  ;;  %v29194_v53 = vld [vmem:[%s30821_s9 + $0x15c8] sm:$0xff]   ;;  %v29202_v61 = vld [vmem:[%s30821_s9 + $0x15d8] sm:$0xff]  }
 0x2bd   : > { %19900 = vmatmul.mubr.bf16.vlgmr.msra.gmra.mrb[76].mxu0 %v1783_v54  ;;  %v29195_v54 = vld [vmem:[%s30821_s9 + $0x1508] sm:$0xff]  }
 0x2be   : > { %26511 = vmatpush3.bf16.msra.mxu0 %v29158_v55  ;;  %19940 = vmatmul.mubr.bf16.vlgmr.msra.gmra.mrb[76].mxu1 %v1785_v59  ;;  %v29196_v55 = vld [vmem:[%s30821_s9 + $0x1588] sm:$0xff]   ;;  %v29200_v59 = vld [vmem:[%s30821_s9 + $0x1590] sm:$0xff]  }
 0x2bf   : > { %26512 = vmatprep.subr.bf16.mxu0 %v29160_v60  ;;  %26533 = vmatpush3.bf16.msra.mxu1 %v29159_v58  ;;  %v29199_v58 = vld [vmem:[%s30821_s9 + $0x1510] sm:$0xff]   ;;  %v29201_v60 = vld [vmem:[%s30821_s9 + $0x1558] sm:$0xff]  }
 0x2c0   : > { %26534 = vmatprep.subr.bf16.mxu1 %v29161_v62  ;;  %19979 = vmatprep.mubr.bf16.mxu0 %v1788_v47  ;;  %v29203_v62 = vld [vmem:[%s30821_s9 + $0x1518] sm:$0xff]   ;;  %v29230_v47 = vld [vmem:[%s30821_s9 + $0x1650] sm:$0xff]  }
 0x2c1   : > { %20019 = vmatprep.mubr.bf16.mxu1 %v1790_v52  ;;  %v29235_v52 = vld [vmem:[%s30821_s9 + $0x16d8] sm:$0xff]  }
 0x2c2   : > { %26513 = vmatpush3.bf16.msra.mxu0 %v29162_v63  ;;  %v29204_v63 = vld [vmem:[%s30821_s9 + $0x1598] sm:$0xff]  }
 0x2c3   : > { %26514 = vmatprep.subr.bf16.mxu0 %v29164_v1  ;;  %26535 = vmatpush3.bf16.msra.mxu1 %v29163_v0  ;;  %v29205_v0 = vld [vmem:[%s30821_s9 + $0x1560] sm:$0xff]  }
 0x2c4   : > { %26536 = vmatprep.subr.bf16.mxu1 %v29165_v2  ;;  %v29206_v1 = vld [vmem:[%s30821_s9 + $0x15e0] sm:$0xff]  }
 0x2c5   : > { %v29207_v2 = vld [vmem:[%s30821_s9 + $0x1520] sm:$0xff]  }
 0x2c6   : > { %26515 = vmatpush3.bf16.msra.mxu0 %v29166_v3  ;;  %v29208_v3 = vld [vmem:[%s30821_s9 + $0x15a0] sm:$0xff]  }
 0x2c7   : > { %26516 = vmatprep.subr.bf16.mxu0 %v29168_v5  ;;  %26537 = vmatpush3.bf16.msra.mxu1 %v29167_v4  ;;  %v29209_v4 = vld [vmem:[%s30821_s9 + $0x1568] sm:$0xff]  }
 0x2c8   : > { %26538 = vmatprep.subr.bf16.mxu1 %v29169_v6  ;;  %v29210_v6 = vld [vmem:[%s30821_s9 + $0x15e8] sm:$0xff]  }
 0x2ca   : > { %26517 = vmatpush3.bf16.msra.mxu0 %v29170_v7 }
 0x2cb   : > { %26518 = vmatprep.subr.bf16.mxu0 %v29172_v9  ;;  %26539 = vmatpush3.bf16.msra.mxu1 %v29171_v8  ;;  %v29211_v8 = vld [vmem:[%s30821_s9 + $0x1528] sm:$0xff]  }
 0x2cc   : > { %26540 = vmatprep.subr.bf16.mxu1 %v29173_v10 }
 0x2ce   : > { %26519 = vmatpush3.bf16.msra.mxu0 %v29174_v11 }
 0x2cf   : > { %26520 = vmatprep.subr.bf16.mxu0 %v29176_v13  ;;  %26541 = vmatpush3.bf16.msra.mxu1 %v29175_v12  ;;  %v29212_v12 = vld [vmem:[%s30821_s9 + $0x15a8] sm:$0xff]   ;;  %v29213_v13 = vld [vmem:[%s30821_s9 + $0x1570] sm:$0xff]  }
 0x2d0   : > { %v26218_v14 = vpop.f32.mrb[52].mxu0  ;;  %26542 = vmatprep.subr.bf16.mxu1 %v29177_v15 }
 0x2d1   : > { %v26219_v16 = vpop.f32.mrb[53].mxu0  ;;  %v26240_v18 = vpop.f32.mrb[52].mxu1 }
 0x2d2   : > { %v26220_v19 = vadd.f32 %v26219_v16, %v26218_v14  ;;  %v26221_v20 = vpop.f32.mrb[54].mxu0  ;;  %v26241_v21 = vpop.f32.mrb[53].mxu1  ;;  %26521 = vmatpush3.bf16.msra.mxu0 %v29178_v17 }
 0x2d3   : > { %v26222_v23 = vpop.f32.mrb[55].mxu0  ;;  %v26242_v26 = vadd.f32 %v26241_v21, %v26240_v18  ;;  %v26243_v27 = vpop.f32.mrb[54].mxu1  ;;  %26522 = vmatprep.subr.bf16.mxu0 %v29180_v24  ;;  %26543 = vmatpush3.bf16.msra.mxu1 %v29179_v22  ;;  %v29215_v21 = vld [vmem:[%s30821_s9 + $0x1530] sm:$0xff]   ;;  %v29217_v24 = vld [vmem:[%s30821_s9 + $0x1578] sm:$0xff]  }
 0x2d4   : > { %v19422_v25 = vadd.f32 %v26220_v19, %v31563_v39  ;;  %v26244_v29 = vpop.f32.mrb[55].mxu1  ;;  %26544 = vmatprep.subr.bf16.mxu1 %v29181_v28  ;;  %v29189_v39 = vld [vmem:[%s30821_s9 + $0x1540] sm:$0xff]   ;;  %v29214_v19 = vld [vmem:[%s30821_s9 + $0x15f0] sm:$0xff]  }
 0x2d5   : > { %v29216_v23 = vld [vmem:[%s30821_s9 + $0x15b0] sm:$0xff]   ;;  %v256_v27 = vld [vmem:[%s30831_s7 + $0xa8] sm:$0xff] }
 0x2d6   : > { %v31602_v31 = vadd.f32 %v26242_v26, %v19422_v25  ;;  %26523 = vmatpush3.bf16.msra.mxu0 %v29182_v30  ;;  %v29218_v25 = vld [vmem:[%s30821_s9 + $0x15f8] sm:$0xff]   ;;  %v727_v28 = vrot.slane %v256_v27, %v30869_v42  ;;  %v720_v29 = vcombine.high %v256_v27, %v256_v27  ;;  %v29222_v30 = vld [vmem:[%s30821_s9 + $0x1640] sm:$0xff]  }
 0x2d7   : > { %26524 = vmatprep.subr.bf16.mxu0 %v29184_v32  ;;  %26545 = vmatpush3.bf16.msra.mxu1 %v29183_v33  ;;  %v29219_v26 = vld [vmem:[%s30821_s9 + $0x1538] sm:$0xff]   ;;  %v29257_v27 = vld [vmem:[%s30821_s9 + $0x1700] sm:$0xff]  }
 0x2d8   : > { %26546 = vmatprep.subr.bf16.mxu1 %v29185_v34  ;;  %v735_v32 = vcombine.high %v727_v28, %v727_v28  ;;  %v734_v33 = vrot.slane %v720_v29, %v30869_v42  ;;  %v29223_v34 = vld [vmem:[%s30821_s9 + $0x16c0] sm:$0xff]  }
 0x2da   : > { %26525 = vmatpush3.bf16.msra.mxu0 %v29186_v35  ;;  %v1791_v35 = vpack.c.bf16 %v727_v28, %v727_v28  ;;  %v1792_v37 = vpack.c.bf16 %v735_v32, %v735_v32  ;;  %v736_v38 = vcombine.high %v734_v33, %v734_v33  ;;  %v29259_v32 = vld [vmem:[%s30821_s9 + $0x1748] sm:$0xff]  }
 0x2db   : > { %26554 = vmatprep.subr.bf16.mxu0 %v29189_v39  ;;  %26547 = vmatpush3.bf16.msra.mxu1 %v29187_v40  ;;  %v29225_v39 = vld [vmem:[%s30821_s9 + $0x1680] sm:$0xff]   ;;  %v1793_v40 = vpack.c.bf16 %v734_v33, %v734_v33 }
 0x2dc   : > { %26576 = vmatprep.subr.bf16.mxu1 %v29190_v44  ;;  %v1794_v43 = vpack.c.bf16 %v736_v38, %v736_v38  ;;  %v29227_v44 = vld [vmem:[%s30821_s9 + $0x16c8] sm:$0xff]   ;;  %v29264_v38 = vld [vmem:[%s30821_s9 + $0x17d0] sm:$0xff]  }
 0x2dd   : > { %19980 = vmatmul.mubr.bf16.vlgmr.msra.gmra.mrb[80].mxu0 %v1787_v45  ;;  %v29228_v45 = vld [vmem:[%s30821_s9 + $0x1608] sm:$0xff]  }
 0x2de   : > { %26555 = vmatpush3.bf16.msra.mxu0 %v29191_v46  ;;  %20020 = vmatmul.mubr.bf16.vlgmr.msra.gmra.mrb[80].mxu1 %v1789_v50  ;;  %v29229_v46 = vld [vmem:[%s30821_s9 + $0x1688] sm:$0xff]   ;;  %v29233_v50 = vld [vmem:[%s30821_s9 + $0x1690] sm:$0xff]  }
 0x2df   : > { %26556 = vmatprep.subr.bf16.mxu0 %v29193_v51  ;;  %26577 = vmatpush3.bf16.msra.mxu1 %v29192_v49  ;;  %v29232_v49 = vld [vmem:[%s30821_s9 + $0x1610] sm:$0xff]   ;;  %v29234_v51 = vld [vmem:[%s30821_s9 + $0x1658] sm:$0xff]  }
 0x2e0   : > { %26578 = vmatprep.subr.bf16.mxu1 %v29194_v53  ;;  %20059 = vmatprep.mubr.bf16.mxu0 %v1792_v37  ;;  %v29236_v53 = vld [vmem:[%s30821_s9 + $0x1618] sm:$0xff]   ;;  %v29263_v37 = vld [vmem:[%s30821_s9 + $0x1750] sm:$0xff]  }
 0x2e1   : > { %20099 = vmatprep.mubr.bf16.mxu1 %v1794_v43  ;;  %v29268_v43 = vld [vmem:[%s30821_s9 + $0x17d8] sm:$0xff]  }
 0x2e2   : > { %26557 = vmatpush3.bf16.msra.mxu0 %v29195_v54  ;;  %v29237_v54 = vld [vmem:[%s30821_s9 + $0x1698] sm:$0xff]  }
 0x2e3   : > { %26558 = vmatprep.subr.bf16.mxu0 %v29197_v56  ;;  %26579 = vmatpush3.bf16.msra.mxu1 %v29196_v55  ;;  %v29238_v55 = vld [vmem:[%s30821_s9 + $0x1660] sm:$0xff]  }
 0x2e4   : > { %26580 = vmatprep.subr.bf16.mxu1 %v29198_v57  ;;  %v29239_v56 = vld [vmem:[%s30821_s9 + $0x16e0] sm:$0xff]  }
 0x2e5   : > { %v29240_v57 = vld [vmem:[%s30821_s9 + $0x1620] sm:$0xff]  }
 0x2e6   : > { %26559 = vmatpush3.bf16.msra.mxu0 %v29199_v58  ;;  %v29241_v58 = vld [vmem:[%s30821_s9 + $0x16a0] sm:$0xff]  }
 0x2e7   : > { %26560 = vmatprep.subr.bf16.mxu0 %v29201_v60  ;;  %26581 = vmatpush3.bf16.msra.mxu1 %v29200_v59  ;;  %v29242_v59 = vld [vmem:[%s30821_s9 + $0x1668] sm:$0xff]  }
 0x2e8   : > { %26582 = vmatprep.subr.bf16.mxu1 %v29202_v61  ;;  %v29243_v61 = vld [vmem:[%s30821_s9 + $0x16e8] sm:$0xff]  }
 0x2ea   : > { %26561 = vmatpush3.bf16.msra.mxu0 %v29203_v62 }
 0x2eb   : > { %26562 = vmatprep.subr.bf16.mxu0 %v29205_v0  ;;  %26583 = vmatpush3.bf16.msra.mxu1 %v29204_v63  ;;  %v29244_v63 = vld [vmem:[%s30821_s9 + $0x1628] sm:$0xff]  }
 0x2ec   : > { %26584 = vmatprep.subr.bf16.mxu1 %v29206_v1 }
 0x2ee   : > { %26563 = vmatpush3.bf16.msra.mxu0 %v29207_v2 }
 0x2ef   : > { %26564 = vmatprep.subr.bf16.mxu0 %v29209_v4  ;;  %26585 = vmatpush3.bf16.msra.mxu1 %v29208_v3  ;;  %v29245_v3 = vld [vmem:[%s30821_s9 + $0x16a8] sm:$0xff]   ;;  %v29246_v4 = vld [vmem:[%s30821_s9 + $0x1670] sm:$0xff]  }
 0x2f0   : > { %v26262_v5 = vpop.f32.mrb[56].mxu0  ;;  %26586 = vmatprep.subr.bf16.mxu1 %v29210_v6 }
 0x2f1   : > { %v26263_v7 = vpop.f32.mrb[57].mxu0  ;;  %v26284_v9 = vpop.f32.mrb[56].mxu1 }
 0x2f2   : > { %v26264_v10 = vadd.f32 %v26263_v7, %v26262_v5  ;;  %v26265_v11 = vpop.f32.mrb[58].mxu0  ;;  %v26285_v14 = vpop.f32.mrb[57].mxu1  ;;  %26565 = vmatpush3.bf16.msra.mxu0 %v29211_v8 }
 0x2f3   : > { %v26266_v15 = vpop.f32.mrb[59].mxu0  ;;  %v26286_v17 = vadd.f32 %v26285_v14, %v26284_v9  ;;  %v26287_v18 = vpop.f32.mrb[58].mxu1  ;;  %26566 = vmatprep.subr.bf16.mxu0 %v29213_v13  ;;  %26587 = vmatpush3.bf16.msra.mxu1 %v29212_v12  ;;  %v29248_v12 = vld [vmem:[%s30821_s9 + $0x1630] sm:$0xff]  }
 0x2f4   : > { %v19502_v16 = vadd.f32 %v26264_v10, %v31602_v31  ;;  %v26288_v20 = vpop.f32.mrb[59].mxu1  ;;  %26588 = vmatprep.subr.bf16.mxu1 %v29214_v19  ;;  %v29220_v31 = vld [vmem:[%s30821_s9 + $0x15b8] sm:$0xff]   ;;  %v29247_v10 = vld [vmem:[%s30821_s9 + $0x16f0] sm:$0xff]  }
 0x2f5   : > { %v29249_v14 = vld [vmem:[%s30821_s9 + $0x16b0] sm:$0xff]   ;;  %v29250_v15 = vld [vmem:[%s30821_s9 + $0x1678] sm:$0xff]  }
 0x2f6   : > { %v31640_v22 = vadd.f32 %v26286_v17, %v19502_v16  ;;  %26567 = vmatpush3.bf16.msra.mxu0 %v29215_v21  ;;  %v29251_v16 = vld [vmem:[%s30821_s9 + $0x16f8] sm:$0xff]   ;;  %v257_v18 = vld [vmem:[%s30831_s7 + $0xb0] sm:$0xff] }
 0x2f7   : > { %26568 = vmatprep.subr.bf16.mxu0 %v29217_v24  ;;  %26589 = vmatpush3.bf16.msra.mxu1 %v29216_v23  ;;  %v29252_v17 = vld [vmem:[%s30821_s9 + $0x1638] sm:$0xff]   ;;  %v744_v20 = vrot.slane %v257_v18, %v30869_v42  ;;  %v737_v21 = vcombine.high %v257_v18, %v257_v18  ;;  %v29290_v18 = vld [vmem:[%s30821_s9 + $0x1800] sm:$0xff]  }
 0x2f8   : > { %26590 = vmatprep.subr.bf16.mxu1 %v29218_v25  ;;  %v29253_v19 = vld [vmem:[%s30821_s9 + $0x16b8] sm:$0xff]   ;;  %v29256_v25 = vld [vmem:[%s30821_s9 + $0x17c0] sm:$0xff]  }
 0x2f9   : > { %v752_v23 = vcombine.high %v744_v20, %v744_v20  ;;  %v751_v24 = vrot.slane %v737_v21, %v30869_v42  ;;  %v29291_v21 = vld [vmem:[%s30821_s9 + $0x1880] sm:$0xff]  }
 0x2fa   : > { %26569 = vmatpush3.bf16.msra.mxu0 %v29219_v26  ;;  %v1795_v26 = vpack.c.bf16 %v744_v20, %v744_v20 }
 0x2fb   : > { %26598 = vmatprep.subr.bf16.mxu0 %v29222_v30  ;;  %26591 = vmatpush3.bf16.msra.mxu1 %v29220_v31  ;;  %v1796_v28 = vpack.c.bf16 %v752_v23, %v752_v23  ;;  %v753_v29 = vcombine.high %v751_v24, %v751_v24  ;;  %v29258_v30 = vld [vmem:[%s30821_s9 + $0x1780] sm:$0xff]   ;;  %v1797_v31 = vpack.c.bf16 %v751_v24, %v751_v24  ;;  %v29292_v23 = vld [vmem:[%s30821_s9 + $0x1848] sm:$0xff]  }
 0x2fc   : > { %26620 = vmatprep.subr.bf16.mxu1 %v29223_v34  ;;  %v29260_v34 = vld [vmem:[%s30821_s9 + $0x17c8] sm:$0xff]  }
 0x2fd   : > { %20060 = vmatmul.mubr.bf16.vlgmr.msra.gmra.mrb[84].mxu0 %v1791_v35  ;;  %v1798_v33 = vpack.c.bf16 %v753_v29, %v753_v29  ;;  %v29261_v35 = vld [vmem:[%s30821_s9 + $0x1708] sm:$0xff]   ;;  %v29297_v29 = vld [vmem:[%s30821_s9 + $0x18d0] sm:$0xff]  }
 0x2fe   : > { %26599 = vmatpush3.bf16.msra.mxu0 %v29224_v36  ;;  %20100 = vmatmul.mubr.bf16.vlgmr.msra.gmra.mrb[84].mxu1 %v1793_v40  ;;  %v29262_v36 = vld [vmem:[%s30821_s9 + $0x1788] sm:$0xff]   ;;  %v29266_v40 = vld [vmem:[%s30821_s9 + $0x1790] sm:$0xff]  }
 0x2ff   : > { %26600 = vmatprep.subr.bf16.mxu0 %v29226_v41  ;;  %26621 = vmatpush3.bf16.msra.mxu1 %v29225_v39  ;;  %v29265_v39 = vld [vmem:[%s30821_s9 + $0x1710] sm:$0xff]   ;;  %v29267_v41 = vld [vmem:[%s30821_s9 + $0x1758] sm:$0xff]  }
 0x300   : > { %26622 = vmatprep.subr.bf16.mxu1 %v29227_v44  ;;  %20139 = vmatprep.mubr.bf16.mxu0 %v1796_v28  ;;  %v29269_v44 = vld [vmem:[%s30821_s9 + $0x1718] sm:$0xff]   ;;  %v29296_v28 = vld [vmem:[%s30821_s9 + $0x1850] sm:$0xff]  }
 0x301   : > { %20179 = vmatprep.mubr.bf16.mxu1 %v1798_v33  ;;  %v29301_v33 = vld [vmem:[%s30821_s9 + $0x18d8] sm:$0xff]  }
 0x302   : > { %26601 = vmatpush3.bf16.msra.mxu0 %v29228_v45  ;;  %v29270_v45 = vld [vmem:[%s30821_s9 + $0x1798] sm:$0xff]  }
 0x303   : > { %26602 = vmatprep.subr.bf16.mxu0 %v29230_v47  ;;  %26623 = vmatpush3.bf16.msra.mxu1 %v29229_v46  ;;  %v29271_v46 = vld [vmem:[%s30821_s9 + $0x1760] sm:$0xff]  }
 0x304   : > { %26624 = vmatprep.subr.bf16.mxu1 %v29231_v48  ;;  %v29272_v47 = vld [vmem:[%s30821_s9 + $0x17e0] sm:$0xff]  }
 0x305   : > { %v29273_v48 = vld [vmem:[%s30821_s9 + $0x1720] sm:$0xff]  }
 0x306   : > { %26603 = vmatpush3.bf16.msra.mxu0 %v29232_v49  ;;  %v29274_v49 = vld [vmem:[%s30821_s9 + $0x17a0] sm:$0xff]  }
 0x307   : > { %26604 = vmatprep.subr.bf16.mxu0 %v29234_v51  ;;  %26625 = vmatpush3.bf16.msra.mxu1 %v29233_v50  ;;  %v29275_v50 = vld [vmem:[%s30821_s9 + $0x1768] sm:$0xff]  }
 0x308   : > { %26626 = vmatprep.subr.bf16.mxu1 %v29235_v52  ;;  %v29276_v52 = vld [vmem:[%s30821_s9 + $0x17e8] sm:$0xff]  }
 0x30a   : > { %26605 = vmatpush3.bf16.msra.mxu0 %v29236_v53 }
 0x30b   : > { %26606 = vmatprep.subr.bf16.mxu0 %v29238_v55  ;;  %26627 = vmatpush3.bf16.msra.mxu1 %v29237_v54  ;;  %v29277_v54 = vld [vmem:[%s30821_s9 + $0x1728] sm:$0xff]  }
 0x30c   : > { %26628 = vmatprep.subr.bf16.mxu1 %v29239_v56 }
 0x30e   : > { %26607 = vmatpush3.bf16.msra.mxu0 %v29240_v57 }
 0x30f   : > { %26608 = vmatprep.subr.bf16.mxu0 %v29242_v59  ;;  %26629 = vmatpush3.bf16.msra.mxu1 %v29241_v58  ;;  %v29278_v59 = vld [vmem:[%s30821_s9 + $0x17a8] sm:$0xff]  }
 0x310   : > { %v26306_v60 = vpop.f32.mrb[60].mxu0  ;;  %26630 = vmatprep.subr.bf16.mxu1 %v29243_v61  ;;  %v29279_v61 = vld [vmem:[%s30821_s9 + $0x1770] sm:$0xff]  }
 0x311   : > { %v26307_v62 = vpop.f32.mrb[61].mxu0  ;;  %v26328_v0 = vpop.f32.mrb[60].mxu1 }
 0x312   : > { %v26308_v1 = vadd.f32 %v26307_v62, %v26306_v60  ;;  %v26309_v2 = vpop.f32.mrb[62].mxu0  ;;  %v26329_v5 = vpop.f32.mrb[61].mxu1  ;;  %26609 = vmatpush3.bf16.msra.mxu0 %v29244_v63 }
 0x313   : > { %v26310_v6 = vpop.f32.mrb[63].mxu0  ;;  %v26330_v8 = vadd.f32 %v26329_v5, %v26328_v0  ;;  %v26331_v9 = vpop.f32.mrb[62].mxu1  ;;  %26610 = vmatprep.subr.bf16.mxu0 %v29246_v4  ;;  %26631 = vmatpush3.bf16.msra.mxu1 %v29245_v3  ;;  %v29281_v3 = vld [vmem:[%s30821_s9 + $0x1730] sm:$0xff]   ;;  %v29283_v5 = vld [vmem:[%s30821_s9 + $0x1778] sm:$0xff]  }
 0x314   : > { %v19582_v7 = vadd.f32 %v26308_v1, %v31640_v22  ;;  %v26332_v11 = vpop.f32.mrb[63].mxu1  ;;  %26632 = vmatprep.subr.bf16.mxu1 %v29247_v10  ;;  %v29255_v22 = vld [vmem:[%s30821_s9 + $0x1740] sm:$0xff]   ;;  %v29280_v1 = vld [vmem:[%s30821_s9 + $0x17f0] sm:$0xff]  }
 0x315   : > { %v29282_v6 = vld [vmem:[%s30821_s9 + $0x17b0] sm:$0xff]  }
 0x316   : > { %v31678_v13 = vadd.f32 %v26330_v8, %v19582_v7  ;;  %26611 = vmatpush3.bf16.msra.mxu0 %v29248_v12  ;;  %v29284_v7 = vld [vmem:[%s30821_s9 + $0x17f8] sm:$0xff]   ;;  %v29288_v12 = vld [vmem:[%s30821_s9 + $0x1840] sm:$0xff]  }
 0x317   : > { %26612 = vmatprep.subr.bf16.mxu0 %v29250_v15  ;;  %26633 = vmatpush3.bf16.msra.mxu1 %v29249_v14  ;;  %v29285_v8 = vld [vmem:[%s30821_s9 + $0x1738] sm:$0xff]  }
 0x318   : > { %26634 = vmatprep.subr.bf16.mxu1 %v29251_v16  ;;  %v258_v9 = vld [vmem:[%s30831_s7 + $0xb8] sm:$0xff]  ;;  %v29289_v16 = vld [vmem:[%s30821_s9 + $0x18c0] sm:$0xff]  }
 0x319   : > { %v761_v10 = vrot.slane %v258_v9, %v30869_v42  ;;  %v754_v11 = vcombine.high %v258_v9, %v258_v9  ;;  %v29323_v9 = vld [vmem:[%s30821_s9 + $0x1900] sm:$0xff]  }
 0x31a   : > { %26613 = vmatpush3.bf16.msra.mxu0 %v29252_v17 }
 0x31b   : > { %26642 = vmatprep.subr.bf16.mxu0 %v29255_v22  ;;  %26635 = vmatpush3.bf16.msra.mxu1 %v29253_v19  ;;  %v769_v14 = vcombine.high %v761_v10, %v761_v10  ;;  %v768_v15 = vrot.slane %v754_v11, %v30869_v42  ;;  %v1799_v17 = vpack.c.bf16 %v761_v10, %v761_v10 }
 0x31c   : > { %26664 = vmatprep.subr.bf16.mxu1 %v29256_v25  ;;  %v29293_v25 = vld [vmem:[%s30821_s9 + $0x18c8] sm:$0xff]  }
 0x31d   : > { %20140 = vmatmul.mubr.bf16.vlgmr.msra.gmra.mrb[88].mxu0 %v1795_v26  ;;  %v1800_v19 = vpack.c.bf16 %v769_v14, %v769_v14  ;;  %v770_v20 = vcombine.high %v768_v15, %v768_v15  ;;  %v1801_v22 = vpack.c.bf16 %v768_v15, %v768_v15  ;;  %v29294_v26 = vld [vmem:[%s30821_s9 + $0x1808] sm:$0xff]  }
 0x31e   : > { %26643 = vmatpush3.bf16.msra.mxu0 %v29257_v27  ;;  %20180 = vmatmul.mubr.bf16.vlgmr.msra.gmra.mrb[88].mxu1 %v1797_v31  ;;  %v29295_v27 = vld [vmem:[%s30821_s9 + $0x1888] sm:$0xff]   ;;  %v29299_v31 = vld [vmem:[%s30821_s9 + $0x1890] sm:$0xff]  }
 0x31f   : > { %26644 = vmatprep.subr.bf16.mxu0 %v29259_v32  ;;  %26665 = vmatpush3.bf16.msra.mxu1 %v29258_v30  ;;  %v1802_v24 = vpack.c.bf16 %v770_v20, %v770_v20  ;;  %v29298_v30 = vld [vmem:[%s30821_s9 + $0x1810] sm:$0xff]   ;;  %v29300_v32 = vld [vmem:[%s30821_s9 + $0x1858] sm:$0xff]   ;;  %v29325_v14 = vld [vmem:[%s30821_s9 + $0x1948] sm:$0xff]  }
 0x320   : > { %26666 = vmatprep.subr.bf16.mxu1 %v29260_v34  ;;  %20219 = vmatprep.mubr.bf16.mxu0 %v1800_v19  ;;  %v29302_v34 = vld [vmem:[%s30821_s9 + $0x1818] sm:$0xff]   ;;  %v29329_v19 = vld [vmem:[%s30821_s9 + $0x1950] sm:$0xff]  }
 0x321   : > { %20259 = vmatprep.mubr.bf16.mxu1 %v1802_v24  ;;  %v29330_v20 = vld [vmem:[%s30821_s9 + $0x19d0] sm:$0xff]   ;;  %v29334_v24 = vld [vmem:[%s30821_s9 + $0x19d8] sm:$0xff]  }
 0x322   : > { %26645 = vmatpush3.bf16.msra.mxu0 %v29261_v35  ;;  %v29303_v35 = vld [vmem:[%s30821_s9 + $0x1898] sm:$0xff]  }
 0x323   : > { %26646 = vmatprep.subr.bf16.mxu0 %v29263_v37  ;;  %26667 = vmatpush3.bf16.msra.mxu1 %v29262_v36  ;;  %v29304_v36 = vld [vmem:[%s30821_s9 + $0x1860] sm:$0xff]  }
 0x324   : > { %26668 = vmatprep.subr.bf16.mxu1 %v29264_v38  ;;  %v29305_v37 = vld [vmem:[%s30821_s9 + $0x18e0] sm:$0xff]  }
 0x325   : > { %v29306_v38 = vld [vmem:[%s30821_s9 + $0x1820] sm:$0xff]  }
 0x326   : > { %26647 = vmatpush3.bf16.msra.mxu0 %v29265_v39  ;;  %v29307_v39 = vld [vmem:[%s30821_s9 + $0x18a0] sm:$0xff]  }
 0x327   : > { %26648 = vmatprep.subr.bf16.mxu0 %v29267_v41  ;;  %26669 = vmatpush3.bf16.msra.mxu1 %v29266_v40  ;;  %v29308_v40 = vld [vmem:[%s30821_s9 + $0x1868] sm:$0xff]  }
 0x328   : > { %26670 = vmatprep.subr.bf16.mxu1 %v29268_v43  ;;  %v29309_v43 = vld [vmem:[%s30821_s9 + $0x18e8] sm:$0xff]  }
 0x32a   : > { %26649 = vmatpush3.bf16.msra.mxu0 %v29269_v44 }
 0x32b   : > { %26650 = vmatprep.subr.bf16.mxu0 %v29271_v46  ;;  %26671 = vmatpush3.bf16.msra.mxu1 %v29270_v45  ;;  %v29310_v45 = vld [vmem:[%s30821_s9 + $0x1828] sm:$0xff]  }
 0x32c   : > { %26672 = vmatprep.subr.bf16.mxu1 %v29272_v47 }
 0x32e   : > { %26651 = vmatpush3.bf16.msra.mxu0 %v29273_v48 }
 0x32f   : > { %26652 = vmatprep.subr.bf16.mxu0 %v29275_v50  ;;  %26673 = vmatpush3.bf16.msra.mxu1 %v29274_v49  ;;  %v29311_v49 = vld [vmem:[%s30821_s9 + $0x18a8] sm:$0xff]   ;;  %v29312_v50 = vld [vmem:[%s30821_s9 + $0x1870] sm:$0xff]  }
 0x330   : > { %v26350_v51 = vpop.f32.mrb[64].mxu0  ;;  %26674 = vmatprep.subr.bf16.mxu1 %v29276_v52 }
 0x331   : > { %v26351_v53 = vpop.f32.mrb[65].mxu0  ;;  %v26372_v55 = vpop.f32.mrb[64].mxu1 }
 0x332   : > { %v26352_v56 = vadd.f32 %v26351_v53, %v26350_v51  ;;  %v26353_v57 = vpop.f32.mrb[66].mxu0  ;;  %v26373_v58 = vpop.f32.mrb[65].mxu1  ;;  %26653 = vmatpush3.bf16.msra.mxu0 %v29277_v54 }
 0x333   : > { %v26354_v60 = vpop.f32.mrb[67].mxu0  ;;  %v26374_v63 = vadd.f32 %v26373_v58, %v26372_v55  ;;  %v26375_v0 = vpop.f32.mrb[66].mxu1  ;;  %26654 = vmatprep.subr.bf16.mxu0 %v29279_v61  ;;  %26675 = vmatpush3.bf16.msra.mxu1 %v29278_v59  ;;  %v29314_v58 = vld [vmem:[%s30821_s9 + $0x1830] sm:$0xff]   ;;  %v29316_v61 = vld [vmem:[%s30821_s9 + $0x1878] sm:$0xff]  }
 0x334   : > { %v19662_v62 = vadd.f32 %v26352_v56, %v31678_v13  ;;  %v26376_v2 = vpop.f32.mrb[67].mxu1  ;;  %26676 = vmatprep.subr.bf16.mxu1 %v29280_v1  ;;  %v29286_v13 = vld [vmem:[%s30821_s9 + $0x17b8] sm:$0xff]   ;;  %v29313_v56 = vld [vmem:[%s30821_s9 + $0x18f0] sm:$0xff]  }
 0x335   : > { %v29315_v60 = vld [vmem:[%s30821_s9 + $0x18b0] sm:$0xff]   ;;  %v259_v0 = vld [vmem:[%s30831_s7 + $0xc0] sm:$0xff] }
 0x336   : > { %v31716_v4 = vadd.f32 %v26374_v63, %v19662_v62  ;;  %26655 = vmatpush3.bf16.msra.mxu0 %v29281_v3  ;;  %v29317_v62 = vld [vmem:[%s30821_s9 + $0x18f8] sm:$0xff]   ;;  %v778_v1 = vrot.slane %v259_v0, %v30869_v42  ;;  %v771_v2 = vcombine.high %v259_v0, %v259_v0  ;;  %v29321_v3 = vld [vmem:[%s30821_s9 + $0x1940] sm:$0xff]  }
 0x337   : > { %26656 = vmatprep.subr.bf16.mxu0 %v29283_v5  ;;  %26677 = vmatpush3.bf16.msra.mxu1 %v29282_v6  ;;  %v29318_v63 = vld [vmem:[%s30821_s9 + $0x1838] sm:$0xff]   ;;  %v29356_v0 = vld [vmem:[%s30821_s9 + $0x1a00] sm:$0xff]  }
 0x338   : > { %26678 = vmatprep.subr.bf16.mxu1 %v29284_v7  ;;  %v786_v5 = vcombine.high %v778_v1, %v778_v1  ;;  %v785_v6 = vrot.slane %v771_v2, %v30869_v42  ;;  %v29322_v7 = vld [vmem:[%s30821_s9 + $0x19c0] sm:$0xff]  }
 0x33a   : > { %26657 = vmatpush3.bf16.msra.mxu0 %v29285_v8  ;;  %v1803_v8 = vpack.c.bf16 %v778_v1, %v778_v1  ;;  %v1804_v10 = vpack.c.bf16 %v786_v5, %v786_v5  ;;  %v787_v11 = vcombine.high %v785_v6, %v785_v6  ;;  %v29358_v5 = vld [vmem:[%s30821_s9 + $0x1a48] sm:$0xff]  }
 0x33b   : > { %26686 = vmatprep.subr.bf16.mxu0 %v29288_v12  ;;  %26679 = vmatpush3.bf16.msra.mxu1 %v29286_v13  ;;  %v29324_v12 = vld [vmem:[%s30821_s9 + $0x1980] sm:$0xff]   ;;  %v1805_v13 = vpack.c.bf16 %v785_v6, %v785_v6 }
 0x33c   : > { %26708 = vmatprep.subr.bf16.mxu1 %v29289_v16  ;;  %v1806_v15 = vpack.c.bf16 %v787_v11, %v787_v11  ;;  %v29326_v16 = vld [vmem:[%s30821_s9 + $0x19c8] sm:$0xff]   ;;  %v29363_v11 = vld [vmem:[%s30821_s9 + $0x1ad0] sm:$0xff]  }
 0x33d   : > { %20220 = vmatmul.mubr.bf16.vlgmr.msra.gmra.mrb[92].mxu0 %v1799_v17  ;;  %v29327_v17 = vld [vmem:[%s30821_s9 + $0x1908] sm:$0xff]  }
 0x33e   : > { %26687 = vmatpush3.bf16.msra.mxu0 %v29290_v18  ;;  %20260 = vmatmul.mubr.bf16.vlgmr.msra.gmra.mrb[92].mxu1 %v1801_v22  ;;  %v29328_v18 = vld [vmem:[%s30821_s9 + $0x1988] sm:$0xff]   ;;  %v29332_v22 = vld [vmem:[%s30821_s9 + $0x1990] sm:$0xff]  }
 0x33f   : > { %26688 = vmatprep.subr.bf16.mxu0 %v29292_v23  ;;  %26709 = vmatpush3.bf16.msra.mxu1 %v29291_v21  ;;  %v29331_v21 = vld [vmem:[%s30821_s9 + $0x1910] sm:$0xff]   ;;  %v29333_v23 = vld [vmem:[%s30821_s9 + $0x1958] sm:$0xff]  }
 0x340   : > { %26710 = vmatprep.subr.bf16.mxu1 %v29293_v25  ;;  %20299 = vmatprep.mubr.bf16.mxu0 %v1804_v10  ;;  %v29335_v25 = vld [vmem:[%s30821_s9 + $0x1918] sm:$0xff]   ;;  %v29362_v10 = vld [vmem:[%s30821_s9 + $0x1a50] sm:$0xff]  }
 0x341   : > { %20339 = vmatprep.mubr.bf16.mxu1 %v1806_v15  ;;  %v29367_v15 = vld [vmem:[%s30821_s9 + $0x1ad8] sm:$0xff]  }
 0x342   : > { %26689 = vmatpush3.bf16.msra.mxu0 %v29294_v26  ;;  %v29336_v26 = vld [vmem:[%s30821_s9 + $0x1998] sm:$0xff]  }
 0x343   : > { %26690 = vmatprep.subr.bf16.mxu0 %v29296_v28  ;;  %26711 = vmatpush3.bf16.msra.mxu1 %v29295_v27  ;;  %v29337_v27 = vld [vmem:[%s30821_s9 + $0x1960] sm:$0xff]  }
 0x344   : > { %26712 = vmatprep.subr.bf16.mxu1 %v29297_v29  ;;  %v29338_v28 = vld [vmem:[%s30821_s9 + $0x19e0] sm:$0xff]  }
 0x345   : > { %v29339_v29 = vld [vmem:[%s30821_s9 + $0x1920] sm:$0xff]  }
 0x346   : > { %26691 = vmatpush3.bf16.msra.mxu0 %v29298_v30  ;;  %v29340_v30 = vld [vmem:[%s30821_s9 + $0x19a0] sm:$0xff]  }
 0x347   : > { %26692 = vmatprep.subr.bf16.mxu0 %v29300_v32  ;;  %26713 = vmatpush3.bf16.msra.mxu1 %v29299_v31  ;;  %v29341_v31 = vld [vmem:[%s30821_s9 + $0x1968] sm:$0xff]  }
 0x348   : > { %26714 = vmatprep.subr.bf16.mxu1 %v29301_v33  ;;  %v29342_v33 = vld [vmem:[%s30821_s9 + $0x19e8] sm:$0xff]  }
 0x34a   : > { %26693 = vmatpush3.bf16.msra.mxu0 %v29302_v34 }
 0x34b   : > { %26694 = vmatprep.subr.bf16.mxu0 %v29304_v36  ;;  %26715 = vmatpush3.bf16.msra.mxu1 %v29303_v35  ;;  %v29343_v35 = vld [vmem:[%s30821_s9 + $0x1928] sm:$0xff]  }
 0x34c   : > { %26716 = vmatprep.subr.bf16.mxu1 %v29305_v37 }
 0x34e   : > { %26695 = vmatpush3.bf16.msra.mxu0 %v29306_v38 }
 0x34f   : > { %26696 = vmatprep.subr.bf16.mxu0 %v29308_v40  ;;  %26717 = vmatpush3.bf16.msra.mxu1 %v29307_v39  ;;  %v29344_v39 = vld [vmem:[%s30821_s9 + $0x19a8] sm:$0xff]   ;;  %v29345_v40 = vld [vmem:[%s30821_s9 + $0x1970] sm:$0xff]  }
 0x350   : > { %v26394_v41 = vpop.f32.mrb[68].mxu0  ;;  %26718 = vmatprep.subr.bf16.mxu1 %v29309_v43 }
 0x351   : > { %v26395_v44 = vpop.f32.mrb[69].mxu0  ;;  %v26416_v46 = vpop.f32.mrb[68].mxu1 }
 0x352   : > { %v26396_v47 = vadd.f32 %v26395_v44, %v26394_v41  ;;  %v26397_v48 = vpop.f32.mrb[70].mxu0  ;;  %v26417_v51 = vpop.f32.mrb[69].mxu1  ;;  %26697 = vmatpush3.bf16.msra.mxu0 %v29310_v45 }
 0x353   : > { %v26398_v52 = vpop.f32.mrb[71].mxu0  ;;  %v26418_v54 = vadd.f32 %v26417_v51, %v26416_v46  ;;  %v26419_v55 = vpop.f32.mrb[70].mxu1  ;;  %26698 = vmatprep.subr.bf16.mxu0 %v29312_v50  ;;  %26719 = vmatpush3.bf16.msra.mxu1 %v29311_v49  ;;  %v29347_v49 = vld [vmem:[%s30821_s9 + $0x1930] sm:$0xff]  }
 0x354   : > { %v19742_v53 = vadd.f32 %v26396_v47, %v31716_v4  ;;  %v26420_v57 = vpop.f32.mrb[71].mxu1  ;;  %26720 = vmatprep.subr.bf16.mxu1 %v29313_v56  ;;  %v29319_v4 = vld [vmem:[%s30821_s9 + $0x18b8] sm:$0xff]   ;;  %v29346_v47 = vld [vmem:[%s30821_s9 + $0x19f0] sm:$0xff]   ;;  %v260_v55 = vld [vmem:[%s30831_s7 + $0xc8] sm:$0xff] }
 0x355   : > { %v29348_v51 = vld [vmem:[%s30821_s9 + $0x19b0] sm:$0xff]   ;;  %v29349_v52 = vld [vmem:[%s30821_s9 + $0x1978] sm:$0xff]   ;;  %v795_v57 = vrot.slane %v260_v55, %v30869_v42 }
 0x356   : > { %v31754_v59 = vadd.f32 %v26418_v54, %v19742_v53  ;;  %26699 = vmatpush3.bf16.msra.mxu0 %v29314_v58  ;;  %v29350_v53 = vld [vmem:[%s30821_s9 + $0x19f8] sm:$0xff]   ;;  %v788_v58 = vcombine.high %v260_v55, %v260_v55  ;;  %v29389_v55 = vld [vmem:[%s30821_s9 + $0x1b00] sm:$0xff]  }
 0x357   : > { %26700 = vmatprep.subr.bf16.mxu0 %v29316_v61  ;;  %26721 = vmatpush3.bf16.msra.mxu1 %v29315_v60  ;;  %v29351_v54 = vld [vmem:[%s30821_s9 + $0x1938] sm:$0xff]   ;;  %v803_v60 = vcombine.high %v795_v57, %v795_v57 }
 0x358   : > { %26722 = vmatprep.subr.bf16.mxu1 %v29317_v62  ;;  %v29352_v56 = vld [vmem:[%s30821_s9 + $0x19b8] sm:$0xff]   ;;  %v802_v61 = vrot.slane %v788_v58, %v30869_v42  ;;  %v29355_v62 = vld [vmem:[%s30821_s9 + $0x1ac0] sm:$0xff]  }
 0x359   : > { %v1808_v1 = vpack.c.bf16 %v803_v60, %v803_v60  ;;  %v29390_v58 = vld [vmem:[%s30821_s9 + $0x1b80] sm:$0xff]   ;;  %v29391_v60 = vld [vmem:[%s30821_s9 + $0x1b48] sm:$0xff]  }
 0x35a   : > { %26701 = vmatpush3.bf16.msra.mxu0 %v29318_v63  ;;  %v1807_v63 = vpack.c.bf16 %v795_v57, %v795_v57  ;;  %v804_v2 = vcombine.high %v802_v61, %v802_v61 }
 0x35b   : > { %26730 = vmatprep.subr.bf16.mxu0 %v29321_v3  ;;  %26723 = vmatpush3.bf16.msra.mxu1 %v29319_v4  ;;  %v29357_v3 = vld [vmem:[%s30821_s9 + $0x1a80] sm:$0xff]   ;;  %v1809_v4 = vpack.c.bf16 %v802_v61, %v802_v61 }
 0x35c   : > { %26752 = vmatprep.subr.bf16.mxu1 %v29322_v7  ;;  %v1810_v6 = vpack.c.bf16 %v804_v2, %v804_v2  ;;  %v29359_v7 = vld [vmem:[%s30821_s9 + $0x1ac8] sm:$0xff]   ;;  %v29396_v2 = vld [vmem:[%s30821_s9 + $0x1bd0] sm:$0xff]  }
 0x35d   : > { %20300 = vmatmul.mubr.bf16.vlgmr.msra.gmra.mrb[96].mxu0 %v1803_v8  ;;  %v29360_v8 = vld [vmem:[%s30821_s9 + $0x1a08] sm:$0xff]  }
 0x35e   : > { %26731 = vmatpush3.bf16.msra.mxu0 %v29323_v9  ;;  %20340 = vmatmul.mubr.bf16.vlgmr.msra.gmra.mrb[96].mxu1 %v1805_v13  ;;  %v29361_v9 = vld [vmem:[%s30821_s9 + $0x1a88] sm:$0xff]   ;;  %v29365_v13 = vld [vmem:[%s30821_s9 + $0x1a90] sm:$0xff]  }
 0x35f   : > { %26732 = vmatprep.subr.bf16.mxu0 %v29325_v14  ;;  %26753 = vmatpush3.bf16.msra.mxu1 %v29324_v12  ;;  %v29364_v12 = vld [vmem:[%s30821_s9 + $0x1a10] sm:$0xff]   ;;  %v29366_v14 = vld [vmem:[%s30821_s9 + $0x1a58] sm:$0xff]  }
 0x360   : > { %26754 = vmatprep.subr.bf16.mxu1 %v29326_v16  ;;  %20379 = vmatprep.mubr.bf16.mxu0 %v1808_v1  ;;  %v29368_v16 = vld [vmem:[%s30821_s9 + $0x1a18] sm:$0xff]   ;;  %v29395_v1 = vld [vmem:[%s30821_s9 + $0x1b50] sm:$0xff]  }
 0x361   : > { %20419 = vmatprep.mubr.bf16.mxu1 %v1810_v6  ;;  %v29400_v6 = vld [vmem:[%s30821_s9 + $0x1bd8] sm:$0xff]  }
 0x362   : > { %26733 = vmatpush3.bf16.msra.mxu0 %v29327_v17  ;;  %v29369_v17 = vld [vmem:[%s30821_s9 + $0x1a98] sm:$0xff]  }
 0x363   : > { %26734 = vmatprep.subr.bf16.mxu0 %v29329_v19  ;;  %26755 = vmatpush3.bf16.msra.mxu1 %v29328_v18  ;;  %v29370_v18 = vld [vmem:[%s30821_s9 + $0x1a60] sm:$0xff]  }
 0x364   : > { %26756 = vmatprep.subr.bf16.mxu1 %v29330_v20  ;;  %v29371_v19 = vld [vmem:[%s30821_s9 + $0x1ae0] sm:$0xff]  }
 0x365   : > { %v29372_v20 = vld [vmem:[%s30821_s9 + $0x1a20] sm:$0xff]  }
 0x366   : > { %26735 = vmatpush3.bf16.msra.mxu0 %v29331_v21  ;;  %v29373_v21 = vld [vmem:[%s30821_s9 + $0x1aa0] sm:$0xff]  }
 0x367   : > { %26736 = vmatprep.subr.bf16.mxu0 %v29333_v23  ;;  %26757 = vmatpush3.bf16.msra.mxu1 %v29332_v22  ;;  %v29374_v22 = vld [vmem:[%s30821_s9 + $0x1a68] sm:$0xff]  }
 0x368   : > { %26758 = vmatprep.subr.bf16.mxu1 %v29334_v24  ;;  %v29375_v24 = vld [vmem:[%s30821_s9 + $0x1ae8] sm:$0xff]  }
 0x36a   : > { %26737 = vmatpush3.bf16.msra.mxu0 %v29335_v25 }
 0x36b   : > { %26738 = vmatprep.subr.bf16.mxu0 %v29337_v27  ;;  %26759 = vmatpush3.bf16.msra.mxu1 %v29336_v26  ;;  %v29376_v26 = vld [vmem:[%s30821_s9 + $0x1a28] sm:$0xff]  }
 0x36c   : > { %26760 = vmatprep.subr.bf16.mxu1 %v29338_v28 }
 0x36e   : > { %26739 = vmatpush3.bf16.msra.mxu0 %v29339_v29 }
 0x36f   : > { %26740 = vmatprep.subr.bf16.mxu0 %v29341_v31  ;;  %26761 = vmatpush3.bf16.msra.mxu1 %v29340_v30  ;;  %v29377_v31 = vld [vmem:[%s30821_s9 + $0x1aa8] sm:$0xff]  }
 0x370   : > { %v26438_v32 = vpop.f32.mrb[72].mxu0  ;;  %26762 = vmatprep.subr.bf16.mxu1 %v29342_v33  ;;  %v29378_v33 = vld [vmem:[%s30821_s9 + $0x1a70] sm:$0xff]  }
 0x371   : > { %v26439_v34 = vpop.f32.mrb[73].mxu0  ;;  %v26460_v36 = vpop.f32.mrb[72].mxu1 }
 0x372   : > { %v26440_v37 = vadd.f32 %v26439_v34, %v26438_v32  ;;  %v26441_v38 = vpop.f32.mrb[74].mxu0  ;;  %v26461_v41 = vpop.f32.mrb[73].mxu1  ;;  %26741 = vmatpush3.bf16.msra.mxu0 %v29343_v35 }
 0x373   : > { %v26442_v43 = vpop.f32.mrb[75].mxu0  ;;  %v26462_v45 = vadd.f32 %v26461_v41, %v26460_v36  ;;  %v26463_v46 = vpop.f32.mrb[74].mxu1  ;;  %26742 = vmatprep.subr.bf16.mxu0 %v29345_v40  ;;  %26763 = vmatpush3.bf16.msra.mxu1 %v29344_v39  ;;  %v29380_v39 = vld [vmem:[%s30821_s9 + $0x1a30] sm:$0xff]   ;;  %v29382_v41 = vld [vmem:[%s30821_s9 + $0x1a78] sm:$0xff]  }
 0x374   : > { %v19822_v44 = vadd.f32 %v26440_v37, %v31754_v59  ;;  %v26464_v48 = vpop.f32.mrb[75].mxu1  ;;  %26764 = vmatprep.subr.bf16.mxu1 %v29346_v47  ;;  %v29354_v59 = vld [vmem:[%s30821_s9 + $0x1a40] sm:$0xff]   ;;  %v29379_v37 = vld [vmem:[%s30821_s9 + $0x1af0] sm:$0xff]  }
 0x375   : > { %v29381_v43 = vld [vmem:[%s30821_s9 + $0x1ab0] sm:$0xff]  }
 0x376   : > { %v31792_v50 = vadd.f32 %v26462_v45, %v19822_v44  ;;  %26743 = vmatpush3.bf16.msra.mxu0 %v29347_v49  ;;  %v29383_v44 = vld [vmem:[%s30821_s9 + $0x1af8] sm:$0xff]   ;;  %v261_v46 = vld [vmem:[%s30831_s7 + $0xd0] sm:$0xff]  ;;  %v29387_v49 = vld [vmem:[%s30821_s9 + $0x1b40] sm:$0xff]  }
 0x377   : > { %26744 = vmatprep.subr.bf16.mxu0 %v29349_v52  ;;  %26765 = vmatpush3.bf16.msra.mxu1 %v29348_v51  ;;  %v29384_v45 = vld [vmem:[%s30821_s9 + $0x1a38] sm:$0xff]   ;;  %v812_v47 = vrot.slane %v261_v46, %v30869_v42  ;;  %v805_v48 = vcombine.high %v261_v46, %v261_v46  ;;  %v29422_v46 = vld [vmem:[%s30821_s9 + $0x1c00] sm:$0xff]  }
 0x378   : > { %26766 = vmatprep.subr.bf16.mxu1 %v29350_v53  ;;  %v29388_v53 = vld [vmem:[%s30821_s9 + $0x1bc0] sm:$0xff]  }
 0x379   : > { %v820_v51 = vcombine.high %v812_v47, %v812_v47  ;;  %v819_v52 = vrot.slane %v805_v48, %v30869_v42 }
 0x37a   : > { %26745 = vmatpush3.bf16.msra.mxu0 %v29351_v54  ;;  %v1811_v54 = vpack.c.bf16 %v812_v47, %v812_v47 }
 0x37b   : > { %26774 = vmatprep.subr.bf16.mxu0 %v29354_v59  ;;  %26767 = vmatpush3.bf16.msra.mxu1 %v29352_v56  ;;  %v1812_v56 = vpack.c.bf16 %v820_v51, %v820_v51  ;;  %v821_v57 = vcombine.high %v819_v52, %v819_v52  ;;  %v1813_v59 = vpack.c.bf16 %v819_v52, %v819_v52  ;;  %v29424_v51 = vld [vmem:[%s30821_s9 + $0x1c48] sm:$0xff]  }
 0x37c   : > { %26796 = vmatprep.subr.bf16.mxu1 %v29355_v62  ;;  %v29392_v62 = vld [vmem:[%s30821_s9 + $0x1bc8] sm:$0xff]  }
 0x37d   : > { %20380 = vmatmul.mubr.bf16.vlgmr.msra.gmra.mrb[100].mxu0 %v1807_v63  ;;  %v1814_v61 = vpack.c.bf16 %v821_v57, %v821_v57  ;;  %v29393_v63 = vld [vmem:[%s30821_s9 + $0x1b08] sm:$0xff]   ;;  %v29429_v57 = vld [vmem:[%s30821_s9 + $0x1cd0] sm:$0xff]  }
 0x37e   : > { %26775 = vmatpush3.bf16.msra.mxu0 %v29356_v0  ;;  %20420 = vmatmul.mubr.bf16.vlgmr.msra.gmra.mrb[100].mxu1 %v1809_v4  ;;  %v29394_v0 = vld [vmem:[%s30821_s9 + $0x1b88] sm:$0xff]   ;;  %v29398_v4 = vld [vmem:[%s30821_s9 + $0x1b90] sm:$0xff]  }
 0x37f   : > { %26776 = vmatprep.subr.bf16.mxu0 %v29358_v5  ;;  %26797 = vmatpush3.bf16.msra.mxu1 %v29357_v3  ;;  %v29397_v3 = vld [vmem:[%s30821_s9 + $0x1b10] sm:$0xff]   ;;  %v29399_v5 = vld [vmem:[%s30821_s9 + $0x1b58] sm:$0xff]  }
 0x380   : > { %26798 = vmatprep.subr.bf16.mxu1 %v29359_v7  ;;  %20459 = vmatprep.mubr.bf16.mxu0 %v1812_v56  ;;  %v29401_v7 = vld [vmem:[%s30821_s9 + $0x1b18] sm:$0xff]   ;;  %v29428_v56 = vld [vmem:[%s30821_s9 + $0x1c50] sm:$0xff]  }
 0x381   : > { %20499 = vmatprep.mubr.bf16.mxu1 %v1814_v61  ;;  %v29433_v61 = vld [vmem:[%s30821_s9 + $0x1cd8] sm:$0xff]  }
 0x382   : > { %26777 = vmatpush3.bf16.msra.mxu0 %v29360_v8  ;;  %v29402_v8 = vld [vmem:[%s30821_s9 + $0x1b98] sm:$0xff]  }
 0x383   : > { %26778 = vmatprep.subr.bf16.mxu0 %v29362_v10  ;;  %26799 = vmatpush3.bf16.msra.mxu1 %v29361_v9  ;;  %v29403_v9 = vld [vmem:[%s30821_s9 + $0x1b60] sm:$0xff]  }
 0x384   : > { %26800 = vmatprep.subr.bf16.mxu1 %v29363_v11  ;;  %v29404_v10 = vld [vmem:[%s30821_s9 + $0x1be0] sm:$0xff]  }
 0x385   : > { %v29405_v11 = vld [vmem:[%s30821_s9 + $0x1b20] sm:$0xff]  }
 0x386   : > { %26779 = vmatpush3.bf16.msra.mxu0 %v29364_v12  ;;  %v29406_v12 = vld [vmem:[%s30821_s9 + $0x1ba0] sm:$0xff]  }
 0x387   : > { %26780 = vmatprep.subr.bf16.mxu0 %v29366_v14  ;;  %26801 = vmatpush3.bf16.msra.mxu1 %v29365_v13  ;;  %v29407_v13 = vld [vmem:[%s30821_s9 + $0x1b68] sm:$0xff]  }
 0x388   : > { %26802 = vmatprep.subr.bf16.mxu1 %v29367_v15  ;;  %v29408_v15 = vld [vmem:[%s30821_s9 + $0x1be8] sm:$0xff]  }
 0x38a   : > { %26781 = vmatpush3.bf16.msra.mxu0 %v29368_v16 }
 0x38b   : > { %26782 = vmatprep.subr.bf16.mxu0 %v29370_v18  ;;  %26803 = vmatpush3.bf16.msra.mxu1 %v29369_v17  ;;  %v29409_v17 = vld [vmem:[%s30821_s9 + $0x1b28] sm:$0xff]  }
 0x38c   : > { %26804 = vmatprep.subr.bf16.mxu1 %v29371_v19 }
 0x38e   : > { %26783 = vmatpush3.bf16.msra.mxu0 %v29372_v20 }
 0x38f   : > { %26784 = vmatprep.subr.bf16.mxu0 %v29374_v22  ;;  %26805 = vmatpush3.bf16.msra.mxu1 %v29373_v21  ;;  %v29410_v21 = vld [vmem:[%s30821_s9 + $0x1ba8] sm:$0xff]   ;;  %v29411_v22 = vld [vmem:[%s30821_s9 + $0x1b70] sm:$0xff]  }
 0x390   : > { %v26482_v23 = vpop.f32.mrb[76].mxu0  ;;  %26806 = vmatprep.subr.bf16.mxu1 %v29375_v24 }
 0x391   : > { %v26483_v25 = vpop.f32.mrb[77].mxu0  ;;  %v26504_v27 = vpop.f32.mrb[76].mxu1 }
 0x392   : > { %v26484_v28 = vadd.f32 %v26483_v25, %v26482_v23  ;;  %v26485_v29 = vpop.f32.mrb[78].mxu0  ;;  %v26505_v30 = vpop.f32.mrb[77].mxu1  ;;  %26785 = vmatpush3.bf16.msra.mxu0 %v29376_v26 }
 0x393   : > { %v26486_v32 = vpop.f32.mrb[79].mxu0  ;;  %v26506_v35 = vadd.f32 %v26505_v30, %v26504_v27  ;;  %v26507_v36 = vpop.f32.mrb[78].mxu1  ;;  %26786 = vmatprep.subr.bf16.mxu0 %v29378_v33  ;;  %26807 = vmatpush3.bf16.msra.mxu1 %v29377_v31  ;;  %v29413_v30 = vld [vmem:[%s30821_s9 + $0x1b30] sm:$0xff]   ;;  %v29415_v33 = vld [vmem:[%s30821_s9 + $0x1b78] sm:$0xff]  }
 0x394   : > { %v19902_v34 = vadd.f32 %v26484_v28, %v31792_v50  ;;  %v26508_v38 = vpop.f32.mrb[79].mxu1  ;;  %26808 = vmatprep.subr.bf16.mxu1 %v29379_v37  ;;  %v29385_v50 = vld [vmem:[%s30821_s9 + $0x1ab8] sm:$0xff]   ;;  %v29412_v28 = vld [vmem:[%s30821_s9 + $0x1bf0] sm:$0xff]  }
 0x395   : > { %v29414_v32 = vld [vmem:[%s30821_s9 + $0x1bb0] sm:$0xff]  }
 0x396   : > { %v31830_v40 = vadd.f32 %v26506_v35, %v19902_v34  ;;  %26787 = vmatpush3.bf16.msra.mxu0 %v29380_v39  ;;  %v29416_v34 = vld [vmem:[%s30821_s9 + $0x1bf8] sm:$0xff]   ;;  %v29420_v39 = vld [vmem:[%s30821_s9 + $0x1c40] sm:$0xff]  }
 0x397   : > { %26788 = vmatprep.subr.bf16.mxu0 %v29382_v41  ;;  %26809 = vmatpush3.bf16.msra.mxu1 %v29381_v43  ;;  %v29417_v35 = vld [vmem:[%s30821_s9 + $0x1b38] sm:$0xff]  }
 0x398   : > { %26810 = vmatprep.subr.bf16.mxu1 %v29383_v44  ;;  %v262_v36 = vld [vmem:[%s30831_s7 + $0xd8] sm:$0xff]  ;;  %v29421_v44 = vld [vmem:[%s30821_s9 + $0x1cc0] sm:$0xff]  }
 0x399   : > { %v829_v37 = vrot.slane %v262_v36, %v30869_v42  ;;  %v822_v38 = vcombine.high %v262_v36, %v262_v36  ;;  %v29455_v36 = vld [vmem:[%s30821_s9 + $0x1d00] sm:$0xff]  }
 0x39a   : > { %26789 = vmatpush3.bf16.msra.mxu0 %v29384_v45 }
 0x39b   : > { %26818 = vmatprep.subr.bf16.mxu0 %v29387_v49  ;;  %26811 = vmatpush3.bf16.msra.mxu1 %v29385_v50  ;;  %v837_v41 = vcombine.high %v829_v37, %v829_v37  ;;  %v836_v43 = vrot.slane %v822_v38, %v30869_v42  ;;  %v1815_v45 = vpack.c.bf16 %v829_v37, %v829_v37  ;;  %v29423_v49 = vld [vmem:[%s30821_s9 + $0x1c80] sm:$0xff]  }
 0x39c   : > { %26840 = vmatprep.subr.bf16.mxu1 %v29388_v53  ;;  %v29425_v53 = vld [vmem:[%s30821_s9 + $0x1cc8] sm:$0xff]  }
 0x39d   : > { %20460 = vmatmul.mubr.bf16.vlgmr.msra.gmra.mrb[104].mxu0 %v1811_v54  ;;  %v1816_v47 = vpack.c.bf16 %v837_v41, %v837_v41  ;;  %v838_v48 = vcombine.high %v836_v43, %v836_v43  ;;  %v1817_v50 = vpack.c.bf16 %v836_v43, %v836_v43  ;;  %v29426_v54 = vld [vmem:[%s30821_s9 + $0x1c08] sm:$0xff]  }
 0x39e   : > { %26819 = vmatpush3.bf16.msra.mxu0 %v29389_v55  ;;  %20500 = vmatmul.mubr.bf16.vlgmr.msra.gmra.mrb[104].mxu1 %v1813_v59  ;;  %v29427_v55 = vld [vmem:[%s30821_s9 + $0x1c88] sm:$0xff]   ;;  %v29431_v59 = vld [vmem:[%s30821_s9 + $0x1c90] sm:$0xff]  }
 0x39f   : > { %26820 = vmatprep.subr.bf16.mxu0 %v29391_v60  ;;  %26841 = vmatpush3.bf16.msra.mxu1 %v29390_v58  ;;  %v1818_v52 = vpack.c.bf16 %v838_v48, %v838_v48  ;;  %v29430_v58 = vld [vmem:[%s30821_s9 + $0x1c10] sm:$0xff]   ;;  %v29432_v60 = vld [vmem:[%s30821_s9 + $0x1c58] sm:$0xff]   ;;  %v29457_v41 = vld [vmem:[%s30821_s9 + $0x1d48] sm:$0xff]  }
 0x3a0   : > { %26842 = vmatprep.subr.bf16.mxu1 %v29392_v62  ;;  %20539 = vmatprep.mubr.bf16.mxu0 %v1816_v47  ;;  %v29434_v62 = vld [vmem:[%s30821_s9 + $0x1c18] sm:$0xff]   ;;  %v29461_v47 = vld [vmem:[%s30821_s9 + $0x1d50] sm:$0xff]  }
 0x3a1   : > { %20579 = vmatprep.mubr.bf16.mxu1 %v1818_v52  ;;  %v29462_v48 = vld [vmem:[%s30821_s9 + $0x1dd0] sm:$0xff]   ;;  %v29466_v52 = vld [vmem:[%s30821_s9 + $0x1dd8] sm:$0xff]  }
 0x3a2   : > { %26821 = vmatpush3.bf16.msra.mxu0 %v29393_v63  ;;  %v29435_v63 = vld [vmem:[%s30821_s9 + $0x1c98] sm:$0xff]  }
 0x3a3   : > { %26822 = vmatprep.subr.bf16.mxu0 %v29395_v1  ;;  %26843 = vmatpush3.bf16.msra.mxu1 %v29394_v0  ;;  %v29436_v0 = vld [vmem:[%s30821_s9 + $0x1c60] sm:$0xff]  }
 0x3a4   : > { %26844 = vmatprep.subr.bf16.mxu1 %v29396_v2  ;;  %v29437_v1 = vld [vmem:[%s30821_s9 + $0x1ce0] sm:$0xff]  }
 0x3a5   : > { %v29438_v2 = vld [vmem:[%s30821_s9 + $0x1c20] sm:$0xff]  }
 0x3a6   : > { %26823 = vmatpush3.bf16.msra.mxu0 %v29397_v3  ;;  %v29439_v3 = vld [vmem:[%s30821_s9 + $0x1ca0] sm:$0xff]  }
 0x3a7   : > { %26824 = vmatprep.subr.bf16.mxu0 %v29399_v5  ;;  %26845 = vmatpush3.bf16.msra.mxu1 %v29398_v4  ;;  %v29440_v4 = vld [vmem:[%s30821_s9 + $0x1c68] sm:$0xff]  }
 0x3a8   : > { %26846 = vmatprep.subr.bf16.mxu1 %v29400_v6  ;;  %v29441_v6 = vld [vmem:[%s30821_s9 + $0x1ce8] sm:$0xff]  }
 0x3aa   : > { %26825 = vmatpush3.bf16.msra.mxu0 %v29401_v7 }
 0x3ab   : > { %26826 = vmatprep.subr.bf16.mxu0 %v29403_v9  ;;  %26847 = vmatpush3.bf16.msra.mxu1 %v29402_v8  ;;  %v29442_v8 = vld [vmem:[%s30821_s9 + $0x1c28] sm:$0xff]  }
 0x3ac   : > { %26848 = vmatprep.subr.bf16.mxu1 %v29404_v10 }
 0x3ae   : > { %26827 = vmatpush3.bf16.msra.mxu0 %v29405_v11 }
 0x3af   : > { %26828 = vmatprep.subr.bf16.mxu0 %v29407_v13  ;;  %26849 = vmatpush3.bf16.msra.mxu1 %v29406_v12  ;;  %v29443_v12 = vld [vmem:[%s30821_s9 + $0x1ca8] sm:$0xff]   ;;  %v29444_v13 = vld [vmem:[%s30821_s9 + $0x1c70] sm:$0xff]  }
 0x3b0   : > { %v26526_v14 = vpop.f32.mrb[80].mxu0  ;;  %26850 = vmatprep.subr.bf16.mxu1 %v29408_v15 }
 0x3b1   : > { %v26527_v16 = vpop.f32.mrb[81].mxu0  ;;  %v26548_v18 = vpop.f32.mrb[80].mxu1 }
 0x3b2   : > { %v26528_v19 = vadd.f32 %v26527_v16, %v26526_v14  ;;  %v26529_v20 = vpop.f32.mrb[82].mxu0  ;;  %v26549_v23 = vpop.f32.mrb[81].mxu1  ;;  %26829 = vmatpush3.bf16.msra.mxu0 %v29409_v17 }
 0x3b3   : > { %v26530_v24 = vpop.f32.mrb[83].mxu0  ;;  %v26550_v26 = vadd.f32 %v26549_v23, %v26548_v18  ;;  %v26551_v27 = vpop.f32.mrb[82].mxu1  ;;  %26830 = vmatprep.subr.bf16.mxu0 %v29411_v22  ;;  %26851 = vmatpush3.bf16.msra.mxu1 %v29410_v21  ;;  %v29446_v21 = vld [vmem:[%s30821_s9 + $0x1c30] sm:$0xff]  }
 0x3b4   : > { %v19982_v25 = vadd.f32 %v26528_v19, %v31830_v40  ;;  %v26552_v29 = vpop.f32.mrb[83].mxu1  ;;  %26852 = vmatprep.subr.bf16.mxu1 %v29412_v28  ;;  %v29418_v40 = vld [vmem:[%s30821_s9 + $0x1bb8] sm:$0xff]   ;;  %v29445_v19 = vld [vmem:[%s30821_s9 + $0x1cf0] sm:$0xff]  }
 0x3b5   : > { %v29447_v23 = vld [vmem:[%s30821_s9 + $0x1cb0] sm:$0xff]   ;;  %v29448_v24 = vld [vmem:[%s30821_s9 + $0x1c78] sm:$0xff]  }
 0x3b6   : > { %v31868_v31 = vadd.f32 %v26550_v26, %v19982_v25  ;;  %26831 = vmatpush3.bf16.msra.mxu0 %v29413_v30  ;;  %v29449_v25 = vld [vmem:[%s30821_s9 + $0x1cf8] sm:$0xff]  }
 0x3b7   : > { %26832 = vmatprep.subr.bf16.mxu0 %v29415_v33  ;;  %26853 = vmatpush3.bf16.msra.mxu1 %v29414_v32  ;;  %v29450_v26 = vld [vmem:[%s30821_s9 + $0x1c38] sm:$0xff]  }
 0x3b8   : > { %26854 = vmatprep.subr.bf16.mxu1 %v29416_v34  ;;  %v263_v27 = vld [vmem:[%s30831_s7 + $0xe0] sm:$0xff] }
 0x3b9   : > { %v29451_v28 = vld [vmem:[%s30821_s9 + $0x1cb8] sm:$0xff]   ;;  %v846_v29 = vrot.slane %v263_v27, %v30869_v42  ;;  %v839_v30 = vcombine.high %v263_v27, %v263_v27  ;;  %v29454_v34 = vld [vmem:[%s30821_s9 + $0x1dc0] sm:$0xff]  }
 0x3ba   : > { %26833 = vmatpush3.bf16.msra.mxu0 %v29417_v35  ;;  %v29488_v27 = vld [vmem:[%s30821_s9 + $0x1e00] sm:$0xff]  }
 0x3bb   : > { %26862 = vmatprep.subr.bf16.mxu0 %v29420_v39  ;;  %26855 = vmatpush3.bf16.msra.mxu1 %v29418_v40  ;;  %v854_v32 = vcombine.high %v846_v29, %v846_v29  ;;  %v853_v33 = vrot.slane %v839_v30, %v30869_v42  ;;  %v1819_v35 = vpack.c.bf16 %v846_v29, %v846_v29  ;;  %v29456_v39 = vld [vmem:[%s30821_s9 + $0x1d80] sm:$0xff]  }
 0x3bc   : > { %26884 = vmatprep.subr.bf16.mxu1 %v29421_v44  ;;  %v29458_v44 = vld [vmem:[%s30821_s9 + $0x1dc8] sm:$0xff]   ;;  %v29489_v30 = vld [vmem:[%s30821_s9 + $0x1e80] sm:$0xff]  }
 0x3bd   : > { %20540 = vmatmul.mubr.bf16.vlgmr.msra.gmra.mrb[108].mxu0 %v1815_v45  ;;  %v1820_v37 = vpack.c.bf16 %v854_v32, %v854_v32  ;;  %v855_v38 = vcombine.high %v853_v33, %v853_v33  ;;  %v1821_v40 = vpack.c.bf16 %v853_v33, %v853_v33  ;;  %v29459_v45 = vld [vmem:[%s30821_s9 + $0x1d08] sm:$0xff]  }
 0x3be   : > { %26863 = vmatpush3.bf16.msra.mxu0 %v29422_v46  ;;  %20580 = vmatmul.mubr.bf16.vlgmr.msra.gmra.mrb[108].mxu1 %v1817_v50  ;;  %v29460_v46 = vld [vmem:[%s30821_s9 + $0x1d88] sm:$0xff]   ;;  %v29464_v50 = vld [vmem:[%s30821_s9 + $0x1d90] sm:$0xff]  }
 0x3bf   : > { %26864 = vmatprep.subr.bf16.mxu0 %v29424_v51  ;;  %26885 = vmatpush3.bf16.msra.mxu1 %v29423_v49  ;;  %v1822_v43 = vpack.c.bf16 %v855_v38, %v855_v38  ;;  %v29463_v49 = vld [vmem:[%s30821_s9 + $0x1d10] sm:$0xff]   ;;  %v29465_v51 = vld [vmem:[%s30821_s9 + $0x1d58] sm:$0xff]   ;;  %v29490_v32 = vld [vmem:[%s30821_s9 + $0x1e48] sm:$0xff]  }
 0x3c0   : > { %26886 = vmatprep.subr.bf16.mxu1 %v29425_v53  ;;  %20619 = vmatprep.mubr.bf16.mxu0 %v1820_v37  ;;  %v29467_v53 = vld [vmem:[%s30821_s9 + $0x1d18] sm:$0xff]   ;;  %v29494_v37 = vld [vmem:[%s30821_s9 + $0x1e50] sm:$0xff]  }
 0x3c1   : > { %20659 = vmatprep.mubr.bf16.mxu1 %v1822_v43  ;;  %v29495_v38 = vld [vmem:[%s30821_s9 + $0x1ed0] sm:$0xff]   ;;  %v29499_v43 = vld [vmem:[%s30821_s9 + $0x1ed8] sm:$0xff]  }
 0x3c2   : > { %26865 = vmatpush3.bf16.msra.mxu0 %v29426_v54  ;;  %v29468_v54 = vld [vmem:[%s30821_s9 + $0x1d98] sm:$0xff]  }
 0x3c3   : > { %26866 = vmatprep.subr.bf16.mxu0 %v29428_v56  ;;  %26887 = vmatpush3.bf16.msra.mxu1 %v29427_v55  ;;  %v29469_v55 = vld [vmem:[%s30821_s9 + $0x1d60] sm:$0xff]  }
 0x3c4   : > { %26888 = vmatprep.subr.bf16.mxu1 %v29429_v57  ;;  %v29470_v56 = vld [vmem:[%s30821_s9 + $0x1de0] sm:$0xff]  }
 0x3c5   : > { %v29471_v57 = vld [vmem:[%s30821_s9 + $0x1d20] sm:$0xff]  }
 0x3c6   : > { %26867 = vmatpush3.bf16.msra.mxu0 %v29430_v58  ;;  %v29472_v58 = vld [vmem:[%s30821_s9 + $0x1da0] sm:$0xff]  }
 0x3c7   : > { %26868 = vmatprep.subr.bf16.mxu0 %v29432_v60  ;;  %26889 = vmatpush3.bf16.msra.mxu1 %v29431_v59  ;;  %v29473_v59 = vld [vmem:[%s30821_s9 + $0x1d68] sm:$0xff]  }
 0x3c8   : > { %26890 = vmatprep.subr.bf16.mxu1 %v29433_v61  ;;  %v29474_v61 = vld [vmem:[%s30821_s9 + $0x1de8] sm:$0xff]  }
 0x3ca   : > { %26869 = vmatpush3.bf16.msra.mxu0 %v29434_v62 }
 0x3cb   : > { %26870 = vmatprep.subr.bf16.mxu0 %v29436_v0  ;;  %26891 = vmatpush3.bf16.msra.mxu1 %v29435_v63  ;;  %v29475_v63 = vld [vmem:[%s30821_s9 + $0x1d28] sm:$0xff]  }
 0x3cc   : > { %26892 = vmatprep.subr.bf16.mxu1 %v29437_v1 }
 0x3ce   : > { %26871 = vmatpush3.bf16.msra.mxu0 %v29438_v2 }
 0x3cf   : > { %26872 = vmatprep.subr.bf16.mxu0 %v29440_v4  ;;  %26893 = vmatpush3.bf16.msra.mxu1 %v29439_v3  ;;  %v29476_v4 = vld [vmem:[%s30821_s9 + $0x1da8] sm:$0xff]  }
 0x3d0   : > { %v26570_v5 = vpop.f32.mrb[84].mxu0  ;;  %26894 = vmatprep.subr.bf16.mxu1 %v29441_v6  ;;  %v29477_v6 = vld [vmem:[%s30821_s9 + $0x1d70] sm:$0xff]  }
 0x3d1   : > { %v26571_v7 = vpop.f32.mrb[85].mxu0  ;;  %v26592_v9 = vpop.f32.mrb[84].mxu1 }
 0x3d2   : > { %v26572_v10 = vadd.f32 %v26571_v7, %v26570_v5  ;;  %v26573_v11 = vpop.f32.mrb[86].mxu0  ;;  %v26593_v14 = vpop.f32.mrb[85].mxu1  ;;  %26873 = vmatpush3.bf16.msra.mxu0 %v29442_v8 }
 0x3d3   : > { %v26574_v15 = vpop.f32.mrb[87].mxu0  ;;  %v26594_v17 = vadd.f32 %v26593_v14, %v26592_v9  ;;  %v26595_v18 = vpop.f32.mrb[86].mxu1  ;;  %26874 = vmatprep.subr.bf16.mxu0 %v29444_v13  ;;  %26895 = vmatpush3.bf16.msra.mxu1 %v29443_v12  ;;  %v29479_v12 = vld [vmem:[%s30821_s9 + $0x1d30] sm:$0xff]   ;;  %v29481_v14 = vld [vmem:[%s30821_s9 + $0x1d78] sm:$0xff]  }
 0x3d4   : > { %v20062_v16 = vadd.f32 %v26572_v10, %v31868_v31  ;;  %v26596_v20 = vpop.f32.mrb[87].mxu1  ;;  %26896 = vmatprep.subr.bf16.mxu1 %v29445_v19  ;;  %v29453_v31 = vld [vmem:[%s30821_s9 + $0x1d40] sm:$0xff]   ;;  %v29478_v10 = vld [vmem:[%s30821_s9 + $0x1df0] sm:$0xff]  }
 0x3d5   : > { %v29480_v15 = vld [vmem:[%s30821_s9 + $0x1db0] sm:$0xff]   ;;  %v264_v18 = vld [vmem:[%s30831_s7 + $0xe8] sm:$0xff] }
 0x3d6   : > { %v31906_v22 = vadd.f32 %v26594_v17, %v20062_v16  ;;  %26875 = vmatpush3.bf16.msra.mxu0 %v29446_v21  ;;  %v29482_v16 = vld [vmem:[%s30821_s9 + $0x1df8] sm:$0xff]   ;;  %v863_v19 = vrot.slane %v264_v18, %v30869_v42  ;;  %v856_v20 = vcombine.high %v264_v18, %v264_v18  ;;  %v29486_v21 = vld [vmem:[%s30821_s9 + $0x1e40] sm:$0xff]  }
 0x3d7   : > { %26876 = vmatprep.subr.bf16.mxu0 %v29448_v24  ;;  %26897 = vmatpush3.bf16.msra.mxu1 %v29447_v23  ;;  %v29483_v17 = vld [vmem:[%s30821_s9 + $0x1d38] sm:$0xff]   ;;  %v29521_v18 = vld [vmem:[%s30821_s9 + $0x1f00] sm:$0xff]  }
 0x3d8   : > { %26898 = vmatprep.subr.bf16.mxu1 %v29449_v25  ;;  %v871_v23 = vcombine.high %v863_v19, %v863_v19  ;;  %v870_v24 = vrot.slane %v856_v20, %v30869_v42  ;;  %v29487_v25 = vld [vmem:[%s30821_s9 + $0x1ec0] sm:$0xff]  }
 0x3da   : > { %26877 = vmatpush3.bf16.msra.mxu0 %v29450_v26  ;;  %v1823_v26 = vpack.c.bf16 %v863_v19, %v863_v19  ;;  %v872_v29 = vcombine.high %v870_v24, %v870_v24 }
 0x3db   : > { %26906 = vmatprep.subr.bf16.mxu0 %v29453_v31  ;;  %26899 = vmatpush3.bf16.msra.mxu1 %v29451_v28  ;;  %v1824_v28 = vpack.c.bf16 %v871_v23, %v871_v23  ;;  %v1825_v31 = vpack.c.bf16 %v870_v24, %v870_v24  ;;  %v29523_v23 = vld [vmem:[%s30821_s9 + $0x1f48] sm:$0xff]  }
 0x3dc   : > { %26928 = vmatprep.subr.bf16.mxu1 %v29454_v34  ;;  %v1826_v33 = vpack.c.bf16 %v872_v29, %v872_v29  ;;  %v29491_v34 = vld [vmem:[%s30821_s9 + $0x1ec8] sm:$0xff]   ;;  %v29528_v29 = vld [vmem:[%s30821_s9 + $0x1fd0] sm:$0xff]  }
 0x3dd   : > { %20620 = vmatmul.mubr.bf16.vlgmr.msra.gmra.mrb[112].mxu0 %v1819_v35  ;;  %v29492_v35 = vld [vmem:[%s30821_s9 + $0x1e08] sm:$0xff]  }
 0x3de   : > { %26907 = vmatpush3.bf16.msra.mxu0 %v29455_v36  ;;  %20660 = vmatmul.mubr.bf16.vlgmr.msra.gmra.mrb[112].mxu1 %v1821_v40  ;;  %v29493_v36 = vld [vmem:[%s30821_s9 + $0x1e88] sm:$0xff]   ;;  %v29497_v40 = vld [vmem:[%s30821_s9 + $0x1e90] sm:$0xff]  }
 0x3df   : > { %26908 = vmatprep.subr.bf16.mxu0 %v29457_v41  ;;  %26929 = vmatpush3.bf16.msra.mxu1 %v29456_v39  ;;  %v29496_v39 = vld [vmem:[%s30821_s9 + $0x1e10] sm:$0xff]   ;;  %v29498_v41 = vld [vmem:[%s30821_s9 + $0x1e58] sm:$0xff]  }
 0x3e0   : > { %26930 = vmatprep.subr.bf16.mxu1 %v29458_v44  ;;  %20699 = vmatprep.mubr.bf16.mxu0 %v1824_v28  ;;  %v29500_v44 = vld [vmem:[%s30821_s9 + $0x1e18] sm:$0xff]   ;;  %v29527_v28 = vld [vmem:[%s30821_s9 + $0x1f50] sm:$0xff]  }
 0x3e1   : > { %20739 = vmatprep.mubr.bf16.mxu1 %v1826_v33  ;;  %v29532_v33 = vld [vmem:[%s30821_s9 + $0x1fd8] sm:$0xff]  }
 0x3e2   : > { %26909 = vmatpush3.bf16.msra.mxu0 %v29459_v45  ;;  %v29501_v45 = vld [vmem:[%s30821_s9 + $0x1e98] sm:$0xff]  }
 0x3e3   : > { %26910 = vmatprep.subr.bf16.mxu0 %v29461_v47  ;;  %26931 = vmatpush3.bf16.msra.mxu1 %v29460_v46  ;;  %v29502_v46 = vld [vmem:[%s30821_s9 + $0x1e60] sm:$0xff]  }
 0x3e4   : > { %26932 = vmatprep.subr.bf16.mxu1 %v29462_v48  ;;  %v29503_v47 = vld [vmem:[%s30821_s9 + $0x1ee0] sm:$0xff]  }
 0x3e5   : > { %v29504_v48 = vld [vmem:[%s30821_s9 + $0x1e20] sm:$0xff]  }
 0x3e6   : > { %26911 = vmatpush3.bf16.msra.mxu0 %v29463_v49  ;;  %v29505_v49 = vld [vmem:[%s30821_s9 + $0x1ea0] sm:$0xff]  }
 0x3e7   : > { %26912 = vmatprep.subr.bf16.mxu0 %v29465_v51  ;;  %26933 = vmatpush3.bf16.msra.mxu1 %v29464_v50  ;;  %v29506_v50 = vld [vmem:[%s30821_s9 + $0x1e68] sm:$0xff]  }
 0x3e8   : > { %26934 = vmatprep.subr.bf16.mxu1 %v29466_v52  ;;  %v29507_v52 = vld [vmem:[%s30821_s9 + $0x1ee8] sm:$0xff]  }
 0x3ea   : > { %26913 = vmatpush3.bf16.msra.mxu0 %v29467_v53 }
 0x3eb   : > { %26914 = vmatprep.subr.bf16.mxu0 %v29469_v55  ;;  %26935 = vmatpush3.bf16.msra.mxu1 %v29468_v54  ;;  %v29508_v54 = vld [vmem:[%s30821_s9 + $0x1e28] sm:$0xff]  }
 0x3ec   : > { %26936 = vmatprep.subr.bf16.mxu1 %v29470_v56 }
 0x3ee   : > { %26915 = vmatpush3.bf16.msra.mxu0 %v29471_v57 }
 0x3ef   : > { %26916 = vmatprep.subr.bf16.mxu0 %v29473_v59  ;;  %26937 = vmatpush3.bf16.msra.mxu1 %v29472_v58  ;;  %v29509_v58 = vld [vmem:[%s30821_s9 + $0x1ea8] sm:$0xff]   ;;  %v29510_v59 = vld [vmem:[%s30821_s9 + $0x1e70] sm:$0xff]  }
 0x3f0   : > { %v26614_v60 = vpop.f32.mrb[88].mxu0  ;;  %26938 = vmatprep.subr.bf16.mxu1 %v29474_v61 }
 0x3f1   : > { %v26615_v62 = vpop.f32.mrb[89].mxu0  ;;  %v26636_v0 = vpop.f32.mrb[88].mxu1 }
 0x3f2   : > { %v26616_v1 = vadd.f32 %v26615_v62, %v26614_v60  ;;  %v26617_v2 = vpop.f32.mrb[90].mxu0  ;;  %v26637_v3 = vpop.f32.mrb[89].mxu1  ;;  %26917 = vmatpush3.bf16.msra.mxu0 %v29475_v63 }
 0x3f3   : > { %v26618_v5 = vpop.f32.mrb[91].mxu0  ;;  %v26638_v8 = vadd.f32 %v26637_v3, %v26636_v0  ;;  %v26639_v9 = vpop.f32.mrb[90].mxu1  ;;  %26918 = vmatprep.subr.bf16.mxu0 %v29477_v6  ;;  %26939 = vmatpush3.bf16.msra.mxu1 %v29476_v4  ;;  %v29512_v3 = vld [vmem:[%s30821_s9 + $0x1e30] sm:$0xff]   ;;  %v29514_v6 = vld [vmem:[%s30821_s9 + $0x1e78] sm:$0xff]  }
 0x3f4   : > { %v20142_v7 = vadd.f32 %v26616_v1, %v31906_v22  ;;  %v26640_v11 = vpop.f32.mrb[91].mxu1  ;;  %26940 = vmatprep.subr.bf16.mxu1 %v29478_v10  ;;  %v29484_v22 = vld [vmem:[%s30821_s9 + $0x1db8] sm:$0xff]   ;;  %v29511_v1 = vld [vmem:[%s30821_s9 + $0x1ef0] sm:$0xff]  }
 0x3f5   : > { %v29513_v5 = vld [vmem:[%s30821_s9 + $0x1eb0] sm:$0xff]  }
 0x3f6   : > { %v31944_v13 = vadd.f32 %v26638_v8, %v20142_v7  ;;  %26919 = vmatpush3.bf16.msra.mxu0 %v29479_v12  ;;  %v29515_v7 = vld [vmem:[%s30821_s9 + $0x1ef8] sm:$0xff]   ;;  %v265_v9 = vld [vmem:[%s30831_s7 + $0xf0] sm:$0xff]  ;;  %v29519_v12 = vld [vmem:[%s30821_s9 + $0x1f40] sm:$0xff]  }
 0x3f7   : > { %26920 = vmatprep.subr.bf16.mxu0 %v29481_v14  ;;  %26941 = vmatpush3.bf16.msra.mxu1 %v29480_v15  ;;  %v29516_v8 = vld [vmem:[%s30821_s9 + $0x1e38] sm:$0xff]   ;;  %v880_v10 = vrot.slane %v265_v9, %v30869_v42  ;;  %v873_v11 = vcombine.high %v265_v9, %v265_v9  ;;  %v29554_v9 = vld [vmem:[%s30821_s9 + $0x2000] sm:$0xff]  }
 0x3f8   : > { %26942 = vmatprep.subr.bf16.mxu1 %v29482_v16  ;;  %v29520_v16 = vld [vmem:[%s30821_s9 + $0x1fc0] sm:$0xff]  }
 0x3f9   : > { %v888_v14 = vcombine.high %v880_v10, %v880_v10  ;;  %v887_v15 = vrot.slane %v873_v11, %v30869_v42 }
 0x3fa   : > { %26921 = vmatpush3.bf16.msra.mxu0 %v29483_v17  ;;  %v1827_v17 = vpack.c.bf16 %v880_v10, %v880_v10 }
 0x3fb   : > { %26950 = vmatprep.subr.bf16.mxu0 %v29486_v21  ;;  %26943 = vmatpush3.bf16.msra.mxu1 %v29484_v22  ;;  %v1828_v19 = vpack.c.bf16 %v888_v14, %v888_v14  ;;  %v889_v20 = vcombine.high %v887_v15, %v887_v15  ;;  %v29522_v21 = vld [vmem:[%s30821_s9 + $0x1f80] sm:$0xff]   ;;  %v1829_v22 = vpack.c.bf16 %v887_v15, %v887_v15  ;;  %v29556_v14 = vld [vmem:[%s30821_s9 + $0x2048] sm:$0xff]  }
 0x3fc   : > { %26972 = vmatprep.subr.bf16.mxu1 %v29487_v25  ;;  %v29524_v25 = vld [vmem:[%s30821_s9 + $0x1fc8] sm:$0xff]  }
 0x3fd   : > { %20700 = vmatmul.mubr.bf16.vlgmr.msra.gmra.mrb[116].mxu0 %v1823_v26  ;;  %v1830_v24 = vpack.c.bf16 %v889_v20, %v889_v20  ;;  %v29525_v26 = vld [vmem:[%s30821_s9 + $0x1f08] sm:$0xff]   ;;  %v29561_v20 = vld [vmem:[%s30821_s9 + $0x20d0] sm:$0xff]  }
 0x3fe   : > { %26951 = vmatpush3.bf16.msra.mxu0 %v29488_v27  ;;  %20740 = vmatmul.mubr.bf16.vlgmr.msra.gmra.mrb[116].mxu1 %v1825_v31  ;;  %v29526_v27 = vld [vmem:[%s30821_s9 + $0x1f88] sm:$0xff]   ;;  %v29530_v31 = vld [vmem:[%s30821_s9 + $0x1f90] sm:$0xff]  }
 0x3ff   : > { %26952 = vmatprep.subr.bf16.mxu0 %v29490_v32  ;;  %26973 = vmatpush3.bf16.msra.mxu1 %v29489_v30  ;;  %v29529_v30 = vld [vmem:[%s30821_s9 + $0x1f10] sm:$0xff]   ;;  %v29531_v32 = vld [vmem:[%s30821_s9 + $0x1f58] sm:$0xff]  }
 0x400   : > { %26974 = vmatprep.subr.bf16.mxu1 %v29491_v34  ;;  %20779 = vmatprep.mubr.bf16.mxu0 %v1828_v19  ;;  %v29533_v34 = vld [vmem:[%s30821_s9 + $0x1f18] sm:$0xff]   ;;  %v29560_v19 = vld [vmem:[%s30821_s9 + $0x2050] sm:$0xff]  }
 0x401   : > { %20819 = vmatprep.mubr.bf16.mxu1 %v1830_v24  ;;  %v29565_v24 = vld [vmem:[%s30821_s9 + $0x20d8] sm:$0xff]  }
 0x402   : > { %26953 = vmatpush3.bf16.msra.mxu0 %v29492_v35  ;;  %v29534_v35 = vld [vmem:[%s30821_s9 + $0x1f98] sm:$0xff]  }
 0x403   : > { %26954 = vmatprep.subr.bf16.mxu0 %v29494_v37  ;;  %26975 = vmatpush3.bf16.msra.mxu1 %v29493_v36  ;;  %v29535_v36 = vld [vmem:[%s30821_s9 + $0x1f60] sm:$0xff]  }
 0x404   : > { %26976 = vmatprep.subr.bf16.mxu1 %v29495_v38  ;;  %v29536_v37 = vld [vmem:[%s30821_s9 + $0x1fe0] sm:$0xff]  }
 0x405   : > { %v29537_v38 = vld [vmem:[%s30821_s9 + $0x1f20] sm:$0xff]  }
 0x406   : > { %26955 = vmatpush3.bf16.msra.mxu0 %v29496_v39  ;;  %v29538_v39 = vld [vmem:[%s30821_s9 + $0x1fa0] sm:$0xff]  }
 0x407   : > { %26956 = vmatprep.subr.bf16.mxu0 %v29498_v41  ;;  %26977 = vmatpush3.bf16.msra.mxu1 %v29497_v40  ;;  %v29539_v40 = vld [vmem:[%s30821_s9 + $0x1f68] sm:$0xff]  }
 0x408   : > { %26978 = vmatprep.subr.bf16.mxu1 %v29499_v43  ;;  %v29540_v43 = vld [vmem:[%s30821_s9 + $0x1fe8] sm:$0xff]  }
 0x40a   : > { %26957 = vmatpush3.bf16.msra.mxu0 %v29500_v44 }
 0x40b   : > { %26958 = vmatprep.subr.bf16.mxu0 %v29502_v46  ;;  %26979 = vmatpush3.bf16.msra.mxu1 %v29501_v45  ;;  %v29541_v45 = vld [vmem:[%s30821_s9 + $0x1f28] sm:$0xff]  }
 0x40c   : > { %26980 = vmatprep.subr.bf16.mxu1 %v29503_v47 }
 0x40e   : > { %26959 = vmatpush3.bf16.msra.mxu0 %v29504_v48 }
 0x40f   : > { %26960 = vmatprep.subr.bf16.mxu0 %v29506_v50  ;;  %26981 = vmatpush3.bf16.msra.mxu1 %v29505_v49  ;;  %v29542_v49 = vld [vmem:[%s30821_s9 + $0x1fa8] sm:$0xff]   ;;  %v29543_v50 = vld [vmem:[%s30821_s9 + $0x1f70] sm:$0xff]  }
 0x410   : > { %v26658_v51 = vpop.f32.mrb[92].mxu0  ;;  %26982 = vmatprep.subr.bf16.mxu1 %v29507_v52 }
 0x411   : > { %v26659_v53 = vpop.f32.mrb[93].mxu0  ;;  %v26680_v55 = vpop.f32.mrb[92].mxu1 }
 0x412   : > { %v26660_v56 = vadd.f32 %v26659_v53, %v26658_v51  ;;  %v26661_v57 = vpop.f32.mrb[94].mxu0  ;;  %v26681_v60 = vpop.f32.mrb[93].mxu1  ;;  %26961 = vmatpush3.bf16.msra.mxu0 %v29508_v54 }
 0x413   : > { %v26662_v61 = vpop.f32.mrb[95].mxu0  ;;  %v26682_v63 = vadd.f32 %v26681_v60, %v26680_v55  ;;  %v26683_v0 = vpop.f32.mrb[94].mxu1  ;;  %26962 = vmatprep.subr.bf16.mxu0 %v29510_v59  ;;  %26983 = vmatpush3.bf16.msra.mxu1 %v29509_v58  ;;  %v29545_v58 = vld [vmem:[%s30821_s9 + $0x1f30] sm:$0xff]  }
 0x414   : > { %v20222_v62 = vadd.f32 %v26660_v56, %v31944_v13  ;;  %v26684_v2 = vpop.f32.mrb[95].mxu1  ;;  %26984 = vmatprep.subr.bf16.mxu1 %v29511_v1  ;;  %v29517_v13 = vld [vmem:[%s30821_s9 + $0x1eb8] sm:$0xff]   ;;  %v29544_v56 = vld [vmem:[%s30821_s9 + $0x1ff0] sm:$0xff]  }
 0x415   : > { %v29546_v60 = vld [vmem:[%s30821_s9 + $0x1fb0] sm:$0xff]   ;;  %v29547_v61 = vld [vmem:[%s30821_s9 + $0x1f78] sm:$0xff]  }
 0x416   : > { %v31982_v4 = vadd.f32 %v26682_v63, %v20222_v62  ;;  %26963 = vmatpush3.bf16.msra.mxu0 %v29512_v3  ;;  %v29548_v62 = vld [vmem:[%s30821_s9 + $0x1ff8] sm:$0xff]  }
 0x417   : > { %26964 = vmatprep.subr.bf16.mxu0 %v29514_v6  ;;  %26985 = vmatpush3.bf16.msra.mxu1 %v29513_v5  ;;  %v29549_v63 = vld [vmem:[%s30821_s9 + $0x1f38] sm:$0xff]  }
 0x418   : > { %26986 = vmatprep.subr.bf16.mxu1 %v29515_v7  ;;  %v266_v0 = vld [vmem:[%s30831_s7 + $0xf8] sm:$0xff]  ;;  %v29553_v7 = vld [vmem:[%s30821_s9 + $0x20c0] sm:$0xff]  }
 0x419   : > { %v29550_v1 = vld [vmem:[%s30821_s9 + $0x1fb8] sm:$0xff]   ;;  %v897_v2 = vrot.slane %v266_v0, %v30869_v42  ;;  %v890_v3 = vcombine.high %v266_v0, %v266_v0  ;;  %v29587_v0 = vld [vmem:[%s30821_s9 + $0x2100] sm:$0xff]  }
 0x41a   : > { %26965 = vmatpush3.bf16.msra.mxu0 %v29516_v8 }
 0x41b   : > { %26994 = vmatprep.subr.bf16.mxu0 %v29519_v12  ;;  %26987 = vmatpush3.bf16.msra.mxu1 %v29517_v13  ;;  %v905_v5 = vcombine.high %v897_v2, %v897_v2  ;;  %v904_v6 = vrot.slane %v890_v3, %v30869_v42  ;;  %v1831_v8 = vpack.c.bf16 %v897_v2, %v897_v2  ;;  %v29555_v12 = vld [vmem:[%s30821_s9 + $0x2080] sm:$0xff]  }
 0x41c   : > { %27016 = vmatprep.subr.bf16.mxu1 %v29520_v16  ;;  %v29557_v16 = vld [vmem:[%s30821_s9 + $0x20c8] sm:$0xff]   ;;  %v29588_v3 = vld [vmem:[%s30821_s9 + $0x2180] sm:$0xff]  }
 0x41d   : > { %20780 = vmatmul.mubr.bf16.vlgmr.msra.gmra.mrb[120].mxu0 %v1827_v17  ;;  %v1832_v10 = vpack.c.bf16 %v905_v5, %v905_v5  ;;  %v906_v11 = vcombine.high %v904_v6, %v904_v6  ;;  %v1833_v13 = vpack.c.bf16 %v904_v6, %v904_v6  ;;  %v29558_v17 = vld [vmem:[%s30821_s9 + $0x2008] sm:$0xff]  }
 0x41e   : > { %26995 = vmatpush3.bf16.msra.mxu0 %v29521_v18  ;;  %20820 = vmatmul.mubr.bf16.vlgmr.msra.gmra.mrb[120].mxu1 %v1829_v22  ;;  %v29559_v18 = vld [vmem:[%s30821_s9 + $0x2088] sm:$0xff]   ;;  %v29563_v22 = vld [vmem:[%s30821_s9 + $0x2090] sm:$0xff]  }
 0x41f   : > { %26996 = vmatprep.subr.bf16.mxu0 %v29523_v23  ;;  %27017 = vmatpush3.bf16.msra.mxu1 %v29522_v21  ;;  %v1834_v15 = vpack.c.bf16 %v906_v11, %v906_v11  ;;  %v29562_v21 = vld [vmem:[%s30821_s9 + $0x2010] sm:$0xff]   ;;  %v29564_v23 = vld [vmem:[%s30821_s9 + $0x2058] sm:$0xff]   ;;  %v29589_v5 = vld [vmem:[%s30821_s9 + $0x2148] sm:$0xff]  }
 0x420   : > { %27018 = vmatprep.subr.bf16.mxu1 %v29524_v25  ;;  %20859 = vmatprep.mubr.bf16.mxu0 %v1832_v10  ;;  %v29566_v25 = vld [vmem:[%s30821_s9 + $0x2018] sm:$0xff]   ;;  %v29593_v10 = vld [vmem:[%s30821_s9 + $0x2150] sm:$0xff]  }
 0x421   : > { %20899 = vmatprep.mubr.bf16.mxu1 %v1834_v15  ;;  %v29594_v11 = vld [vmem:[%s30821_s9 + $0x21d0] sm:$0xff]   ;;  %v29598_v15 = vld [vmem:[%s30821_s9 + $0x21d8] sm:$0xff]  }
 0x422   : > { %26997 = vmatpush3.bf16.msra.mxu0 %v29525_v26  ;;  %v29567_v26 = vld [vmem:[%s30821_s9 + $0x2098] sm:$0xff]  }
 0x423   : > { %26998 = vmatprep.subr.bf16.mxu0 %v29527_v28  ;;  %27019 = vmatpush3.bf16.msra.mxu1 %v29526_v27  ;;  %v29568_v27 = vld [vmem:[%s30821_s9 + $0x2060] sm:$0xff]  }
 0x424   : > { %27020 = vmatprep.subr.bf16.mxu1 %v29528_v29  ;;  %v29569_v28 = vld [vmem:[%s30821_s9 + $0x20e0] sm:$0xff]  }
 0x425   : > { %v29570_v29 = vld [vmem:[%s30821_s9 + $0x2020] sm:$0xff]  }
 0x426   : > { %26999 = vmatpush3.bf16.msra.mxu0 %v29529_v30  ;;  %v29571_v30 = vld [vmem:[%s30821_s9 + $0x20a0] sm:$0xff]  }
 0x427   : > { %27000 = vmatprep.subr.bf16.mxu0 %v29531_v32  ;;  %27021 = vmatpush3.bf16.msra.mxu1 %v29530_v31  ;;  %v29572_v31 = vld [vmem:[%s30821_s9 + $0x2068] sm:$0xff]  }
 0x428   : > { %27022 = vmatprep.subr.bf16.mxu1 %v29532_v33  ;;  %v29573_v33 = vld [vmem:[%s30821_s9 + $0x20e8] sm:$0xff]  }
 0x42a   : > { %27001 = vmatpush3.bf16.msra.mxu0 %v29533_v34 }
 0x42b   : > { %27002 = vmatprep.subr.bf16.mxu0 %v29535_v36  ;;  %27023 = vmatpush3.bf16.msra.mxu1 %v29534_v35  ;;  %v29574_v35 = vld [vmem:[%s30821_s9 + $0x2028] sm:$0xff]  }
 0x42c   : > { %27024 = vmatprep.subr.bf16.mxu1 %v29536_v37 }
 0x42e   : > { %27003 = vmatpush3.bf16.msra.mxu0 %v29537_v38 }
 0x42f   : > { %27004 = vmatprep.subr.bf16.mxu0 %v29539_v40  ;;  %27025 = vmatpush3.bf16.msra.mxu1 %v29538_v39  ;;  %v29575_v40 = vld [vmem:[%s30821_s9 + $0x20a8] sm:$0xff]  }
 0x430   : > { %v26702_v41 = vpop.f32.mrb[96].mxu0  ;;  %27026 = vmatprep.subr.bf16.mxu1 %v29540_v43  ;;  %v29576_v43 = vld [vmem:[%s30821_s9 + $0x2070] sm:$0xff]  }
 0x431   : > { %v26703_v44 = vpop.f32.mrb[97].mxu0  ;;  %v26724_v46 = vpop.f32.mrb[96].mxu1 }
 0x432   : > { %v26704_v47 = vadd.f32 %v26703_v44, %v26702_v41  ;;  %v26705_v48 = vpop.f32.mrb[98].mxu0  ;;  %v26725_v51 = vpop.f32.mrb[97].mxu1  ;;  %27005 = vmatpush3.bf16.msra.mxu0 %v29541_v45 }
 0x433   : > { %v26706_v52 = vpop.f32.mrb[99].mxu0  ;;  %v26726_v54 = vadd.f32 %v26725_v51, %v26724_v46  ;;  %v26727_v55 = vpop.f32.mrb[98].mxu1  ;;  %27006 = vmatprep.subr.bf16.mxu0 %v29543_v50  ;;  %27027 = vmatpush3.bf16.msra.mxu1 %v29542_v49  ;;  %v29578_v49 = vld [vmem:[%s30821_s9 + $0x2030] sm:$0xff]   ;;  %v29580_v51 = vld [vmem:[%s30821_s9 + $0x2078] sm:$0xff]  }
 0x434   : > { %v20302_v53 = vadd.f32 %v26704_v47, %v31982_v4  ;;  %v26728_v57 = vpop.f32.mrb[99].mxu1  ;;  %27028 = vmatprep.subr.bf16.mxu1 %v29544_v56  ;;  %v29552_v4 = vld [vmem:[%s30821_s9 + $0x2040] sm:$0xff]   ;;  %v29577_v47 = vld [vmem:[%s30821_s9 + $0x20f0] sm:$0xff]  }
 0x435   : > { %v29579_v52 = vld [vmem:[%s30821_s9 + $0x20b0] sm:$0xff]   ;;  %v267_v55 = vld [vmem:[%s30831_s7 + $0x100] sm:$0xff] }
 0x436   : > { %v32020_v59 = vadd.f32 %v26726_v54, %v20302_v53  ;;  %27007 = vmatpush3.bf16.msra.mxu0 %v29545_v58  ;;  %v29581_v53 = vld [vmem:[%s30821_s9 + $0x20f8] sm:$0xff]   ;;  %v914_v56 = vrot.slane %v267_v55, %v30869_v42  ;;  %v907_v57 = vcombine.high %v267_v55, %v267_v55  ;;  %v29585_v58 = vld [vmem:[%s30821_s9 + $0x2140] sm:$0xff]  }
 0x437   : > { %27008 = vmatprep.subr.bf16.mxu0 %v29547_v61  ;;  %27029 = vmatpush3.bf16.msra.mxu1 %v29546_v60  ;;  %v29582_v54 = vld [vmem:[%s30821_s9 + $0x2038] sm:$0xff]   ;;  %v29620_v55 = vld [vmem:[%s30821_s9 + $0x2200] sm:$0xff]  }
 0x438   : > { %27030 = vmatprep.subr.bf16.mxu1 %v29548_v62  ;;  %v922_v60 = vcombine.high %v914_v56, %v914_v56  ;;  %v921_v61 = vrot.slane %v907_v57, %v30869_v42  ;;  %v29586_v62 = vld [vmem:[%s30821_s9 + $0x21c0] sm:$0xff]  }
 0x43a   : > { %27009 = vmatpush3.bf16.msra.mxu0 %v29549_v63  ;;  %v1835_v63 = vpack.c.bf16 %v914_v56, %v914_v56  ;;  %v923_v2 = vcombine.high %v921_v61, %v921_v61 }
 0x43b   : > { %27038 = vmatprep.subr.bf16.mxu0 %v29552_v4  ;;  %27031 = vmatpush3.bf16.msra.mxu1 %v29550_v1  ;;  %v1836_v1 = vpack.c.bf16 %v922_v60, %v922_v60  ;;  %v1837_v4 = vpack.c.bf16 %v921_v61, %v921_v61  ;;  %v29622_v60 = vld [vmem:[%s30821_s9 + $0x2248] sm:$0xff]  }
 0x43c   : > { %27060 = vmatprep.subr.bf16.mxu1 %v29553_v7  ;;  %v1838_v6 = vpack.c.bf16 %v923_v2, %v923_v2  ;;  %v29590_v7 = vld [vmem:[%s30821_s9 + $0x21c8] sm:$0xff]   ;;  %v29627_v2 = vld [vmem:[%s30821_s9 + $0x22d0] sm:$0xff]  }
 0x43d   : > { %20860 = vmatmul.mubr.bf16.vlgmr.msra.gmra.mrb[124].mxu0 %v1831_v8  ;;  %v29591_v8 = vld [vmem:[%s30821_s9 + $0x2108] sm:$0xff]  }
 0x43e   : > { %27039 = vmatpush3.bf16.msra.mxu0 %v29554_v9  ;;  %20900 = vmatmul.mubr.bf16.vlgmr.msra.gmra.mrb[124].mxu1 %v1833_v13  ;;  %v29592_v9 = vld [vmem:[%s30821_s9 + $0x2188] sm:$0xff]   ;;  %v29596_v13 = vld [vmem:[%s30821_s9 + $0x2190] sm:$0xff]  }
 0x43f   : > { %27040 = vmatprep.subr.bf16.mxu0 %v29556_v14  ;;  %27061 = vmatpush3.bf16.msra.mxu1 %v29555_v12  ;;  %v29595_v12 = vld [vmem:[%s30821_s9 + $0x2110] sm:$0xff]   ;;  %v29597_v14 = vld [vmem:[%s30821_s9 + $0x2158] sm:$0xff]  }
 0x440   : > { %27062 = vmatprep.subr.bf16.mxu1 %v29557_v16  ;;  %20939 = vmatprep.mubr.bf16.mxu0 %v1836_v1  ;;  %v29599_v16 = vld [vmem:[%s30821_s9 + $0x2118] sm:$0xff]   ;;  %v29626_v1 = vld [vmem:[%s30821_s9 + $0x2250] sm:$0xff]  }
 0x441   : > { %20979 = vmatprep.mubr.bf16.mxu1 %v1838_v6  ;;  %v29631_v6 = vld [vmem:[%s30821_s9 + $0x22d8] sm:$0xff]  }
 0x442   : > { %27041 = vmatpush3.bf16.msra.mxu0 %v29558_v17  ;;  %v29600_v17 = vld [vmem:[%s30821_s9 + $0x2198] sm:$0xff]  }
 0x443   : > { %27042 = vmatprep.subr.bf16.mxu0 %v29560_v19  ;;  %27063 = vmatpush3.bf16.msra.mxu1 %v29559_v18  ;;  %v29601_v18 = vld [vmem:[%s30821_s9 + $0x2160] sm:$0xff]  }
 0x444   : > { %27064 = vmatprep.subr.bf16.mxu1 %v29561_v20  ;;  %v29602_v19 = vld [vmem:[%s30821_s9 + $0x21e0] sm:$0xff]  }
 0x445   : > { %v29603_v20 = vld [vmem:[%s30821_s9 + $0x2120] sm:$0xff]  }
 0x446   : > { %27043 = vmatpush3.bf16.msra.mxu0 %v29562_v21  ;;  %v29604_v21 = vld [vmem:[%s30821_s9 + $0x21a0] sm:$0xff]  }
 0x447   : > { %27044 = vmatprep.subr.bf16.mxu0 %v29564_v23  ;;  %27065 = vmatpush3.bf16.msra.mxu1 %v29563_v22  ;;  %v29605_v22 = vld [vmem:[%s30821_s9 + $0x2168] sm:$0xff]  }
 0x448   : > { %27066 = vmatprep.subr.bf16.mxu1 %v29565_v24  ;;  %v29606_v24 = vld [vmem:[%s30821_s9 + $0x21e8] sm:$0xff]  }
 0x44a   : > { %27045 = vmatpush3.bf16.msra.mxu0 %v29566_v25 }
 0x44b   : > { %27046 = vmatprep.subr.bf16.mxu0 %v29568_v27  ;;  %27067 = vmatpush3.bf16.msra.mxu1 %v29567_v26  ;;  %v29607_v26 = vld [vmem:[%s30821_s9 + $0x2128] sm:$0xff]  }
 0x44c   : > { %27068 = vmatprep.subr.bf16.mxu1 %v29569_v28 }
 0x44e   : > { %27047 = vmatpush3.bf16.msra.mxu0 %v29570_v29 }
 0x44f   : > { %27048 = vmatprep.subr.bf16.mxu0 %v29572_v31  ;;  %27069 = vmatpush3.bf16.msra.mxu1 %v29571_v30  ;;  %v29608_v30 = vld [vmem:[%s30821_s9 + $0x21a8] sm:$0xff]   ;;  %v29609_v31 = vld [vmem:[%s30821_s9 + $0x2170] sm:$0xff]  }
 0x450   : > { %v26746_v32 = vpop.f32.mrb[100].mxu0  ;;  %27070 = vmatprep.subr.bf16.mxu1 %v29573_v33 }
 0x451   : > { %v26747_v34 = vpop.f32.mrb[101].mxu0  ;;  %v26768_v36 = vpop.f32.mrb[100].mxu1 }
 0x452   : > { %v26748_v37 = vadd.f32 %v26747_v34, %v26746_v32  ;;  %v26749_v38 = vpop.f32.mrb[102].mxu0  ;;  %v26769_v39 = vpop.f32.mrb[101].mxu1  ;;  %27049 = vmatpush3.bf16.msra.mxu0 %v29574_v35 }
 0x453   : > { %v26750_v41 = vpop.f32.mrb[103].mxu0  ;;  %v26770_v45 = vadd.f32 %v26769_v39, %v26768_v36  ;;  %v26771_v46 = vpop.f32.mrb[102].mxu1  ;;  %27050 = vmatprep.subr.bf16.mxu0 %v29576_v43  ;;  %27071 = vmatpush3.bf16.msra.mxu1 %v29575_v40  ;;  %v29611_v39 = vld [vmem:[%s30821_s9 + $0x2130] sm:$0xff]   ;;  %v29613_v43 = vld [vmem:[%s30821_s9 + $0x2178] sm:$0xff]  }
 0x454   : > { %v20382_v44 = vadd.f32 %v26748_v37, %v32020_v59  ;;  %v26772_v48 = vpop.f32.mrb[103].mxu1  ;;  %27072 = vmatprep.subr.bf16.mxu1 %v29577_v47  ;;  %v29583_v59 = vld [vmem:[%s30821_s9 + $0x20b8] sm:$0xff]   ;;  %v29610_v37 = vld [vmem:[%s30821_s9 + $0x21f0] sm:$0xff]   ;;  %v268_v46 = vld [vmem:[%s30831_s7 + $0x108] sm:$0xff] }
 0x455   : > { %v29612_v41 = vld [vmem:[%s30821_s9 + $0x21b0] sm:$0xff]   ;;  %v931_v47 = vrot.slane %v268_v46, %v30869_v42  ;;  %v924_v48 = vcombine.high %v268_v46, %v268_v46  ;;  %v29653_v46 = vld [vmem:[%s30821_s9 + $0x2300] sm:$0xff]  }
 0x456   : > { %v32058_v50 = vadd.f32 %v26770_v45, %v20382_v44  ;;  %27051 = vmatpush3.bf16.msra.mxu0 %v29578_v49  ;;  %v29614_v44 = vld [vmem:[%s30821_s9 + $0x21f8] sm:$0xff]   ;;  %v29618_v49 = vld [vmem:[%s30821_s9 + $0x2240] sm:$0xff]  }
 0x457   : > { %27052 = vmatprep.subr.bf16.mxu0 %v29580_v51  ;;  %27073 = vmatpush3.bf16.msra.mxu1 %v29579_v52  ;;  %v29615_v45 = vld [vmem:[%s30821_s9 + $0x2138] sm:$0xff]   ;;  %v939_v51 = vcombine.high %v931_v47, %v931_v47  ;;  %v938_v52 = vrot.slane %v924_v48, %v30869_v42 }
 0x458   : > { %27074 = vmatprep.subr.bf16.mxu1 %v29581_v53  ;;  %v29619_v53 = vld [vmem:[%s30821_s9 + $0x22c0] sm:$0xff]  }
 0x459   : > { %v1840_v56 = vpack.c.bf16 %v939_v51, %v939_v51  ;;  %v940_v57 = vcombine.high %v938_v52, %v938_v52  ;;  %v29655_v51 = vld [vmem:[%s30821_s9 + $0x2348] sm:$0xff]  }
 0x45a   : > { %27053 = vmatpush3.bf16.msra.mxu0 %v29582_v54  ;;  %v1839_v54 = vpack.c.bf16 %v931_v47, %v931_v47 }
 0x45b   : > { %27082 = vmatprep.subr.bf16.mxu0 %v29585_v58  ;;  %27075 = vmatpush3.bf16.msra.mxu1 %v29583_v59  ;;  %v29621_v58 = vld [vmem:[%s30821_s9 + $0x2280] sm:$0xff]   ;;  %v1841_v59 = vpack.c.bf16 %v938_v52, %v938_v52  ;;  %v1842_v61 = vpack.c.bf16 %v940_v57, %v940_v57  ;;  %v29660_v57 = vld [vmem:[%s30821_s9 + $0x23d0] sm:$0xff]  }
 0x45c   : > { %27104 = vmatprep.subr.bf16.mxu1 %v29586_v62  ;;  %v29623_v62 = vld [vmem:[%s30821_s9 + $0x22c8] sm:$0xff]  }
 0x45d   : > { %20940 = vmatmul.mubr.bf16.vlgmr.msra.gmra.mrb[128].mxu0 %v1835_v63  ;;  %v29624_v63 = vld [vmem:[%s30821_s9 + $0x2208] sm:$0xff]  }
 0x45e   : > { %27083 = vmatpush3.bf16.msra.mxu0 %v29587_v0  ;;  %20980 = vmatmul.mubr.bf16.vlgmr.msra.gmra.mrb[128].mxu1 %v1837_v4  ;;  %v29625_v0 = vld [vmem:[%s30821_s9 + $0x2288] sm:$0xff]   ;;  %v29629_v4 = vld [vmem:[%s30821_s9 + $0x2290] sm:$0xff]  }
 0x45f   : > { %27084 = vmatprep.subr.bf16.mxu0 %v29589_v5  ;;  %27105 = vmatpush3.bf16.msra.mxu1 %v29588_v3  ;;  %v29628_v3 = vld [vmem:[%s30821_s9 + $0x2210] sm:$0xff]   ;;  %v29630_v5 = vld [vmem:[%s30821_s9 + $0x2258] sm:$0xff]  }
 0x460   : > { %27106 = vmatprep.subr.bf16.mxu1 %v29590_v7  ;;  %21019 = vmatprep.mubr.bf16.mxu0 %v1840_v56  ;;  %v29632_v7 = vld [vmem:[%s30821_s9 + $0x2218] sm:$0xff]   ;;  %v29659_v56 = vld [vmem:[%s30821_s9 + $0x2350] sm:$0xff]  }
 0x461   : > { %21059 = vmatprep.mubr.bf16.mxu1 %v1842_v61  ;;  %v29664_v61 = vld [vmem:[%s30821_s9 + $0x23d8] sm:$0xff]  }
 0x462   : > { %27085 = vmatpush3.bf16.msra.mxu0 %v29591_v8  ;;  %v29633_v8 = vld [vmem:[%s30821_s9 + $0x2298] sm:$0xff]  }
 0x463   : > { %27086 = vmatprep.subr.bf16.mxu0 %v29593_v10  ;;  %27107 = vmatpush3.bf16.msra.mxu1 %v29592_v9  ;;  %v29634_v9 = vld [vmem:[%s30821_s9 + $0x2260] sm:$0xff]  }
 0x464   : > { %27108 = vmatprep.subr.bf16.mxu1 %v29594_v11  ;;  %v29635_v10 = vld [vmem:[%s30821_s9 + $0x22e0] sm:$0xff]  }
 0x465   : > { %v29636_v11 = vld [vmem:[%s30821_s9 + $0x2220] sm:$0xff]  }
 0x466   : > { %27087 = vmatpush3.bf16.msra.mxu0 %v29595_v12  ;;  %v29637_v12 = vld [vmem:[%s30821_s9 + $0x22a0] sm:$0xff]  }
 0x467   : > { %27088 = vmatprep.subr.bf16.mxu0 %v29597_v14  ;;  %27109 = vmatpush3.bf16.msra.mxu1 %v29596_v13  ;;  %v29638_v13 = vld [vmem:[%s30821_s9 + $0x2268] sm:$0xff]  }
 0x468   : > { %27110 = vmatprep.subr.bf16.mxu1 %v29598_v15  ;;  %v29639_v15 = vld [vmem:[%s30821_s9 + $0x22e8] sm:$0xff]  }
 0x46a   : > { %27089 = vmatpush3.bf16.msra.mxu0 %v29599_v16 }
 0x46b   : > { %27090 = vmatprep.subr.bf16.mxu0 %v29601_v18  ;;  %27111 = vmatpush3.bf16.msra.mxu1 %v29600_v17  ;;  %v29640_v17 = vld [vmem:[%s30821_s9 + $0x2228] sm:$0xff]  }
 0x46c   : > { %27112 = vmatprep.subr.bf16.mxu1 %v29602_v19 }
 0x46e   : > { %27091 = vmatpush3.bf16.msra.mxu0 %v29603_v20 }
 0x46f   : > { %27092 = vmatprep.subr.bf16.mxu0 %v29605_v22  ;;  %27113 = vmatpush3.bf16.msra.mxu1 %v29604_v21  ;;  %v29641_v21 = vld [vmem:[%s30821_s9 + $0x22a8] sm:$0xff]   ;;  %v29642_v22 = vld [vmem:[%s30821_s9 + $0x2270] sm:$0xff]  }
 0x470   : > { %v26790_v23 = vpop.f32.mrb[104].mxu0  ;;  %27114 = vmatprep.subr.bf16.mxu1 %v29606_v24 }
 0x471   : > { %v26791_v25 = vpop.f32.mrb[105].mxu0  ;;  %v26812_v27 = vpop.f32.mrb[104].mxu1 }
 0x472   : > { %v26792_v28 = vadd.f32 %v26791_v25, %v26790_v23  ;;  %v26793_v29 = vpop.f32.mrb[106].mxu0  ;;  %v26813_v32 = vpop.f32.mrb[105].mxu1  ;;  %27093 = vmatpush3.bf16.msra.mxu0 %v29607_v26 }
 0x473   : > { %v26794_v33 = vpop.f32.mrb[107].mxu0  ;;  %v26814_v35 = vadd.f32 %v26813_v32, %v26812_v27  ;;  %v26815_v36 = vpop.f32.mrb[106].mxu1  ;;  %27094 = vmatprep.subr.bf16.mxu0 %v29609_v31  ;;  %27115 = vmatpush3.bf16.msra.mxu1 %v29608_v30  ;;  %v29644_v30 = vld [vmem:[%s30821_s9 + $0x2230] sm:$0xff]  }
 0x474   : > { %v20462_v34 = vadd.f32 %v26792_v28, %v32058_v50  ;;  %v26816_v38 = vpop.f32.mrb[107].mxu1  ;;  %27116 = vmatprep.subr.bf16.mxu1 %v29610_v37  ;;  %v29616_v50 = vld [vmem:[%s30821_s9 + $0x21b8] sm:$0xff]   ;;  %v29643_v28 = vld [vmem:[%s30821_s9 + $0x22f0] sm:$0xff]  }
 0x475   : > { %v29645_v32 = vld [vmem:[%s30821_s9 + $0x22b0] sm:$0xff]   ;;  %v29646_v33 = vld [vmem:[%s30821_s9 + $0x2278] sm:$0xff]  }
 0x476   : > { %v32096_v40 = vadd.f32 %v26814_v35, %v20462_v34  ;;  %27095 = vmatpush3.bf16.msra.mxu0 %v29611_v39  ;;  %v29647_v34 = vld [vmem:[%s30821_s9 + $0x22f8] sm:$0xff]   ;;  %v269_v36 = vld [vmem:[%s30831_s7 + $0x110] sm:$0xff] }
 0x477   : > { %27096 = vmatprep.subr.bf16.mxu0 %v29613_v43  ;;  %27117 = vmatpush3.bf16.msra.mxu1 %v29612_v41  ;;  %v29648_v35 = vld [vmem:[%s30821_s9 + $0x2238] sm:$0xff]   ;;  %v948_v38 = vrot.slane %v269_v36, %v30869_v42  ;;  %v941_v39 = vcombine.high %v269_v36, %v269_v36  ;;  %v29686_v36 = vld [vmem:[%s30821_s9 + $0x2400] sm:$0xff]  }
 0x478   : > { %27118 = vmatprep.subr.bf16.mxu1 %v29614_v44  ;;  %v29649_v37 = vld [vmem:[%s30821_s9 + $0x22b8] sm:$0xff]   ;;  %v29652_v44 = vld [vmem:[%s30821_s9 + $0x23c0] sm:$0xff]  }
 0x479   : > { %v956_v41 = vcombine.high %v948_v38, %v948_v38  ;;  %v955_v43 = vrot.slane %v941_v39, %v30869_v42  ;;  %v29687_v39 = vld [vmem:[%s30821_s9 + $0x2480] sm:$0xff]  }
 0x47a   : > { %27097 = vmatpush3.bf16.msra.mxu0 %v29615_v45  ;;  %v1843_v45 = vpack.c.bf16 %v948_v38, %v948_v38 }
 0x47b   : > { %27126 = vmatprep.subr.bf16.mxu0 %v29618_v49  ;;  %27119 = vmatpush3.bf16.msra.mxu1 %v29616_v50  ;;  %v1844_v47 = vpack.c.bf16 %v956_v41, %v956_v41  ;;  %v957_v48 = vcombine.high %v955_v43, %v955_v43  ;;  %v29654_v49 = vld [vmem:[%s30821_s9 + $0x2380] sm:$0xff]   ;;  %v1845_v50 = vpack.c.bf16 %v955_v43, %v955_v43  ;;  %v29688_v41 = vld [vmem:[%s30821_s9 + $0x2448] sm:$0xff]  }
 0x47c   : > { %27148 = vmatprep.subr.bf16.mxu1 %v29619_v53  ;;  %v29656_v53 = vld [vmem:[%s30821_s9 + $0x23c8] sm:$0xff]  }
 0x47d   : > { %21020 = vmatmul.mubr.bf16.vlgmr.msra.gmra.mrb[132].mxu0 %v1839_v54  ;;  %v1846_v52 = vpack.c.bf16 %v957_v48, %v957_v48  ;;  %v29657_v54 = vld [vmem:[%s30821_s9 + $0x2308] sm:$0xff]   ;;  %v29693_v48 = vld [vmem:[%s30821_s9 + $0x24d0] sm:$0xff]  }
 0x47e   : > { %27127 = vmatpush3.bf16.msra.mxu0 %v29620_v55  ;;  %21060 = vmatmul.mubr.bf16.vlgmr.msra.gmra.mrb[132].mxu1 %v1841_v59  ;;  %v29658_v55 = vld [vmem:[%s30821_s9 + $0x2388] sm:$0xff]   ;;  %v29662_v59 = vld [vmem:[%s30821_s9 + $0x2390] sm:$0xff]  }
 0x47f   : > { %27128 = vmatprep.subr.bf16.mxu0 %v29622_v60  ;;  %27149 = vmatpush3.bf16.msra.mxu1 %v29621_v58  ;;  %v29661_v58 = vld [vmem:[%s30821_s9 + $0x2310] sm:$0xff]   ;;  %v29663_v60 = vld [vmem:[%s30821_s9 + $0x2358] sm:$0xff]  }
 0x480   : > { %27150 = vmatprep.subr.bf16.mxu1 %v29623_v62  ;;  %21099 = vmatprep.mubr.bf16.mxu0 %v1844_v47  ;;  %v29665_v62 = vld [vmem:[%s30821_s9 + $0x2318] sm:$0xff]   ;;  %v29692_v47 = vld [vmem:[%s30821_s9 + $0x2450] sm:$0xff]  }
 0x481   : > { %21139 = vmatprep.mubr.bf16.mxu1 %v1846_v52  ;;  %v29697_v52 = vld [vmem:[%s30821_s9 + $0x24d8] sm:$0xff]  }
 0x482   : > { %27129 = vmatpush3.bf16.msra.mxu0 %v29624_v63  ;;  %v29666_v63 = vld [vmem:[%s30821_s9 + $0x2398] sm:$0xff]  }
 0x483   : > { %27130 = vmatprep.subr.bf16.mxu0 %v29626_v1  ;;  %27151 = vmatpush3.bf16.msra.mxu1 %v29625_v0  ;;  %v29667_v0 = vld [vmem:[%s30821_s9 + $0x2360] sm:$0xff]  }
 0x484   : > { %27152 = vmatprep.subr.bf16.mxu1 %v29627_v2  ;;  %v29668_v1 = vld [vmem:[%s30821_s9 + $0x23e0] sm:$0xff]  }
 0x485   : > { %v29669_v2 = vld [vmem:[%s30821_s9 + $0x2320] sm:$0xff]  }
 0x486   : > { %27131 = vmatpush3.bf16.msra.mxu0 %v29628_v3  ;;  %v29670_v3 = vld [vmem:[%s30821_s9 + $0x23a0] sm:$0xff]  }
 0x487   : > { %27132 = vmatprep.subr.bf16.mxu0 %v29630_v5  ;;  %27153 = vmatpush3.bf16.msra.mxu1 %v29629_v4  ;;  %v29671_v4 = vld [vmem:[%s30821_s9 + $0x2368] sm:$0xff]  }
 0x488   : > { %27154 = vmatprep.subr.bf16.mxu1 %v29631_v6  ;;  %v29672_v6 = vld [vmem:[%s30821_s9 + $0x23e8] sm:$0xff]  }
 0x48a   : > { %27133 = vmatpush3.bf16.msra.mxu0 %v29632_v7 }
 0x48b   : > { %27134 = vmatprep.subr.bf16.mxu0 %v29634_v9  ;;  %27155 = vmatpush3.bf16.msra.mxu1 %v29633_v8  ;;  %v29673_v8 = vld [vmem:[%s30821_s9 + $0x2328] sm:$0xff]  }
 0x48c   : > { %27156 = vmatprep.subr.bf16.mxu1 %v29635_v10 }
 0x48e   : > { %27135 = vmatpush3.bf16.msra.mxu0 %v29636_v11 }
 0x48f   : > { %27136 = vmatprep.subr.bf16.mxu0 %v29638_v13  ;;  %27157 = vmatpush3.bf16.msra.mxu1 %v29637_v12  ;;  %v29674_v13 = vld [vmem:[%s30821_s9 + $0x23a8] sm:$0xff]  }
 0x490   : > { %v26834_v14 = vpop.f32.mrb[108].mxu0  ;;  %27158 = vmatprep.subr.bf16.mxu1 %v29639_v15  ;;  %v29675_v15 = vld [vmem:[%s30821_s9 + $0x2370] sm:$0xff]  }
 0x491   : > { %v26835_v16 = vpop.f32.mrb[109].mxu0  ;;  %v26856_v18 = vpop.f32.mrb[108].mxu1 }
 0x492   : > { %v26836_v19 = vadd.f32 %v26835_v16, %v26834_v14  ;;  %v26837_v20 = vpop.f32.mrb[110].mxu0  ;;  %v26857_v23 = vpop.f32.mrb[109].mxu1  ;;  %27137 = vmatpush3.bf16.msra.mxu0 %v29640_v17 }
 0x493   : > { %v26838_v24 = vpop.f32.mrb[111].mxu0  ;;  %v26858_v26 = vadd.f32 %v26857_v23, %v26856_v18  ;;  %v26859_v27 = vpop.f32.mrb[110].mxu1  ;;  %27138 = vmatprep.subr.bf16.mxu0 %v29642_v22  ;;  %27159 = vmatpush3.bf16.msra.mxu1 %v29641_v21  ;;  %v29677_v21 = vld [vmem:[%s30821_s9 + $0x2330] sm:$0xff]   ;;  %v29679_v23 = vld [vmem:[%s30821_s9 + $0x2378] sm:$0xff]  }
 0x494   : > { %v20542_v25 = vadd.f32 %v26836_v19, %v32096_v40  ;;  %v26860_v29 = vpop.f32.mrb[111].mxu1  ;;  %27160 = vmatprep.subr.bf16.mxu1 %v29643_v28  ;;  %v29651_v40 = vld [vmem:[%s30821_s9 + $0x2340] sm:$0xff]   ;;  %v29676_v19 = vld [vmem:[%s30821_s9 + $0x23f0] sm:$0xff]  }
 0x495   : > { %v29678_v24 = vld [vmem:[%s30821_s9 + $0x23b0] sm:$0xff]  }
 0x496   : > { %v32134_v31 = vadd.f32 %v26858_v26, %v20542_v25  ;;  %27139 = vmatpush3.bf16.msra.mxu0 %v29644_v30  ;;  %v29680_v25 = vld [vmem:[%s30821_s9 + $0x23f8] sm:$0xff]   ;;  %v29684_v30 = vld [vmem:[%s30821_s9 + $0x2440] sm:$0xff]  }
 0x497   : > { %27140 = vmatprep.subr.bf16.mxu0 %v29646_v33  ;;  %27161 = vmatpush3.bf16.msra.mxu1 %v29645_v32  ;;  %v29681_v26 = vld [vmem:[%s30821_s9 + $0x2338] sm:$0xff]  }
 0x498   : > { %27162 = vmatprep.subr.bf16.mxu1 %v29647_v34  ;;  %v270_v27 = vld [vmem:[%s30831_s7 + $0x118] sm:$0xff]  ;;  %v29685_v34 = vld [vmem:[%s30821_s9 + $0x24c0] sm:$0xff]  }
 0x499   : > { %v965_v28 = vrot.slane %v270_v27, %v30869_v42  ;;  %v958_v29 = vcombine.high %v270_v27, %v270_v27  ;;  %v29719_v27 = vld [vmem:[%s30821_s9 + $0x2500] sm:$0xff]  }
 0x49a   : > { %27141 = vmatpush3.bf16.msra.mxu0 %v29648_v35 }
 0x49b   : > { %27170 = vmatprep.subr.bf16.mxu0 %v29651_v40  ;;  %27163 = vmatpush3.bf16.msra.mxu1 %v29649_v37  ;;  %v973_v32 = vcombine.high %v965_v28, %v965_v28  ;;  %v972_v33 = vrot.slane %v958_v29, %v30869_v42  ;;  %v1847_v35 = vpack.c.bf16 %v965_v28, %v965_v28 }
 0x49c   : > { %27192 = vmatprep.subr.bf16.mxu1 %v29652_v44  ;;  %v29689_v44 = vld [vmem:[%s30821_s9 + $0x24c8] sm:$0xff]  }
 0x49d   : > { %21100 = vmatmul.mubr.bf16.vlgmr.msra.gmra.mrb[136].mxu0 %v1843_v45  ;;  %v1848_v37 = vpack.c.bf16 %v973_v32, %v973_v32  ;;  %v974_v38 = vcombine.high %v972_v33, %v972_v33  ;;  %v1849_v40 = vpack.c.bf16 %v972_v33, %v972_v33  ;;  %v29690_v45 = vld [vmem:[%s30821_s9 + $0x2408] sm:$0xff]  }
 0x49e   : > { %27171 = vmatpush3.bf16.msra.mxu0 %v29653_v46  ;;  %21140 = vmatmul.mubr.bf16.vlgmr.msra.gmra.mrb[136].mxu1 %v1845_v50  ;;  %v29691_v46 = vld [vmem:[%s30821_s9 + $0x2488] sm:$0xff]   ;;  %v29695_v50 = vld [vmem:[%s30821_s9 + $0x2490] sm:$0xff]  }
 0x49f   : > { %27172 = vmatprep.subr.bf16.mxu0 %v29655_v51  ;;  %27193 = vmatpush3.bf16.msra.mxu1 %v29654_v49  ;;  %v1850_v43 = vpack.c.bf16 %v974_v38, %v974_v38  ;;  %v29694_v49 = vld [vmem:[%s30821_s9 + $0x2410] sm:$0xff]   ;;  %v29696_v51 = vld [vmem:[%s30821_s9 + $0x2458] sm:$0xff]   ;;  %v29721_v32 = vld [vmem:[%s30821_s9 + $0x2548] sm:$0xff]  }
 0x4a0   : > { %27194 = vmatprep.subr.bf16.mxu1 %v29656_v53  ;;  %21179 = vmatprep.mubr.bf16.mxu0 %v1848_v37  ;;  %v29698_v53 = vld [vmem:[%s30821_s9 + $0x2418] sm:$0xff]   ;;  %v29725_v37 = vld [vmem:[%s30821_s9 + $0x2550] sm:$0xff]  }
 0x4a1   : > { %21219 = vmatprep.mubr.bf16.mxu1 %v1850_v43  ;;  %v29726_v38 = vld [vmem:[%s30821_s9 + $0x25d0] sm:$0xff]   ;;  %v29730_v43 = vld [vmem:[%s30821_s9 + $0x25d8] sm:$0xff]  }
 0x4a2   : > { %27173 = vmatpush3.bf16.msra.mxu0 %v29657_v54  ;;  %v29699_v54 = vld [vmem:[%s30821_s9 + $0x2498] sm:$0xff]  }
 0x4a3   : > { %27174 = vmatprep.subr.bf16.mxu0 %v29659_v56  ;;  %27195 = vmatpush3.bf16.msra.mxu1 %v29658_v55  ;;  %v29700_v55 = vld [vmem:[%s30821_s9 + $0x2460] sm:$0xff]  }
 0x4a4   : > { %27196 = vmatprep.subr.bf16.mxu1 %v29660_v57  ;;  %v29701_v56 = vld [vmem:[%s30821_s9 + $0x24e0] sm:$0xff]  }
 0x4a5   : > { %v29702_v57 = vld [vmem:[%s30821_s9 + $0x2420] sm:$0xff]  }
 0x4a6   : > { %27175 = vmatpush3.bf16.msra.mxu0 %v29661_v58  ;;  %v29703_v58 = vld [vmem:[%s30821_s9 + $0x24a0] sm:$0xff]  }
 0x4a7   : > { %27176 = vmatprep.subr.bf16.mxu0 %v29663_v60  ;;  %27197 = vmatpush3.bf16.msra.mxu1 %v29662_v59  ;;  %v29704_v59 = vld [vmem:[%s30821_s9 + $0x2468] sm:$0xff]  }
 0x4a8   : > { %27198 = vmatprep.subr.bf16.mxu1 %v29664_v61  ;;  %v29705_v61 = vld [vmem:[%s30821_s9 + $0x24e8] sm:$0xff]  }
 0x4aa   : > { %27177 = vmatpush3.bf16.msra.mxu0 %v29665_v62 }
 0x4ab   : > { %27178 = vmatprep.subr.bf16.mxu0 %v29667_v0  ;;  %27199 = vmatpush3.bf16.msra.mxu1 %v29666_v63  ;;  %v29706_v63 = vld [vmem:[%s30821_s9 + $0x2428] sm:$0xff]  }
 0x4ac   : > { %27200 = vmatprep.subr.bf16.mxu1 %v29668_v1 }
 0x4ae   : > { %27179 = vmatpush3.bf16.msra.mxu0 %v29669_v2 }
 0x4af   : > { %27180 = vmatprep.subr.bf16.mxu0 %v29671_v4  ;;  %27201 = vmatpush3.bf16.msra.mxu1 %v29670_v3  ;;  %v29707_v3 = vld [vmem:[%s30821_s9 + $0x24a8] sm:$0xff]   ;;  %v29708_v4 = vld [vmem:[%s30821_s9 + $0x2470] sm:$0xff]  }
 0x4b0   : > { %v26878_v5 = vpop.f32.mrb[112].mxu0  ;;  %27202 = vmatprep.subr.bf16.mxu1 %v29672_v6 }
 0x4b1   : > { %v26879_v7 = vpop.f32.mrb[113].mxu0  ;;  %v26900_v9 = vpop.f32.mrb[112].mxu1 }
 0x4b2   : > { %v26880_v10 = vadd.f32 %v26879_v7, %v26878_v5  ;;  %v26881_v11 = vpop.f32.mrb[114].mxu0  ;;  %v26901_v12 = vpop.f32.mrb[113].mxu1  ;;  %27181 = vmatpush3.bf16.msra.mxu0 %v29673_v8 }
 0x4b3   : > { %v26882_v14 = vpop.f32.mrb[115].mxu0  ;;  %v26902_v17 = vadd.f32 %v26901_v12, %v26900_v9  ;;  %v26903_v18 = vpop.f32.mrb[114].mxu1  ;;  %27182 = vmatprep.subr.bf16.mxu0 %v29675_v15  ;;  %27203 = vmatpush3.bf16.msra.mxu1 %v29674_v13  ;;  %v29710_v12 = vld [vmem:[%s30821_s9 + $0x2430] sm:$0xff]   ;;  %v29712_v15 = vld [vmem:[%s30821_s9 + $0x2478] sm:$0xff]  }
 0x4b4   : > { %v20622_v16 = vadd.f32 %v26880_v10, %v32134_v31  ;;  %v26904_v20 = vpop.f32.mrb[115].mxu1  ;;  %27204 = vmatprep.subr.bf16.mxu1 %v29676_v19  ;;  %v29682_v31 = vld [vmem:[%s30821_s9 + $0x23b8] sm:$0xff]   ;;  %v29709_v10 = vld [vmem:[%s30821_s9 + $0x24f0] sm:$0xff]  }
 0x4b5   : > { %v29711_v14 = vld [vmem:[%s30821_s9 + $0x24b0] sm:$0xff]   ;;  %v271_v18 = vld [vmem:[%s30831_s7 + $0x120] sm:$0xff] }
 0x4b6   : > { %v32172_v22 = vadd.f32 %v26902_v17, %v20622_v16  ;;  %27183 = vmatpush3.bf16.msra.mxu0 %v29677_v21  ;;  %v29713_v16 = vld [vmem:[%s30821_s9 + $0x24f8] sm:$0xff]   ;;  %v982_v19 = vrot.slane %v271_v18, %v30869_v42  ;;  %v975_v20 = vcombine.high %v271_v18, %v271_v18  ;;  %v29717_v21 = vld [vmem:[%s30821_s9 + $0x2540] sm:$0xff]  }
 0x4b7   : > { %27184 = vmatprep.subr.bf16.mxu0 %v29679_v23  ;;  %27205 = vmatpush3.bf16.msra.mxu1 %v29678_v24  ;;  %v29714_v17 = vld [vmem:[%s30821_s9 + $0x2438] sm:$0xff]   ;;  %v29752_v18 = vld [vmem:[%s30821_s9 + $0x2600] sm:$0xff]  }
 0x4b8   : > { %27206 = vmatprep.subr.bf16.mxu1 %v29680_v25  ;;  %v990_v23 = vcombine.high %v982_v19, %v982_v19  ;;  %v989_v24 = vrot.slane %v975_v20, %v30869_v42  ;;  %v29718_v25 = vld [vmem:[%s30821_s9 + $0x25c0] sm:$0xff]  }
 0x4ba   : > { %27185 = vmatpush3.bf16.msra.mxu0 %v29681_v26  ;;  %v1851_v26 = vpack.c.bf16 %v982_v19, %v982_v19  ;;  %v1852_v28 = vpack.c.bf16 %v990_v23, %v990_v23  ;;  %v991_v29 = vcombine.high %v989_v24, %v989_v24  ;;  %v29754_v23 = vld [vmem:[%s30821_s9 + $0x2648] sm:$0xff]  }
 0x4bb   : > { %27214 = vmatprep.subr.bf16.mxu0 %v29684_v30  ;;  %27207 = vmatpush3.bf16.msra.mxu1 %v29682_v31  ;;  %v29720_v30 = vld [vmem:[%s30821_s9 + $0x2580] sm:$0xff]   ;;  %v1853_v31 = vpack.c.bf16 %v989_v24, %v989_v24 }
 0x4bc   : > { %27236 = vmatprep.subr.bf16.mxu1 %v29685_v34  ;;  %v1854_v33 = vpack.c.bf16 %v991_v29, %v991_v29  ;;  %v29722_v34 = vld [vmem:[%s30821_s9 + $0x25c8] sm:$0xff]   ;;  %v29759_v29 = vld [vmem:[%s30821_s9 + $0x26d0] sm:$0xff]  }
 0x4bd   : > { %21180 = vmatmul.mubr.bf16.vlgmr.msra.gmra.mrb[140].mxu0 %v1847_v35  ;;  %v29723_v35 = vld [vmem:[%s30821_s9 + $0x2508] sm:$0xff]  }
 0x4be   : > { %27215 = vmatpush3.bf16.msra.mxu0 %v29686_v36  ;;  %21220 = vmatmul.mubr.bf16.vlgmr.msra.gmra.mrb[140].mxu1 %v1849_v40  ;;  %v29724_v36 = vld [vmem:[%s30821_s9 + $0x2588] sm:$0xff]   ;;  %v29728_v40 = vld [vmem:[%s30821_s9 + $0x2590] sm:$0xff]  }
 0x4bf   : > { %27216 = vmatprep.subr.bf16.mxu0 %v29688_v41  ;;  %27237 = vmatpush3.bf16.msra.mxu1 %v29687_v39  ;;  %v29727_v39 = vld [vmem:[%s30821_s9 + $0x2510] sm:$0xff]   ;;  %v29729_v41 = vld [vmem:[%s30821_s9 + $0x2558] sm:$0xff]  }
 0x4c0   : > { %27238 = vmatprep.subr.bf16.mxu1 %v29689_v44  ;;  %21259 = vmatprep.mubr.bf16.mxu0 %v1852_v28  ;;  %v29731_v44 = vld [vmem:[%s30821_s9 + $0x2518] sm:$0xff]   ;;  %v29758_v28 = vld [vmem:[%s30821_s9 + $0x2650] sm:$0xff]  }
 0x4c1   : > { %21299 = vmatprep.mubr.bf16.mxu1 %v1854_v33  ;;  %v29763_v33 = vld [vmem:[%s30821_s9 + $0x26d8] sm:$0xff]  }
 0x4c2   : > { %27217 = vmatpush3.bf16.msra.mxu0 %v29690_v45  ;;  %v29732_v45 = vld [vmem:[%s30821_s9 + $0x2598] sm:$0xff]  }
 0x4c3   : > { %27218 = vmatprep.subr.bf16.mxu0 %v29692_v47  ;;  %27239 = vmatpush3.bf16.msra.mxu1 %v29691_v46  ;;  %v29733_v46 = vld [vmem:[%s30821_s9 + $0x2560] sm:$0xff]  }
 0x4c4   : > { %27240 = vmatprep.subr.bf16.mxu1 %v29693_v48  ;;  %v29734_v47 = vld [vmem:[%s30821_s9 + $0x25e0] sm:$0xff]  }
 0x4c5   : > { %v29735_v48 = vld [vmem:[%s30821_s9 + $0x2520] sm:$0xff]  }
 0x4c6   : > { %27219 = vmatpush3.bf16.msra.mxu0 %v29694_v49  ;;  %v29736_v49 = vld [vmem:[%s30821_s9 + $0x25a0] sm:$0xff]  }
 0x4c7   : > { %27220 = vmatprep.subr.bf16.mxu0 %v29696_v51  ;;  %27241 = vmatpush3.bf16.msra.mxu1 %v29695_v50  ;;  %v29737_v50 = vld [vmem:[%s30821_s9 + $0x2568] sm:$0xff]  }
 0x4c8   : > { %27242 = vmatprep.subr.bf16.mxu1 %v29697_v52  ;;  %v29738_v52 = vld [vmem:[%s30821_s9 + $0x25e8] sm:$0xff]  }
 0x4ca   : > { %27221 = vmatpush3.bf16.msra.mxu0 %v29698_v53 }
 0x4cb   : > { %27222 = vmatprep.subr.bf16.mxu0 %v29700_v55  ;;  %27243 = vmatpush3.bf16.msra.mxu1 %v29699_v54  ;;  %v29739_v54 = vld [vmem:[%s30821_s9 + $0x2528] sm:$0xff]  }
 0x4cc   : > { %27244 = vmatprep.subr.bf16.mxu1 %v29701_v56 }
 0x4ce   : > { %27223 = vmatpush3.bf16.msra.mxu0 %v29702_v57 }
 0x4cf   : > { %27224 = vmatprep.subr.bf16.mxu0 %v29704_v59  ;;  %27245 = vmatpush3.bf16.msra.mxu1 %v29703_v58  ;;  %v29740_v58 = vld [vmem:[%s30821_s9 + $0x25a8] sm:$0xff]   ;;  %v29741_v59 = vld [vmem:[%s30821_s9 + $0x2570] sm:$0xff]  }
 0x4d0   : > { %v26922_v60 = vpop.f32.mrb[116].mxu0  ;;  %27246 = vmatprep.subr.bf16.mxu1 %v29705_v61 }
 0x4d1   : > { %v26923_v62 = vpop.f32.mrb[117].mxu0  ;;  %v26944_v0 = vpop.f32.mrb[116].mxu1 }
 0x4d2   : > { %v26924_v1 = vadd.f32 %v26923_v62, %v26922_v60  ;;  %v26925_v2 = vpop.f32.mrb[118].mxu0  ;;  %v26945_v5 = vpop.f32.mrb[117].mxu1  ;;  %27225 = vmatpush3.bf16.msra.mxu0 %v29706_v63 }
 0x4d3   : > { %v26926_v6 = vpop.f32.mrb[119].mxu0  ;;  %v26946_v8 = vadd.f32 %v26945_v5, %v26944_v0  ;;  %v26947_v9 = vpop.f32.mrb[118].mxu1  ;;  %27226 = vmatprep.subr.bf16.mxu0 %v29708_v4  ;;  %27247 = vmatpush3.bf16.msra.mxu1 %v29707_v3  ;;  %v29743_v3 = vld [vmem:[%s30821_s9 + $0x2530] sm:$0xff]  }
 0x4d4   : > { %v20702_v7 = vadd.f32 %v26924_v1, %v32172_v22  ;;  %v26948_v11 = vpop.f32.mrb[119].mxu1  ;;  %27248 = vmatprep.subr.bf16.mxu1 %v29709_v10  ;;  %v29715_v22 = vld [vmem:[%s30821_s9 + $0x24b8] sm:$0xff]   ;;  %v29742_v1 = vld [vmem:[%s30821_s9 + $0x25f0] sm:$0xff]   ;;  %v272_v9 = vld [vmem:[%s30831_s7 + $0x128] sm:$0xff] }
 0x4d5   : > { %v29744_v5 = vld [vmem:[%s30821_s9 + $0x25b0] sm:$0xff]   ;;  %v29745_v6 = vld [vmem:[%s30821_s9 + $0x2578] sm:$0xff]   ;;  %v999_v11 = vrot.slane %v272_v9, %v30869_v42 }
 0x4d6   : > { %v32210_v13 = vadd.f32 %v26946_v8, %v20702_v7  ;;  %27227 = vmatpush3.bf16.msra.mxu0 %v29710_v12  ;;  %v29746_v7 = vld [vmem:[%s30821_s9 + $0x25f8] sm:$0xff]   ;;  %v992_v12 = vcombine.high %v272_v9, %v272_v9  ;;  %v29785_v9 = vld [vmem:[%s30821_s9 + $0x2700] sm:$0xff]  }
 0x4d7   : > { %27228 = vmatprep.subr.bf16.mxu0 %v29712_v15  ;;  %27249 = vmatpush3.bf16.msra.mxu1 %v29711_v14  ;;  %v29747_v8 = vld [vmem:[%s30821_s9 + $0x2538] sm:$0xff]   ;;  %v1007_v14 = vcombine.high %v999_v11, %v999_v11 }
 0x4d8   : > { %27250 = vmatprep.subr.bf16.mxu1 %v29713_v16  ;;  %v29748_v10 = vld [vmem:[%s30821_s9 + $0x25b8] sm:$0xff]   ;;  %v1006_v15 = vrot.slane %v992_v12, %v30869_v42  ;;  %v29751_v16 = vld [vmem:[%s30821_s9 + $0x26c0] sm:$0xff]  }
 0x4d9   : > { %v1856_v19 = vpack.c.bf16 %v1007_v14, %v1007_v14  ;;  %v29786_v12 = vld [vmem:[%s30821_s9 + $0x2780] sm:$0xff]   ;;  %v29787_v14 = vld [vmem:[%s30821_s9 + $0x2748] sm:$0xff]  }
 0x4da   : > { %27229 = vmatpush3.bf16.msra.mxu0 %v29714_v17  ;;  %v1855_v17 = vpack.c.bf16 %v999_v11, %v999_v11  ;;  %v1008_v20 = vcombine.high %v1006_v15, %v1006_v15 }
 0x4db   : > { %27258 = vmatprep.subr.bf16.mxu0 %v29717_v21  ;;  %27251 = vmatpush3.bf16.msra.mxu1 %v29715_v22  ;;  %v29753_v21 = vld [vmem:[%s30821_s9 + $0x2680] sm:$0xff]   ;;  %v1857_v22 = vpack.c.bf16 %v1006_v15, %v1006_v15 }
 0x4dc   : > { %27280 = vmatprep.subr.bf16.mxu1 %v29718_v25  ;;  %v1858_v24 = vpack.c.bf16 %v1008_v20, %v1008_v20  ;;  %v29755_v25 = vld [vmem:[%s30821_s9 + $0x26c8] sm:$0xff]   ;;  %v29792_v20 = vld [vmem:[%s30821_s9 + $0x27d0] sm:$0xff]  }
 0x4dd   : > { %21260 = vmatmul.mubr.bf16.vlgmr.msra.gmra.mrb[144].mxu0 %v1851_v26  ;;  %v29756_v26 = vld [vmem:[%s30821_s9 + $0x2608] sm:$0xff]  }
 0x4de   : > { %27259 = vmatpush3.bf16.msra.mxu0 %v29719_v27  ;;  %21300 = vmatmul.mubr.bf16.vlgmr.msra.gmra.mrb[144].mxu1 %v1853_v31  ;;  %v29757_v27 = vld [vmem:[%s30821_s9 + $0x2688] sm:$0xff]   ;;  %v29761_v31 = vld [vmem:[%s30821_s9 + $0x2690] sm:$0xff]  }
 0x4df   : > { %27260 = vmatprep.subr.bf16.mxu0 %v29721_v32  ;;  %27281 = vmatpush3.bf16.msra.mxu1 %v29720_v30  ;;  %v29760_v30 = vld [vmem:[%s30821_s9 + $0x2610] sm:$0xff]   ;;  %v29762_v32 = vld [vmem:[%s30821_s9 + $0x2658] sm:$0xff]  }
 0x4e0   : > { %27282 = vmatprep.subr.bf16.mxu1 %v29722_v34  ;;  %21339 = vmatprep.mubr.bf16.mxu0 %v1856_v19  ;;  %v29764_v34 = vld [vmem:[%s30821_s9 + $0x2618] sm:$0xff]   ;;  %v29791_v19 = vld [vmem:[%s30821_s9 + $0x2750] sm:$0xff]  }
 0x4e1   : > { %21379 = vmatprep.mubr.bf16.mxu1 %v1858_v24  ;;  %v29796_v24 = vld [vmem:[%s30821_s9 + $0x27d8] sm:$0xff]  }
 0x4e2   : > { %27261 = vmatpush3.bf16.msra.mxu0 %v29723_v35  ;;  %v29765_v35 = vld [vmem:[%s30821_s9 + $0x2698] sm:$0xff]  }
 0x4e3   : > { %27262 = vmatprep.subr.bf16.mxu0 %v29725_v37  ;;  %27283 = vmatpush3.bf16.msra.mxu1 %v29724_v36  ;;  %v29766_v36 = vld [vmem:[%s30821_s9 + $0x2660] sm:$0xff]  }
 0x4e4   : > { %27284 = vmatprep.subr.bf16.mxu1 %v29726_v38  ;;  %v29767_v37 = vld [vmem:[%s30821_s9 + $0x26e0] sm:$0xff]  }
 0x4e5   : > { %v29768_v38 = vld [vmem:[%s30821_s9 + $0x2620] sm:$0xff]  }
 0x4e6   : > { %27263 = vmatpush3.bf16.msra.mxu0 %v29727_v39  ;;  %v29769_v39 = vld [vmem:[%s30821_s9 + $0x26a0] sm:$0xff]  }
 0x4e7   : > { %27264 = vmatprep.subr.bf16.mxu0 %v29729_v41  ;;  %27285 = vmatpush3.bf16.msra.mxu1 %v29728_v40  ;;  %v29770_v40 = vld [vmem:[%s30821_s9 + $0x2668] sm:$0xff]  }
 0x4e8   : > { %27286 = vmatprep.subr.bf16.mxu1 %v29730_v43  ;;  %v29771_v43 = vld [vmem:[%s30821_s9 + $0x26e8] sm:$0xff]  }
 0x4ea   : > { %27265 = vmatpush3.bf16.msra.mxu0 %v29731_v44 }
 0x4eb   : > { %27266 = vmatprep.subr.bf16.mxu0 %v29733_v46  ;;  %27287 = vmatpush3.bf16.msra.mxu1 %v29732_v45  ;;  %v29772_v45 = vld [vmem:[%s30821_s9 + $0x2628] sm:$0xff]  }
 0x4ec   : > { %27288 = vmatprep.subr.bf16.mxu1 %v29734_v47 }
 0x4ee   : > { %27267 = vmatpush3.bf16.msra.mxu0 %v29735_v48 }
 0x4ef   : > { %27268 = vmatprep.subr.bf16.mxu0 %v29737_v50  ;;  %27289 = vmatpush3.bf16.msra.mxu1 %v29736_v49  ;;  %v29773_v50 = vld [vmem:[%s30821_s9 + $0x26a8] sm:$0xff]  }
 0x4f0   : > { %v26966_v51 = vpop.f32.mrb[120].mxu0  ;;  %27290 = vmatprep.subr.bf16.mxu1 %v29738_v52  ;;  %v29774_v52 = vld [vmem:[%s30821_s9 + $0x2670] sm:$0xff]  }
 0x4f1   : > { %v26967_v53 = vpop.f32.mrb[121].mxu0  ;;  %v26988_v55 = vpop.f32.mrb[120].mxu1 }
 0x4f2   : > { %v26968_v56 = vadd.f32 %v26967_v53, %v26966_v51  ;;  %v26969_v57 = vpop.f32.mrb[122].mxu0  ;;  %v26989_v60 = vpop.f32.mrb[121].mxu1  ;;  %27269 = vmatpush3.bf16.msra.mxu0 %v29739_v54 }
 0x4f3   : > { %v26970_v61 = vpop.f32.mrb[123].mxu0  ;;  %v26990_v63 = vadd.f32 %v26989_v60, %v26988_v55  ;;  %v26991_v0 = vpop.f32.mrb[122].mxu1  ;;  %27270 = vmatprep.subr.bf16.mxu0 %v29741_v59  ;;  %27291 = vmatpush3.bf16.msra.mxu1 %v29740_v58  ;;  %v29776_v58 = vld [vmem:[%s30821_s9 + $0x2630] sm:$0xff]   ;;  %v29778_v60 = vld [vmem:[%s30821_s9 + $0x2678] sm:$0xff]  }
 0x4f4   : > { %v20782_v62 = vadd.f32 %v26968_v56, %v32210_v13  ;;  %v26992_v2 = vpop.f32.mrb[123].mxu1  ;;  %27292 = vmatprep.subr.bf16.mxu1 %v29742_v1  ;;  %v29750_v13 = vld [vmem:[%s30821_s9 + $0x2640] sm:$0xff]   ;;  %v29775_v56 = vld [vmem:[%s30821_s9 + $0x26f0] sm:$0xff]  }
 0x4f5   : > { %v29777_v61 = vld [vmem:[%s30821_s9 + $0x26b0] sm:$0xff]  }
 0x4f6   : > { %v32248_v4 = vadd.f32 %v26990_v63, %v20782_v62  ;;  %27271 = vmatpush3.bf16.msra.mxu0 %v29743_v3  ;;  %v29779_v62 = vld [vmem:[%s30821_s9 + $0x26f8] sm:$0xff]   ;;  %v273_v0 = vld [vmem:[%s30831_s7 + $0x130] sm:$0xff]  ;;  %v29783_v3 = vld [vmem:[%s30821_s9 + $0x2740] sm:$0xff]  }
 0x4f7   : > { %27272 = vmatprep.subr.bf16.mxu0 %v29745_v6  ;;  %27293 = vmatpush3.bf16.msra.mxu1 %v29744_v5  ;;  %v29780_v63 = vld [vmem:[%s30821_s9 + $0x2638] sm:$0xff]   ;;  %v1016_v1 = vrot.slane %v273_v0, %v30869_v42  ;;  %v1009_v2 = vcombine.high %v273_v0, %v273_v0  ;;  %v29818_v0 = vld [vmem:[%s30821_s9 + $0x2800] sm:$0xff]  }
 0x4f8   : > { %27294 = vmatprep.subr.bf16.mxu1 %v29746_v7  ;;  %v29784_v7 = vld [vmem:[%s30821_s9 + $0x27c0] sm:$0xff]  }
 0x4f9   : > { %v1024_v5 = vcombine.high %v1016_v1, %v1016_v1  ;;  %v1023_v6 = vrot.slane %v1009_v2, %v30869_v42 }
 0x4fa   : > { %27273 = vmatpush3.bf16.msra.mxu0 %v29747_v8  ;;  %v1859_v8 = vpack.c.bf16 %v1016_v1, %v1016_v1 }
 0x4fb   : > { %27302 = vmatprep.subr.bf16.mxu0 %v29750_v13  ;;  %27295 = vmatpush3.bf16.msra.mxu1 %v29748_v10  ;;  %v1860_v10 = vpack.c.bf16 %v1024_v5, %v1024_v5  ;;  %v1025_v11 = vcombine.high %v1023_v6, %v1023_v6  ;;  %v1861_v13 = vpack.c.bf16 %v1023_v6, %v1023_v6  ;;  %v29820_v5 = vld [vmem:[%s30821_s9 + $0x2848] sm:$0xff]  }
 0x4fc   : > { %27324 = vmatprep.subr.bf16.mxu1 %v29751_v16  ;;  %v29788_v16 = vld [vmem:[%s30821_s9 + $0x27c8] sm:$0xff]  }
 0x4fd   : > { %21340 = vmatmul.mubr.bf16.vlgmr.msra.gmra.mrb[148].mxu0 %v1855_v17  ;;  %v1862_v15 = vpack.c.bf16 %v1025_v11, %v1025_v11  ;;  %v29789_v17 = vld [vmem:[%s30821_s9 + $0x2708] sm:$0xff]   ;;  %v29825_v11 = vld [vmem:[%s30821_s9 + $0x28d0] sm:$0xff]  }
 0x4fe   : > { %27303 = vmatpush3.bf16.msra.mxu0 %v29752_v18  ;;  %21380 = vmatmul.mubr.bf16.vlgmr.msra.gmra.mrb[148].mxu1 %v1857_v22  ;;  %v29790_v18 = vld [vmem:[%s30821_s9 + $0x2788] sm:$0xff]   ;;  %v29794_v22 = vld [vmem:[%s30821_s9 + $0x2790] sm:$0xff]  }
 0x4ff   : > { %27304 = vmatprep.subr.bf16.mxu0 %v29754_v23  ;;  %27325 = vmatpush3.bf16.msra.mxu1 %v29753_v21  ;;  %v29793_v21 = vld [vmem:[%s30821_s9 + $0x2710] sm:$0xff]   ;;  %v29795_v23 = vld [vmem:[%s30821_s9 + $0x2758] sm:$0xff]  }
 0x500   : > { %27326 = vmatprep.subr.bf16.mxu1 %v29755_v25  ;;  %21419 = vmatprep.mubr.bf16.mxu0 %v1860_v10  ;;  %v29797_v25 = vld [vmem:[%s30821_s9 + $0x2718] sm:$0xff]   ;;  %v29824_v10 = vld [vmem:[%s30821_s9 + $0x2850] sm:$0xff]  }
 0x501   : > { %21459 = vmatprep.mubr.bf16.mxu1 %v1862_v15  ;;  %v29829_v15 = vld [vmem:[%s30821_s9 + $0x28d8] sm:$0xff]  }
 0x502   : > { %27305 = vmatpush3.bf16.msra.mxu0 %v29756_v26  ;;  %v29798_v26 = vld [vmem:[%s30821_s9 + $0x2798] sm:$0xff]  }
 0x503   : > { %27306 = vmatprep.subr.bf16.mxu0 %v29758_v28  ;;  %27327 = vmatpush3.bf16.msra.mxu1 %v29757_v27  ;;  %v29799_v27 = vld [vmem:[%s30821_s9 + $0x2760] sm:$0xff]  }
 0x504   : > { %27328 = vmatprep.subr.bf16.mxu1 %v29759_v29  ;;  %v29800_v28 = vld [vmem:[%s30821_s9 + $0x27e0] sm:$0xff]  }
 0x505   : > { %v29801_v29 = vld [vmem:[%s30821_s9 + $0x2720] sm:$0xff]  }
 0x506   : > { %27307 = vmatpush3.bf16.msra.mxu0 %v29760_v30  ;;  %v29802_v30 = vld [vmem:[%s30821_s9 + $0x27a0] sm:$0xff]  }
 0x507   : > { %27308 = vmatprep.subr.bf16.mxu0 %v29762_v32  ;;  %27329 = vmatpush3.bf16.msra.mxu1 %v29761_v31  ;;  %v29803_v31 = vld [vmem:[%s30821_s9 + $0x2768] sm:$0xff]  }
 0x508   : > { %27330 = vmatprep.subr.bf16.mxu1 %v29763_v33  ;;  %v29804_v33 = vld [vmem:[%s30821_s9 + $0x27e8] sm:$0xff]  }
 0x50a   : > { %27309 = vmatpush3.bf16.msra.mxu0 %v29764_v34 }
 0x50b   : > { %27310 = vmatprep.subr.bf16.mxu0 %v29766_v36  ;;  %27331 = vmatpush3.bf16.msra.mxu1 %v29765_v35  ;;  %v29805_v35 = vld [vmem:[%s30821_s9 + $0x2728] sm:$0xff]  }
 0x50c   : > { %27332 = vmatprep.subr.bf16.mxu1 %v29767_v37 }
 0x50e   : > { %27311 = vmatpush3.bf16.msra.mxu0 %v29768_v38 }
 0x50f   : > { %27312 = vmatprep.subr.bf16.mxu0 %v29770_v40  ;;  %27333 = vmatpush3.bf16.msra.mxu1 %v29769_v39  ;;  %v29806_v39 = vld [vmem:[%s30821_s9 + $0x27a8] sm:$0xff]   ;;  %v29807_v40 = vld [vmem:[%s30821_s9 + $0x2770] sm:$0xff]  }
 0x510   : > { %v27010_v41 = vpop.f32.mrb[124].mxu0  ;;  %27334 = vmatprep.subr.bf16.mxu1 %v29771_v43 }
 0x511   : > { %v27011_v44 = vpop.f32.mrb[125].mxu0  ;;  %v27032_v46 = vpop.f32.mrb[124].mxu1 }
 0x512   : > { %v27012_v47 = vadd.f32 %v27011_v44, %v27010_v41  ;;  %v27013_v48 = vpop.f32.mrb[126].mxu0  ;;  %v27033_v49 = vpop.f32.mrb[125].mxu1  ;;  %27313 = vmatpush3.bf16.msra.mxu0 %v29772_v45 }
 0x513   : > { %v27014_v51 = vpop.f32.mrb[127].mxu0  ;;  %v27034_v54 = vadd.f32 %v27033_v49, %v27032_v46  ;;  %v27035_v55 = vpop.f32.mrb[126].mxu1  ;;  %27314 = vmatprep.subr.bf16.mxu0 %v29774_v52  ;;  %27335 = vmatpush3.bf16.msra.mxu1 %v29773_v50  ;;  %v29809_v49 = vld [vmem:[%s30821_s9 + $0x2730] sm:$0xff]   ;;  %v29811_v52 = vld [vmem:[%s30821_s9 + $0x2778] sm:$0xff]  }
 0x514   : > { %v20862_v53 = vadd.f32 %v27012_v47, %v32248_v4  ;;  %v27036_v57 = vpop.f32.mrb[127].mxu1  ;;  %27336 = vmatprep.subr.bf16.mxu1 %v29775_v56  ;;  %v29781_v4 = vld [vmem:[%s30821_s9 + $0x26b8] sm:$0xff]   ;;  %v29808_v47 = vld [vmem:[%s30821_s9 + $0x27f0] sm:$0xff]  }
 0x515   : > { %v29810_v51 = vld [vmem:[%s30821_s9 + $0x27b0] sm:$0xff]  }
 0x516   : > { %v32286_v59 = vadd.f32 %v27034_v54, %v20862_v53  ;;  %27315 = vmatpush3.bf16.msra.mxu0 %v29776_v58  ;;  %v29812_v53 = vld [vmem:[%s30821_s9 + $0x27f8] sm:$0xff]   ;;  %v29816_v58 = vld [vmem:[%s30821_s9 + $0x2840] sm:$0xff]  }
 0x517   : > { %27316 = vmatprep.subr.bf16.mxu0 %v29778_v60  ;;  %27337 = vmatpush3.bf16.msra.mxu1 %v29777_v61  ;;  %v29813_v54 = vld [vmem:[%s30821_s9 + $0x2738] sm:$0xff]  }
 0x518   : > { %27338 = vmatprep.subr.bf16.mxu1 %v29779_v62  ;;  %v274_v55 = vld [vmem:[%s30831_s7 + $0x138] sm:$0xff]  ;;  %v29817_v62 = vld [vmem:[%s30821_s9 + $0x28c0] sm:$0xff]  }
 0x519   : > { %v1033_v56 = vrot.slane %v274_v55, %v30869_v42  ;;  %v1026_v57 = vcombine.high %v274_v55, %v274_v55  ;;  %v29851_v55 = vld [vmem:[%s30821_s9 + $0x2900] sm:$0xff]  }
 0x51a   : > { %27317 = vmatpush3.bf16.msra.mxu0 %v29780_v63 }
 0x51b   : > { %27346 = vmatprep.subr.bf16.mxu0 %v29783_v3  ;;  %27339 = vmatpush3.bf16.msra.mxu1 %v29781_v4  ;;  %v1041_v60 = vcombine.high %v1033_v56, %v1033_v56  ;;  %v1040_v61 = vrot.slane %v1026_v57, %v30869_v42  ;;  %v1863_v63 = vpack.c.bf16 %v1033_v56, %v1033_v56  ;;  %v29819_v3 = vld [vmem:[%s30821_s9 + $0x2880] sm:$0xff]  }
 0x51c   : > { %27368 = vmatprep.subr.bf16.mxu1 %v29784_v7  ;;  %v29821_v7 = vld [vmem:[%s30821_s9 + $0x28c8] sm:$0xff]  }
 0x51d   : > { %21420 = vmatmul.mubr.bf16.vlgmr.msra.gmra.mrb[152].mxu0 %v1859_v8  ;;  %v1864_v1 = vpack.c.bf16 %v1041_v60, %v1041_v60  ;;  %v1042_v2 = vcombine.high %v1040_v61, %v1040_v61  ;;  %v1865_v4 = vpack.c.bf16 %v1040_v61, %v1040_v61  ;;  %v29822_v8 = vld [vmem:[%s30821_s9 + $0x2808] sm:$0xff]  }
 0x51e   : > { %27347 = vmatpush3.bf16.msra.mxu0 %v29785_v9  ;;  %21460 = vmatmul.mubr.bf16.vlgmr.msra.gmra.mrb[152].mxu1 %v1861_v13  ;;  %v29823_v9 = vld [vmem:[%s30821_s9 + $0x2888] sm:$0xff]   ;;  %v29827_v13 = vld [vmem:[%s30821_s9 + $0x2890] sm:$0xff]  }
 0x51f   : > { %27348 = vmatprep.subr.bf16.mxu0 %v29787_v14  ;;  %27369 = vmatpush3.bf16.msra.mxu1 %v29786_v12  ;;  %v1866_v6 = vpack.c.bf16 %v1042_v2, %v1042_v2  ;;  %v29826_v12 = vld [vmem:[%s30821_s9 + $0x2810] sm:$0xff]   ;;  %v29828_v14 = vld [vmem:[%s30821_s9 + $0x2858] sm:$0xff]   ;;  %v29853_v60 = vld [vmem:[%s30821_s9 + $0x2948] sm:$0xff]  }
 0x520   : > { %27370 = vmatprep.subr.bf16.mxu1 %v29788_v16  ;;  %21499 = vmatprep.mubr.bf16.mxu0 %v1864_v1  ;;  %v29830_v16 = vld [vmem:[%s30821_s9 + $0x2818] sm:$0xff]   ;;  %v29857_v1 = vld [vmem:[%s30821_s9 + $0x2950] sm:$0xff]  }
 0x521   : > { %21539 = vmatprep.mubr.bf16.mxu1 %v1866_v6  ;;  %v29858_v2 = vld [vmem:[%s30821_s9 + $0x29d0] sm:$0xff]   ;;  %v29862_v6 = vld [vmem:[%s30821_s9 + $0x29d8] sm:$0xff]  }
 0x522   : > { %27349 = vmatpush3.bf16.msra.mxu0 %v29789_v17  ;;  %v29831_v17 = vld [vmem:[%s30821_s9 + $0x2898] sm:$0xff]  }
 0x523   : > { %27350 = vmatprep.subr.bf16.mxu0 %v29791_v19  ;;  %27371 = vmatpush3.bf16.msra.mxu1 %v29790_v18  ;;  %v29832_v18 = vld [vmem:[%s30821_s9 + $0x2860] sm:$0xff]  }
 0x524   : > { %27372 = vmatprep.subr.bf16.mxu1 %v29792_v20  ;;  %v29833_v19 = vld [vmem:[%s30821_s9 + $0x28e0] sm:$0xff]  }
 0x525   : > { %v29834_v20 = vld [vmem:[%s30821_s9 + $0x2820] sm:$0xff]  }
 0x526   : > { %27351 = vmatpush3.bf16.msra.mxu0 %v29793_v21  ;;  %v29835_v21 = vld [vmem:[%s30821_s9 + $0x28a0] sm:$0xff]  }
 0x527   : > { %27352 = vmatprep.subr.bf16.mxu0 %v29795_v23  ;;  %27373 = vmatpush3.bf16.msra.mxu1 %v29794_v22  ;;  %v29836_v22 = vld [vmem:[%s30821_s9 + $0x2868] sm:$0xff]  }
 0x528   : > { %27374 = vmatprep.subr.bf16.mxu1 %v29796_v24  ;;  %v29837_v24 = vld [vmem:[%s30821_s9 + $0x28e8] sm:$0xff]  }
 0x52a   : > { %27353 = vmatpush3.bf16.msra.mxu0 %v29797_v25 }
 0x52b   : > { %27354 = vmatprep.subr.bf16.mxu0 %v29799_v27  ;;  %27375 = vmatpush3.bf16.msra.mxu1 %v29798_v26  ;;  %v29838_v26 = vld [vmem:[%s30821_s9 + $0x2828] sm:$0xff]  }
 0x52c   : > { %27376 = vmatprep.subr.bf16.mxu1 %v29800_v28 }
 0x52e   : > { %27355 = vmatpush3.bf16.msra.mxu0 %v29801_v29 }
 0x52f   : > { %27356 = vmatprep.subr.bf16.mxu0 %v29803_v31  ;;  %27377 = vmatpush3.bf16.msra.mxu1 %v29802_v30  ;;  %v29839_v30 = vld [vmem:[%s30821_s9 + $0x28a8] sm:$0xff]   ;;  %v29840_v31 = vld [vmem:[%s30821_s9 + $0x2870] sm:$0xff]  }
 0x530   : > { %v27054_v32 = vpop.f32.mrb[128].mxu0  ;;  %27378 = vmatprep.subr.bf16.mxu1 %v29804_v33 }
 0x531   : > { %v27055_v34 = vpop.f32.mrb[129].mxu0  ;;  %v27076_v36 = vpop.f32.mrb[128].mxu1 }
 0x532   : > { %v27056_v37 = vadd.f32 %v27055_v34, %v27054_v32  ;;  %v27057_v38 = vpop.f32.mrb[130].mxu0  ;;  %v27077_v41 = vpop.f32.mrb[129].mxu1  ;;  %27357 = vmatpush3.bf16.msra.mxu0 %v29805_v35 }
 0x533   : > { %v27058_v43 = vpop.f32.mrb[131].mxu0  ;;  %v27078_v45 = vadd.f32 %v27077_v41, %v27076_v36  ;;  %v27079_v46 = vpop.f32.mrb[130].mxu1  ;;  %27358 = vmatprep.subr.bf16.mxu0 %v29807_v40  ;;  %27379 = vmatpush3.bf16.msra.mxu1 %v29806_v39  ;;  %v29842_v39 = vld [vmem:[%s30821_s9 + $0x2830] sm:$0xff]  }
 0x534   : > { %v20942_v44 = vadd.f32 %v27056_v37, %v32286_v59  ;;  %v27080_v48 = vpop.f32.mrb[131].mxu1  ;;  %27380 = vmatprep.subr.bf16.mxu1 %v29808_v47  ;;  %v29814_v59 = vld [vmem:[%s30821_s9 + $0x27b8] sm:$0xff]   ;;  %v29841_v37 = vld [vmem:[%s30821_s9 + $0x28f0] sm:$0xff]  }
 0x535   : > { %v29843_v41 = vld [vmem:[%s30821_s9 + $0x28b0] sm:$0xff]   ;;  %v29844_v43 = vld [vmem:[%s30821_s9 + $0x2878] sm:$0xff]  }
 0x536   : > { %v32324_v50 = vadd.f32 %v27078_v45, %v20942_v44  ;;  %27359 = vmatpush3.bf16.msra.mxu0 %v29809_v49  ;;  %v29845_v44 = vld [vmem:[%s30821_s9 + $0x28f8] sm:$0xff]  }
 0x537   : > { %27360 = vmatprep.subr.bf16.mxu0 %v29811_v52  ;;  %27381 = vmatpush3.bf16.msra.mxu1 %v29810_v51  ;;  %v29846_v45 = vld [vmem:[%s30821_s9 + $0x2838] sm:$0xff]  }
 0x538   : > { %27382 = vmatprep.subr.bf16.mxu1 %v29812_v53  ;;  %v275_v46 = vld [vmem:[%s30831_s7 + $0x140] sm:$0xff] }
 0x539   : > { %v29847_v47 = vld [vmem:[%s30821_s9 + $0x28b8] sm:$0xff]   ;;  %v1050_v48 = vrot.slane %v275_v46, %v30869_v42  ;;  %v1043_v49 = vcombine.high %v275_v46, %v275_v46  ;;  %v29850_v53 = vld [vmem:[%s30821_s9 + $0x29c0] sm:$0xff]  }
 0x53a   : > { %27361 = vmatpush3.bf16.msra.mxu0 %v29813_v54  ;;  %v29884_v46 = vld [vmem:[%s30821_s9 + $0x2a00] sm:$0xff]  }
 0x53b   : > { %27390 = vmatprep.subr.bf16.mxu0 %v29816_v58  ;;  %27383 = vmatpush3.bf16.msra.mxu1 %v29814_v59  ;;  %v1058_v51 = vcombine.high %v1050_v48, %v1050_v48  ;;  %v1057_v52 = vrot.slane %v1043_v49, %v30869_v42  ;;  %v1867_v54 = vpack.c.bf16 %v1050_v48, %v1050_v48  ;;  %v29852_v58 = vld [vmem:[%s30821_s9 + $0x2980] sm:$0xff]  }
 0x53c   : > { %27412 = vmatprep.subr.bf16.mxu1 %v29817_v62  ;;  %v29854_v62 = vld [vmem:[%s30821_s9 + $0x29c8] sm:$0xff]   ;;  %v29885_v49 = vld [vmem:[%s30821_s9 + $0x2a80] sm:$0xff]  }
 0x53d   : > { %21500 = vmatmul.mubr.bf16.vlgmr.msra.gmra.mrb[156].mxu0 %v1863_v63  ;;  %v1868_v56 = vpack.c.bf16 %v1058_v51, %v1058_v51  ;;  %v1059_v57 = vcombine.high %v1057_v52, %v1057_v52  ;;  %v1869_v59 = vpack.c.bf16 %v1057_v52, %v1057_v52  ;;  %v29855_v63 = vld [vmem:[%s30821_s9 + $0x2908] sm:$0xff]  }
 0x53e   : > { %27391 = vmatpush3.bf16.msra.mxu0 %v29818_v0  ;;  %21540 = vmatmul.mubr.bf16.vlgmr.msra.gmra.mrb[156].mxu1 %v1865_v4  ;;  %v29856_v0 = vld [vmem:[%s30821_s9 + $0x2988] sm:$0xff]   ;;  %v29860_v4 = vld [vmem:[%s30821_s9 + $0x2990] sm:$0xff]  }
 0x53f   : > { %27392 = vmatprep.subr.bf16.mxu0 %v29820_v5  ;;  %27413 = vmatpush3.bf16.msra.mxu1 %v29819_v3  ;;  %v1870_v61 = vpack.c.bf16 %v1059_v57, %v1059_v57  ;;  %v29859_v3 = vld [vmem:[%s30821_s9 + $0x2910] sm:$0xff]   ;;  %v29861_v5 = vld [vmem:[%s30821_s9 + $0x2958] sm:$0xff]   ;;  %v29886_v51 = vld [vmem:[%s30821_s9 + $0x2a48] sm:$0xff]  }
 0x540   : > { %27414 = vmatprep.subr.bf16.mxu1 %v29821_v7  ;;  %21579 = vmatprep.mubr.bf16.mxu0 %v1868_v56  ;;  %v29863_v7 = vld [vmem:[%s30821_s9 + $0x2918] sm:$0xff]   ;;  %v29890_v56 = vld [vmem:[%s30821_s9 + $0x2a50] sm:$0xff]  }
 0x541   : > { %21619 = vmatprep.mubr.bf16.mxu1 %v1870_v61  ;;  %v29891_v57 = vld [vmem:[%s30821_s9 + $0x2ad0] sm:$0xff]   ;;  %v29895_v61 = vld [vmem:[%s30821_s9 + $0x2ad8] sm:$0xff]  }
 0x542   : > { %27393 = vmatpush3.bf16.msra.mxu0 %v29822_v8  ;;  %v29864_v8 = vld [vmem:[%s30821_s9 + $0x2998] sm:$0xff]  }
 0x543   : > { %27394 = vmatprep.subr.bf16.mxu0 %v29824_v10  ;;  %27415 = vmatpush3.bf16.msra.mxu1 %v29823_v9  ;;  %v29865_v9 = vld [vmem:[%s30821_s9 + $0x2960] sm:$0xff]  }
 0x544   : > { %27416 = vmatprep.subr.bf16.mxu1 %v29825_v11  ;;  %v29866_v10 = vld [vmem:[%s30821_s9 + $0x29e0] sm:$0xff]  }
 0x545   : > { %v29867_v11 = vld [vmem:[%s30821_s9 + $0x2920] sm:$0xff]  }
 0x546   : > { %27395 = vmatpush3.bf16.msra.mxu0 %v29826_v12  ;;  %v29868_v12 = vld [vmem:[%s30821_s9 + $0x29a0] sm:$0xff]  }
 0x547   : > { %27396 = vmatprep.subr.bf16.mxu0 %v29828_v14  ;;  %27417 = vmatpush3.bf16.msra.mxu1 %v29827_v13  ;;  %v29869_v13 = vld [vmem:[%s30821_s9 + $0x2968] sm:$0xff]  }
 0x548   : > { %27418 = vmatprep.subr.bf16.mxu1 %v29829_v15  ;;  %v29870_v15 = vld [vmem:[%s30821_s9 + $0x29e8] sm:$0xff]  }
 0x54a   : > { %27397 = vmatpush3.bf16.msra.mxu0 %v29830_v16 }
 0x54b   : > { %27398 = vmatprep.subr.bf16.mxu0 %v29832_v18  ;;  %27419 = vmatpush3.bf16.msra.mxu1 %v29831_v17  ;;  %v29871_v17 = vld [vmem:[%s30821_s9 + $0x2928] sm:$0xff]  }
 0x54c   : > { %27420 = vmatprep.subr.bf16.mxu1 %v29833_v19 }
 0x54e   : > { %27399 = vmatpush3.bf16.msra.mxu0 %v29834_v20 }
 0x54f   : > { %27400 = vmatprep.subr.bf16.mxu0 %v29836_v22  ;;  %27421 = vmatpush3.bf16.msra.mxu1 %v29835_v21  ;;  %v29872_v22 = vld [vmem:[%s30821_s9 + $0x29a8] sm:$0xff]  }
 0x550   : > { %v27098_v23 = vpop.f32.mrb[132].mxu0  ;;  %27422 = vmatprep.subr.bf16.mxu1 %v29837_v24  ;;  %v29873_v24 = vld [vmem:[%s30821_s9 + $0x2970] sm:$0xff]  }
 0x551   : > { %v27099_v25 = vpop.f32.mrb[133].mxu0  ;;  %v27120_v27 = vpop.f32.mrb[132].mxu1 }
 0x552   : > { %v27100_v28 = vadd.f32 %v27099_v25, %v27098_v23  ;;  %v27101_v29 = vpop.f32.mrb[134].mxu0  ;;  %v27121_v32 = vpop.f32.mrb[133].mxu1  ;;  %27401 = vmatpush3.bf16.msra.mxu0 %v29838_v26 }
 0x553   : > { %v27102_v33 = vpop.f32.mrb[135].mxu0  ;;  %v27122_v35 = vadd.f32 %v27121_v32, %v27120_v27  ;;  %v27123_v36 = vpop.f32.mrb[134].mxu1  ;;  %27402 = vmatprep.subr.bf16.mxu0 %v29840_v31  ;;  %27423 = vmatpush3.bf16.msra.mxu1 %v29839_v30  ;;  %v29875_v30 = vld [vmem:[%s30821_s9 + $0x2930] sm:$0xff]   ;;  %v29877_v32 = vld [vmem:[%s30821_s9 + $0x2978] sm:$0xff]  }
 0x554   : > { %v21022_v34 = vadd.f32 %v27100_v28, %v32324_v50  ;;  %v27124_v38 = vpop.f32.mrb[135].mxu1  ;;  %27424 = vmatprep.subr.bf16.mxu1 %v29841_v37  ;;  %v29849_v50 = vld [vmem:[%s30821_s9 + $0x2940] sm:$0xff]   ;;  %v29874_v28 = vld [vmem:[%s30821_s9 + $0x29f0] sm:$0xff]  }
 0x555   : > { %v29876_v33 = vld [vmem:[%s30821_s9 + $0x29b0] sm:$0xff]   ;;  %v276_v36 = vld [vmem:[%s30831_s7 + $0x148] sm:$0xff] }
 0x556   : > { %v32362_v40 = vadd.f32 %v27122_v35, %v21022_v34  ;;  %27403 = vmatpush3.bf16.msra.mxu0 %v29842_v39  ;;  %v29878_v34 = vld [vmem:[%s30821_s9 + $0x29f8] sm:$0xff]   ;;  %v1067_v37 = vrot.slane %v276_v36, %v30869_v42  ;;  %v1060_v38 = vcombine.high %v276_v36, %v276_v36  ;;  %v29882_v39 = vld [vmem:[%s30821_s9 + $0x2a40] sm:$0xff]  }
 0x557   : > { %27404 = vmatprep.subr.bf16.mxu0 %v29844_v43  ;;  %27425 = vmatpush3.bf16.msra.mxu1 %v29843_v41  ;;  %v29879_v35 = vld [vmem:[%s30821_s9 + $0x2938] sm:$0xff]   ;;  %v29917_v36 = vld [vmem:[%s30821_s9 + $0x2b00] sm:$0xff]  }
 0x558   : > { %27426 = vmatprep.subr.bf16.mxu1 %v29845_v44  ;;  %v1075_v41 = vcombine.high %v1067_v37, %v1067_v37  ;;  %v1074_v43 = vrot.slane %v1060_v38, %v30869_v42  ;;  %v29883_v44 = vld [vmem:[%s30821_s9 + $0x2ac0] sm:$0xff]  }
 0x55a   : > { %27405 = vmatpush3.bf16.msra.mxu0 %v29846_v45  ;;  %v1871_v45 = vpack.c.bf16 %v1067_v37, %v1067_v37  ;;  %v1076_v48 = vcombine.high %v1074_v43, %v1074_v43 }
 0x55b   : > { %27434 = vmatprep.subr.bf16.mxu0 %v29849_v50  ;;  %27427 = vmatpush3.bf16.msra.mxu1 %v29847_v47  ;;  %v1872_v47 = vpack.c.bf16 %v1075_v41, %v1075_v41  ;;  %v1873_v50 = vpack.c.bf16 %v1074_v43, %v1074_v43  ;;  %v29919_v41 = vld [vmem:[%s30821_s9 + $0x2b48] sm:$0xff]  }
 0x55c   : > { %27456 = vmatprep.subr.bf16.mxu1 %v29850_v53  ;;  %v1874_v52 = vpack.c.bf16 %v1076_v48, %v1076_v48  ;;  %v29887_v53 = vld [vmem:[%s30821_s9 + $0x2ac8] sm:$0xff]   ;;  %v29924_v48 = vld [vmem:[%s30821_s9 + $0x2bd0] sm:$0xff]  }
 0x55d   : > { %21580 = vmatmul.mubr.bf16.vlgmr.msra.gmra.mrb[160].mxu0 %v1867_v54  ;;  %v29888_v54 = vld [vmem:[%s30821_s9 + $0x2a08] sm:$0xff]  }
 0x55e   : > { %27435 = vmatpush3.bf16.msra.mxu0 %v29851_v55  ;;  %21620 = vmatmul.mubr.bf16.vlgmr.msra.gmra.mrb[160].mxu1 %v1869_v59  ;;  %v29889_v55 = vld [vmem:[%s30821_s9 + $0x2a88] sm:$0xff]   ;;  %v29893_v59 = vld [vmem:[%s30821_s9 + $0x2a90] sm:$0xff]  }
 0x55f   : > { %27436 = vmatprep.subr.bf16.mxu0 %v29853_v60  ;;  %27457 = vmatpush3.bf16.msra.mxu1 %v29852_v58  ;;  %v29892_v58 = vld [vmem:[%s30821_s9 + $0x2a10] sm:$0xff]   ;;  %v29894_v60 = vld [vmem:[%s30821_s9 + $0x2a58] sm:$0xff]  }
 0x560   : > { %27458 = vmatprep.subr.bf16.mxu1 %v29854_v62  ;;  %21659 = vmatprep.mubr.bf16.mxu0 %v1872_v47  ;;  %v29896_v62 = vld [vmem:[%s30821_s9 + $0x2a18] sm:$0xff]   ;;  %v29923_v47 = vld [vmem:[%s30821_s9 + $0x2b50] sm:$0xff]  }
 0x561   : > { %21699 = vmatprep.mubr.bf16.mxu1 %v1874_v52  ;;  %v29928_v52 = vld [vmem:[%s30821_s9 + $0x2bd8] sm:$0xff]  }
 0x562   : > { %27437 = vmatpush3.bf16.msra.mxu0 %v29855_v63  ;;  %v29897_v63 = vld [vmem:[%s30821_s9 + $0x2a98] sm:$0xff]  }
 0x563   : > { %27438 = vmatprep.subr.bf16.mxu0 %v29857_v1  ;;  %27459 = vmatpush3.bf16.msra.mxu1 %v29856_v0  ;;  %v29898_v0 = vld [vmem:[%s30821_s9 + $0x2a60] sm:$0xff]  }
 0x564   : > { %27460 = vmatprep.subr.bf16.mxu1 %v29858_v2  ;;  %v29899_v1 = vld [vmem:[%s30821_s9 + $0x2ae0] sm:$0xff]  }
 0x565   : > { %v29900_v2 = vld [vmem:[%s30821_s9 + $0x2a20] sm:$0xff]  }
 0x566   : > { %27439 = vmatpush3.bf16.msra.mxu0 %v29859_v3  ;;  %v29901_v3 = vld [vmem:[%s30821_s9 + $0x2aa0] sm:$0xff]  }
 0x567   : > { %27440 = vmatprep.subr.bf16.mxu0 %v29861_v5  ;;  %27461 = vmatpush3.bf16.msra.mxu1 %v29860_v4  ;;  %v29902_v4 = vld [vmem:[%s30821_s9 + $0x2a68] sm:$0xff]  }
 0x568   : > { %27462 = vmatprep.subr.bf16.mxu1 %v29862_v6  ;;  %v29903_v6 = vld [vmem:[%s30821_s9 + $0x2ae8] sm:$0xff]  }
 0x56a   : > { %27441 = vmatpush3.bf16.msra.mxu0 %v29863_v7 }
 0x56b   : > { %27442 = vmatprep.subr.bf16.mxu0 %v29865_v9  ;;  %27463 = vmatpush3.bf16.msra.mxu1 %v29864_v8  ;;  %v29904_v8 = vld [vmem:[%s30821_s9 + $0x2a28] sm:$0xff]  }
 0x56c   : > { %27464 = vmatprep.subr.bf16.mxu1 %v29866_v10 }
 0x56e   : > { %27443 = vmatpush3.bf16.msra.mxu0 %v29867_v11 }
 0x56f   : > { %27444 = vmatprep.subr.bf16.mxu0 %v29869_v13  ;;  %27465 = vmatpush3.bf16.msra.mxu1 %v29868_v12  ;;  %v29905_v12 = vld [vmem:[%s30821_s9 + $0x2aa8] sm:$0xff]   ;;  %v29906_v13 = vld [vmem:[%s30821_s9 + $0x2a70] sm:$0xff]  }
 0x570   : > { %v27142_v14 = vpop.f32.mrb[136].mxu0  ;;  %27466 = vmatprep.subr.bf16.mxu1 %v29870_v15 }
 0x571   : > { %v27143_v16 = vpop.f32.mrb[137].mxu0  ;;  %v27164_v18 = vpop.f32.mrb[136].mxu1 }
 0x572   : > { %v27144_v19 = vadd.f32 %v27143_v16, %v27142_v14  ;;  %v27145_v20 = vpop.f32.mrb[138].mxu0  ;;  %v27165_v21 = vpop.f32.mrb[137].mxu1  ;;  %27445 = vmatpush3.bf16.msra.mxu0 %v29871_v17 }
 0x573   : > { %v27146_v23 = vpop.f32.mrb[139].mxu0  ;;  %v27166_v26 = vadd.f32 %v27165_v21, %v27164_v18  ;;  %v27167_v27 = vpop.f32.mrb[138].mxu1  ;;  %27446 = vmatprep.subr.bf16.mxu0 %v29873_v24  ;;  %27467 = vmatpush3.bf16.msra.mxu1 %v29872_v22  ;;  %v29908_v21 = vld [vmem:[%s30821_s9 + $0x2a30] sm:$0xff]   ;;  %v29910_v24 = vld [vmem:[%s30821_s9 + $0x2a78] sm:$0xff]  }
 0x574   : > { %v21102_v25 = vadd.f32 %v27144_v19, %v32362_v40  ;;  %v27168_v29 = vpop.f32.mrb[139].mxu1  ;;  %27468 = vmatprep.subr.bf16.mxu1 %v29874_v28  ;;  %v29880_v40 = vld [vmem:[%s30821_s9 + $0x29b8] sm:$0xff]   ;;  %v29907_v19 = vld [vmem:[%s30821_s9 + $0x2af0] sm:$0xff]  }
 0x575   : > { %v29909_v23 = vld [vmem:[%s30821_s9 + $0x2ab0] sm:$0xff]  }
 0x576   : > { %v32400_v31 = vadd.f32 %v27166_v26, %v21102_v25  ;;  %27447 = vmatpush3.bf16.msra.mxu0 %v29875_v30  ;;  %v29911_v25 = vld [vmem:[%s30821_s9 + $0x2af8] sm:$0xff]   ;;  %v277_v27 = vld [vmem:[%s30831_s7 + $0x150] sm:$0xff]  ;;  %v29915_v30 = vld [vmem:[%s30821_s9 + $0x2b40] sm:$0xff]  }
 0x577   : > { %27448 = vmatprep.subr.bf16.mxu0 %v29877_v32  ;;  %27469 = vmatpush3.bf16.msra.mxu1 %v29876_v33  ;;  %v29912_v26 = vld [vmem:[%s30821_s9 + $0x2a38] sm:$0xff]   ;;  %v1084_v28 = vrot.slane %v277_v27, %v30869_v42  ;;  %v1077_v29 = vcombine.high %v277_v27, %v277_v27  ;;  %v29950_v27 = vld [vmem:[%s30821_s9 + $0x2c00] sm:$0xff]  }
 0x578   : > { %27470 = vmatprep.subr.bf16.mxu1 %v29878_v34  ;;  %v29916_v34 = vld [vmem:[%s30821_s9 + $0x2bc0] sm:$0xff]  }
 0x579   : > { %v1092_v32 = vcombine.high %v1084_v28, %v1084_v28  ;;  %v1091_v33 = vrot.slane %v1077_v29, %v30869_v42 }
 0x57a   : > { %27449 = vmatpush3.bf16.msra.mxu0 %v29879_v35  ;;  %v1875_v35 = vpack.c.bf16 %v1084_v28, %v1084_v28 }
 0x57b   : > { %27478 = vmatprep.subr.bf16.mxu0 %v29882_v39  ;;  %27471 = vmatpush3.bf16.msra.mxu1 %v29880_v40  ;;  %v1876_v37 = vpack.c.bf16 %v1092_v32, %v1092_v32  ;;  %v1093_v38 = vcombine.high %v1091_v33, %v1091_v33  ;;  %v29918_v39 = vld [vmem:[%s30821_s9 + $0x2b80] sm:$0xff]   ;;  %v1877_v40 = vpack.c.bf16 %v1091_v33, %v1091_v33  ;;  %v29952_v32 = vld [vmem:[%s30821_s9 + $0x2c48] sm:$0xff]  }
 0x57c   : > { %27500 = vmatprep.subr.bf16.mxu1 %v29883_v44  ;;  %v29920_v44 = vld [vmem:[%s30821_s9 + $0x2bc8] sm:$0xff]  }
 0x57d   : > { %21660 = vmatmul.mubr.bf16.vlgmr.msra.gmra.mrb[164].mxu0 %v1871_v45  ;;  %v1878_v43 = vpack.c.bf16 %v1093_v38, %v1093_v38  ;;  %v29921_v45 = vld [vmem:[%s30821_s9 + $0x2b08] sm:$0xff]   ;;  %v29957_v38 = vld [vmem:[%s30821_s9 + $0x2cd0] sm:$0xff]  }
 0x57e   : > { %27479 = vmatpush3.bf16.msra.mxu0 %v29884_v46  ;;  %21700 = vmatmul.mubr.bf16.vlgmr.msra.gmra.mrb[164].mxu1 %v1873_v50  ;;  %v29922_v46 = vld [vmem:[%s30821_s9 + $0x2b88] sm:$0xff]   ;;  %v29926_v50 = vld [vmem:[%s30821_s9 + $0x2b90] sm:$0xff]  }
 0x57f   : > { %27480 = vmatprep.subr.bf16.mxu0 %v29886_v51  ;;  %27501 = vmatpush3.bf16.msra.mxu1 %v29885_v49  ;;  %v29925_v49 = vld [vmem:[%s30821_s9 + $0x2b10] sm:$0xff]   ;;  %v29927_v51 = vld [vmem:[%s30821_s9 + $0x2b58] sm:$0xff]  }
 0x580   : > { %27502 = vmatprep.subr.bf16.mxu1 %v29887_v53  ;;  %21739 = vmatprep.mubr.bf16.mxu0 %v1876_v37  ;;  %v29929_v53 = vld [vmem:[%s30821_s9 + $0x2b18] sm:$0xff]   ;;  %v29956_v37 = vld [vmem:[%s30821_s9 + $0x2c50] sm:$0xff]  }
 0x581   : > { %21779 = vmatprep.mubr.bf16.mxu1 %v1878_v43  ;;  %v29961_v43 = vld [vmem:[%s30821_s9 + $0x2cd8] sm:$0xff]  }
 0x582   : > { %27481 = vmatpush3.bf16.msra.mxu0 %v29888_v54  ;;  %v29930_v54 = vld [vmem:[%s30821_s9 + $0x2b98] sm:$0xff]  }
 0x583   : > { %27482 = vmatprep.subr.bf16.mxu0 %v29890_v56  ;;  %27503 = vmatpush3.bf16.msra.mxu1 %v29889_v55  ;;  %v29931_v55 = vld [vmem:[%s30821_s9 + $0x2b60] sm:$0xff]  }
 0x584   : > { %27504 = vmatprep.subr.bf16.mxu1 %v29891_v57  ;;  %v29932_v56 = vld [vmem:[%s30821_s9 + $0x2be0] sm:$0xff]  }
 0x585   : > { %v29933_v57 = vld [vmem:[%s30821_s9 + $0x2b20] sm:$0xff]  }
 0x586   : > { %27483 = vmatpush3.bf16.msra.mxu0 %v29892_v58  ;;  %v29934_v58 = vld [vmem:[%s30821_s9 + $0x2ba0] sm:$0xff]  }
 0x587   : > { %27484 = vmatprep.subr.bf16.mxu0 %v29894_v60  ;;  %27505 = vmatpush3.bf16.msra.mxu1 %v29893_v59  ;;  %v29935_v59 = vld [vmem:[%s30821_s9 + $0x2b68] sm:$0xff]  }
 0x588   : > { %27506 = vmatprep.subr.bf16.mxu1 %v29895_v61  ;;  %v29936_v61 = vld [vmem:[%s30821_s9 + $0x2be8] sm:$0xff]  }
 0x58a   : > { %27485 = vmatpush3.bf16.msra.mxu0 %v29896_v62 }
 0x58b   : > { %27486 = vmatprep.subr.bf16.mxu0 %v29898_v0  ;;  %27507 = vmatpush3.bf16.msra.mxu1 %v29897_v63  ;;  %v29937_v63 = vld [vmem:[%s30821_s9 + $0x2b28] sm:$0xff]  }
 0x58c   : > { %27508 = vmatprep.subr.bf16.mxu1 %v29899_v1 }
 0x58e   : > { %27487 = vmatpush3.bf16.msra.mxu0 %v29900_v2 }
 0x58f   : > { %27488 = vmatprep.subr.bf16.mxu0 %v29902_v4  ;;  %27509 = vmatpush3.bf16.msra.mxu1 %v29901_v3  ;;  %v29938_v3 = vld [vmem:[%s30821_s9 + $0x2ba8] sm:$0xff]   ;;  %v29939_v4 = vld [vmem:[%s30821_s9 + $0x2b70] sm:$0xff]  }
 0x590   : > { %v27186_v5 = vpop.f32.mrb[140].mxu0  ;;  %27510 = vmatprep.subr.bf16.mxu1 %v29903_v6 }
 0x591   : > { %v27187_v7 = vpop.f32.mrb[141].mxu0  ;;  %v27208_v9 = vpop.f32.mrb[140].mxu1 }
 0x592   : > { %v27188_v10 = vadd.f32 %v27187_v7, %v27186_v5  ;;  %v27189_v11 = vpop.f32.mrb[142].mxu0  ;;  %v27209_v14 = vpop.f32.mrb[141].mxu1  ;;  %27489 = vmatpush3.bf16.msra.mxu0 %v29904_v8 }
 0x593   : > { %v27190_v15 = vpop.f32.mrb[143].mxu0  ;;  %v27210_v17 = vadd.f32 %v27209_v14, %v27208_v9  ;;  %v27211_v18 = vpop.f32.mrb[142].mxu1  ;;  %27490 = vmatprep.subr.bf16.mxu0 %v29906_v13  ;;  %27511 = vmatpush3.bf16.msra.mxu1 %v29905_v12  ;;  %v29941_v12 = vld [vmem:[%s30821_s9 + $0x2b30] sm:$0xff]  }
 0x594   : > { %v21182_v16 = vadd.f32 %v27188_v10, %v32400_v31  ;;  %v27212_v20 = vpop.f32.mrb[143].mxu1  ;;  %27512 = vmatprep.subr.bf16.mxu1 %v29907_v19  ;;  %v29913_v31 = vld [vmem:[%s30821_s9 + $0x2ab8] sm:$0xff]   ;;  %v29940_v10 = vld [vmem:[%s30821_s9 + $0x2bf0] sm:$0xff]  }
 0x595   : > { %v29942_v14 = vld [vmem:[%s30821_s9 + $0x2bb0] sm:$0xff]   ;;  %v29943_v15 = vld [vmem:[%s30821_s9 + $0x2b78] sm:$0xff]  }
 0x596   : > { %v32438_v22 = vadd.f32 %v27210_v17, %v21182_v16  ;;  %27491 = vmatpush3.bf16.msra.mxu0 %v29908_v21  ;;  %v29944_v16 = vld [vmem:[%s30821_s9 + $0x2bf8] sm:$0xff]  }
 0x597   : > { %27492 = vmatprep.subr.bf16.mxu0 %v29910_v24  ;;  %27513 = vmatpush3.bf16.msra.mxu1 %v29909_v23  ;;  %v29945_v17 = vld [vmem:[%s30821_s9 + $0x2b38] sm:$0xff]  }
 0x598   : > { %27514 = vmatprep.subr.bf16.mxu1 %v29911_v25  ;;  %v278_v18 = vld [vmem:[%s30831_s7 + $0x158] sm:$0xff]  ;;  %v29949_v25 = vld [vmem:[%s30821_s9 + $0x2cc0] sm:$0xff]  }
 0x599   : > { %v29946_v19 = vld [vmem:[%s30821_s9 + $0x2bb8] sm:$0xff]   ;;  %v1101_v20 = vrot.slane %v278_v18, %v30869_v42  ;;  %v1094_v21 = vcombine.high %v278_v18, %v278_v18  ;;  %v29983_v18 = vld [vmem:[%s30821_s9 + $0x2d00] sm:$0xff]  }
 0x59a   : > { %27493 = vmatpush3.bf16.msra.mxu0 %v29912_v26 }
 0x59b   : > { %27522 = vmatprep.subr.bf16.mxu0 %v29915_v30  ;;  %27515 = vmatpush3.bf16.msra.mxu1 %v29913_v31  ;;  %v1109_v23 = vcombine.high %v1101_v20, %v1101_v20  ;;  %v1108_v24 = vrot.slane %v1094_v21, %v30869_v42  ;;  %v1879_v26 = vpack.c.bf16 %v1101_v20, %v1101_v20  ;;  %v29951_v30 = vld [vmem:[%s30821_s9 + $0x2c80] sm:$0xff]  }
 0x59c   : > { %27544 = vmatprep.subr.bf16.mxu1 %v29916_v34  ;;  %v29953_v34 = vld [vmem:[%s30821_s9 + $0x2cc8] sm:$0xff]   ;;  %v29984_v21 = vld [vmem:[%s30821_s9 + $0x2d80] sm:$0xff]  }
 0x59d   : > { %21740 = vmatmul.mubr.bf16.vlgmr.msra.gmra.mrb[168].mxu0 %v1875_v35  ;;  %v1880_v28 = vpack.c.bf16 %v1109_v23, %v1109_v23  ;;  %v1110_v29 = vcombine.high %v1108_v24, %v1108_v24  ;;  %v1881_v31 = vpack.c.bf16 %v1108_v24, %v1108_v24  ;;  %v29954_v35 = vld [vmem:[%s30821_s9 + $0x2c08] sm:$0xff]  }
 0x59e   : > { %27523 = vmatpush3.bf16.msra.mxu0 %v29917_v36  ;;  %21780 = vmatmul.mubr.bf16.vlgmr.msra.gmra.mrb[168].mxu1 %v1877_v40  ;;  %v29955_v36 = vld [vmem:[%s30821_s9 + $0x2c88] sm:$0xff]   ;;  %v29959_v40 = vld [vmem:[%s30821_s9 + $0x2c90] sm:$0xff]  }
 0x59f   : > { %27524 = vmatprep.subr.bf16.mxu0 %v29919_v41  ;;  %27545 = vmatpush3.bf16.msra.mxu1 %v29918_v39  ;;  %v1882_v33 = vpack.c.bf16 %v1110_v29, %v1110_v29  ;;  %v29958_v39 = vld [vmem:[%s30821_s9 + $0x2c10] sm:$0xff]   ;;  %v29960_v41 = vld [vmem:[%s30821_s9 + $0x2c58] sm:$0xff]   ;;  %v29985_v23 = vld [vmem:[%s30821_s9 + $0x2d48] sm:$0xff]  }
 0x5a0   : > { %27546 = vmatprep.subr.bf16.mxu1 %v29920_v44  ;;  %21819 = vmatprep.mubr.bf16.mxu0 %v1880_v28  ;;  %v29962_v44 = vld [vmem:[%s30821_s9 + $0x2c18] sm:$0xff]   ;;  %v29989_v28 = vld [vmem:[%s30821_s9 + $0x2d50] sm:$0xff]  }
 0x5a1   : > { %21859 = vmatprep.mubr.bf16.mxu1 %v1882_v33  ;;  %v29990_v29 = vld [vmem:[%s30821_s9 + $0x2dd0] sm:$0xff]   ;;  %v29994_v33 = vld [vmem:[%s30821_s9 + $0x2dd8] sm:$0xff]  }
 0x5a2   : > { %27525 = vmatpush3.bf16.msra.mxu0 %v29921_v45  ;;  %v29963_v45 = vld [vmem:[%s30821_s9 + $0x2c98] sm:$0xff]  }
 0x5a3   : > { %27526 = vmatprep.subr.bf16.mxu0 %v29923_v47  ;;  %27547 = vmatpush3.bf16.msra.mxu1 %v29922_v46  ;;  %v29964_v46 = vld [vmem:[%s30821_s9 + $0x2c60] sm:$0xff]  }
 0x5a4   : > { %27548 = vmatprep.subr.bf16.mxu1 %v29924_v48  ;;  %v29965_v47 = vld [vmem:[%s30821_s9 + $0x2ce0] sm:$0xff]  }
 0x5a5   : > { %v29966_v48 = vld [vmem:[%s30821_s9 + $0x2c20] sm:$0xff]  }
 0x5a6   : > { %27527 = vmatpush3.bf16.msra.mxu0 %v29925_v49  ;;  %v29967_v49 = vld [vmem:[%s30821_s9 + $0x2ca0] sm:$0xff]  }
 0x5a7   : > { %27528 = vmatprep.subr.bf16.mxu0 %v29927_v51  ;;  %27549 = vmatpush3.bf16.msra.mxu1 %v29926_v50  ;;  %v29968_v50 = vld [vmem:[%s30821_s9 + $0x2c68] sm:$0xff]  }
 0x5a8   : > { %27550 = vmatprep.subr.bf16.mxu1 %v29928_v52  ;;  %v29969_v52 = vld [vmem:[%s30821_s9 + $0x2ce8] sm:$0xff]  }
 0x5aa   : > { %27529 = vmatpush3.bf16.msra.mxu0 %v29929_v53 }
 0x5ab   : > { %27530 = vmatprep.subr.bf16.mxu0 %v29931_v55  ;;  %27551 = vmatpush3.bf16.msra.mxu1 %v29930_v54  ;;  %v29970_v54 = vld [vmem:[%s30821_s9 + $0x2c28] sm:$0xff]  }
 0x5ac   : > { %27552 = vmatprep.subr.bf16.mxu1 %v29932_v56 }
 0x5ae   : > { %27531 = vmatpush3.bf16.msra.mxu0 %v29933_v57 }
 0x5af   : > { %27532 = vmatprep.subr.bf16.mxu0 %v29935_v59  ;;  %27553 = vmatpush3.bf16.msra.mxu1 %v29934_v58  ;;  %v29971_v59 = vld [vmem:[%s30821_s9 + $0x2ca8] sm:$0xff]  }
 0x5b0   : > { %v27230_v60 = vpop.f32.mrb[144].mxu0  ;;  %27554 = vmatprep.subr.bf16.mxu1 %v29936_v61  ;;  %v29972_v61 = vld [vmem:[%s30821_s9 + $0x2c70] sm:$0xff]  }
 0x5b1   : > { %v27231_v62 = vpop.f32.mrb[145].mxu0  ;;  %v27252_v0 = vpop.f32.mrb[144].mxu1 }
 0x5b2   : > { %v27232_v1 = vadd.f32 %v27231_v62, %v27230_v60  ;;  %v27233_v2 = vpop.f32.mrb[146].mxu0  ;;  %v27253_v5 = vpop.f32.mrb[145].mxu1  ;;  %27533 = vmatpush3.bf16.msra.mxu0 %v29937_v63 }
 0x5b3   : > { %v27234_v6 = vpop.f32.mrb[147].mxu0  ;;  %v27254_v8 = vadd.f32 %v27253_v5, %v27252_v0  ;;  %v27255_v9 = vpop.f32.mrb[146].mxu1  ;;  %27534 = vmatprep.subr.bf16.mxu0 %v29939_v4  ;;  %27555 = vmatpush3.bf16.msra.mxu1 %v29938_v3  ;;  %v29974_v3 = vld [vmem:[%s30821_s9 + $0x2c30] sm:$0xff]   ;;  %v29976_v5 = vld [vmem:[%s30821_s9 + $0x2c78] sm:$0xff]  }
 0x5b4   : > { %v21262_v7 = vadd.f32 %v27232_v1, %v32438_v22  ;;  %v27256_v11 = vpop.f32.mrb[147].mxu1  ;;  %27556 = vmatprep.subr.bf16.mxu1 %v29940_v10  ;;  %v29948_v22 = vld [vmem:[%s30821_s9 + $0x2c40] sm:$0xff]   ;;  %v29973_v1 = vld [vmem:[%s30821_s9 + $0x2cf0] sm:$0xff]  }
 0x5b5   : > { %v29975_v6 = vld [vmem:[%s30821_s9 + $0x2cb0] sm:$0xff]   ;;  %v279_v9 = vld [vmem:[%s30831_s7 + $0x160] sm:$0xff] }
 0x5b6   : > { %v32476_v13 = vadd.f32 %v27254_v8, %v21262_v7  ;;  %27535 = vmatpush3.bf16.msra.mxu0 %v29941_v12  ;;  %v29977_v7 = vld [vmem:[%s30821_s9 + $0x2cf8] sm:$0xff]   ;;  %v1118_v10 = vrot.slane %v279_v9, %v30869_v42  ;;  %v1111_v11 = vcombine.high %v279_v9, %v279_v9  ;;  %v29981_v12 = vld [vmem:[%s30821_s9 + $0x2d40] sm:$0xff]  }
 0x5b7   : > { %27536 = vmatprep.subr.bf16.mxu0 %v29943_v15  ;;  %27557 = vmatpush3.bf16.msra.mxu1 %v29942_v14  ;;  %v29978_v8 = vld [vmem:[%s30821_s9 + $0x2c38] sm:$0xff]   ;;  %v30016_v9 = vld [vmem:[%s30821_s9 + $0x2e00] sm:$0xff]  }
 0x5b8   : > { %27558 = vmatprep.subr.bf16.mxu1 %v29944_v16  ;;  %v1126_v14 = vcombine.high %v1118_v10, %v1118_v10  ;;  %v1125_v15 = vrot.slane %v1111_v11, %v30869_v42  ;;  %v29982_v16 = vld [vmem:[%s30821_s9 + $0x2dc0] sm:$0xff]  }
 0x5ba   : > { %27537 = vmatpush3.bf16.msra.mxu0 %v29945_v17  ;;  %v1883_v17 = vpack.c.bf16 %v1118_v10, %v1118_v10  ;;  %v1127_v20 = vcombine.high %v1125_v15, %v1125_v15 }
 0x5bb   : > { %27566 = vmatprep.subr.bf16.mxu0 %v29948_v22  ;;  %27559 = vmatpush3.bf16.msra.mxu1 %v29946_v19  ;;  %v1884_v19 = vpack.c.bf16 %v1126_v14, %v1126_v14  ;;  %v1885_v22 = vpack.c.bf16 %v1125_v15, %v1125_v15  ;;  %v30018_v14 = vld [vmem:[%s30821_s9 + $0x2e48] sm:$0xff]  }
 0x5bc   : > { %27588 = vmatprep.subr.bf16.mxu1 %v29949_v25  ;;  %v1886_v24 = vpack.c.bf16 %v1127_v20, %v1127_v20  ;;  %v29986_v25 = vld [vmem:[%s30821_s9 + $0x2dc8] sm:$0xff]   ;;  %v30023_v20 = vld [vmem:[%s30821_s9 + $0x2ed0] sm:$0xff]  }
 0x5bd   : > { %21820 = vmatmul.mubr.bf16.vlgmr.msra.gmra.mrb[172].mxu0 %v1879_v26  ;;  %v29987_v26 = vld [vmem:[%s30821_s9 + $0x2d08] sm:$0xff]  }
 0x5be   : > { %27567 = vmatpush3.bf16.msra.mxu0 %v29950_v27  ;;  %21860 = vmatmul.mubr.bf16.vlgmr.msra.gmra.mrb[172].mxu1 %v1881_v31  ;;  %v29988_v27 = vld [vmem:[%s30821_s9 + $0x2d88] sm:$0xff]   ;;  %v29992_v31 = vld [vmem:[%s30821_s9 + $0x2d90] sm:$0xff]  }
 0x5bf   : > { %27568 = vmatprep.subr.bf16.mxu0 %v29952_v32  ;;  %27589 = vmatpush3.bf16.msra.mxu1 %v29951_v30  ;;  %v29991_v30 = vld [vmem:[%s30821_s9 + $0x2d10] sm:$0xff]   ;;  %v29993_v32 = vld [vmem:[%s30821_s9 + $0x2d58] sm:$0xff]  }
 0x5c0   : > { %27590 = vmatprep.subr.bf16.mxu1 %v29953_v34  ;;  %21899 = vmatprep.mubr.bf16.mxu0 %v1884_v19  ;;  %v29995_v34 = vld [vmem:[%s30821_s9 + $0x2d18] sm:$0xff]   ;;  %v30022_v19 = vld [vmem:[%s30821_s9 + $0x2e50] sm:$0xff]  }
 0x5c1   : > { %21939 = vmatprep.mubr.bf16.mxu1 %v1886_v24  ;;  %v30027_v24 = vld [vmem:[%s30821_s9 + $0x2ed8] sm:$0xff]  }
 0x5c2   : > { %27569 = vmatpush3.bf16.msra.mxu0 %v29954_v35  ;;  %v29996_v35 = vld [vmem:[%s30821_s9 + $0x2d98] sm:$0xff]  }
 0x5c3   : > { %27570 = vmatprep.subr.bf16.mxu0 %v29956_v37  ;;  %27591 = vmatpush3.bf16.msra.mxu1 %v29955_v36  ;;  %v29997_v36 = vld [vmem:[%s30821_s9 + $0x2d60] sm:$0xff]  }
 0x5c4   : > { %27592 = vmatprep.subr.bf16.mxu1 %v29957_v38  ;;  %v29998_v37 = vld [vmem:[%s30821_s9 + $0x2de0] sm:$0xff]  }
 0x5c5   : > { %v29999_v38 = vld [vmem:[%s30821_s9 + $0x2d20] sm:$0xff]  }
 0x5c6   : > { %27571 = vmatpush3.bf16.msra.mxu0 %v29958_v39  ;;  %v30000_v39 = vld [vmem:[%s30821_s9 + $0x2da0] sm:$0xff]  }
 0x5c7   : > { %27572 = vmatprep.subr.bf16.mxu0 %v29960_v41  ;;  %27593 = vmatpush3.bf16.msra.mxu1 %v29959_v40  ;;  %v30001_v40 = vld [vmem:[%s30821_s9 + $0x2d68] sm:$0xff]  }
 0x5c8   : > { %27594 = vmatprep.subr.bf16.mxu1 %v29961_v43  ;;  %v30002_v43 = vld [vmem:[%s30821_s9 + $0x2de8] sm:$0xff]  }
 0x5ca   : > { %27573 = vmatpush3.bf16.msra.mxu0 %v29962_v44 }
 0x5cb   : > { %27574 = vmatprep.subr.bf16.mxu0 %v29964_v46  ;;  %27595 = vmatpush3.bf16.msra.mxu1 %v29963_v45  ;;  %v30003_v45 = vld [vmem:[%s30821_s9 + $0x2d28] sm:$0xff]  }
 0x5cc   : > { %27596 = vmatprep.subr.bf16.mxu1 %v29965_v47 }
 0x5ce   : > { %27575 = vmatpush3.bf16.msra.mxu0 %v29966_v48 }
 0x5cf   : > { %27576 = vmatprep.subr.bf16.mxu0 %v29968_v50  ;;  %27597 = vmatpush3.bf16.msra.mxu1 %v29967_v49  ;;  %v30004_v49 = vld [vmem:[%s30821_s9 + $0x2da8] sm:$0xff]   ;;  %v30005_v50 = vld [vmem:[%s30821_s9 + $0x2d70] sm:$0xff]  }
 0x5d0   : > { %v27274_v51 = vpop.f32.mrb[148].mxu0  ;;  %27598 = vmatprep.subr.bf16.mxu1 %v29969_v52 }
 0x5d1   : > { %v27275_v53 = vpop.f32.mrb[149].mxu0  ;;  %v27296_v55 = vpop.f32.mrb[148].mxu1 }
 0x5d2   : > { %v27276_v56 = vadd.f32 %v27275_v53, %v27274_v51  ;;  %v27277_v57 = vpop.f32.mrb[150].mxu0  ;;  %v27297_v58 = vpop.f32.mrb[149].mxu1  ;;  %27577 = vmatpush3.bf16.msra.mxu0 %v29970_v54 }
 0x5d3   : > { %v27278_v60 = vpop.f32.mrb[151].mxu0  ;;  %v27298_v63 = vadd.f32 %v27297_v58, %v27296_v55  ;;  %v27299_v0 = vpop.f32.mrb[150].mxu1  ;;  %27578 = vmatprep.subr.bf16.mxu0 %v29972_v61  ;;  %27599 = vmatpush3.bf16.msra.mxu1 %v29971_v59  ;;  %v30007_v58 = vld [vmem:[%s30821_s9 + $0x2d30] sm:$0xff]   ;;  %v30009_v61 = vld [vmem:[%s30821_s9 + $0x2d78] sm:$0xff]  }
 0x5d4   : > { %v21342_v62 = vadd.f32 %v27276_v56, %v32476_v13  ;;  %v27300_v2 = vpop.f32.mrb[151].mxu1  ;;  %27600 = vmatprep.subr.bf16.mxu1 %v29973_v1  ;;  %v29979_v13 = vld [vmem:[%s30821_s9 + $0x2cb8] sm:$0xff]   ;;  %v30006_v56 = vld [vmem:[%s30821_s9 + $0x2df0] sm:$0xff]   ;;  %v280_v0 = vld [vmem:[%s30831_s7 + $0x168] sm:$0xff] }
 0x5d5   : > { %v30008_v60 = vld [vmem:[%s30821_s9 + $0x2db0] sm:$0xff]   ;;  %v1135_v1 = vrot.slane %v280_v0, %v30869_v42  ;;  %v1128_v2 = vcombine.high %v280_v0, %v280_v0  ;;  %v30049_v0 = vld [vmem:[%s30821_s9 + $0x2f00] sm:$0xff]  }
 0x5d6   : > { %v32514_v4 = vadd.f32 %v27298_v63, %v21342_v62  ;;  %27579 = vmatpush3.bf16.msra.mxu0 %v29974_v3  ;;  %v30010_v62 = vld [vmem:[%s30821_s9 + $0x2df8] sm:$0xff]   ;;  %v30014_v3 = vld [vmem:[%s30821_s9 + $0x2e40] sm:$0xff]  }
 0x5d7   : > { %27580 = vmatprep.subr.bf16.mxu0 %v29976_v5  ;;  %27601 = vmatpush3.bf16.msra.mxu1 %v29975_v6  ;;  %v30011_v63 = vld [vmem:[%s30821_s9 + $0x2d38] sm:$0xff]   ;;  %v1143_v5 = vcombine.high %v1135_v1, %v1135_v1  ;;  %v1142_v6 = vrot.slane %v1128_v2, %v30869_v42 }
 0x5d8   : > { %27602 = vmatprep.subr.bf16.mxu1 %v29977_v7  ;;  %v30015_v7 = vld [vmem:[%s30821_s9 + $0x2ec0] sm:$0xff]  }
 0x5d9   : > { %v1888_v10 = vpack.c.bf16 %v1143_v5, %v1143_v5  ;;  %v1144_v11 = vcombine.high %v1142_v6, %v1142_v6  ;;  %v30051_v5 = vld [vmem:[%s30821_s9 + $0x2f48] sm:$0xff]  }
 0x5da   : > { %27581 = vmatpush3.bf16.msra.mxu0 %v29978_v8  ;;  %v1887_v8 = vpack.c.bf16 %v1135_v1, %v1135_v1 }
 0x5db   : > { %27610 = vmatprep.subr.bf16.mxu0 %v29981_v12  ;;  %27603 = vmatpush3.bf16.msra.mxu1 %v29979_v13  ;;  %v30017_v12 = vld [vmem:[%s30821_s9 + $0x2e80] sm:$0xff]   ;;  %v1889_v13 = vpack.c.bf16 %v1142_v6, %v1142_v6  ;;  %v1890_v15 = vpack.c.bf16 %v1144_v11, %v1144_v11  ;;  %v30056_v11 = vld [vmem:[%s30821_s9 + $0x2fd0] sm:$0xff]  }
 0x5dc   : > { %27632 = vmatprep.subr.bf16.mxu1 %v29982_v16  ;;  %v30019_v16 = vld [vmem:[%s30821_s9 + $0x2ec8] sm:$0xff]  }
 0x5dd   : > { %21900 = vmatmul.mubr.bf16.vlgmr.msra.gmra.mrb[176].mxu0 %v1883_v17  ;;  %v30020_v17 = vld [vmem:[%s30821_s9 + $0x2e08] sm:$0xff]  }
 0x5de   : > { %27611 = vmatpush3.bf16.msra.mxu0 %v29983_v18  ;;  %21940 = vmatmul.mubr.bf16.vlgmr.msra.gmra.mrb[176].mxu1 %v1885_v22  ;;  %v30021_v18 = vld [vmem:[%s30821_s9 + $0x2e88] sm:$0xff]   ;;  %v30025_v22 = vld [vmem:[%s30821_s9 + $0x2e90] sm:$0xff]  }
 0x5df   : > { %27612 = vmatprep.subr.bf16.mxu0 %v29985_v23  ;;  %27633 = vmatpush3.bf16.msra.mxu1 %v29984_v21  ;;  %v30024_v21 = vld [vmem:[%s30821_s9 + $0x2e10] sm:$0xff]   ;;  %v30026_v23 = vld [vmem:[%s30821_s9 + $0x2e58] sm:$0xff]  }
 0x5e0   : > { %27634 = vmatprep.subr.bf16.mxu1 %v29986_v25  ;;  %21979 = vmatprep.mubr.bf16.mxu0 %v1888_v10  ;;  %v30028_v25 = vld [vmem:[%s30821_s9 + $0x2e18] sm:$0xff]   ;;  %v30055_v10 = vld [vmem:[%s30821_s9 + $0x2f50] sm:$0xff]  }
 0x5e1   : > { %22019 = vmatprep.mubr.bf16.mxu1 %v1890_v15  ;;  %v30060_v15 = vld [vmem:[%s30821_s9 + $0x2fd8] sm:$0xff]  }
 0x5e2   : > { %27613 = vmatpush3.bf16.msra.mxu0 %v29987_v26  ;;  %v30029_v26 = vld [vmem:[%s30821_s9 + $0x2e98] sm:$0xff]  }
 0x5e3   : > { %27614 = vmatprep.subr.bf16.mxu0 %v29989_v28  ;;  %27635 = vmatpush3.bf16.msra.mxu1 %v29988_v27  ;;  %v30030_v27 = vld [vmem:[%s30821_s9 + $0x2e60] sm:$0xff]  }
 0x5e4   : > { %27636 = vmatprep.subr.bf16.mxu1 %v29990_v29  ;;  %v30031_v28 = vld [vmem:[%s30821_s9 + $0x2ee0] sm:$0xff]  }
 0x5e5   : > { %v30032_v29 = vld [vmem:[%s30821_s9 + $0x2e20] sm:$0xff]  }
 0x5e6   : > { %27615 = vmatpush3.bf16.msra.mxu0 %v29991_v30  ;;  %v30033_v30 = vld [vmem:[%s30821_s9 + $0x2ea0] sm:$0xff]  }
 0x5e7   : > { %27616 = vmatprep.subr.bf16.mxu0 %v29993_v32  ;;  %27637 = vmatpush3.bf16.msra.mxu1 %v29992_v31  ;;  %v30034_v31 = vld [vmem:[%s30821_s9 + $0x2e68] sm:$0xff]  }
 0x5e8   : > { %27638 = vmatprep.subr.bf16.mxu1 %v29994_v33  ;;  %v30035_v33 = vld [vmem:[%s30821_s9 + $0x2ee8] sm:$0xff]  }
 0x5ea   : > { %27617 = vmatpush3.bf16.msra.mxu0 %v29995_v34 }
 0x5eb   : > { %27618 = vmatprep.subr.bf16.mxu0 %v29997_v36  ;;  %27639 = vmatpush3.bf16.msra.mxu1 %v29996_v35  ;;  %v30036_v35 = vld [vmem:[%s30821_s9 + $0x2e28] sm:$0xff]  }
 0x5ec   : > { %27640 = vmatprep.subr.bf16.mxu1 %v29998_v37 }
 0x5ee   : > { %27619 = vmatpush3.bf16.msra.mxu0 %v29999_v38 }
 0x5ef   : > { %27620 = vmatprep.subr.bf16.mxu0 %v30001_v40  ;;  %27641 = vmatpush3.bf16.msra.mxu1 %v30000_v39  ;;  %v30037_v39 = vld [vmem:[%s30821_s9 + $0x2ea8] sm:$0xff]   ;;  %v30038_v40 = vld [vmem:[%s30821_s9 + $0x2e70] sm:$0xff]  }
 0x5f0   : > { %v27318_v41 = vpop.f32.mrb[152].mxu0  ;;  %27642 = vmatprep.subr.bf16.mxu1 %v30002_v43 }
 0x5f1   : > { %v27319_v44 = vpop.f32.mrb[153].mxu0  ;;  %v27340_v46 = vpop.f32.mrb[152].mxu1 }
 0x5f2   : > { %v27320_v47 = vadd.f32 %v27319_v44, %v27318_v41  ;;  %v27321_v48 = vpop.f32.mrb[154].mxu0  ;;  %v27341_v51 = vpop.f32.mrb[153].mxu1  ;;  %27621 = vmatpush3.bf16.msra.mxu0 %v30003_v45 }
 0x5f3   : > { %v27322_v52 = vpop.f32.mrb[155].mxu0  ;;  %v27342_v54 = vadd.f32 %v27341_v51, %v27340_v46  ;;  %v27343_v55 = vpop.f32.mrb[154].mxu1  ;;  %27622 = vmatprep.subr.bf16.mxu0 %v30005_v50  ;;  %27643 = vmatpush3.bf16.msra.mxu1 %v30004_v49  ;;  %v30040_v49 = vld [vmem:[%s30821_s9 + $0x2e30] sm:$0xff]  }
 0x5f4   : > { %v21422_v53 = vadd.f32 %v27320_v47, %v32514_v4  ;;  %v27344_v57 = vpop.f32.mrb[155].mxu1  ;;  %27644 = vmatprep.subr.bf16.mxu1 %v30006_v56  ;;  %v30012_v4 = vld [vmem:[%s30821_s9 + $0x2db8] sm:$0xff]   ;;  %v30039_v47 = vld [vmem:[%s30821_s9 + $0x2ef0] sm:$0xff]  }
 0x5f5   : > { %v30041_v51 = vld [vmem:[%s30821_s9 + $0x2eb0] sm:$0xff]   ;;  %v30042_v52 = vld [vmem:[%s30821_s9 + $0x2e78] sm:$0xff]  }
 0x5f6   : > { %v32552_v59 = vadd.f32 %v27342_v54, %v21422_v53  ;;  %27623 = vmatpush3.bf16.msra.mxu0 %v30007_v58  ;;  %v30043_v53 = vld [vmem:[%s30821_s9 + $0x2ef8] sm:$0xff]   ;;  %v281_v55 = vld [vmem:[%s30831_s7 + $0x170] sm:$0xff] }
 0x5f7   : > { %27624 = vmatprep.subr.bf16.mxu0 %v30009_v61  ;;  %27645 = vmatpush3.bf16.msra.mxu1 %v30008_v60  ;;  %v30044_v54 = vld [vmem:[%s30821_s9 + $0x2e38] sm:$0xff]   ;;  %v1152_v57 = vrot.slane %v281_v55, %v30869_v42  ;;  %v1145_v58 = vcombine.high %v281_v55, %v281_v55  ;;  %v30082_v55 = vld [vmem:[%s30821_s9 + $0x3000] sm:$0xff]  }
 0x5f8   : > { %27646 = vmatprep.subr.bf16.mxu1 %v30010_v62  ;;  %v30045_v56 = vld [vmem:[%s30821_s9 + $0x2eb8] sm:$0xff]   ;;  %v30048_v62 = vld [vmem:[%s30821_s9 + $0x2fc0] sm:$0xff]  }
 0x5f9   : > { %v1160_v60 = vcombine.high %v1152_v57, %v1152_v57  ;;  %v1159_v61 = vrot.slane %v1145_v58, %v30869_v42  ;;  %v30083_v58 = vld [vmem:[%s30821_s9 + $0x3080] sm:$0xff]  }
 0x5fa   : > { %27625 = vmatpush3.bf16.msra.mxu0 %v30011_v63  ;;  %v1891_v63 = vpack.c.bf16 %v1152_v57, %v1152_v57 }
 0x5fb   : > { %27654 = vmatprep.subr.bf16.mxu0 %v30014_v3  ;;  %27647 = vmatpush3.bf16.msra.mxu1 %v30012_v4  ;;  %v1892_v1 = vpack.c.bf16 %v1160_v60, %v1160_v60  ;;  %v1161_v2 = vcombine.high %v1159_v61, %v1159_v61  ;;  %v30050_v3 = vld [vmem:[%s30821_s9 + $0x2f80] sm:$0xff]   ;;  %v1893_v4 = vpack.c.bf16 %v1159_v61, %v1159_v61  ;;  %v30084_v60 = vld [vmem:[%s30821_s9 + $0x3048] sm:$0xff]  }
 0x5fc   : > { %27676 = vmatprep.subr.bf16.mxu1 %v30015_v7  ;;  %v30052_v7 = vld [vmem:[%s30821_s9 + $0x2fc8] sm:$0xff]  }
 0x5fd   : > { %21980 = vmatmul.mubr.bf16.vlgmr.msra.gmra.mrb[180].mxu0 %v1887_v8  ;;  %v1894_v6 = vpack.c.bf16 %v1161_v2, %v1161_v2  ;;  %v30053_v8 = vld [vmem:[%s30821_s9 + $0x2f08] sm:$0xff]   ;;  %v30089_v2 = vld [vmem:[%s30821_s9 + $0x30d0] sm:$0xff]  }
 0x5fe   : > { %27655 = vmatpush3.bf16.msra.mxu0 %v30016_v9  ;;  %22020 = vmatmul.mubr.bf16.vlgmr.msra.gmra.mrb[180].mxu1 %v1889_v13  ;;  %v30054_v9 = vld [vmem:[%s30821_s9 + $0x2f88] sm:$0xff]   ;;  %v30058_v13 = vld [vmem:[%s30821_s9 + $0x2f90] sm:$0xff]  }
 0x5ff   : > { %27656 = vmatprep.subr.bf16.mxu0 %v30018_v14  ;;  %27677 = vmatpush3.bf16.msra.mxu1 %v30017_v12  ;;  %v30057_v12 = vld [vmem:[%s30821_s9 + $0x2f10] sm:$0xff]   ;;  %v30059_v14 = vld [vmem:[%s30821_s9 + $0x2f58] sm:$0xff]  }
 0x600   : > { %27678 = vmatprep.subr.bf16.mxu1 %v30019_v16  ;;  %22059 = vmatprep.mubr.bf16.mxu0 %v1892_v1  ;;  %v30061_v16 = vld [vmem:[%s30821_s9 + $0x2f18] sm:$0xff]   ;;  %v30088_v1 = vld [vmem:[%s30821_s9 + $0x3050] sm:$0xff]  }
 0x601   : > { %22099 = vmatprep.mubr.bf16.mxu1 %v1894_v6  ;;  %v30093_v6 = vld [vmem:[%s30821_s9 + $0x30d8] sm:$0xff]  }
 0x602   : > { %27657 = vmatpush3.bf16.msra.mxu0 %v30020_v17  ;;  %v30062_v17 = vld [vmem:[%s30821_s9 + $0x2f98] sm:$0xff]  }
 0x603   : > { %27658 = vmatprep.subr.bf16.mxu0 %v30022_v19  ;;  %27679 = vmatpush3.bf16.msra.mxu1 %v30021_v18  ;;  %v30063_v18 = vld [vmem:[%s30821_s9 + $0x2f60] sm:$0xff]  }
 0x604   : > { %27680 = vmatprep.subr.bf16.mxu1 %v30023_v20  ;;  %v30064_v19 = vld [vmem:[%s30821_s9 + $0x2fe0] sm:$0xff]  }
 0x605   : > { %v30065_v20 = vld [vmem:[%s30821_s9 + $0x2f20] sm:$0xff]  }
 0x606   : > { %27659 = vmatpush3.bf16.msra.mxu0 %v30024_v21  ;;  %v30066_v21 = vld [vmem:[%s30821_s9 + $0x2fa0] sm:$0xff]  }
 0x607   : > { %27660 = vmatprep.subr.bf16.mxu0 %v30026_v23  ;;  %27681 = vmatpush3.bf16.msra.mxu1 %v30025_v22  ;;  %v30067_v22 = vld [vmem:[%s30821_s9 + $0x2f68] sm:$0xff]  }
 0x608   : > { %27682 = vmatprep.subr.bf16.mxu1 %v30027_v24  ;;  %v30068_v24 = vld [vmem:[%s30821_s9 + $0x2fe8] sm:$0xff]  }
 0x60a   : > { %27661 = vmatpush3.bf16.msra.mxu0 %v30028_v25 }
 0x60b   : > { %27662 = vmatprep.subr.bf16.mxu0 %v30030_v27  ;;  %27683 = vmatpush3.bf16.msra.mxu1 %v30029_v26  ;;  %v30069_v26 = vld [vmem:[%s30821_s9 + $0x2f28] sm:$0xff]  }
 0x60c   : > { %27684 = vmatprep.subr.bf16.mxu1 %v30031_v28 }
 0x60e   : > { %27663 = vmatpush3.bf16.msra.mxu0 %v30032_v29 }
 0x60f   : > { %27664 = vmatprep.subr.bf16.mxu0 %v30034_v31  ;;  %27685 = vmatpush3.bf16.msra.mxu1 %v30033_v30  ;;  %v30070_v31 = vld [vmem:[%s30821_s9 + $0x2fa8] sm:$0xff]  }
 0x610   : > { %v27362_v32 = vpop.f32.mrb[156].mxu0  ;;  %27686 = vmatprep.subr.bf16.mxu1 %v30035_v33  ;;  %v30071_v33 = vld [vmem:[%s30821_s9 + $0x2f70] sm:$0xff]  }
 0x611   : > { %v27363_v34 = vpop.f32.mrb[157].mxu0  ;;  %v27384_v36 = vpop.f32.mrb[156].mxu1 }
 0x612   : > { %v27364_v37 = vadd.f32 %v27363_v34, %v27362_v32  ;;  %v27365_v38 = vpop.f32.mrb[158].mxu0  ;;  %v27385_v41 = vpop.f32.mrb[157].mxu1  ;;  %27665 = vmatpush3.bf16.msra.mxu0 %v30036_v35 }
 0x613   : > { %v27366_v43 = vpop.f32.mrb[159].mxu0  ;;  %v27386_v45 = vadd.f32 %v27385_v41, %v27384_v36  ;;  %v27387_v46 = vpop.f32.mrb[158].mxu1  ;;  %27666 = vmatprep.subr.bf16.mxu0 %v30038_v40  ;;  %27687 = vmatpush3.bf16.msra.mxu1 %v30037_v39  ;;  %v30073_v39 = vld [vmem:[%s30821_s9 + $0x2f30] sm:$0xff]   ;;  %v30075_v41 = vld [vmem:[%s30821_s9 + $0x2f78] sm:$0xff]  }
 0x614   : > { %v21502_v44 = vadd.f32 %v27364_v37, %v32552_v59  ;;  %v27388_v48 = vpop.f32.mrb[159].mxu1  ;;  %27688 = vmatprep.subr.bf16.mxu1 %v30039_v47  ;;  %v30047_v59 = vld [vmem:[%s30821_s9 + $0x2f40] sm:$0xff]   ;;  %v30072_v37 = vld [vmem:[%s30821_s9 + $0x2ff0] sm:$0xff]  }
 0x615   : > { %v30074_v43 = vld [vmem:[%s30821_s9 + $0x2fb0] sm:$0xff]  }
 0x616   : > { %v32590_v50 = vadd.f32 %v27386_v45, %v21502_v44  ;;  %27667 = vmatpush3.bf16.msra.mxu0 %v30040_v49  ;;  %v30076_v44 = vld [vmem:[%s30821_s9 + $0x2ff8] sm:$0xff]   ;;  %v30080_v49 = vld [vmem:[%s30821_s9 + $0x3040] sm:$0xff]  }
 0x617   : > { %27668 = vmatprep.subr.bf16.mxu0 %v30042_v52  ;;  %27689 = vmatpush3.bf16.msra.mxu1 %v30041_v51  ;;  %v30077_v45 = vld [vmem:[%s30821_s9 + $0x2f38] sm:$0xff]  }
 0x618   : > { %27690 = vmatprep.subr.bf16.mxu1 %v30043_v53  ;;  %v282_v46 = vld [vmem:[%s30831_s7 + $0x178] sm:$0xff]  ;;  %v30081_v53 = vld [vmem:[%s30821_s9 + $0x30c0] sm:$0xff]  }
 0x619   : > { %v1169_v47 = vrot.slane %v282_v46, %v30869_v42  ;;  %v1162_v48 = vcombine.high %v282_v46, %v282_v46  ;;  %v30115_v46 = vld [vmem:[%s30821_s9 + $0x3100] sm:$0xff]  }
 0x61a   : > { %27669 = vmatpush3.bf16.msra.mxu0 %v30044_v54 }
 0x61b   : > { %27698 = vmatprep.subr.bf16.mxu0 %v30047_v59  ;;  %27691 = vmatpush3.bf16.msra.mxu1 %v30045_v56  ;;  %v1177_v51 = vcombine.high %v1169_v47, %v1169_v47  ;;  %v1176_v52 = vrot.slane %v1162_v48, %v30869_v42  ;;  %v1895_v54 = vpack.c.bf16 %v1169_v47, %v1169_v47 }
 0x61c   : > { %27720 = vmatprep.subr.bf16.mxu1 %v30048_v62  ;;  %v30085_v62 = vld [vmem:[%s30821_s9 + $0x30c8] sm:$0xff]  }
 0x61d   : > { %22060 = vmatmul.mubr.bf16.vlgmr.msra.gmra.mrb[184].mxu0 %v1891_v63  ;;  %v1896_v56 = vpack.c.bf16 %v1177_v51, %v1177_v51  ;;  %v1178_v57 = vcombine.high %v1176_v52, %v1176_v52  ;;  %v1897_v59 = vpack.c.bf16 %v1176_v52, %v1176_v52  ;;  %v30086_v63 = vld [vmem:[%s30821_s9 + $0x3008] sm:$0xff]  }
 0x61e   : > { %27699 = vmatpush3.bf16.msra.mxu0 %v30049_v0  ;;  %22100 = vmatmul.mubr.bf16.vlgmr.msra.gmra.mrb[184].mxu1 %v1893_v4  ;;  %v30087_v0 = vld [vmem:[%s30821_s9 + $0x3088] sm:$0xff]   ;;  %v30091_v4 = vld [vmem:[%s30821_s9 + $0x3090] sm:$0xff]  }
 0x61f   : > { %27700 = vmatprep.subr.bf16.mxu0 %v30051_v5  ;;  %27721 = vmatpush3.bf16.msra.mxu1 %v30050_v3  ;;  %v1898_v61 = vpack.c.bf16 %v1178_v57, %v1178_v57  ;;  %v30090_v3 = vld [vmem:[%s30821_s9 + $0x3010] sm:$0xff]   ;;  %v30092_v5 = vld [vmem:[%s30821_s9 + $0x3058] sm:$0xff]   ;;  %v30117_v51 = vld [vmem:[%s30821_s9 + $0x3148] sm:$0xff]  }
 0x620   : > { %27722 = vmatprep.subr.bf16.mxu1 %v30052_v7  ;;  %22139 = vmatprep.mubr.bf16.mxu0 %v1896_v56  ;;  %v30094_v7 = vld [vmem:[%s30821_s9 + $0x3018] sm:$0xff]   ;;  %v30121_v56 = vld [vmem:[%s30821_s9 + $0x3150] sm:$0xff]  }
 0x621   : > { %22179 = vmatprep.mubr.bf16.mxu1 %v1898_v61  ;;  %v30122_v57 = vld [vmem:[%s30821_s9 + $0x31d0] sm:$0xff]   ;;  %v30126_v61 = vld [vmem:[%s30821_s9 + $0x31d8] sm:$0xff]  }
 0x622   : > { %27701 = vmatpush3.bf16.msra.mxu0 %v30053_v8  ;;  %v30095_v8 = vld [vmem:[%s30821_s9 + $0x3098] sm:$0xff]  }
 0x623   : > { %27702 = vmatprep.subr.bf16.mxu0 %v30055_v10  ;;  %27723 = vmatpush3.bf16.msra.mxu1 %v30054_v9  ;;  %v30096_v9 = vld [vmem:[%s30821_s9 + $0x3060] sm:$0xff]  }
 0x624   : > { %27724 = vmatprep.subr.bf16.mxu1 %v30056_v11  ;;  %v30097_v10 = vld [vmem:[%s30821_s9 + $0x30e0] sm:$0xff]  }
 0x625   : > { %v30098_v11 = vld [vmem:[%s30821_s9 + $0x3020] sm:$0xff]  }
 0x626   : > { %27703 = vmatpush3.bf16.msra.mxu0 %v30057_v12  ;;  %v30099_v12 = vld [vmem:[%s30821_s9 + $0x30a0] sm:$0xff]  }
 0x627   : > { %27704 = vmatprep.subr.bf16.mxu0 %v30059_v14  ;;  %27725 = vmatpush3.bf16.msra.mxu1 %v30058_v13  ;;  %v30100_v13 = vld [vmem:[%s30821_s9 + $0x3068] sm:$0xff]  }
 0x628   : > { %27726 = vmatprep.subr.bf16.mxu1 %v30060_v15  ;;  %v30101_v15 = vld [vmem:[%s30821_s9 + $0x30e8] sm:$0xff]  }
 0x62a   : > { %27705 = vmatpush3.bf16.msra.mxu0 %v30061_v16 }
 0x62b   : > { %27706 = vmatprep.subr.bf16.mxu0 %v30063_v18  ;;  %27727 = vmatpush3.bf16.msra.mxu1 %v30062_v17  ;;  %v30102_v17 = vld [vmem:[%s30821_s9 + $0x3028] sm:$0xff]  }
 0x62c   : > { %27728 = vmatprep.subr.bf16.mxu1 %v30064_v19 }
 0x62e   : > { %27707 = vmatpush3.bf16.msra.mxu0 %v30065_v20 }
 0x62f   : > { %27708 = vmatprep.subr.bf16.mxu0 %v30067_v22  ;;  %27729 = vmatpush3.bf16.msra.mxu1 %v30066_v21  ;;  %v30103_v21 = vld [vmem:[%s30821_s9 + $0x30a8] sm:$0xff]   ;;  %v30104_v22 = vld [vmem:[%s30821_s9 + $0x3070] sm:$0xff]  }
 0x630   : > { %v27406_v23 = vpop.f32.mrb[160].mxu0  ;;  %27730 = vmatprep.subr.bf16.mxu1 %v30068_v24 }
 0x631   : > { %v27407_v25 = vpop.f32.mrb[161].mxu0  ;;  %v27428_v27 = vpop.f32.mrb[160].mxu1 }
 0x632   : > { %v27408_v28 = vadd.f32 %v27407_v25, %v27406_v23  ;;  %v27409_v29 = vpop.f32.mrb[162].mxu0  ;;  %v27429_v30 = vpop.f32.mrb[161].mxu1  ;;  %27709 = vmatpush3.bf16.msra.mxu0 %v30069_v26 }
 0x633   : > { %v27410_v32 = vpop.f32.mrb[163].mxu0  ;;  %v27430_v35 = vadd.f32 %v27429_v30, %v27428_v27  ;;  %v27431_v36 = vpop.f32.mrb[162].mxu1  ;;  %27710 = vmatprep.subr.bf16.mxu0 %v30071_v33  ;;  %27731 = vmatpush3.bf16.msra.mxu1 %v30070_v31  ;;  %v30106_v30 = vld [vmem:[%s30821_s9 + $0x3030] sm:$0xff]   ;;  %v30108_v33 = vld [vmem:[%s30821_s9 + $0x3078] sm:$0xff]  }
 0x634   : > { %v21582_v34 = vadd.f32 %v27408_v28, %v32590_v50  ;;  %v27432_v38 = vpop.f32.mrb[163].mxu1  ;;  %27732 = vmatprep.subr.bf16.mxu1 %v30072_v37  ;;  %v30078_v50 = vld [vmem:[%s30821_s9 + $0x2fb8] sm:$0xff]   ;;  %v30105_v28 = vld [vmem:[%s30821_s9 + $0x30f0] sm:$0xff]  }
 0x635   : > { %v30107_v32 = vld [vmem:[%s30821_s9 + $0x30b0] sm:$0xff]   ;;  %v283_v36 = vld [vmem:[%s30831_s7 + $0x180] sm:$0xff] }
 0x636   : > { %v32628_v40 = vadd.f32 %v27430_v35, %v21582_v34  ;;  %27711 = vmatpush3.bf16.msra.mxu0 %v30073_v39  ;;  %v30109_v34 = vld [vmem:[%s30821_s9 + $0x30f8] sm:$0xff]   ;;  %v1186_v37 = vrot.slane %v283_v36, %v30869_v42  ;;  %v1179_v38 = vcombine.high %v283_v36, %v283_v36  ;;  %v30113_v39 = vld [vmem:[%s30821_s9 + $0x3140] sm:$0xff]  }
 0x637   : > { %27712 = vmatprep.subr.bf16.mxu0 %v30075_v41  ;;  %27733 = vmatpush3.bf16.msra.mxu1 %v30074_v43  ;;  %v30110_v35 = vld [vmem:[%s30821_s9 + $0x3038] sm:$0xff]   ;;  %v30148_v36 = vld [vmem:[%s30821_s9 + $0x3200] sm:$0xff]  }
 0x638   : > { %27734 = vmatprep.subr.bf16.mxu1 %v30076_v44  ;;  %v1194_v41 = vcombine.high %v1186_v37, %v1186_v37  ;;  %v1193_v43 = vrot.slane %v1179_v38, %v30869_v42  ;;  %v30114_v44 = vld [vmem:[%s30821_s9 + $0x31c0] sm:$0xff]  }
 0x63a   : > { %27713 = vmatpush3.bf16.msra.mxu0 %v30077_v45  ;;  %v1899_v45 = vpack.c.bf16 %v1186_v37, %v1186_v37  ;;  %v1900_v47 = vpack.c.bf16 %v1194_v41, %v1194_v41  ;;  %v1195_v48 = vcombine.high %v1193_v43, %v1193_v43  ;;  %v30150_v41 = vld [vmem:[%s30821_s9 + $0x3248] sm:$0xff]  }
 0x63b   : > { %27742 = vmatprep.subr.bf16.mxu0 %v30080_v49  ;;  %27735 = vmatpush3.bf16.msra.mxu1 %v30078_v50  ;;  %v30116_v49 = vld [vmem:[%s30821_s9 + $0x3180] sm:$0xff]   ;;  %v1901_v50 = vpack.c.bf16 %v1193_v43, %v1193_v43 }
 0x63c   : > { %27764 = vmatprep.subr.bf16.mxu1 %v30081_v53  ;;  %v1902_v52 = vpack.c.bf16 %v1195_v48, %v1195_v48  ;;  %v30118_v53 = vld [vmem:[%s30821_s9 + $0x31c8] sm:$0xff]   ;;  %v30155_v48 = vld [vmem:[%s30821_s9 + $0x32d0] sm:$0xff]  }
 0x63d   : > { %22140 = vmatmul.mubr.bf16.vlgmr.msra.gmra.mrb[188].mxu0 %v1895_v54  ;;  %v30119_v54 = vld [vmem:[%s30821_s9 + $0x3108] sm:$0xff]  }
 0x63e   : > { %27743 = vmatpush3.bf16.msra.mxu0 %v30082_v55  ;;  %22180 = vmatmul.mubr.bf16.vlgmr.msra.gmra.mrb[188].mxu1 %v1897_v59  ;;  %v30120_v55 = vld [vmem:[%s30821_s9 + $0x3188] sm:$0xff]   ;;  %v30124_v59 = vld [vmem:[%s30821_s9 + $0x3190] sm:$0xff]  }
 0x63f   : > { %27744 = vmatprep.subr.bf16.mxu0 %v30084_v60  ;;  %27765 = vmatpush3.bf16.msra.mxu1 %v30083_v58  ;;  %v30123_v58 = vld [vmem:[%s30821_s9 + $0x3110] sm:$0xff]   ;;  %v30125_v60 = vld [vmem:[%s30821_s9 + $0x3158] sm:$0xff]  }
 0x640   : > { %27766 = vmatprep.subr.bf16.mxu1 %v30085_v62  ;;  %22219 = vmatprep.mubr.bf16.mxu0 %v1900_v47  ;;  %v30127_v62 = vld [vmem:[%s30821_s9 + $0x3118] sm:$0xff]   ;;  %v30154_v47 = vld [vmem:[%s30821_s9 + $0x3250] sm:$0xff]  }
 0x641   : > { %22259 = vmatprep.mubr.bf16.mxu1 %v1902_v52  ;;  %v30159_v52 = vld [vmem:[%s30821_s9 + $0x32d8] sm:$0xff]  }
 0x642   : > { %27745 = vmatpush3.bf16.msra.mxu0 %v30086_v63  ;;  %v30128_v63 = vld [vmem:[%s30821_s9 + $0x3198] sm:$0xff]  }
 0x643   : > { %27746 = vmatprep.subr.bf16.mxu0 %v30088_v1  ;;  %27767 = vmatpush3.bf16.msra.mxu1 %v30087_v0  ;;  %v30129_v0 = vld [vmem:[%s30821_s9 + $0x3160] sm:$0xff]  }
 0x644   : > { %27768 = vmatprep.subr.bf16.mxu1 %v30089_v2  ;;  %v30130_v1 = vld [vmem:[%s30821_s9 + $0x31e0] sm:$0xff]  }
 0x645   : > { %v30131_v2 = vld [vmem:[%s30821_s9 + $0x3120] sm:$0xff]  }
 0x646   : > { %27747 = vmatpush3.bf16.msra.mxu0 %v30090_v3  ;;  %v30132_v3 = vld [vmem:[%s30821_s9 + $0x31a0] sm:$0xff]  }
 0x647   : > { %27748 = vmatprep.subr.bf16.mxu0 %v30092_v5  ;;  %27769 = vmatpush3.bf16.msra.mxu1 %v30091_v4  ;;  %v30133_v4 = vld [vmem:[%s30821_s9 + $0x3168] sm:$0xff]  }
 0x648   : > { %27770 = vmatprep.subr.bf16.mxu1 %v30093_v6  ;;  %v30134_v6 = vld [vmem:[%s30821_s9 + $0x31e8] sm:$0xff]  }
 0x64a   : > { %27749 = vmatpush3.bf16.msra.mxu0 %v30094_v7 }
 0x64b   : > { %27750 = vmatprep.subr.bf16.mxu0 %v30096_v9  ;;  %27771 = vmatpush3.bf16.msra.mxu1 %v30095_v8  ;;  %v30135_v8 = vld [vmem:[%s30821_s9 + $0x3128] sm:$0xff]  }
 0x64c   : > { %27772 = vmatprep.subr.bf16.mxu1 %v30097_v10 }
 0x64e   : > { %27751 = vmatpush3.bf16.msra.mxu0 %v30098_v11 }
 0x64f   : > { %27752 = vmatprep.subr.bf16.mxu0 %v30100_v13  ;;  %27773 = vmatpush3.bf16.msra.mxu1 %v30099_v12  ;;  %v30136_v12 = vld [vmem:[%s30821_s9 + $0x31a8] sm:$0xff]   ;;  %v30137_v13 = vld [vmem:[%s30821_s9 + $0x3170] sm:$0xff]  }
 0x650   : > { %v27450_v14 = vpop.f32.mrb[164].mxu0  ;;  %27774 = vmatprep.subr.bf16.mxu1 %v30101_v15 }
 0x651   : > { %v27451_v16 = vpop.f32.mrb[165].mxu0  ;;  %v27472_v18 = vpop.f32.mrb[164].mxu1 }
 0x652   : > { %v27452_v19 = vadd.f32 %v27451_v16, %v27450_v14  ;;  %v27453_v20 = vpop.f32.mrb[166].mxu0  ;;  %v27473_v23 = vpop.f32.mrb[165].mxu1  ;;  %27753 = vmatpush3.bf16.msra.mxu0 %v30102_v17 }
 0x653   : > { %v27454_v24 = vpop.f32.mrb[167].mxu0  ;;  %v27474_v26 = vadd.f32 %v27473_v23, %v27472_v18  ;;  %v27475_v27 = vpop.f32.mrb[166].mxu1  ;;  %27754 = vmatprep.subr.bf16.mxu0 %v30104_v22  ;;  %27775 = vmatpush3.bf16.msra.mxu1 %v30103_v21  ;;  %v30139_v21 = vld [vmem:[%s30821_s9 + $0x3130] sm:$0xff]  }
 0x654   : > { %v21662_v25 = vadd.f32 %v27452_v19, %v32628_v40  ;;  %v27476_v29 = vpop.f32.mrb[167].mxu1  ;;  %27776 = vmatprep.subr.bf16.mxu1 %v30105_v28  ;;  %v30111_v40 = vld [vmem:[%s30821_s9 + $0x30b8] sm:$0xff]   ;;  %v30138_v19 = vld [vmem:[%s30821_s9 + $0x31f0] sm:$0xff]   ;;  %v284_v27 = vld [vmem:[%s30831_s7 + $0x188] sm:$0xff] }
 0x655   : > { %v30140_v23 = vld [vmem:[%s30821_s9 + $0x31b0] sm:$0xff]   ;;  %v30141_v24 = vld [vmem:[%s30821_s9 + $0x3178] sm:$0xff]   ;;  %v1203_v29 = vrot.slane %v284_v27, %v30869_v42 }
 0x656   : > { %v32666_v31 = vadd.f32 %v27474_v26, %v21662_v25  ;;  %27755 = vmatpush3.bf16.msra.mxu0 %v30106_v30  ;;  %v30142_v25 = vld [vmem:[%s30821_s9 + $0x31f8] sm:$0xff]   ;;  %v1196_v30 = vcombine.high %v284_v27, %v284_v27  ;;  %v30181_v27 = vld [vmem:[%s30821_s9 + $0x3300] sm:$0xff]  }
 0x657   : > { %27756 = vmatprep.subr.bf16.mxu0 %v30108_v33  ;;  %27777 = vmatpush3.bf16.msra.mxu1 %v30107_v32  ;;  %v30143_v26 = vld [vmem:[%s30821_s9 + $0x3138] sm:$0xff]   ;;  %v1211_v32 = vcombine.high %v1203_v29, %v1203_v29 }
 0x658   : > { %27778 = vmatprep.subr.bf16.mxu1 %v30109_v34  ;;  %v30144_v28 = vld [vmem:[%s30821_s9 + $0x31b8] sm:$0xff]   ;;  %v1210_v33 = vrot.slane %v1196_v30, %v30869_v42  ;;  %v30147_v34 = vld [vmem:[%s30821_s9 + $0x32c0] sm:$0xff]  }
 0x659   : > { %v1904_v37 = vpack.c.bf16 %v1211_v32, %v1211_v32  ;;  %v30182_v30 = vld [vmem:[%s30821_s9 + $0x3380] sm:$0xff]   ;;  %v30183_v32 = vld [vmem:[%s30821_s9 + $0x3348] sm:$0xff]  }
 0x65a   : > { %27757 = vmatpush3.bf16.msra.mxu0 %v30110_v35  ;;  %v1903_v35 = vpack.c.bf16 %v1203_v29, %v1203_v29  ;;  %v1212_v38 = vcombine.high %v1210_v33, %v1210_v33 }
 0x65b   : > { %27786 = vmatprep.subr.bf16.mxu0 %v30113_v39  ;;  %27779 = vmatpush3.bf16.msra.mxu1 %v30111_v40  ;;  %v30149_v39 = vld [vmem:[%s30821_s9 + $0x3280] sm:$0xff]   ;;  %v1905_v40 = vpack.c.bf16 %v1210_v33, %v1210_v33 }
 0x65c   : > { %27808 = vmatprep.subr.bf16.mxu1 %v30114_v44  ;;  %v1906_v43 = vpack.c.bf16 %v1212_v38, %v1212_v38  ;;  %v30151_v44 = vld [vmem:[%s30821_s9 + $0x32c8] sm:$0xff]   ;;  %v30188_v38 = vld [vmem:[%s30821_s9 + $0x33d0] sm:$0xff]  }
 0x65d   : > { %22220 = vmatmul.mubr.bf16.vlgmr.msra.gmra.mrb[192].mxu0 %v1899_v45  ;;  %v30152_v45 = vld [vmem:[%s30821_s9 + $0x3208] sm:$0xff]  }
 0x65e   : > { %27787 = vmatpush3.bf16.msra.mxu0 %v30115_v46  ;;  %22260 = vmatmul.mubr.bf16.vlgmr.msra.gmra.mrb[192].mxu1 %v1901_v50  ;;  %v30153_v46 = vld [vmem:[%s30821_s9 + $0x3288] sm:$0xff]   ;;  %v30157_v50 = vld [vmem:[%s30821_s9 + $0x3290] sm:$0xff]  }
 0x65f   : > { %27788 = vmatprep.subr.bf16.mxu0 %v30117_v51  ;;  %27809 = vmatpush3.bf16.msra.mxu1 %v30116_v49  ;;  %v30156_v49 = vld [vmem:[%s30821_s9 + $0x3210] sm:$0xff]   ;;  %v30158_v51 = vld [vmem:[%s30821_s9 + $0x3258] sm:$0xff]  }
 0x660   : > { %27810 = vmatprep.subr.bf16.mxu1 %v30118_v53  ;;  %22299 = vmatprep.mubr.bf16.mxu0 %v1904_v37  ;;  %v30160_v53 = vld [vmem:[%s30821_s9 + $0x3218] sm:$0xff]   ;;  %v30187_v37 = vld [vmem:[%s30821_s9 + $0x3350] sm:$0xff]  }
 0x661   : > { %22339 = vmatprep.mubr.bf16.mxu1 %v1906_v43  ;;  %v30192_v43 = vld [vmem:[%s30821_s9 + $0x33d8] sm:$0xff]  }
 0x662   : > { %27789 = vmatpush3.bf16.msra.mxu0 %v30119_v54  ;;  %v30161_v54 = vld [vmem:[%s30821_s9 + $0x3298] sm:$0xff]  }
 0x663   : > { %27790 = vmatprep.subr.bf16.mxu0 %v30121_v56  ;;  %27811 = vmatpush3.bf16.msra.mxu1 %v30120_v55  ;;  %v30162_v55 = vld [vmem:[%s30821_s9 + $0x3260] sm:$0xff]  }
 0x664   : > { %27812 = vmatprep.subr.bf16.mxu1 %v30122_v57  ;;  %v30163_v56 = vld [vmem:[%s30821_s9 + $0x32e0] sm:$0xff]  }
 0x665   : > { %v30164_v57 = vld [vmem:[%s30821_s9 + $0x3220] sm:$0xff]  }
 0x666   : > { %27791 = vmatpush3.bf16.msra.mxu0 %v30123_v58  ;;  %v30165_v58 = vld [vmem:[%s30821_s9 + $0x32a0] sm:$0xff]  }
 0x667   : > { %27792 = vmatprep.subr.bf16.mxu0 %v30125_v60  ;;  %27813 = vmatpush3.bf16.msra.mxu1 %v30124_v59  ;;  %v30166_v59 = vld [vmem:[%s30821_s9 + $0x3268] sm:$0xff]  }
 0x668   : > { %27814 = vmatprep.subr.bf16.mxu1 %v30126_v61  ;;  %v30167_v61 = vld [vmem:[%s30821_s9 + $0x32e8] sm:$0xff]  }
 0x66a   : > { %27793 = vmatpush3.bf16.msra.mxu0 %v30127_v62 }
 0x66b   : > { %27794 = vmatprep.subr.bf16.mxu0 %v30129_v0  ;;  %27815 = vmatpush3.bf16.msra.mxu1 %v30128_v63  ;;  %v30168_v63 = vld [vmem:[%s30821_s9 + $0x3228] sm:$0xff]  }
 0x66c   : > { %27816 = vmatprep.subr.bf16.mxu1 %v30130_v1 }
 0x66e   : > { %27795 = vmatpush3.bf16.msra.mxu0 %v30131_v2 }
 0x66f   : > { %27796 = vmatprep.subr.bf16.mxu0 %v30133_v4  ;;  %27817 = vmatpush3.bf16.msra.mxu1 %v30132_v3  ;;  %v30169_v4 = vld [vmem:[%s30821_s9 + $0x32a8] sm:$0xff]  }
 0x670   : > { %v27494_v5 = vpop.f32.mrb[168].mxu0  ;;  %27818 = vmatprep.subr.bf16.mxu1 %v30134_v6  ;;  %v30170_v6 = vld [vmem:[%s30821_s9 + $0x3270] sm:$0xff]  }
 0x671   : > { %v27495_v7 = vpop.f32.mrb[169].mxu0  ;;  %v27516_v9 = vpop.f32.mrb[168].mxu1 }
 0x672   : > { %v27496_v10 = vadd.f32 %v27495_v7, %v27494_v5  ;;  %v27497_v11 = vpop.f32.mrb[170].mxu0  ;;  %v27517_v14 = vpop.f32.mrb[169].mxu1  ;;  %27797 = vmatpush3.bf16.msra.mxu0 %v30135_v8 }
 0x673   : > { %v27498_v15 = vpop.f32.mrb[171].mxu0  ;;  %v27518_v17 = vadd.f32 %v27517_v14, %v27516_v9  ;;  %v27519_v18 = vpop.f32.mrb[170].mxu1  ;;  %27798 = vmatprep.subr.bf16.mxu0 %v30137_v13  ;;  %27819 = vmatpush3.bf16.msra.mxu1 %v30136_v12  ;;  %v30172_v12 = vld [vmem:[%s30821_s9 + $0x3230] sm:$0xff]   ;;  %v30174_v14 = vld [vmem:[%s30821_s9 + $0x3278] sm:$0xff]  }
 0x674   : > { %v21742_v16 = vadd.f32 %v27496_v10, %v32666_v31  ;;  %v27520_v20 = vpop.f32.mrb[171].mxu1  ;;  %27820 = vmatprep.subr.bf16.mxu1 %v30138_v19  ;;  %v30146_v31 = vld [vmem:[%s30821_s9 + $0x3240] sm:$0xff]   ;;  %v30171_v10 = vld [vmem:[%s30821_s9 + $0x32f0] sm:$0xff]  }
 0x675   : > { %v30173_v15 = vld [vmem:[%s30821_s9 + $0x32b0] sm:$0xff]  }
 0x676   : > { %v32704_v22 = vadd.f32 %v27518_v17, %v21742_v16  ;;  %27799 = vmatpush3.bf16.msra.mxu0 %v30139_v21  ;;  %v30175_v16 = vld [vmem:[%s30821_s9 + $0x32f8] sm:$0xff]   ;;  %v285_v18 = vld [vmem:[%s30831_s7 + $0x190] sm:$0xff]  ;;  %v30179_v21 = vld [vmem:[%s30821_s9 + $0x3340] sm:$0xff]  }
 0x677   : > { %27800 = vmatprep.subr.bf16.mxu0 %v30141_v24  ;;  %27821 = vmatpush3.bf16.msra.mxu1 %v30140_v23  ;;  %v30176_v17 = vld [vmem:[%s30821_s9 + $0x3238] sm:$0xff]   ;;  %v1220_v19 = vrot.slane %v285_v18, %v30869_v42  ;;  %v1213_v20 = vcombine.high %v285_v18, %v285_v18  ;;  %v30214_v18 = vld [vmem:[%s30821_s9 + $0x3400] sm:$0xff]  }
 0x678   : > { %27822 = vmatprep.subr.bf16.mxu1 %v30142_v25  ;;  %v30180_v25 = vld [vmem:[%s30821_s9 + $0x33c0] sm:$0xff]  }
 0x679   : > { %v1228_v23 = vcombine.high %v1220_v19, %v1220_v19  ;;  %v1227_v24 = vrot.slane %v1213_v20, %v30869_v42 }
 0x67a   : > { %27801 = vmatpush3.bf16.msra.mxu0 %v30143_v26  ;;  %v1907_v26 = vpack.c.bf16 %v1220_v19, %v1220_v19 }
 0x67b   : > { %27830 = vmatprep.subr.bf16.mxu0 %v30146_v31  ;;  %27823 = vmatpush3.bf16.msra.mxu1 %v30144_v28  ;;  %v1908_v28 = vpack.c.bf16 %v1228_v23, %v1228_v23  ;;  %v1229_v29 = vcombine.high %v1227_v24, %v1227_v24  ;;  %v1909_v31 = vpack.c.bf16 %v1227_v24, %v1227_v24  ;;  %v30216_v23 = vld [vmem:[%s30821_s9 + $0x3448] sm:$0xff]  }
 0x67c   : > { %27852 = vmatprep.subr.bf16.mxu1 %v30147_v34  ;;  %v30184_v34 = vld [vmem:[%s30821_s9 + $0x33c8] sm:$0xff]  }
 0x67d   : > { %22300 = vmatmul.mubr.bf16.vlgmr.msra.gmra.mrb[196].mxu0 %v1903_v35  ;;  %v1910_v33 = vpack.c.bf16 %v1229_v29, %v1229_v29  ;;  %v30185_v35 = vld [vmem:[%s30821_s9 + $0x3308] sm:$0xff]   ;;  %v30221_v29 = vld [vmem:[%s30821_s9 + $0x34d0] sm:$0xff]  }
 0x67e   : > { %27831 = vmatpush3.bf16.msra.mxu0 %v30148_v36  ;;  %22340 = vmatmul.mubr.bf16.vlgmr.msra.gmra.mrb[196].mxu1 %v1905_v40  ;;  %v30186_v36 = vld [vmem:[%s30821_s9 + $0x3388] sm:$0xff]   ;;  %v30190_v40 = vld [vmem:[%s30821_s9 + $0x3390] sm:$0xff]  }
 0x67f   : > { %27832 = vmatprep.subr.bf16.mxu0 %v30150_v41  ;;  %27853 = vmatpush3.bf16.msra.mxu1 %v30149_v39  ;;  %v30189_v39 = vld [vmem:[%s30821_s9 + $0x3310] sm:$0xff]   ;;  %v30191_v41 = vld [vmem:[%s30821_s9 + $0x3358] sm:$0xff]  }
 0x680   : > { %27854 = vmatprep.subr.bf16.mxu1 %v30151_v44  ;;  %22379 = vmatprep.mubr.bf16.mxu0 %v1908_v28  ;;  %v30193_v44 = vld [vmem:[%s30821_s9 + $0x3318] sm:$0xff]   ;;  %v30220_v28 = vld [vmem:[%s30821_s9 + $0x3450] sm:$0xff]  }
 0x681   : > { %22419 = vmatprep.mubr.bf16.mxu1 %v1910_v33  ;;  %v30225_v33 = vld [vmem:[%s30821_s9 + $0x34d8] sm:$0xff]  }
 0x682   : > { %27833 = vmatpush3.bf16.msra.mxu0 %v30152_v45  ;;  %v30194_v45 = vld [vmem:[%s30821_s9 + $0x3398] sm:$0xff]  }
 0x683   : > { %27834 = vmatprep.subr.bf16.mxu0 %v30154_v47  ;;  %27855 = vmatpush3.bf16.msra.mxu1 %v30153_v46  ;;  %v30195_v46 = vld [vmem:[%s30821_s9 + $0x3360] sm:$0xff]  }
 0x684   : > { %27856 = vmatprep.subr.bf16.mxu1 %v30155_v48  ;;  %v30196_v47 = vld [vmem:[%s30821_s9 + $0x33e0] sm:$0xff]  }
 0x685   : > { %v30197_v48 = vld [vmem:[%s30821_s9 + $0x3320] sm:$0xff]  }
 0x686   : > { %27835 = vmatpush3.bf16.msra.mxu0 %v30156_v49  ;;  %v30198_v49 = vld [vmem:[%s30821_s9 + $0x33a0] sm:$0xff]  }
 0x687   : > { %27836 = vmatprep.subr.bf16.mxu0 %v30158_v51  ;;  %27857 = vmatpush3.bf16.msra.mxu1 %v30157_v50  ;;  %v30199_v50 = vld [vmem:[%s30821_s9 + $0x3368] sm:$0xff]  }
 0x688   : > { %27858 = vmatprep.subr.bf16.mxu1 %v30159_v52  ;;  %v30200_v52 = vld [vmem:[%s30821_s9 + $0x33e8] sm:$0xff]  }
 0x68a   : > { %27837 = vmatpush3.bf16.msra.mxu0 %v30160_v53 }
 0x68b   : > { %27838 = vmatprep.subr.bf16.mxu0 %v30162_v55  ;;  %27859 = vmatpush3.bf16.msra.mxu1 %v30161_v54  ;;  %v30201_v54 = vld [vmem:[%s30821_s9 + $0x3328] sm:$0xff]  }
 0x68c   : > { %27860 = vmatprep.subr.bf16.mxu1 %v30163_v56 }
 0x68e   : > { %27839 = vmatpush3.bf16.msra.mxu0 %v30164_v57 }
 0x68f   : > { %27840 = vmatprep.subr.bf16.mxu0 %v30166_v59  ;;  %27861 = vmatpush3.bf16.msra.mxu1 %v30165_v58  ;;  %v30202_v58 = vld [vmem:[%s30821_s9 + $0x33a8] sm:$0xff]   ;;  %v30203_v59 = vld [vmem:[%s30821_s9 + $0x3370] sm:$0xff]  }
 0x690   : > { %v27538_v60 = vpop.f32.mrb[172].mxu0  ;;  %27862 = vmatprep.subr.bf16.mxu1 %v30167_v61 }
 0x691   : > { %v27539_v62 = vpop.f32.mrb[173].mxu0  ;;  %v27560_v0 = vpop.f32.mrb[172].mxu1 }
 0x692   : > { %v27540_v1 = vadd.f32 %v27539_v62, %v27538_v60  ;;  %v27541_v2 = vpop.f32.mrb[174].mxu0  ;;  %v27561_v3 = vpop.f32.mrb[173].mxu1  ;;  %27841 = vmatpush3.bf16.msra.mxu0 %v30168_v63 }
 0x693   : > { %v27542_v5 = vpop.f32.mrb[175].mxu0  ;;  %v27562_v8 = vadd.f32 %v27561_v3, %v27560_v0  ;;  %v27563_v9 = vpop.f32.mrb[174].mxu1  ;;  %27842 = vmatprep.subr.bf16.mxu0 %v30170_v6  ;;  %27863 = vmatpush3.bf16.msra.mxu1 %v30169_v4  ;;  %v30205_v3 = vld [vmem:[%s30821_s9 + $0x3330] sm:$0xff]   ;;  %v30207_v6 = vld [vmem:[%s30821_s9 + $0x3378] sm:$0xff]  }
 0x694   : > { %v21822_v7 = vadd.f32 %v27540_v1, %v32704_v22  ;;  %v27564_v11 = vpop.f32.mrb[175].mxu1  ;;  %27864 = vmatprep.subr.bf16.mxu1 %v30171_v10  ;;  %v30177_v22 = vld [vmem:[%s30821_s9 + $0x32b8] sm:$0xff]   ;;  %v30204_v1 = vld [vmem:[%s30821_s9 + $0x33f0] sm:$0xff]  }
 0x695   : > { %v30206_v5 = vld [vmem:[%s30821_s9 + $0x33b0] sm:$0xff]  }
 0x696   : > { %v32742_v13 = vadd.f32 %v27562_v8, %v21822_v7  ;;  %27843 = vmatpush3.bf16.msra.mxu0 %v30172_v12  ;;  %v30208_v7 = vld [vmem:[%s30821_s9 + $0x33f8] sm:$0xff]   ;;  %v30212_v12 = vld [vmem:[%s30821_s9 + $0x3440] sm:$0xff]  }
 0x697   : > { %27844 = vmatprep.subr.bf16.mxu0 %v30174_v14  ;;  %27865 = vmatpush3.bf16.msra.mxu1 %v30173_v15  ;;  %v30209_v8 = vld [vmem:[%s30821_s9 + $0x3338] sm:$0xff]  }
 0x698   : > { %27866 = vmatprep.subr.bf16.mxu1 %v30175_v16  ;;  %v286_v9 = vld [vmem:[%s30831_s7 + $0x198] sm:$0xff]  ;;  %v30213_v16 = vld [vmem:[%s30821_s9 + $0x34c0] sm:$0xff]  }
 0x699   : > { %v1237_v10 = vrot.slane %v286_v9, %v30869_v42  ;;  %v1230_v11 = vcombine.high %v286_v9, %v286_v9  ;;  %v30247_v9 = vld [vmem:[%s30821_s9 + $0x3500] sm:$0xff]  }
 0x69a   : > { %27845 = vmatpush3.bf16.msra.mxu0 %v30176_v17 }
 0x69b   : > { %27874 = vmatprep.subr.bf16.mxu0 %v30179_v21  ;;  %27867 = vmatpush3.bf16.msra.mxu1 %v30177_v22  ;;  %v1245_v14 = vcombine.high %v1237_v10, %v1237_v10  ;;  %v1244_v15 = vrot.slane %v1230_v11, %v30869_v42  ;;  %v1911_v17 = vpack.c.bf16 %v1237_v10, %v1237_v10  ;;  %v30215_v21 = vld [vmem:[%s30821_s9 + $0x3480] sm:$0xff]  }
 0x69c   : > { %27896 = vmatprep.subr.bf16.mxu1 %v30180_v25  ;;  %v30217_v25 = vld [vmem:[%s30821_s9 + $0x34c8] sm:$0xff]  }
 0x69d   : > { %22380 = vmatmul.mubr.bf16.vlgmr.msra.gmra.mrb[200].mxu0 %v1907_v26  ;;  %v1912_v19 = vpack.c.bf16 %v1245_v14, %v1245_v14  ;;  %v1246_v20 = vcombine.high %v1244_v15, %v1244_v15  ;;  %v1913_v22 = vpack.c.bf16 %v1244_v15, %v1244_v15  ;;  %v30218_v26 = vld [vmem:[%s30821_s9 + $0x3408] sm:$0xff]  }
 0x69e   : > { %27875 = vmatpush3.bf16.msra.mxu0 %v30181_v27  ;;  %22420 = vmatmul.mubr.bf16.vlgmr.msra.gmra.mrb[200].mxu1 %v1909_v31  ;;  %v30219_v27 = vld [vmem:[%s30821_s9 + $0x3488] sm:$0xff]   ;;  %v30223_v31 = vld [vmem:[%s30821_s9 + $0x3490] sm:$0xff]  }
 0x69f   : > { %27876 = vmatprep.subr.bf16.mxu0 %v30183_v32  ;;  %27897 = vmatpush3.bf16.msra.mxu1 %v30182_v30  ;;  %v1914_v24 = vpack.c.bf16 %v1246_v20, %v1246_v20  ;;  %v30222_v30 = vld [vmem:[%s30821_s9 + $0x3410] sm:$0xff]   ;;  %v30224_v32 = vld [vmem:[%s30821_s9 + $0x3458] sm:$0xff]   ;;  %v30249_v14 = vld [vmem:[%s30821_s9 + $0x3548] sm:$0xff]  }
 0x6a0   : > { %27898 = vmatprep.subr.bf16.mxu1 %v30184_v34  ;;  %22459 = vmatprep.mubr.bf16.mxu0 %v1912_v19  ;;  %v30226_v34 = vld [vmem:[%s30821_s9 + $0x3418] sm:$0xff]   ;;  %v30253_v19 = vld [vmem:[%s30821_s9 + $0x3550] sm:$0xff]  }
 0x6a1   : > { %22499 = vmatprep.mubr.bf16.mxu1 %v1914_v24  ;;  %v30254_v20 = vld [vmem:[%s30821_s9 + $0x35d0] sm:$0xff]   ;;  %v30258_v24 = vld [vmem:[%s30821_s9 + $0x35d8] sm:$0xff]  }
 0x6a2   : > { %27877 = vmatpush3.bf16.msra.mxu0 %v30185_v35  ;;  %v30227_v35 = vld [vmem:[%s30821_s9 + $0x3498] sm:$0xff]  }
 0x6a3   : > { %27878 = vmatprep.subr.bf16.mxu0 %v30187_v37  ;;  %27899 = vmatpush3.bf16.msra.mxu1 %v30186_v36  ;;  %v30228_v36 = vld [vmem:[%s30821_s9 + $0x3460] sm:$0xff]  }
 0x6a4   : > { %27900 = vmatprep.subr.bf16.mxu1 %v30188_v38  ;;  %v30229_v37 = vld [vmem:[%s30821_s9 + $0x34e0] sm:$0xff]  }
 0x6a5   : > { %v30230_v38 = vld [vmem:[%s30821_s9 + $0x3420] sm:$0xff]  }
 0x6a6   : > { %27879 = vmatpush3.bf16.msra.mxu0 %v30189_v39  ;;  %v30231_v39 = vld [vmem:[%s30821_s9 + $0x34a0] sm:$0xff]  }
 0x6a7   : > { %27880 = vmatprep.subr.bf16.mxu0 %v30191_v41  ;;  %27901 = vmatpush3.bf16.msra.mxu1 %v30190_v40  ;;  %v30232_v40 = vld [vmem:[%s30821_s9 + $0x3468] sm:$0xff]  }
 0x6a8   : > { %27902 = vmatprep.subr.bf16.mxu1 %v30192_v43  ;;  %v30233_v43 = vld [vmem:[%s30821_s9 + $0x34e8] sm:$0xff]  }
 0x6aa   : > { %27881 = vmatpush3.bf16.msra.mxu0 %v30193_v44 }
 0x6ab   : > { %27882 = vmatprep.subr.bf16.mxu0 %v30195_v46  ;;  %27903 = vmatpush3.bf16.msra.mxu1 %v30194_v45  ;;  %v30234_v45 = vld [vmem:[%s30821_s9 + $0x3428] sm:$0xff]  }
 0x6ac   : > { %27904 = vmatprep.subr.bf16.mxu1 %v30196_v47 }
 0x6ae   : > { %27883 = vmatpush3.bf16.msra.mxu0 %v30197_v48 }
 0x6af   : > { %27884 = vmatprep.subr.bf16.mxu0 %v30199_v50  ;;  %27905 = vmatpush3.bf16.msra.mxu1 %v30198_v49  ;;  %v30235_v49 = vld [vmem:[%s30821_s9 + $0x34a8] sm:$0xff]   ;;  %v30236_v50 = vld [vmem:[%s30821_s9 + $0x3470] sm:$0xff]  }
 0x6b0   : > { %v27582_v51 = vpop.f32.mrb[176].mxu0  ;;  %27906 = vmatprep.subr.bf16.mxu1 %v30200_v52 }
 0x6b1   : > { %v27583_v53 = vpop.f32.mrb[177].mxu0  ;;  %v27604_v55 = vpop.f32.mrb[176].mxu1 }
 0x6b2   : > { %v27584_v56 = vadd.f32 %v27583_v53, %v27582_v51  ;;  %v27585_v57 = vpop.f32.mrb[178].mxu0  ;;  %v27605_v60 = vpop.f32.mrb[177].mxu1  ;;  %27885 = vmatpush3.bf16.msra.mxu0 %v30201_v54 }
 0x6b3   : > { %v27586_v61 = vpop.f32.mrb[179].mxu0  ;;  %v27606_v63 = vadd.f32 %v27605_v60, %v27604_v55  ;;  %v27607_v0 = vpop.f32.mrb[178].mxu1  ;;  %27886 = vmatprep.subr.bf16.mxu0 %v30203_v59  ;;  %27907 = vmatpush3.bf16.msra.mxu1 %v30202_v58  ;;  %v30238_v58 = vld [vmem:[%s30821_s9 + $0x3430] sm:$0xff]  }
 0x6b4   : > { %v21902_v62 = vadd.f32 %v27584_v56, %v32742_v13  ;;  %v27608_v2 = vpop.f32.mrb[179].mxu1  ;;  %27908 = vmatprep.subr.bf16.mxu1 %v30204_v1  ;;  %v30210_v13 = vld [vmem:[%s30821_s9 + $0x33b8] sm:$0xff]   ;;  %v30237_v56 = vld [vmem:[%s30821_s9 + $0x34f0] sm:$0xff]  }
 0x6b5   : > { %v30239_v60 = vld [vmem:[%s30821_s9 + $0x34b0] sm:$0xff]   ;;  %v30240_v61 = vld [vmem:[%s30821_s9 + $0x3478] sm:$0xff]  }
 0x6b6   : > { %v32780_v4 = vadd.f32 %v27606_v63, %v21902_v62  ;;  %27887 = vmatpush3.bf16.msra.mxu0 %v30205_v3  ;;  %v30241_v62 = vld [vmem:[%s30821_s9 + $0x34f8] sm:$0xff]  }
 0x6b7   : > { %27888 = vmatprep.subr.bf16.mxu0 %v30207_v6  ;;  %27909 = vmatpush3.bf16.msra.mxu1 %v30206_v5  ;;  %v30242_v63 = vld [vmem:[%s30821_s9 + $0x3438] sm:$0xff]  }
 0x6b8   : > { %27910 = vmatprep.subr.bf16.mxu1 %v30208_v7  ;;  %v287_v0 = vld [vmem:[%s30831_s7 + $0x1a0] sm:$0xff] }
 0x6b9   : > { %v30243_v1 = vld [vmem:[%s30821_s9 + $0x34b8] sm:$0xff]   ;;  %v1254_v2 = vrot.slane %v287_v0, %v30869_v42  ;;  %v1247_v3 = vcombine.high %v287_v0, %v287_v0  ;;  %v30246_v7 = vld [vmem:[%s30821_s9 + $0x35c0] sm:$0xff]  }
 0x6ba   : > { %27889 = vmatpush3.bf16.msra.mxu0 %v30209_v8  ;;  %v30280_v0 = vld [vmem:[%s30821_s9 + $0x3600] sm:$0xff]  }
 0x6bb   : > { %27918 = vmatprep.subr.bf16.mxu0 %v30212_v12  ;;  %27911 = vmatpush3.bf16.msra.mxu1 %v30210_v13  ;;  %v1262_v5 = vcombine.high %v1254_v2, %v1254_v2  ;;  %v1261_v6 = vrot.slane %v1247_v3, %v30869_v42  ;;  %v1915_v8 = vpack.c.bf16 %v1254_v2, %v1254_v2  ;;  %v30248_v12 = vld [vmem:[%s30821_s9 + $0x3580] sm:$0xff]  }
 0x6bc   : > { %27940 = vmatprep.subr.bf16.mxu1 %v30213_v16  ;;  %v30250_v16 = vld [vmem:[%s30821_s9 + $0x35c8] sm:$0xff]   ;;  %v30281_v3 = vld [vmem:[%s30821_s9 + $0x3680] sm:$0xff]  }
 0x6bd   : > { %22460 = vmatmul.mubr.bf16.vlgmr.msra.gmra.mrb[204].mxu0 %v1911_v17  ;;  %v1916_v10 = vpack.c.bf16 %v1262_v5, %v1262_v5  ;;  %v1263_v11 = vcombine.high %v1261_v6, %v1261_v6  ;;  %v1917_v13 = vpack.c.bf16 %v1261_v6, %v1261_v6  ;;  %v30251_v17 = vld [vmem:[%s30821_s9 + $0x3508] sm:$0xff]  }
 0x6be   : > { %27919 = vmatpush3.bf16.msra.mxu0 %v30214_v18  ;;  %22500 = vmatmul.mubr.bf16.vlgmr.msra.gmra.mrb[204].mxu1 %v1913_v22  ;;  %v30252_v18 = vld [vmem:[%s30821_s9 + $0x3588] sm:$0xff]   ;;  %v30256_v22 = vld [vmem:[%s30821_s9 + $0x3590] sm:$0xff]  }
 0x6bf   : > { %27920 = vmatprep.subr.bf16.mxu0 %v30216_v23  ;;  %27941 = vmatpush3.bf16.msra.mxu1 %v30215_v21  ;;  %v1918_v15 = vpack.c.bf16 %v1263_v11, %v1263_v11  ;;  %v30255_v21 = vld [vmem:[%s30821_s9 + $0x3510] sm:$0xff]   ;;  %v30257_v23 = vld [vmem:[%s30821_s9 + $0x3558] sm:$0xff]   ;;  %v30282_v5 = vld [vmem:[%s30821_s9 + $0x3648] sm:$0xff]  }
 0x6c0   : > { %27942 = vmatprep.subr.bf16.mxu1 %v30217_v25  ;;  %22539 = vmatprep.mubr.bf16.mxu0 %v1916_v10  ;;  %v30259_v25 = vld [vmem:[%s30821_s9 + $0x3518] sm:$0xff]   ;;  %v30286_v10 = vld [vmem:[%s30821_s9 + $0x3650] sm:$0xff]  }
 0x6c1   : > { %22579 = vmatprep.mubr.bf16.mxu1 %v1918_v15  ;;  %v30287_v11 = vld [vmem:[%s30821_s9 + $0x36d0] sm:$0xff]   ;;  %v30291_v15 = vld [vmem:[%s30821_s9 + $0x36d8] sm:$0xff]  }
 0x6c2   : > { %27921 = vmatpush3.bf16.msra.mxu0 %v30218_v26  ;;  %v30260_v26 = vld [vmem:[%s30821_s9 + $0x3598] sm:$0xff]  }
 0x6c3   : > { %27922 = vmatprep.subr.bf16.mxu0 %v30220_v28  ;;  %27943 = vmatpush3.bf16.msra.mxu1 %v30219_v27  ;;  %v30261_v27 = vld [vmem:[%s30821_s9 + $0x3560] sm:$0xff]  }
 0x6c4   : > { %27944 = vmatprep.subr.bf16.mxu1 %v30221_v29  ;;  %v30262_v28 = vld [vmem:[%s30821_s9 + $0x35e0] sm:$0xff]  }
 0x6c5   : > { %v30263_v29 = vld [vmem:[%s30821_s9 + $0x3520] sm:$0xff]  }
 0x6c6   : > { %27923 = vmatpush3.bf16.msra.mxu0 %v30222_v30  ;;  %v30264_v30 = vld [vmem:[%s30821_s9 + $0x35a0] sm:$0xff]  }
 0x6c7   : > { %27924 = vmatprep.subr.bf16.mxu0 %v30224_v32  ;;  %27945 = vmatpush3.bf16.msra.mxu1 %v30223_v31  ;;  %v30265_v31 = vld [vmem:[%s30821_s9 + $0x3568] sm:$0xff]  }
 0x6c8   : > { %27946 = vmatprep.subr.bf16.mxu1 %v30225_v33  ;;  %v30266_v33 = vld [vmem:[%s30821_s9 + $0x35e8] sm:$0xff]  }
 0x6ca   : > { %27925 = vmatpush3.bf16.msra.mxu0 %v30226_v34 }
 0x6cb   : > { %27926 = vmatprep.subr.bf16.mxu0 %v30228_v36  ;;  %27947 = vmatpush3.bf16.msra.mxu1 %v30227_v35  ;;  %v30267_v35 = vld [vmem:[%s30821_s9 + $0x3528] sm:$0xff]  }
 0x6cc   : > { %27948 = vmatprep.subr.bf16.mxu1 %v30229_v37 }
 0x6ce   : > { %27927 = vmatpush3.bf16.msra.mxu0 %v30230_v38 }
 0x6cf   : > { %27928 = vmatprep.subr.bf16.mxu0 %v30232_v40  ;;  %27949 = vmatpush3.bf16.msra.mxu1 %v30231_v39  ;;  %v30268_v40 = vld [vmem:[%s30821_s9 + $0x35a8] sm:$0xff]  }
 0x6d0   : > { %v27626_v41 = vpop.f32.mrb[180].mxu0  ;;  %27950 = vmatprep.subr.bf16.mxu1 %v30233_v43  ;;  %v30269_v43 = vld [vmem:[%s30821_s9 + $0x3570] sm:$0xff]  }
 0x6d1   : > { %v27627_v44 = vpop.f32.mrb[181].mxu0  ;;  %v27648_v46 = vpop.f32.mrb[180].mxu1 }
 0x6d2   : > { %v27628_v47 = vadd.f32 %v27627_v44, %v27626_v41  ;;  %v27629_v48 = vpop.f32.mrb[182].mxu0  ;;  %v27649_v51 = vpop.f32.mrb[181].mxu1  ;;  %27929 = vmatpush3.bf16.msra.mxu0 %v30234_v45 }
 0x6d3   : > { %v27630_v52 = vpop.f32.mrb[183].mxu0  ;;  %v27650_v54 = vadd.f32 %v27649_v51, %v27648_v46  ;;  %v27651_v55 = vpop.f32.mrb[182].mxu1  ;;  %27930 = vmatprep.subr.bf16.mxu0 %v30236_v50  ;;  %27951 = vmatpush3.bf16.msra.mxu1 %v30235_v49  ;;  %v30271_v49 = vld [vmem:[%s30821_s9 + $0x3530] sm:$0xff]   ;;  %v30273_v51 = vld [vmem:[%s30821_s9 + $0x3578] sm:$0xff]  }
 0x6d4   : > { %v21982_v53 = vadd.f32 %v27628_v47, %v32780_v4  ;;  %v27652_v57 = vpop.f32.mrb[183].mxu1  ;;  %27952 = vmatprep.subr.bf16.mxu1 %v30237_v56  ;;  %v30245_v4 = vld [vmem:[%s30821_s9 + $0x3540] sm:$0xff]   ;;  %v30270_v47 = vld [vmem:[%s30821_s9 + $0x35f0] sm:$0xff]  }
 0x6d5   : > { %v30272_v52 = vld [vmem:[%s30821_s9 + $0x35b0] sm:$0xff]   ;;  %v288_v55 = vld [vmem:[%s30831_s7 + $0x1a8] sm:$0xff] }
 0x6d6   : > { %v32818_v59 = vadd.f32 %v27650_v54, %v21982_v53  ;;  %27931 = vmatpush3.bf16.msra.mxu0 %v30238_v58  ;;  %v30274_v53 = vld [vmem:[%s30821_s9 + $0x35f8] sm:$0xff]   ;;  %v1271_v56 = vrot.slane %v288_v55, %v30869_v42  ;;  %v1264_v57 = vcombine.high %v288_v55, %v288_v55  ;;  %v30278_v58 = vld [vmem:[%s30821_s9 + $0x3640] sm:$0xff]  }
 0x6d7   : > { %27932 = vmatprep.subr.bf16.mxu0 %v30240_v61  ;;  %27953 = vmatpush3.bf16.msra.mxu1 %v30239_v60  ;;  %v30275_v54 = vld [vmem:[%s30821_s9 + $0x3538] sm:$0xff]   ;;  %v30313_v55 = vld [vmem:[%s30821_s9 + $0x3700] sm:$0xff]  }
 0x6d8   : > { %27954 = vmatprep.subr.bf16.mxu1 %v30241_v62  ;;  %v1279_v60 = vcombine.high %v1271_v56, %v1271_v56  ;;  %v1278_v61 = vrot.slane %v1264_v57, %v30869_v42  ;;  %v30279_v62 = vld [vmem:[%s30821_s9 + $0x36c0] sm:$0xff]  }
 0x6da   : > { %27933 = vmatpush3.bf16.msra.mxu0 %v30242_v63  ;;  %v1919_v63 = vpack.c.bf16 %v1271_v56, %v1271_v56  ;;  %v1280_v2 = vcombine.high %v1278_v61, %v1278_v61 }
 0x6db   : > { %27962 = vmatprep.subr.bf16.mxu0 %v30245_v4  ;;  %27955 = vmatpush3.bf16.msra.mxu1 %v30243_v1  ;;  %v1920_v1 = vpack.c.bf16 %v1279_v60, %v1279_v60  ;;  %v1921_v4 = vpack.c.bf16 %v1278_v61, %v1278_v61  ;;  %v30315_v60 = vld [vmem:[%s30821_s9 + $0x3748] sm:$0xff]  }
 0x6dc   : > { %27984 = vmatprep.subr.bf16.mxu1 %v30246_v7  ;;  %v1922_v6 = vpack.c.bf16 %v1280_v2, %v1280_v2  ;;  %v30283_v7 = vld [vmem:[%s30821_s9 + $0x36c8] sm:$0xff]   ;;  %v30320_v2 = vld [vmem:[%s30821_s9 + $0x37d0] sm:$0xff]  }
 0x6dd   : > { %22540 = vmatmul.mubr.bf16.vlgmr.msra.gmra.mrb[208].mxu0 %v1915_v8  ;;  %v30284_v8 = vld [vmem:[%s30821_s9 + $0x3608] sm:$0xff]  }
 0x6de   : > { %27963 = vmatpush3.bf16.msra.mxu0 %v30247_v9  ;;  %22580 = vmatmul.mubr.bf16.vlgmr.msra.gmra.mrb[208].mxu1 %v1917_v13  ;;  %v30285_v9 = vld [vmem:[%s30821_s9 + $0x3688] sm:$0xff]   ;;  %v30289_v13 = vld [vmem:[%s30821_s9 + $0x3690] sm:$0xff]  }
 0x6df   : > { %27964 = vmatprep.subr.bf16.mxu0 %v30249_v14  ;;  %27985 = vmatpush3.bf16.msra.mxu1 %v30248_v12  ;;  %v30288_v12 = vld [vmem:[%s30821_s9 + $0x3610] sm:$0xff]   ;;  %v30290_v14 = vld [vmem:[%s30821_s9 + $0x3658] sm:$0xff]  }
 0x6e0   : > { %27986 = vmatprep.subr.bf16.mxu1 %v30250_v16  ;;  %22619 = vmatprep.mubr.bf16.mxu0 %v1920_v1  ;;  %v30292_v16 = vld [vmem:[%s30821_s9 + $0x3618] sm:$0xff]   ;;  %v30319_v1 = vld [vmem:[%s30821_s9 + $0x3750] sm:$0xff]  }
 0x6e1   : > { %22659 = vmatprep.mubr.bf16.mxu1 %v1922_v6  ;;  %v30324_v6 = vld [vmem:[%s30821_s9 + $0x37d8] sm:$0xff]  }
 0x6e2   : > { %27965 = vmatpush3.bf16.msra.mxu0 %v30251_v17  ;;  %v30293_v17 = vld [vmem:[%s30821_s9 + $0x3698] sm:$0xff]  }
 0x6e3   : > { %27966 = vmatprep.subr.bf16.mxu0 %v30253_v19  ;;  %27987 = vmatpush3.bf16.msra.mxu1 %v30252_v18  ;;  %v30294_v18 = vld [vmem:[%s30821_s9 + $0x3660] sm:$0xff]  }
 0x6e4   : > { %27988 = vmatprep.subr.bf16.mxu1 %v30254_v20  ;;  %v30295_v19 = vld [vmem:[%s30821_s9 + $0x36e0] sm:$0xff]  }
 0x6e5   : > { %v30296_v20 = vld [vmem:[%s30821_s9 + $0x3620] sm:$0xff]  }
 0x6e6   : > { %27967 = vmatpush3.bf16.msra.mxu0 %v30255_v21  ;;  %v30297_v21 = vld [vmem:[%s30821_s9 + $0x36a0] sm:$0xff]  }
 0x6e7   : > { %27968 = vmatprep.subr.bf16.mxu0 %v30257_v23  ;;  %27989 = vmatpush3.bf16.msra.mxu1 %v30256_v22  ;;  %v30298_v22 = vld [vmem:[%s30821_s9 + $0x3668] sm:$0xff]  }
 0x6e8   : > { %27990 = vmatprep.subr.bf16.mxu1 %v30258_v24  ;;  %v30299_v24 = vld [vmem:[%s30821_s9 + $0x36e8] sm:$0xff]  }
 0x6ea   : > { %27969 = vmatpush3.bf16.msra.mxu0 %v30259_v25 }
 0x6eb   : > { %27970 = vmatprep.subr.bf16.mxu0 %v30261_v27  ;;  %27991 = vmatpush3.bf16.msra.mxu1 %v30260_v26  ;;  %v30300_v26 = vld [vmem:[%s30821_s9 + $0x3628] sm:$0xff]  }
 0x6ec   : > { %27992 = vmatprep.subr.bf16.mxu1 %v30262_v28 }
 0x6ee   : > { %27971 = vmatpush3.bf16.msra.mxu0 %v30263_v29 }
 0x6ef   : > { %27972 = vmatprep.subr.bf16.mxu0 %v30265_v31  ;;  %27993 = vmatpush3.bf16.msra.mxu1 %v30264_v30  ;;  %v30301_v30 = vld [vmem:[%s30821_s9 + $0x36a8] sm:$0xff]   ;;  %v30302_v31 = vld [vmem:[%s30821_s9 + $0x3670] sm:$0xff]  }
 0x6f0   : > { %v27670_v32 = vpop.f32.mrb[184].mxu0  ;;  %27994 = vmatprep.subr.bf16.mxu1 %v30266_v33 }
 0x6f1   : > { %v27671_v34 = vpop.f32.mrb[185].mxu0  ;;  %v27692_v36 = vpop.f32.mrb[184].mxu1 }
 0x6f2   : > { %v27672_v37 = vadd.f32 %v27671_v34, %v27670_v32  ;;  %v27673_v38 = vpop.f32.mrb[186].mxu0  ;;  %v27693_v39 = vpop.f32.mrb[185].mxu1  ;;  %27973 = vmatpush3.bf16.msra.mxu0 %v30267_v35 }
 0x6f3   : > { %v27674_v41 = vpop.f32.mrb[187].mxu0  ;;  %v27694_v45 = vadd.f32 %v27693_v39, %v27692_v36  ;;  %v27695_v46 = vpop.f32.mrb[186].mxu1  ;;  %27974 = vmatprep.subr.bf16.mxu0 %v30269_v43  ;;  %27995 = vmatpush3.bf16.msra.mxu1 %v30268_v40  ;;  %v30304_v39 = vld [vmem:[%s30821_s9 + $0x3630] sm:$0xff]   ;;  %v30306_v43 = vld [vmem:[%s30821_s9 + $0x3678] sm:$0xff]  }
 0x6f4   : > { %v22062_v44 = vadd.f32 %v27672_v37, %v32818_v59  ;;  %v27696_v48 = vpop.f32.mrb[187].mxu1  ;;  %27996 = vmatprep.subr.bf16.mxu1 %v30270_v47  ;;  %v30276_v59 = vld [vmem:[%s30821_s9 + $0x35b8] sm:$0xff]   ;;  %v30303_v37 = vld [vmem:[%s30821_s9 + $0x36f0] sm:$0xff]  }
 0x6f5   : > { %v30305_v41 = vld [vmem:[%s30821_s9 + $0x36b0] sm:$0xff]  }
 0x6f6   : > { %v32856_v50 = vadd.f32 %v27694_v45, %v22062_v44  ;;  %27975 = vmatpush3.bf16.msra.mxu0 %v30271_v49  ;;  %v30307_v44 = vld [vmem:[%s30821_s9 + $0x36f8] sm:$0xff]   ;;  %v289_v46 = vld [vmem:[%s30831_s7 + $0x1b0] sm:$0xff]  ;;  %v30311_v49 = vld [vmem:[%s30821_s9 + $0x3740] sm:$0xff]  }
 0x6f7   : > { %27976 = vmatprep.subr.bf16.mxu0 %v30273_v51  ;;  %27997 = vmatpush3.bf16.msra.mxu1 %v30272_v52  ;;  %v30308_v45 = vld [vmem:[%s30821_s9 + $0x3638] sm:$0xff]   ;;  %v1288_v47 = vrot.slane %v289_v46, %v30869_v42  ;;  %v1281_v48 = vcombine.high %v289_v46, %v289_v46  ;;  %v30346_v46 = vld [vmem:[%s30821_s9 + $0x3800] sm:$0xff]  }
 0x6f8   : > { %27998 = vmatprep.subr.bf16.mxu1 %v30274_v53  ;;  %v30312_v53 = vld [vmem:[%s30821_s9 + $0x37c0] sm:$0xff]  }
 0x6f9   : > { %v1296_v51 = vcombine.high %v1288_v47, %v1288_v47  ;;  %v1295_v52 = vrot.slane %v1281_v48, %v30869_v42 }
 0x6fa   : > { %27977 = vmatpush3.bf16.msra.mxu0 %v30275_v54  ;;  %v1923_v54 = vpack.c.bf16 %v1288_v47, %v1288_v47 }
 0x6fb   : > { %28006 = vmatprep.subr.bf16.mxu0 %v30278_v58  ;;  %27999 = vmatpush3.bf16.msra.mxu1 %v30276_v59  ;;  %v1924_v56 = vpack.c.bf16 %v1296_v51, %v1296_v51  ;;  %v1297_v57 = vcombine.high %v1295_v52, %v1295_v52  ;;  %v30314_v58 = vld [vmem:[%s30821_s9 + $0x3780] sm:$0xff]   ;;  %v1925_v59 = vpack.c.bf16 %v1295_v52, %v1295_v52  ;;  %v30348_v51 = vld [vmem:[%s30821_s9 + $0x3848] sm:$0xff]  }
 0x6fc   : > { %28028 = vmatprep.subr.bf16.mxu1 %v30279_v62  ;;  %v30316_v62 = vld [vmem:[%s30821_s9 + $0x37c8] sm:$0xff]  }
 0x6fd   : > { %22620 = vmatmul.mubr.bf16.vlgmr.msra.gmra.mrb[212].mxu0 %v1919_v63  ;;  %v1926_v61 = vpack.c.bf16 %v1297_v57, %v1297_v57  ;;  %v30317_v63 = vld [vmem:[%s30821_s9 + $0x3708] sm:$0xff]   ;;  %v30353_v57 = vld [vmem:[%s30821_s9 + $0x38d0] sm:$0xff]  }
 0x6fe   : > { %28007 = vmatpush3.bf16.msra.mxu0 %v30280_v0  ;;  %22660 = vmatmul.mubr.bf16.vlgmr.msra.gmra.mrb[212].mxu1 %v1921_v4  ;;  %v30318_v0 = vld [vmem:[%s30821_s9 + $0x3788] sm:$0xff]   ;;  %v30322_v4 = vld [vmem:[%s30821_s9 + $0x3790] sm:$0xff]  }
 0x6ff   : > { %28008 = vmatprep.subr.bf16.mxu0 %v30282_v5  ;;  %28029 = vmatpush3.bf16.msra.mxu1 %v30281_v3  ;;  %v30321_v3 = vld [vmem:[%s30821_s9 + $0x3710] sm:$0xff]   ;;  %v30323_v5 = vld [vmem:[%s30821_s9 + $0x3758] sm:$0xff]  }
 0x700   : > { %28030 = vmatprep.subr.bf16.mxu1 %v30283_v7  ;;  %22699 = vmatprep.mubr.bf16.mxu0 %v1924_v56  ;;  %v30325_v7 = vld [vmem:[%s30821_s9 + $0x3718] sm:$0xff]   ;;  %v30352_v56 = vld [vmem:[%s30821_s9 + $0x3850] sm:$0xff]  }
 0x701   : > { %22739 = vmatprep.mubr.bf16.mxu1 %v1926_v61  ;;  %v30357_v61 = vld [vmem:[%s30821_s9 + $0x38d8] sm:$0xff]  }
 0x702   : > { %28009 = vmatpush3.bf16.msra.mxu0 %v30284_v8  ;;  %v30326_v8 = vld [vmem:[%s30821_s9 + $0x3798] sm:$0xff]  }
 0x703   : > { %28010 = vmatprep.subr.bf16.mxu0 %v30286_v10  ;;  %28031 = vmatpush3.bf16.msra.mxu1 %v30285_v9  ;;  %v30327_v9 = vld [vmem:[%s30821_s9 + $0x3760] sm:$0xff]  }
 0x704   : > { %28032 = vmatprep.subr.bf16.mxu1 %v30287_v11  ;;  %v30328_v10 = vld [vmem:[%s30821_s9 + $0x37e0] sm:$0xff]  }
 0x705   : > { %v30329_v11 = vld [vmem:[%s30821_s9 + $0x3720] sm:$0xff]  }
 0x706   : > { %28011 = vmatpush3.bf16.msra.mxu0 %v30288_v12  ;;  %v30330_v12 = vld [vmem:[%s30821_s9 + $0x37a0] sm:$0xff]  }
 0x707   : > { %28012 = vmatprep.subr.bf16.mxu0 %v30290_v14  ;;  %28033 = vmatpush3.bf16.msra.mxu1 %v30289_v13  ;;  %v30331_v13 = vld [vmem:[%s30821_s9 + $0x3768] sm:$0xff]  }
 0x708   : > { %28034 = vmatprep.subr.bf16.mxu1 %v30291_v15  ;;  %v30332_v15 = vld [vmem:[%s30821_s9 + $0x37e8] sm:$0xff]  }
 0x70a   : > { %28013 = vmatpush3.bf16.msra.mxu0 %v30292_v16 }
 0x70b   : > { %28014 = vmatprep.subr.bf16.mxu0 %v30294_v18  ;;  %28035 = vmatpush3.bf16.msra.mxu1 %v30293_v17  ;;  %v30333_v17 = vld [vmem:[%s30821_s9 + $0x3728] sm:$0xff]  }
 0x70c   : > { %28036 = vmatprep.subr.bf16.mxu1 %v30295_v19 }
 0x70e   : > { %28015 = vmatpush3.bf16.msra.mxu0 %v30296_v20 }
 0x70f   : > { %28016 = vmatprep.subr.bf16.mxu0 %v30298_v22  ;;  %28037 = vmatpush3.bf16.msra.mxu1 %v30297_v21  ;;  %v30334_v21 = vld [vmem:[%s30821_s9 + $0x37a8] sm:$0xff]   ;;  %v30335_v22 = vld [vmem:[%s30821_s9 + $0x3770] sm:$0xff]  }
 0x710   : > { %v27714_v23 = vpop.f32.mrb[188].mxu0  ;;  %28038 = vmatprep.subr.bf16.mxu1 %v30299_v24 }
 0x711   : > { %v27715_v25 = vpop.f32.mrb[189].mxu0  ;;  %v27736_v27 = vpop.f32.mrb[188].mxu1 }
 0x712   : > { %v27716_v28 = vadd.f32 %v27715_v25, %v27714_v23  ;;  %v27717_v29 = vpop.f32.mrb[190].mxu0  ;;  %v27737_v32 = vpop.f32.mrb[189].mxu1  ;;  %28017 = vmatpush3.bf16.msra.mxu0 %v30300_v26 }
 0x713   : > { %v27718_v33 = vpop.f32.mrb[191].mxu0  ;;  %v27738_v35 = vadd.f32 %v27737_v32, %v27736_v27  ;;  %v27739_v36 = vpop.f32.mrb[190].mxu1  ;;  %28018 = vmatprep.subr.bf16.mxu0 %v30302_v31  ;;  %28039 = vmatpush3.bf16.msra.mxu1 %v30301_v30  ;;  %v30337_v30 = vld [vmem:[%s30821_s9 + $0x3730] sm:$0xff]  }
 0x714   : > { %v22142_v34 = vadd.f32 %v27716_v28, %v32856_v50  ;;  %v27740_v38 = vpop.f32.mrb[191].mxu1  ;;  %28040 = vmatprep.subr.bf16.mxu1 %v30303_v37  ;;  %v30309_v50 = vld [vmem:[%s30821_s9 + $0x36b8] sm:$0xff]   ;;  %v30336_v28 = vld [vmem:[%s30821_s9 + $0x37f0] sm:$0xff]  }
 0x715   : > { %v30338_v32 = vld [vmem:[%s30821_s9 + $0x37b0] sm:$0xff]   ;;  %v30339_v33 = vld [vmem:[%s30821_s9 + $0x3778] sm:$0xff]  }
 0x716   : > { %v32894_v40 = vadd.f32 %v27738_v35, %v22142_v34  ;;  %28019 = vmatpush3.bf16.msra.mxu0 %v30304_v39  ;;  %v30340_v34 = vld [vmem:[%s30821_s9 + $0x37f8] sm:$0xff]  }
 0x717   : > { %28020 = vmatprep.subr.bf16.mxu0 %v30306_v43  ;;  %28041 = vmatpush3.bf16.msra.mxu1 %v30305_v41  ;;  %v30341_v35 = vld [vmem:[%s30821_s9 + $0x3738] sm:$0xff]  }
 0x718   : > { %28042 = vmatprep.subr.bf16.mxu1 %v30307_v44  ;;  %v290_v36 = vld [vmem:[%s30831_s7 + $0x1b8] sm:$0xff]  ;;  %v30345_v44 = vld [vmem:[%s30821_s9 + $0x38c0] sm:$0xff]  }
 0x719   : > { %v30342_v37 = vld [vmem:[%s30821_s9 + $0x37b8] sm:$0xff]   ;;  %v1305_v38 = vrot.slane %v290_v36, %v30869_v42  ;;  %v1298_v39 = vcombine.high %v290_v36, %v290_v36  ;;  %v30379_v36 = vld [vmem:[%s30821_s9 + $0x3900] sm:$0xff]  }
 0x71a   : > { %28021 = vmatpush3.bf16.msra.mxu0 %v30308_v45 }
 0x71b   : > { %28050 = vmatprep.subr.bf16.mxu0 %v30311_v49  ;;  %28043 = vmatpush3.bf16.msra.mxu1 %v30309_v50  ;;  %v1313_v41 = vcombine.high %v1305_v38, %v1305_v38  ;;  %v1312_v43 = vrot.slane %v1298_v39, %v30869_v42  ;;  %v1927_v45 = vpack.c.bf16 %v1305_v38, %v1305_v38  ;;  %v30347_v49 = vld [vmem:[%s30821_s9 + $0x3880] sm:$0xff]  }
 0x71c   : > { %28072 = vmatprep.subr.bf16.mxu1 %v30312_v53  ;;  %v30349_v53 = vld [vmem:[%s30821_s9 + $0x38c8] sm:$0xff]   ;;  %v30380_v39 = vld [vmem:[%s30821_s9 + $0x3980] sm:$0xff]  }
 0x71d   : > { %22700 = vmatmul.mubr.bf16.vlgmr.msra.gmra.mrb[216].mxu0 %v1923_v54  ;;  %v1928_v47 = vpack.c.bf16 %v1313_v41, %v1313_v41  ;;  %v1314_v48 = vcombine.high %v1312_v43, %v1312_v43  ;;  %v1929_v50 = vpack.c.bf16 %v1312_v43, %v1312_v43  ;;  %v30350_v54 = vld [vmem:[%s30821_s9 + $0x3808] sm:$0xff]  }
 0x71e   : > { %28051 = vmatpush3.bf16.msra.mxu0 %v30313_v55  ;;  %22740 = vmatmul.mubr.bf16.vlgmr.msra.gmra.mrb[216].mxu1 %v1925_v59  ;;  %v30351_v55 = vld [vmem:[%s30821_s9 + $0x3888] sm:$0xff]   ;;  %v30355_v59 = vld [vmem:[%s30821_s9 + $0x3890] sm:$0xff]  }
 0x71f   : > { %28052 = vmatprep.subr.bf16.mxu0 %v30315_v60  ;;  %28073 = vmatpush3.bf16.msra.mxu1 %v30314_v58  ;;  %v1930_v52 = vpack.c.bf16 %v1314_v48, %v1314_v48  ;;  %v30354_v58 = vld [vmem:[%s30821_s9 + $0x3810] sm:$0xff]   ;;  %v30356_v60 = vld [vmem:[%s30821_s9 + $0x3858] sm:$0xff]   ;;  %v30381_v41 = vld [vmem:[%s30821_s9 + $0x3948] sm:$0xff]  }
 0x720   : > { %28074 = vmatprep.subr.bf16.mxu1 %v30316_v62  ;;  %22779 = vmatprep.mubr.bf16.mxu0 %v1928_v47  ;;  %v30358_v62 = vld [vmem:[%s30821_s9 + $0x3818] sm:$0xff]   ;;  %v30385_v47 = vld [vmem:[%s30821_s9 + $0x3950] sm:$0xff]  }
 0x721   : > { %22819 = vmatprep.mubr.bf16.mxu1 %v1930_v52  ;;  %v30386_v48 = vld [vmem:[%s30821_s9 + $0x39d0] sm:$0xff]   ;;  %v30390_v52 = vld [vmem:[%s30821_s9 + $0x39d8] sm:$0xff]  }
 0x722   : > { %28053 = vmatpush3.bf16.msra.mxu0 %v30317_v63  ;;  %v30359_v63 = vld [vmem:[%s30821_s9 + $0x3898] sm:$0xff]  }
 0x723   : > { %28054 = vmatprep.subr.bf16.mxu0 %v30319_v1  ;;  %28075 = vmatpush3.bf16.msra.mxu1 %v30318_v0  ;;  %v30360_v0 = vld [vmem:[%s30821_s9 + $0x3860] sm:$0xff]  }
 0x724   : > { %28076 = vmatprep.subr.bf16.mxu1 %v30320_v2  ;;  %v30361_v1 = vld [vmem:[%s30821_s9 + $0x38e0] sm:$0xff]  }
 0x725   : > { %v30362_v2 = vld [vmem:[%s30821_s9 + $0x3820] sm:$0xff]  }
 0x726   : > { %28055 = vmatpush3.bf16.msra.mxu0 %v30321_v3  ;;  %v30363_v3 = vld [vmem:[%s30821_s9 + $0x38a0] sm:$0xff]  }
 0x727   : > { %28056 = vmatprep.subr.bf16.mxu0 %v30323_v5  ;;  %28077 = vmatpush3.bf16.msra.mxu1 %v30322_v4  ;;  %v30364_v4 = vld [vmem:[%s30821_s9 + $0x3868] sm:$0xff]  }
 0x728   : > { %28078 = vmatprep.subr.bf16.mxu1 %v30324_v6  ;;  %v30365_v6 = vld [vmem:[%s30821_s9 + $0x38e8] sm:$0xff]  }
 0x72a   : > { %28057 = vmatpush3.bf16.msra.mxu0 %v30325_v7 }
 0x72b   : > { %28058 = vmatprep.subr.bf16.mxu0 %v30327_v9  ;;  %28079 = vmatpush3.bf16.msra.mxu1 %v30326_v8  ;;  %v30366_v8 = vld [vmem:[%s30821_s9 + $0x3828] sm:$0xff]  }
 0x72c   : > { %28080 = vmatprep.subr.bf16.mxu1 %v30328_v10 }
 0x72e   : > { %28059 = vmatpush3.bf16.msra.mxu0 %v30329_v11 }
 0x72f   : > { %28060 = vmatprep.subr.bf16.mxu0 %v30331_v13  ;;  %28081 = vmatpush3.bf16.msra.mxu1 %v30330_v12  ;;  %v30367_v13 = vld [vmem:[%s30821_s9 + $0x38a8] sm:$0xff]  }
 0x730   : > { %v27758_v14 = vpop.f32.mrb[192].mxu0  ;;  %28082 = vmatprep.subr.bf16.mxu1 %v30332_v15  ;;  %v30368_v15 = vld [vmem:[%s30821_s9 + $0x3870] sm:$0xff]  }
 0x731   : > { %v27759_v16 = vpop.f32.mrb[193].mxu0  ;;  %v27780_v18 = vpop.f32.mrb[192].mxu1 }
 0x732   : > { %v27760_v19 = vadd.f32 %v27759_v16, %v27758_v14  ;;  %v27761_v20 = vpop.f32.mrb[194].mxu0  ;;  %v27781_v23 = vpop.f32.mrb[193].mxu1  ;;  %28061 = vmatpush3.bf16.msra.mxu0 %v30333_v17 }
 0x733   : > { %v27762_v24 = vpop.f32.mrb[195].mxu0  ;;  %v27782_v26 = vadd.f32 %v27781_v23, %v27780_v18  ;;  %v27783_v27 = vpop.f32.mrb[194].mxu1  ;;  %28062 = vmatprep.subr.bf16.mxu0 %v30335_v22  ;;  %28083 = vmatpush3.bf16.msra.mxu1 %v30334_v21  ;;  %v30370_v21 = vld [vmem:[%s30821_s9 + $0x3830] sm:$0xff]   ;;  %v30372_v23 = vld [vmem:[%s30821_s9 + $0x3878] sm:$0xff]  }
 0x734   : > { %v22222_v25 = vadd.f32 %v27760_v19, %v32894_v40  ;;  %v27784_v29 = vpop.f32.mrb[195].mxu1  ;;  %28084 = vmatprep.subr.bf16.mxu1 %v30336_v28  ;;  %v30344_v40 = vld [vmem:[%s30821_s9 + $0x3840] sm:$0xff]   ;;  %v30369_v19 = vld [vmem:[%s30821_s9 + $0x38f0] sm:$0xff]  }
 0x735   : > { %v30371_v24 = vld [vmem:[%s30821_s9 + $0x38b0] sm:$0xff]   ;;  %v291_v27 = vld [vmem:[%s30831_s7 + $0x1c0] sm:$0xff] }
 0x736   : > { %v32932_v31 = vadd.f32 %v27782_v26, %v22222_v25  ;;  %28063 = vmatpush3.bf16.msra.mxu0 %v30337_v30  ;;  %v30373_v25 = vld [vmem:[%s30821_s9 + $0x38f8] sm:$0xff]   ;;  %v1322_v28 = vrot.slane %v291_v27, %v30869_v42  ;;  %v1315_v29 = vcombine.high %v291_v27, %v291_v27  ;;  %v30377_v30 = vld [vmem:[%s30821_s9 + $0x3940] sm:$0xff]  }
 0x737   : > { %28064 = vmatprep.subr.bf16.mxu0 %v30339_v33  ;;  %28085 = vmatpush3.bf16.msra.mxu1 %v30338_v32  ;;  %v30374_v26 = vld [vmem:[%s30821_s9 + $0x3838] sm:$0xff]   ;;  %v30412_v27 = vld [vmem:[%s30821_s9 + $0x3a00] sm:$0xff]  }
 0x738   : > { %28086 = vmatprep.subr.bf16.mxu1 %v30340_v34  ;;  %v1330_v32 = vcombine.high %v1322_v28, %v1322_v28  ;;  %v1329_v33 = vrot.slane %v1315_v29, %v30869_v42  ;;  %v30378_v34 = vld [vmem:[%s30821_s9 + $0x39c0] sm:$0xff]  }
 0x73a   : > { %28065 = vmatpush3.bf16.msra.mxu0 %v30341_v35  ;;  %v1931_v35 = vpack.c.bf16 %v1322_v28, %v1322_v28  ;;  %v1331_v38 = vcombine.high %v1329_v33, %v1329_v33 }
 0x73b   : > { %28094 = vmatprep.subr.bf16.mxu0 %v30344_v40  ;;  %28087 = vmatpush3.bf16.msra.mxu1 %v30342_v37  ;;  %v1932_v37 = vpack.c.bf16 %v1330_v32, %v1330_v32  ;;  %v1933_v40 = vpack.c.bf16 %v1329_v33, %v1329_v33  ;;  %v30414_v32 = vld [vmem:[%s30821_s9 + $0x3a48] sm:$0xff]  }
 0x73c   : > { %28116 = vmatprep.subr.bf16.mxu1 %v30345_v44  ;;  %v1934_v43 = vpack.c.bf16 %v1331_v38, %v1331_v38  ;;  %v30382_v44 = vld [vmem:[%s30821_s9 + $0x39c8] sm:$0xff]   ;;  %v30419_v38 = vld [vmem:[%s30821_s9 + $0x3ad0] sm:$0xff]  }
 0x73d   : > { %22780 = vmatmul.mubr.bf16.vlgmr.msra.gmra.mrb[220].mxu0 %v1927_v45  ;;  %v30383_v45 = vld [vmem:[%s30821_s9 + $0x3908] sm:$0xff]  }
 0x73e   : > { %28095 = vmatpush3.bf16.msra.mxu0 %v30346_v46  ;;  %22820 = vmatmul.mubr.bf16.vlgmr.msra.gmra.mrb[220].mxu1 %v1929_v50  ;;  %v30384_v46 = vld [vmem:[%s30821_s9 + $0x3988] sm:$0xff]   ;;  %v30388_v50 = vld [vmem:[%s30821_s9 + $0x3990] sm:$0xff]  }
 0x73f   : > { %28096 = vmatprep.subr.bf16.mxu0 %v30348_v51  ;;  %28117 = vmatpush3.bf16.msra.mxu1 %v30347_v49  ;;  %v30387_v49 = vld [vmem:[%s30821_s9 + $0x3910] sm:$0xff]   ;;  %v30389_v51 = vld [vmem:[%s30821_s9 + $0x3958] sm:$0xff]  }
 0x740   : > { %28118 = vmatprep.subr.bf16.mxu1 %v30349_v53  ;;  %22859 = vmatprep.mubr.bf16.mxu0 %v1932_v37  ;;  %v30391_v53 = vld [vmem:[%s30821_s9 + $0x3918] sm:$0xff]   ;;  %v30418_v37 = vld [vmem:[%s30821_s9 + $0x3a50] sm:$0xff]  }
 0x741   : > { %22899 = vmatprep.mubr.bf16.mxu1 %v1934_v43  ;;  %v30423_v43 = vld [vmem:[%s30821_s9 + $0x3ad8] sm:$0xff]  }
 0x742   : > { %28097 = vmatpush3.bf16.msra.mxu0 %v30350_v54  ;;  %v30392_v54 = vld [vmem:[%s30821_s9 + $0x3998] sm:$0xff]  }
 0x743   : > { %28098 = vmatprep.subr.bf16.mxu0 %v30352_v56  ;;  %28119 = vmatpush3.bf16.msra.mxu1 %v30351_v55  ;;  %v30393_v55 = vld [vmem:[%s30821_s9 + $0x3960] sm:$0xff]  }
 0x744   : > { %28120 = vmatprep.subr.bf16.mxu1 %v30353_v57  ;;  %v30394_v56 = vld [vmem:[%s30821_s9 + $0x39e0] sm:$0xff]  }
 0x745   : > { %v30395_v57 = vld [vmem:[%s30821_s9 + $0x3920] sm:$0xff]  }
 0x746   : > { %28099 = vmatpush3.bf16.msra.mxu0 %v30354_v58  ;;  %v30396_v58 = vld [vmem:[%s30821_s9 + $0x39a0] sm:$0xff]  }
 0x747   : > { %28100 = vmatprep.subr.bf16.mxu0 %v30356_v60  ;;  %28121 = vmatpush3.bf16.msra.mxu1 %v30355_v59  ;;  %v30397_v59 = vld [vmem:[%s30821_s9 + $0x3968] sm:$0xff]  }
 0x748   : > { %28122 = vmatprep.subr.bf16.mxu1 %v30357_v61  ;;  %v30398_v61 = vld [vmem:[%s30821_s9 + $0x39e8] sm:$0xff]  }
 0x74a   : > { %28101 = vmatpush3.bf16.msra.mxu0 %v30358_v62 }
 0x74b   : > { %28102 = vmatprep.subr.bf16.mxu0 %v30360_v0  ;;  %28123 = vmatpush3.bf16.msra.mxu1 %v30359_v63  ;;  %v30399_v63 = vld [vmem:[%s30821_s9 + $0x3928] sm:$0xff]  }
 0x74c   : > { %28124 = vmatprep.subr.bf16.mxu1 %v30361_v1 }
 0x74e   : > { %28103 = vmatpush3.bf16.msra.mxu0 %v30362_v2 }
 0x74f   : > { %28104 = vmatprep.subr.bf16.mxu0 %v30364_v4  ;;  %28125 = vmatpush3.bf16.msra.mxu1 %v30363_v3  ;;  %v30400_v3 = vld [vmem:[%s30821_s9 + $0x39a8] sm:$0xff]   ;;  %v30401_v4 = vld [vmem:[%s30821_s9 + $0x3970] sm:$0xff]  }
 0x750   : > { %v27802_v5 = vpop.f32.mrb[196].mxu0  ;;  %28126 = vmatprep.subr.bf16.mxu1 %v30365_v6 }
 0x751   : > { %v27803_v7 = vpop.f32.mrb[197].mxu0  ;;  %v27824_v9 = vpop.f32.mrb[196].mxu1 }
 0x752   : > { %v27804_v10 = vadd.f32 %v27803_v7, %v27802_v5  ;;  %v27805_v11 = vpop.f32.mrb[198].mxu0  ;;  %v27825_v12 = vpop.f32.mrb[197].mxu1  ;;  %28105 = vmatpush3.bf16.msra.mxu0 %v30366_v8 }
 0x753   : > { %v27806_v14 = vpop.f32.mrb[199].mxu0  ;;  %v27826_v17 = vadd.f32 %v27825_v12, %v27824_v9  ;;  %v27827_v18 = vpop.f32.mrb[198].mxu1  ;;  %28106 = vmatprep.subr.bf16.mxu0 %v30368_v15  ;;  %28127 = vmatpush3.bf16.msra.mxu1 %v30367_v13  ;;  %v30403_v12 = vld [vmem:[%s30821_s9 + $0x3930] sm:$0xff]   ;;  %v30405_v15 = vld [vmem:[%s30821_s9 + $0x3978] sm:$0xff]  }
 0x754   : > { %v22302_v16 = vadd.f32 %v27804_v10, %v32932_v31  ;;  %v27828_v20 = vpop.f32.mrb[199].mxu1  ;;  %28128 = vmatprep.subr.bf16.mxu1 %v30369_v19  ;;  %v30375_v31 = vld [vmem:[%s30821_s9 + $0x38b8] sm:$0xff]   ;;  %v30402_v10 = vld [vmem:[%s30821_s9 + $0x39f0] sm:$0xff]   ;;  %v292_v18 = vld [vmem:[%s30831_s7 + $0x1c8] sm:$0xff] }
 0x755   : > { %v30404_v14 = vld [vmem:[%s30821_s9 + $0x39b0] sm:$0xff]   ;;  %v1339_v19 = vrot.slane %v292_v18, %v30869_v42  ;;  %v1332_v20 = vcombine.high %v292_v18, %v292_v18  ;;  %v30445_v18 = vld [vmem:[%s30821_s9 + $0x3b00] sm:$0xff]  }
 0x756   : > { %v32970_v22 = vadd.f32 %v27826_v17, %v22302_v16  ;;  %28107 = vmatpush3.bf16.msra.mxu0 %v30370_v21  ;;  %v30406_v16 = vld [vmem:[%s30821_s9 + $0x39f8] sm:$0xff]   ;;  %v30410_v21 = vld [vmem:[%s30821_s9 + $0x3a40] sm:$0xff]  }
 0x757   : > { %28108 = vmatprep.subr.bf16.mxu0 %v30372_v23  ;;  %28129 = vmatpush3.bf16.msra.mxu1 %v30371_v24  ;;  %v30407_v17 = vld [vmem:[%s30821_s9 + $0x3938] sm:$0xff]   ;;  %v1347_v23 = vcombine.high %v1339_v19, %v1339_v19  ;;  %v1346_v24 = vrot.slane %v1332_v20, %v30869_v42 }
 0x758   : > { %28130 = vmatprep.subr.bf16.mxu1 %v30373_v25  ;;  %v30411_v25 = vld [vmem:[%s30821_s9 + $0x3ac0] sm:$0xff]  }
 0x759   : > { %v1936_v28 = vpack.c.bf16 %v1347_v23, %v1347_v23  ;;  %v1348_v29 = vcombine.high %v1346_v24, %v1346_v24  ;;  %v30447_v23 = vld [vmem:[%s30821_s9 + $0x3b48] sm:$0xff]  }
 0x75a   : > { %28109 = vmatpush3.bf16.msra.mxu0 %v30374_v26  ;;  %v1935_v26 = vpack.c.bf16 %v1339_v19, %v1339_v19 }
 0x75b   : > { %28138 = vmatprep.subr.bf16.mxu0 %v30377_v30  ;;  %28131 = vmatpush3.bf16.msra.mxu1 %v30375_v31  ;;  %v30413_v30 = vld [vmem:[%s30821_s9 + $0x3a80] sm:$0xff]   ;;  %v1937_v31 = vpack.c.bf16 %v1346_v24, %v1346_v24  ;;  %v1938_v33 = vpack.c.bf16 %v1348_v29, %v1348_v29  ;;  %v30452_v29 = vld [vmem:[%s30821_s9 + $0x3bd0] sm:$0xff]  }
 0x75c   : > { %28160 = vmatprep.subr.bf16.mxu1 %v30378_v34  ;;  %v30415_v34 = vld [vmem:[%s30821_s9 + $0x3ac8] sm:$0xff]  }
 0x75d   : > { %22860 = vmatmul.mubr.bf16.vlgmr.msra.gmra.mrb[224].mxu0 %v1931_v35  ;;  %v30416_v35 = vld [vmem:[%s30821_s9 + $0x3a08] sm:$0xff]  }
 0x75e   : > { %28139 = vmatpush3.bf16.msra.mxu0 %v30379_v36  ;;  %22900 = vmatmul.mubr.bf16.vlgmr.msra.gmra.mrb[224].mxu1 %v1933_v40  ;;  %v30417_v36 = vld [vmem:[%s30821_s9 + $0x3a88] sm:$0xff]   ;;  %v30421_v40 = vld [vmem:[%s30821_s9 + $0x3a90] sm:$0xff]  }
 0x75f   : > { %28140 = vmatprep.subr.bf16.mxu0 %v30381_v41  ;;  %28161 = vmatpush3.bf16.msra.mxu1 %v30380_v39  ;;  %v30420_v39 = vld [vmem:[%s30821_s9 + $0x3a10] sm:$0xff]   ;;  %v30422_v41 = vld [vmem:[%s30821_s9 + $0x3a58] sm:$0xff]  }
 0x760   : > { %28162 = vmatprep.subr.bf16.mxu1 %v30382_v44  ;;  %22939 = vmatprep.mubr.bf16.mxu0 %v1936_v28  ;;  %v30424_v44 = vld [vmem:[%s30821_s9 + $0x3a18] sm:$0xff]   ;;  %v30451_v28 = vld [vmem:[%s30821_s9 + $0x3b50] sm:$0xff]  }
 0x761   : > { %22979 = vmatprep.mubr.bf16.mxu1 %v1938_v33  ;;  %v30456_v33 = vld [vmem:[%s30821_s9 + $0x3bd8] sm:$0xff]  }
 0x762   : > { %28141 = vmatpush3.bf16.msra.mxu0 %v30383_v45  ;;  %v30425_v45 = vld [vmem:[%s30821_s9 + $0x3a98] sm:$0xff]  }
 0x763   : > { %28142 = vmatprep.subr.bf16.mxu0 %v30385_v47  ;;  %28163 = vmatpush3.bf16.msra.mxu1 %v30384_v46  ;;  %v30426_v46 = vld [vmem:[%s30821_s9 + $0x3a60] sm:$0xff]  }
 0x764   : > { %28164 = vmatprep.subr.bf16.mxu1 %v30386_v48  ;;  %v30427_v47 = vld [vmem:[%s30821_s9 + $0x3ae0] sm:$0xff]  }
 0x765   : > { %v30428_v48 = vld [vmem:[%s30821_s9 + $0x3a20] sm:$0xff]  }
 0x766   : > { %28143 = vmatpush3.bf16.msra.mxu0 %v30387_v49  ;;  %v30429_v49 = vld [vmem:[%s30821_s9 + $0x3aa0] sm:$0xff]  }
 0x767   : > { %28144 = vmatprep.subr.bf16.mxu0 %v30389_v51  ;;  %28165 = vmatpush3.bf16.msra.mxu1 %v30388_v50  ;;  %v30430_v50 = vld [vmem:[%s30821_s9 + $0x3a68] sm:$0xff]  }
 0x768   : > { %28166 = vmatprep.subr.bf16.mxu1 %v30390_v52  ;;  %v30431_v52 = vld [vmem:[%s30821_s9 + $0x3ae8] sm:$0xff]  }
 0x76a   : > { %28145 = vmatpush3.bf16.msra.mxu0 %v30391_v53 }
 0x76b   : > { %28146 = vmatprep.subr.bf16.mxu0 %v30393_v55  ;;  %28167 = vmatpush3.bf16.msra.mxu1 %v30392_v54  ;;  %v30432_v54 = vld [vmem:[%s30821_s9 + $0x3a28] sm:$0xff]  }
 0x76c   : > { %28168 = vmatprep.subr.bf16.mxu1 %v30394_v56 }
 0x76e   : > { %28147 = vmatpush3.bf16.msra.mxu0 %v30395_v57 }
 0x76f   : > { %28148 = vmatprep.subr.bf16.mxu0 %v30397_v59  ;;  %28169 = vmatpush3.bf16.msra.mxu1 %v30396_v58  ;;  %v30433_v58 = vld [vmem:[%s30821_s9 + $0x3aa8] sm:$0xff]   ;;  %v30434_v59 = vld [vmem:[%s30821_s9 + $0x3a70] sm:$0xff]  }
 0x770   : > { %v27846_v60 = vpop.f32.mrb[200].mxu0  ;;  %28170 = vmatprep.subr.bf16.mxu1 %v30398_v61 }
 0x771   : > { %v27847_v62 = vpop.f32.mrb[201].mxu0  ;;  %v27868_v0 = vpop.f32.mrb[200].mxu1 }
 0x772   : > { %v27848_v1 = vadd.f32 %v27847_v62, %v27846_v60  ;;  %v27849_v2 = vpop.f32.mrb[202].mxu0  ;;  %v27869_v5 = vpop.f32.mrb[201].mxu1  ;;  %28149 = vmatpush3.bf16.msra.mxu0 %v30399_v63 }
 0x773   : > { %v27850_v6 = vpop.f32.mrb[203].mxu0  ;;  %v27870_v8 = vadd.f32 %v27869_v5, %v27868_v0  ;;  %v27871_v9 = vpop.f32.mrb[202].mxu1  ;;  %28150 = vmatprep.subr.bf16.mxu0 %v30401_v4  ;;  %28171 = vmatpush3.bf16.msra.mxu1 %v30400_v3  ;;  %v30436_v3 = vld [vmem:[%s30821_s9 + $0x3a30] sm:$0xff]  }
 0x774   : > { %v22382_v7 = vadd.f32 %v27848_v1, %v32970_v22  ;;  %v27872_v11 = vpop.f32.mrb[203].mxu1  ;;  %28172 = vmatprep.subr.bf16.mxu1 %v30402_v10  ;;  %v30408_v22 = vld [vmem:[%s30821_s9 + $0x39b8] sm:$0xff]   ;;  %v30435_v1 = vld [vmem:[%s30821_s9 + $0x3af0] sm:$0xff]  }
 0x775   : > { %v30437_v5 = vld [vmem:[%s30821_s9 + $0x3ab0] sm:$0xff]   ;;  %v30438_v6 = vld [vmem:[%s30821_s9 + $0x3a78] sm:$0xff]  }
 0x776   : > { %v33008_v13 = vadd.f32 %v27870_v8, %v22382_v7  ;;  %28151 = vmatpush3.bf16.msra.mxu0 %v30403_v12  ;;  %v30439_v7 = vld [vmem:[%s30821_s9 + $0x3af8] sm:$0xff]   ;;  %v293_v9 = vld [vmem:[%s30831_s7 + $0x1d0] sm:$0xff] }
 0x777   : > { %28152 = vmatprep.subr.bf16.mxu0 %v30405_v15  ;;  %28173 = vmatpush3.bf16.msra.mxu1 %v30404_v14  ;;  %v30440_v8 = vld [vmem:[%s30821_s9 + $0x3a38] sm:$0xff]   ;;  %v1356_v11 = vrot.slane %v293_v9, %v30869_v42  ;;  %v1349_v12 = vcombine.high %v293_v9, %v293_v9  ;;  %v30478_v9 = vld [vmem:[%s30821_s9 + $0x3c00] sm:$0xff]  }
 0x778   : > { %28174 = vmatprep.subr.bf16.mxu1 %v30406_v16  ;;  %v30441_v10 = vld [vmem:[%s30821_s9 + $0x3ab8] sm:$0xff]   ;;  %v30444_v16 = vld [vmem:[%s30821_s9 + $0x3bc0] sm:$0xff]  }
 0x779   : > { %v1364_v14 = vcombine.high %v1356_v11, %v1356_v11  ;;  %v1363_v15 = vrot.slane %v1349_v12, %v30869_v42  ;;  %v30479_v12 = vld [vmem:[%s30821_s9 + $0x3c80] sm:$0xff]  }
 0x77a   : > { %28153 = vmatpush3.bf16.msra.mxu0 %v30407_v17  ;;  %v1939_v17 = vpack.c.bf16 %v1356_v11, %v1356_v11 }
 0x77b   : > { %28182 = vmatprep.subr.bf16.mxu0 %v30410_v21  ;;  %28175 = vmatpush3.bf16.msra.mxu1 %v30408_v22  ;;  %v1940_v19 = vpack.c.bf16 %v1364_v14, %v1364_v14  ;;  %v1365_v20 = vcombine.high %v1363_v15, %v1363_v15  ;;  %v30446_v21 = vld [vmem:[%s30821_s9 + $0x3b80] sm:$0xff]   ;;  %v1941_v22 = vpack.c.bf16 %v1363_v15, %v1363_v15  ;;  %v30480_v14 = vld [vmem:[%s30821_s9 + $0x3c48] sm:$0xff]  }
 0x77c   : > { %28204 = vmatprep.subr.bf16.mxu1 %v30411_v25  ;;  %v30448_v25 = vld [vmem:[%s30821_s9 + $0x3bc8] sm:$0xff]  }
 0x77d   : > { %22940 = vmatmul.mubr.bf16.vlgmr.msra.gmra.mrb[228].mxu0 %v1935_v26  ;;  %v1942_v24 = vpack.c.bf16 %v1365_v20, %v1365_v20  ;;  %v30449_v26 = vld [vmem:[%s30821_s9 + $0x3b08] sm:$0xff]   ;;  %v30485_v20 = vld [vmem:[%s30821_s9 + $0x3cd0] sm:$0xff]  }
 0x77e   : > { %28183 = vmatpush3.bf16.msra.mxu0 %v30412_v27  ;;  %22980 = vmatmul.mubr.bf16.vlgmr.msra.gmra.mrb[228].mxu1 %v1937_v31  ;;  %v30450_v27 = vld [vmem:[%s30821_s9 + $0x3b88] sm:$0xff]   ;;  %v30454_v31 = vld [vmem:[%s30821_s9 + $0x3b90] sm:$0xff]  }
 0x77f   : > { %28184 = vmatprep.subr.bf16.mxu0 %v30414_v32  ;;  %28205 = vmatpush3.bf16.msra.mxu1 %v30413_v30  ;;  %v30453_v30 = vld [vmem:[%s30821_s9 + $0x3b10] sm:$0xff]   ;;  %v30455_v32 = vld [vmem:[%s30821_s9 + $0x3b58] sm:$0xff]  }
 0x780   : > { %28206 = vmatprep.subr.bf16.mxu1 %v30415_v34  ;;  %23019 = vmatprep.mubr.bf16.mxu0 %v1940_v19  ;;  %v30457_v34 = vld [vmem:[%s30821_s9 + $0x3b18] sm:$0xff]   ;;  %v30484_v19 = vld [vmem:[%s30821_s9 + $0x3c50] sm:$0xff]  }
 0x781   : > { %23059 = vmatprep.mubr.bf16.mxu1 %v1942_v24  ;;  %v30489_v24 = vld [vmem:[%s30821_s9 + $0x3cd8] sm:$0xff]  }
 0x782   : > { %28185 = vmatpush3.bf16.msra.mxu0 %v30416_v35  ;;  %v30458_v35 = vld [vmem:[%s30821_s9 + $0x3b98] sm:$0xff]  }
 0x783   : > { %28186 = vmatprep.subr.bf16.mxu0 %v30418_v37  ;;  %28207 = vmatpush3.bf16.msra.mxu1 %v30417_v36  ;;  %v30459_v36 = vld [vmem:[%s30821_s9 + $0x3b60] sm:$0xff]  }
 0x784   : > { %28208 = vmatprep.subr.bf16.mxu1 %v30419_v38  ;;  %v30460_v37 = vld [vmem:[%s30821_s9 + $0x3be0] sm:$0xff]  }
 0x785   : > { %v30461_v38 = vld [vmem:[%s30821_s9 + $0x3b20] sm:$0xff]  }
 0x786   : > { %28187 = vmatpush3.bf16.msra.mxu0 %v30420_v39  ;;  %v30462_v39 = vld [vmem:[%s30821_s9 + $0x3ba0] sm:$0xff]  }
 0x787   : > { %28188 = vmatprep.subr.bf16.mxu0 %v30422_v41  ;;  %28209 = vmatpush3.bf16.msra.mxu1 %v30421_v40  ;;  %v30463_v40 = vld [vmem:[%s30821_s9 + $0x3b68] sm:$0xff]  }
 0x788   : > { %28210 = vmatprep.subr.bf16.mxu1 %v30423_v43  ;;  %v30464_v43 = vld [vmem:[%s30821_s9 + $0x3be8] sm:$0xff]  }
 0x78a   : > { %28189 = vmatpush3.bf16.msra.mxu0 %v30424_v44 }
 0x78b   : > { %28190 = vmatprep.subr.bf16.mxu0 %v30426_v46  ;;  %28211 = vmatpush3.bf16.msra.mxu1 %v30425_v45  ;;  %v30465_v45 = vld [vmem:[%s30821_s9 + $0x3b28] sm:$0xff]  }
 0x78c   : > { %28212 = vmatprep.subr.bf16.mxu1 %v30427_v47 }
 0x78e   : > { %28191 = vmatpush3.bf16.msra.mxu0 %v30428_v48 }
 0x78f   : > { %28192 = vmatprep.subr.bf16.mxu0 %v30430_v50  ;;  %28213 = vmatpush3.bf16.msra.mxu1 %v30429_v49  ;;  %v30466_v50 = vld [vmem:[%s30821_s9 + $0x3ba8] sm:$0xff]  }
 0x790   : > { %v27890_v51 = vpop.f32.mrb[204].mxu0  ;;  %28214 = vmatprep.subr.bf16.mxu1 %v30431_v52  ;;  %v30467_v52 = vld [vmem:[%s30821_s9 + $0x3b70] sm:$0xff]  }
 0x791   : > { %v27891_v53 = vpop.f32.mrb[205].mxu0  ;;  %v27912_v55 = vpop.f32.mrb[204].mxu1 }
 0x792   : > { %v27892_v56 = vadd.f32 %v27891_v53, %v27890_v51  ;;  %v27893_v57 = vpop.f32.mrb[206].mxu0  ;;  %v27913_v60 = vpop.f32.mrb[205].mxu1  ;;  %28193 = vmatpush3.bf16.msra.mxu0 %v30432_v54 }
 0x793   : > { %v27894_v61 = vpop.f32.mrb[207].mxu0  ;;  %v27914_v63 = vadd.f32 %v27913_v60, %v27912_v55  ;;  %v27915_v0 = vpop.f32.mrb[206].mxu1  ;;  %28194 = vmatprep.subr.bf16.mxu0 %v30434_v59  ;;  %28215 = vmatpush3.bf16.msra.mxu1 %v30433_v58  ;;  %v30469_v58 = vld [vmem:[%s30821_s9 + $0x3b30] sm:$0xff]   ;;  %v30471_v60 = vld [vmem:[%s30821_s9 + $0x3b78] sm:$0xff]  }
 0x794   : > { %v22462_v62 = vadd.f32 %v27892_v56, %v33008_v13  ;;  %v27916_v2 = vpop.f32.mrb[207].mxu1  ;;  %28216 = vmatprep.subr.bf16.mxu1 %v30435_v1  ;;  %v30443_v13 = vld [vmem:[%s30821_s9 + $0x3b40] sm:$0xff]   ;;  %v30468_v56 = vld [vmem:[%s30821_s9 + $0x3bf0] sm:$0xff]  }
 0x795   : > { %v30470_v61 = vld [vmem:[%s30821_s9 + $0x3bb0] sm:$0xff]  }
 0x796   : > { %v33046_v4 = vadd.f32 %v27914_v63, %v22462_v62  ;;  %28195 = vmatpush3.bf16.msra.mxu0 %v30436_v3  ;;  %v30472_v62 = vld [vmem:[%s30821_s9 + $0x3bf8] sm:$0xff]   ;;  %v30476_v3 = vld [vmem:[%s30821_s9 + $0x3c40] sm:$0xff]  }
 0x797   : > { %28196 = vmatprep.subr.bf16.mxu0 %v30438_v6  ;;  %28217 = vmatpush3.bf16.msra.mxu1 %v30437_v5  ;;  %v30473_v63 = vld [vmem:[%s30821_s9 + $0x3b38] sm:$0xff]  }
 0x798   : > { %28218 = vmatprep.subr.bf16.mxu1 %v30439_v7  ;;  %v294_v0 = vld [vmem:[%s30831_s7 + $0x1d8] sm:$0xff]  ;;  %v30477_v7 = vld [vmem:[%s30821_s9 + $0x3cc0] sm:$0xff]  }
 0x799   : > { %v1373_v1 = vrot.slane %v294_v0, %v30869_v42  ;;  %v1366_v2 = vcombine.high %v294_v0, %v294_v0  ;;  %v30511_v0 = vld [vmem:[%s30821_s9 + $0x3d00] sm:$0xff]  }
 0x79a   : > { %28197 = vmatpush3.bf16.msra.mxu0 %v30440_v8 }
 0x79b   : > { %28226 = vmatprep.subr.bf16.mxu0 %v30443_v13  ;;  %28219 = vmatpush3.bf16.msra.mxu1 %v30441_v10  ;;  %v1381_v5 = vcombine.high %v1373_v1, %v1373_v1  ;;  %v1380_v6 = vrot.slane %v1366_v2, %v30869_v42  ;;  %v1943_v8 = vpack.c.bf16 %v1373_v1, %v1373_v1 }
 0x79c   : > { %28248 = vmatprep.subr.bf16.mxu1 %v30444_v16  ;;  %v30481_v16 = vld [vmem:[%s30821_s9 + $0x3cc8] sm:$0xff]  }
 0x79d   : > { %23020 = vmatmul.mubr.bf16.vlgmr.msra.gmra.mrb[232].mxu0 %v1939_v17  ;;  %v1944_v10 = vpack.c.bf16 %v1381_v5, %v1381_v5  ;;  %v1382_v11 = vcombine.high %v1380_v6, %v1380_v6  ;;  %v1945_v13 = vpack.c.bf16 %v1380_v6, %v1380_v6  ;;  %v30482_v17 = vld [vmem:[%s30821_s9 + $0x3c08] sm:$0xff]  }
 0x79e   : > { %28227 = vmatpush3.bf16.msra.mxu0 %v30445_v18  ;;  %23060 = vmatmul.mubr.bf16.vlgmr.msra.gmra.mrb[232].mxu1 %v1941_v22  ;;  %v30483_v18 = vld [vmem:[%s30821_s9 + $0x3c88] sm:$0xff]   ;;  %v30487_v22 = vld [vmem:[%s30821_s9 + $0x3c90] sm:$0xff]  }
 0x79f   : > { %28228 = vmatprep.subr.bf16.mxu0 %v30447_v23  ;;  %28249 = vmatpush3.bf16.msra.mxu1 %v30446_v21  ;;  %v1946_v15 = vpack.c.bf16 %v1382_v11, %v1382_v11  ;;  %v30486_v21 = vld [vmem:[%s30821_s9 + $0x3c10] sm:$0xff]   ;;  %v30488_v23 = vld [vmem:[%s30821_s9 + $0x3c58] sm:$0xff]   ;;  %v30513_v5 = vld [vmem:[%s30821_s9 + $0x3d48] sm:$0xff]  }
 0x7a0   : > { %28250 = vmatprep.subr.bf16.mxu1 %v30448_v25  ;;  %23099 = vmatprep.mubr.bf16.mxu0 %v1944_v10  ;;  %v30490_v25 = vld [vmem:[%s30821_s9 + $0x3c18] sm:$0xff]   ;;  %v30517_v10 = vld [vmem:[%s30821_s9 + $0x3d50] sm:$0xff]  }
 0x7a1   : > { %23139 = vmatprep.mubr.bf16.mxu1 %v1946_v15  ;;  %v30518_v11 = vld [vmem:[%s30821_s9 + $0x3dd0] sm:$0xff]   ;;  %v30522_v15 = vld [vmem:[%s30821_s9 + $0x3dd8] sm:$0xff]  }
 0x7a2   : > { %28229 = vmatpush3.bf16.msra.mxu0 %v30449_v26  ;;  %v30491_v26 = vld [vmem:[%s30821_s9 + $0x3c98] sm:$0xff]  }
 0x7a3   : > { %28230 = vmatprep.subr.bf16.mxu0 %v30451_v28  ;;  %28251 = vmatpush3.bf16.msra.mxu1 %v30450_v27  ;;  %v30492_v27 = vld [vmem:[%s30821_s9 + $0x3c60] sm:$0xff]  }
 0x7a4   : > { %28252 = vmatprep.subr.bf16.mxu1 %v30452_v29  ;;  %v30493_v28 = vld [vmem:[%s30821_s9 + $0x3ce0] sm:$0xff]  }
 0x7a5   : > { %v30494_v29 = vld [vmem:[%s30821_s9 + $0x3c20] sm:$0xff]  }
 0x7a6   : > { %28231 = vmatpush3.bf16.msra.mxu0 %v30453_v30  ;;  %v30495_v30 = vld [vmem:[%s30821_s9 + $0x3ca0] sm:$0xff]  }
 0x7a7   : > { %28232 = vmatprep.subr.bf16.mxu0 %v30455_v32  ;;  %28253 = vmatpush3.bf16.msra.mxu1 %v30454_v31  ;;  %v30496_v31 = vld [vmem:[%s30821_s9 + $0x3c68] sm:$0xff]  }
 0x7a8   : > { %28254 = vmatprep.subr.bf16.mxu1 %v30456_v33  ;;  %v30497_v33 = vld [vmem:[%s30821_s9 + $0x3ce8] sm:$0xff]  }
 0x7aa   : > { %28233 = vmatpush3.bf16.msra.mxu0 %v30457_v34 }
 0x7ab   : > { %28234 = vmatprep.subr.bf16.mxu0 %v30459_v36  ;;  %28255 = vmatpush3.bf16.msra.mxu1 %v30458_v35  ;;  %v30498_v35 = vld [vmem:[%s30821_s9 + $0x3c28] sm:$0xff]  }
 0x7ac   : > { %28256 = vmatprep.subr.bf16.mxu1 %v30460_v37 }
 0x7ae   : > { %28235 = vmatpush3.bf16.msra.mxu0 %v30461_v38 }
 0x7af   : > { %28236 = vmatprep.subr.bf16.mxu0 %v30463_v40  ;;  %28257 = vmatpush3.bf16.msra.mxu1 %v30462_v39  ;;  %v30499_v39 = vld [vmem:[%s30821_s9 + $0x3ca8] sm:$0xff]   ;;  %v30500_v40 = vld [vmem:[%s30821_s9 + $0x3c70] sm:$0xff]  }
 0x7b0   : > { %v27934_v41 = vpop.f32.mrb[208].mxu0  ;;  %28258 = vmatprep.subr.bf16.mxu1 %v30464_v43 }
 0x7b1   : > { %v27935_v44 = vpop.f32.mrb[209].mxu0  ;;  %v27956_v46 = vpop.f32.mrb[208].mxu1 }
 0x7b2   : > { %v27936_v47 = vadd.f32 %v27935_v44, %v27934_v41  ;;  %v27937_v48 = vpop.f32.mrb[210].mxu0  ;;  %v27957_v49 = vpop.f32.mrb[209].mxu1  ;;  %28237 = vmatpush3.bf16.msra.mxu0 %v30465_v45 }
 0x7b3   : > { %v27938_v51 = vpop.f32.mrb[211].mxu0  ;;  %v27958_v54 = vadd.f32 %v27957_v49, %v27956_v46  ;;  %v27959_v55 = vpop.f32.mrb[210].mxu1  ;;  %28238 = vmatprep.subr.bf16.mxu0 %v30467_v52  ;;  %28259 = vmatpush3.bf16.msra.mxu1 %v30466_v50  ;;  %v30502_v49 = vld [vmem:[%s30821_s9 + $0x3c30] sm:$0xff]   ;;  %v30504_v52 = vld [vmem:[%s30821_s9 + $0x3c78] sm:$0xff]  }
 0x7b4   : > { %v22542_v53 = vadd.f32 %v27936_v47, %v33046_v4  ;;  %v27960_v57 = vpop.f32.mrb[211].mxu1  ;;  %28260 = vmatprep.subr.bf16.mxu1 %v30468_v56  ;;  %v30474_v4 = vld [vmem:[%s30821_s9 + $0x3bb8] sm:$0xff]   ;;  %v30501_v47 = vld [vmem:[%s30821_s9 + $0x3cf0] sm:$0xff]  }
 0x7b5   : > { %v30503_v51 = vld [vmem:[%s30821_s9 + $0x3cb0] sm:$0xff]   ;;  %v295_v55 = vld [vmem:[%s30831_s7 + $0x1e0] sm:$0xff] }
 0x7b6   : > { %v33084_v59 = vadd.f32 %v27958_v54, %v22542_v53  ;;  %28239 = vmatpush3.bf16.msra.mxu0 %v30469_v58  ;;  %v30505_v53 = vld [vmem:[%s30821_s9 + $0x3cf8] sm:$0xff]   ;;  %v1390_v56 = vrot.slane %v295_v55, %v30869_v42  ;;  %v1383_v57 = vcombine.high %v295_v55, %v295_v55  ;;  %v30509_v58 = vld [vmem:[%s30821_s9 + $0x3d40] sm:$0xff]  }
 0x7b7   : > { %28240 = vmatprep.subr.bf16.mxu0 %v30471_v60  ;;  %28261 = vmatpush3.bf16.msra.mxu1 %v30470_v61  ;;  %v30506_v54 = vld [vmem:[%s30821_s9 + $0x3c38] sm:$0xff]   ;;  %v30544_v55 = vld [vmem:[%s30821_s9 + $0x3e00] sm:$0xff]  }
 0x7b8   : > { %28262 = vmatprep.subr.bf16.mxu1 %v30472_v62  ;;  %v1398_v60 = vcombine.high %v1390_v56, %v1390_v56  ;;  %v1397_v61 = vrot.slane %v1383_v57, %v30869_v42  ;;  %v30510_v62 = vld [vmem:[%s30821_s9 + $0x3dc0] sm:$0xff]  }
 0x7ba   : > { %28241 = vmatpush3.bf16.msra.mxu0 %v30473_v63  ;;  %v1947_v63 = vpack.c.bf16 %v1390_v56, %v1390_v56  ;;  %v1948_v1 = vpack.c.bf16 %v1398_v60, %v1398_v60  ;;  %v1399_v2 = vcombine.high %v1397_v61, %v1397_v61  ;;  %v30546_v60 = vld [vmem:[%s30821_s9 + $0x3e48] sm:$0xff]  }
 0x7bb   : > { %28270 = vmatprep.subr.bf16.mxu0 %v30476_v3  ;;  %28263 = vmatpush3.bf16.msra.mxu1 %v30474_v4  ;;  %v30512_v3 = vld [vmem:[%s30821_s9 + $0x3d80] sm:$0xff]   ;;  %v1949_v4 = vpack.c.bf16 %v1397_v61, %v1397_v61 }
 0x7bc   : > { %28292 = vmatprep.subr.bf16.mxu1 %v30477_v7  ;;  %v1950_v6 = vpack.c.bf16 %v1399_v2, %v1399_v2  ;;  %v30514_v7 = vld [vmem:[%s30821_s9 + $0x3dc8] sm:$0xff]   ;;  %v30551_v2 = vld [vmem:[%s30821_s9 + $0x3ed0] sm:$0xff]  }
 0x7bd   : > { %23100 = vmatmul.mubr.bf16.vlgmr.msra.gmra.mrb[236].mxu0 %v1943_v8  ;;  %v30515_v8 = vld [vmem:[%s30821_s9 + $0x3d08] sm:$0xff]  }
 0x7be   : > { %28271 = vmatpush3.bf16.msra.mxu0 %v30478_v9  ;;  %23140 = vmatmul.mubr.bf16.vlgmr.msra.gmra.mrb[236].mxu1 %v1945_v13  ;;  %v30516_v9 = vld [vmem:[%s30821_s9 + $0x3d88] sm:$0xff]   ;;  %v30520_v13 = vld [vmem:[%s30821_s9 + $0x3d90] sm:$0xff]  }
 0x7bf   : > { %28272 = vmatprep.subr.bf16.mxu0 %v30480_v14  ;;  %28293 = vmatpush3.bf16.msra.mxu1 %v30479_v12  ;;  %v30519_v12 = vld [vmem:[%s30821_s9 + $0x3d10] sm:$0xff]   ;;  %v30521_v14 = vld [vmem:[%s30821_s9 + $0x3d58] sm:$0xff]  }
 0x7c0   : > { %28294 = vmatprep.subr.bf16.mxu1 %v30481_v16  ;;  %23179 = vmatprep.mubr.bf16.mxu0 %v1948_v1  ;;  %v30523_v16 = vld [vmem:[%s30821_s9 + $0x3d18] sm:$0xff]   ;;  %v30550_v1 = vld [vmem:[%s30821_s9 + $0x3e50] sm:$0xff]  }
 0x7c1   : > { %23219 = vmatprep.mubr.bf16.mxu1 %v1950_v6  ;;  %v30555_v6 = vld [vmem:[%s30821_s9 + $0x3ed8] sm:$0xff]  }
 0x7c2   : > { %28273 = vmatpush3.bf16.msra.mxu0 %v30482_v17  ;;  %v30524_v17 = vld [vmem:[%s30821_s9 + $0x3d98] sm:$0xff]  }
 0x7c3   : > { %28274 = vmatprep.subr.bf16.mxu0 %v30484_v19  ;;  %28295 = vmatpush3.bf16.msra.mxu1 %v30483_v18  ;;  %v30525_v18 = vld [vmem:[%s30821_s9 + $0x3d60] sm:$0xff]  }
 0x7c4   : > { %28296 = vmatprep.subr.bf16.mxu1 %v30485_v20  ;;  %v30526_v19 = vld [vmem:[%s30821_s9 + $0x3de0] sm:$0xff]  }
 0x7c5   : > { %v30527_v20 = vld [vmem:[%s30821_s9 + $0x3d20] sm:$0xff]  }
 0x7c6   : > { %28275 = vmatpush3.bf16.msra.mxu0 %v30486_v21  ;;  %v30528_v21 = vld [vmem:[%s30821_s9 + $0x3da0] sm:$0xff]  }
 0x7c7   : > { %28276 = vmatprep.subr.bf16.mxu0 %v30488_v23  ;;  %28297 = vmatpush3.bf16.msra.mxu1 %v30487_v22  ;;  %v30529_v22 = vld [vmem:[%s30821_s9 + $0x3d68] sm:$0xff]  }
 0x7c8   : > { %28298 = vmatprep.subr.bf16.mxu1 %v30489_v24  ;;  %v30530_v24 = vld [vmem:[%s30821_s9 + $0x3de8] sm:$0xff]  }
 0x7ca   : > { %28277 = vmatpush3.bf16.msra.mxu0 %v30490_v25 }
 0x7cb   : > { %28278 = vmatprep.subr.bf16.mxu0 %v30492_v27  ;;  %28299 = vmatpush3.bf16.msra.mxu1 %v30491_v26  ;;  %v30531_v26 = vld [vmem:[%s30821_s9 + $0x3d28] sm:$0xff]  }
 0x7cc   : > { %28300 = vmatprep.subr.bf16.mxu1 %v30493_v28 }
 0x7ce   : > { %28279 = vmatpush3.bf16.msra.mxu0 %v30494_v29 }
 0x7cf   : > { %28280 = vmatprep.subr.bf16.mxu0 %v30496_v31  ;;  %28301 = vmatpush3.bf16.msra.mxu1 %v30495_v30  ;;  %v30532_v30 = vld [vmem:[%s30821_s9 + $0x3da8] sm:$0xff]   ;;  %v30533_v31 = vld [vmem:[%s30821_s9 + $0x3d70] sm:$0xff]  }
 0x7d0   : > { %v27978_v32 = vpop.f32.mrb[212].mxu0  ;;  %28302 = vmatprep.subr.bf16.mxu1 %v30497_v33 }
 0x7d1   : > { %v27979_v34 = vpop.f32.mrb[213].mxu0  ;;  %v28000_v36 = vpop.f32.mrb[212].mxu1 }
 0x7d2   : > { %v27980_v37 = vadd.f32 %v27979_v34, %v27978_v32  ;;  %v27981_v38 = vpop.f32.mrb[214].mxu0  ;;  %v28001_v41 = vpop.f32.mrb[213].mxu1  ;;  %28281 = vmatpush3.bf16.msra.mxu0 %v30498_v35 }
 0x7d3   : > { %v27982_v43 = vpop.f32.mrb[215].mxu0  ;;  %v28002_v45 = vadd.f32 %v28001_v41, %v28000_v36  ;;  %v28003_v46 = vpop.f32.mrb[214].mxu1  ;;  %28282 = vmatprep.subr.bf16.mxu0 %v30500_v40  ;;  %28303 = vmatpush3.bf16.msra.mxu1 %v30499_v39  ;;  %v30535_v39 = vld [vmem:[%s30821_s9 + $0x3d30] sm:$0xff]  }
 0x7d4   : > { %v22622_v44 = vadd.f32 %v27980_v37, %v33084_v59  ;;  %v28004_v48 = vpop.f32.mrb[215].mxu1  ;;  %28304 = vmatprep.subr.bf16.mxu1 %v30501_v47  ;;  %v30507_v59 = vld [vmem:[%s30821_s9 + $0x3cb8] sm:$0xff]   ;;  %v30534_v37 = vld [vmem:[%s30821_s9 + $0x3df0] sm:$0xff]   ;;  %v296_v46 = vld [vmem:[%s30831_s7 + $0x1e8] sm:$0xff] }
 0x7d5   : > { %v30536_v41 = vld [vmem:[%s30821_s9 + $0x3db0] sm:$0xff]   ;;  %v30537_v43 = vld [vmem:[%s30821_s9 + $0x3d78] sm:$0xff]   ;;  %v1407_v48 = vrot.slane %v296_v46, %v30869_v42 }
 0x7d6   : > { %v33122_v50 = vadd.f32 %v28002_v45, %v22622_v44  ;;  %28283 = vmatpush3.bf16.msra.mxu0 %v30502_v49  ;;  %v30538_v44 = vld [vmem:[%s30821_s9 + $0x3df8] sm:$0xff]   ;;  %v1400_v49 = vcombine.high %v296_v46, %v296_v46 }
 0x7d7   : > { %28284 = vmatprep.subr.bf16.mxu0 %v30504_v52  ;;  %28305 = vmatpush3.bf16.msra.mxu1 %v30503_v51  ;;  %v30539_v45 = vld [vmem:[%s30821_s9 + $0x3d38] sm:$0xff]   ;;  %v1415_v51 = vcombine.high %v1407_v48, %v1407_v48 }
 0x7d8   : > { %28306 = vmatprep.subr.bf16.mxu1 %v30505_v53  ;;  %v30540_v47 = vld [vmem:[%s30821_s9 + $0x3db8] sm:$0xff]   ;;  %v1414_v52 = vrot.slane %v1400_v49, %v30869_v42  ;;  %v30543_v53 = vld [vmem:[%s30821_s9 + $0x3ec0] sm:$0xff]  }
 0x7d9   : > { %v1952_v56 = vpack.c.bf16 %v1415_v51, %v1415_v51 }
 0x7da   : > { %28285 = vmatpush3.bf16.msra.mxu0 %v30506_v54  ;;  %v1951_v54 = vpack.c.bf16 %v1407_v48, %v1407_v48  ;;  %v1416_v57 = vcombine.high %v1414_v52, %v1414_v52  ;;  %v30577_v48 = vld [vmem:[%s30821_s9 + $0x3f00] sm:$0xff]  }
 0x7db   : > { %28314 = vmatprep.subr.bf16.mxu0 %v30509_v58  ;;  %28307 = vmatpush3.bf16.msra.mxu1 %v30507_v59  ;;  %v30545_v58 = vld [vmem:[%s30821_s9 + $0x3e80] sm:$0xff]   ;;  %v1953_v59 = vpack.c.bf16 %v1414_v52, %v1414_v52 }
 0x7dc   : > { %28336 = vmatprep.subr.bf16.mxu1 %v30510_v62  ;;  %v1954_v61 = vpack.c.bf16 %v1416_v57, %v1416_v57  ;;  %v30547_v62 = vld [vmem:[%s30821_s9 + $0x3ec8] sm:$0xff]   ;;  %v30578_v52 = vld [vmem:[%s30821_s9 + $0x3f80] sm:$0xff]   ;;  %v30584_v57 = vld [vmem:[%s30821_s9 + $0x3fd0] sm:$0xff]  }
 0x7dd   : > { %23180 = vmatmul.mubr.bf16.vlgmr.msra.gmra.mrb[240].mxu0 %v1947_v63  ;;  %v30548_v63 = vld [vmem:[%s30821_s9 + $0x3e08] sm:$0xff]  }
 0x7de   : > { %28315 = vmatpush3.bf16.msra.mxu0 %v30511_v0  ;;  %23220 = vmatmul.mubr.bf16.vlgmr.msra.gmra.mrb[240].mxu1 %v1949_v4  ;;  %v30549_v0 = vld [vmem:[%s30821_s9 + $0x3e88] sm:$0xff]   ;;  %v30553_v4 = vld [vmem:[%s30821_s9 + $0x3e90] sm:$0xff]  }
 0x7df   : > { %28316 = vmatprep.subr.bf16.mxu0 %v30513_v5  ;;  %28337 = vmatpush3.bf16.msra.mxu1 %v30512_v3  ;;  %v30552_v3 = vld [vmem:[%s30821_s9 + $0x3e10] sm:$0xff]   ;;  %v30554_v5 = vld [vmem:[%s30821_s9 + $0x3e58] sm:$0xff]  }
 0x7e0   : > { %28338 = vmatprep.subr.bf16.mxu1 %v30514_v7  ;;  %23259 = vmatprep.mubr.bf16.mxu0 %v1952_v56  ;;  %v30556_v7 = vld [vmem:[%s30821_s9 + $0x3e18] sm:$0xff]   ;;  %v30582_v56 = vld [vmem:[%s30821_s9 + $0x3f88] sm:$0xff]  }
 0x7e1   : > { %23299 = vmatprep.mubr.bf16.mxu1 %v1954_v61  ;;  %v30588_v61 = vld [vmem:[%s30821_s9 + $0x3fd8] sm:$0xff]  }
 0x7e2   : > { %28317 = vmatpush3.bf16.msra.mxu0 %v30515_v8  ;;  %v30557_v8 = vld [vmem:[%s30821_s9 + $0x3e98] sm:$0xff]  }
 0x7e3   : > { %28318 = vmatprep.subr.bf16.mxu0 %v30517_v10  ;;  %28339 = vmatpush3.bf16.msra.mxu1 %v30516_v9  ;;  %v30558_v9 = vld [vmem:[%s30821_s9 + $0x3e60] sm:$0xff]  }
 0x7e4   : > { %28340 = vmatprep.subr.bf16.mxu1 %v30518_v11  ;;  %v30559_v10 = vld [vmem:[%s30821_s9 + $0x3ee0] sm:$0xff]  }
 0x7e5   : > { %v30560_v11 = vld [vmem:[%s30821_s9 + $0x3e20] sm:$0xff]  }
 0x7e6   : > { %28319 = vmatpush3.bf16.msra.mxu0 %v30519_v12  ;;  %v30561_v12 = vld [vmem:[%s30821_s9 + $0x3ea0] sm:$0xff]  }
 0x7e7   : > { %28320 = vmatprep.subr.bf16.mxu0 %v30521_v14  ;;  %28341 = vmatpush3.bf16.msra.mxu1 %v30520_v13  ;;  %v30562_v13 = vld [vmem:[%s30821_s9 + $0x3e68] sm:$0xff]  }
 0x7e8   : > { %28342 = vmatprep.subr.bf16.mxu1 %v30522_v15  ;;  %v30563_v15 = vld [vmem:[%s30821_s9 + $0x3ee8] sm:$0xff]  }
 0x7ea   : > { %28321 = vmatpush3.bf16.msra.mxu0 %v30523_v16 }
 0x7eb   : > { %28322 = vmatprep.subr.bf16.mxu0 %v30525_v18  ;;  %28343 = vmatpush3.bf16.msra.mxu1 %v30524_v17  ;;  %v30564_v17 = vld [vmem:[%s30821_s9 + $0x3e28] sm:$0xff]  }
 0x7ec   : > { %28344 = vmatprep.subr.bf16.mxu1 %v30526_v19 }
 0x7ee   : > { %28323 = vmatpush3.bf16.msra.mxu0 %v30527_v20 }
 0x7ef   : > { %28324 = vmatprep.subr.bf16.mxu0 %v30529_v22  ;;  %28345 = vmatpush3.bf16.msra.mxu1 %v30528_v21  ;;  %v30565_v22 = vld [vmem:[%s30821_s9 + $0x3ea8] sm:$0xff]  }
 0x7f0   : > { %v28022_v23 = vpop.f32.mrb[216].mxu0  ;;  %28346 = vmatprep.subr.bf16.mxu1 %v30530_v24  ;;  %v30566_v24 = vld [vmem:[%s30821_s9 + $0x3e70] sm:$0xff]  }
 0x7f1   : > { %v28023_v25 = vpop.f32.mrb[217].mxu0  ;;  %v28044_v27 = vpop.f32.mrb[216].mxu1 }
 0x7f2   : > { %v28024_v28 = vadd.f32 %v28023_v25, %v28022_v23  ;;  %v28025_v29 = vpop.f32.mrb[218].mxu0  ;;  %v28045_v32 = vpop.f32.mrb[217].mxu1  ;;  %28325 = vmatpush3.bf16.msra.mxu0 %v30531_v26 }
 0x7f3   : > { %v28026_v33 = vpop.f32.mrb[219].mxu0  ;;  %v28046_v35 = vadd.f32 %v28045_v32, %v28044_v27  ;;  %v28047_v36 = vpop.f32.mrb[218].mxu1  ;;  %28326 = vmatprep.subr.bf16.mxu0 %v30533_v31  ;;  %28347 = vmatpush3.bf16.msra.mxu1 %v30532_v30  ;;  %v30568_v30 = vld [vmem:[%s30821_s9 + $0x3e30] sm:$0xff]   ;;  %v30570_v32 = vld [vmem:[%s30821_s9 + $0x3e78] sm:$0xff]  }
 0x7f4   : > { %v22702_v34 = vadd.f32 %v28024_v28, %v33122_v50  ;;  %v28048_v38 = vpop.f32.mrb[219].mxu1  ;;  %28348 = vmatprep.subr.bf16.mxu1 %v30534_v37  ;;  %v30542_v50 = vld [vmem:[%s30821_s9 + $0x3e40] sm:$0xff]   ;;  %v30567_v28 = vld [vmem:[%s30821_s9 + $0x3ef0] sm:$0xff]  }
 0x7f5   : > { %v30569_v33 = vld [vmem:[%s30821_s9 + $0x3eb0] sm:$0xff]  }
 0x7f6   : > { %v33160_v40 = vadd.f32 %v28046_v35, %v22702_v34  ;;  %28327 = vmatpush3.bf16.msra.mxu0 %v30535_v39  ;;  %v30571_v34 = vld [vmem:[%s30821_s9 + $0x3ef8] sm:$0xff]   ;;  %v297_v36 = vld [vmem:[%s30831_s7 + $0x1f0] sm:$0xff]  ;;  %v30575_v39 = vld [vmem:[%s30821_s9 + $0x3f40] sm:$0xff]  }
 0x7f7   : > { %28328 = vmatprep.subr.bf16.mxu0 %v30537_v43  ;;  %28349 = vmatpush3.bf16.msra.mxu1 %v30536_v41  ;;  %v30572_v35 = vld [vmem:[%s30821_s9 + $0x3e38] sm:$0xff]   ;;  %v1424_v37 = vrot.slane %v297_v36, %v30869_v42  ;;  %v1417_v38 = vcombine.high %v297_v36, %v297_v36 }
 0x7f8   : > { %28350 = vmatprep.subr.bf16.mxu1 %v30538_v44  ;;  %v30576_v44 = vld [vmem:[%s30821_s9 + $0x3fc0] sm:$0xff]  }
 0x7f9   : > { %v1432_v41 = vcombine.high %v1424_v37, %v1424_v37  ;;  %v1431_v43 = vrot.slane %v1417_v38, %v30869_v42 }
 0x7fa   : > { %28329 = vmatpush3.bf16.msra.mxu0 %v30539_v45  ;;  %v1955_v45 = vpack.c.bf16 %v1424_v37, %v1424_v37 }
 0x7fb   : > { %28358 = vmatprep.subr.bf16.mxu0 %v30542_v50  ;;  %28351 = vmatpush3.bf16.msra.mxu1 %v30540_v47  ;;  %v1956_v46 = vpack.c.bf16 %v1432_v41, %v1432_v41  ;;  %v1433_v47 = vcombine.high %v1431_v43, %v1431_v43  ;;  %v1957_v49 = vpack.c.bf16 %v1431_v43, %v1431_v43  ;;  %v30579_v50 = vld [vmem:[%s30821_s9 + $0x3f48] sm:$0xff]  }
 0x7fc   : > { %28380 = vmatprep.subr.bf16.mxu1 %v30543_v53  ;;  %v30580_v53 = vld [vmem:[%s30821_s9 + $0x3fc8] sm:$0xff]  }
 0x7fd   : > { %23260 = vmatmul.mubr.bf16.vlgmr.msra.gmra.mrb[244].mxu0 %v1951_v54  ;;  %v1958_v51 = vpack.c.bf16 %v1433_v47, %v1433_v47  ;;  %v30581_v54 = vld [vmem:[%s30821_s9 + $0x3f08] sm:$0xff]  }
 0x7fe   : > { %28359 = vmatpush3.bf16.msra.mxu0 %v30544_v55  ;;  %23300 = vmatmul.mubr.bf16.vlgmr.msra.gmra.mrb[244].mxu1 %v1953_v59  ;;  %v30583_v55 = vld [vmem:[%s30821_s9 + $0x3f50] sm:$0xff]   ;;  %v30587_v59 = vld [vmem:[%s30821_s9 + $0x3f58] sm:$0xff]  }
 0x7ff   : > { %28360 = vmatprep.subr.bf16.mxu0 %v30546_v60  ;;  %28381 = vmatpush3.bf16.msra.mxu1 %v30545_v58  ;;  %v30585_v58 = vld [vmem:[%s30821_s9 + $0x3f10] sm:$0xff]  }
 0x800   : > { %28382 = vmatprep.subr.bf16.mxu1 %v30547_v62  ;;  %23339 = vmatprep.mubr.bf16.mxu0 %v1956_v46  ;;  %v30586_v60 = vld [vmem:[%s30821_s9 + $0x3f90] sm:$0xff]   ;;  %v30589_v62 = vld [vmem:[%s30821_s9 + $0x3f18] sm:$0xff]  }
 0x801   : > { %23379 = vmatprep.mubr.bf16.mxu1 %v1958_v51 }
 0x802   : > { %28361 = vmatpush3.bf16.msra.mxu0 %v30548_v63  ;;  %v30591_v63 = vld [vmem:[%s30821_s9 + $0x3f60] sm:$0xff]  }
 0x803   : > { %28362 = vmatprep.subr.bf16.mxu0 %v30550_v1  ;;  %28383 = vmatpush3.bf16.msra.mxu1 %v30549_v0  ;;  %v30590_v0 = vld [vmem:[%s30821_s9 + $0x3f98] sm:$0xff]   ;;  %v30592_v1 = vld [vmem:[%s30821_s9 + $0x3fe0] sm:$0xff]  }
 0x804   : > { %28384 = vmatprep.subr.bf16.mxu1 %v30551_v2  ;;  %v30593_v2 = vld [vmem:[%s30821_s9 + $0x3f20] sm:$0xff]  }
 0x806   : > { %28363 = vmatpush3.bf16.msra.mxu0 %v30552_v3  ;;  %v30595_v3 = vld [vmem:[%s30821_s9 + $0x3f68] sm:$0xff]  }
 0x807   : > { %28364 = vmatprep.subr.bf16.mxu0 %v30554_v5  ;;  %28385 = vmatpush3.bf16.msra.mxu1 %v30553_v4  ;;  %v30594_v4 = vld [vmem:[%s30821_s9 + $0x3fa0] sm:$0xff]  }
 0x808   : > { %28386 = vmatprep.subr.bf16.mxu1 %v30555_v6 }
 0x80a   : > { %28365 = vmatpush3.bf16.msra.mxu0 %v30556_v7  ;;  %v30596_v7 = vld [vmem:[%s30821_s9 + $0x3fe8] sm:$0xff]  }
 0x80b   : > { %28366 = vmatprep.subr.bf16.mxu0 %v30558_v9  ;;  %28387 = vmatpush3.bf16.msra.mxu1 %v30557_v8 }
 0x80c   : > { %28388 = vmatprep.subr.bf16.mxu1 %v30559_v10 }
 0x80e   : > { %28367 = vmatpush3.bf16.msra.mxu0 %v30560_v11  ;;  %v30597_v11 = vld [vmem:[%s30821_s9 + $0x3f28] sm:$0xff]  }
 0x80f   : > { %28368 = vmatprep.subr.bf16.mxu0 %v30562_v13  ;;  %28389 = vmatpush3.bf16.msra.mxu1 %v30561_v12  ;;  %v30599_v12 = vld [vmem:[%s30821_s9 + $0x3f70] sm:$0xff]  }
 0x810   : > { %v28066_v14 = vpop.f32.mrb[220].mxu0  ;;  %28390 = vmatprep.subr.bf16.mxu1 %v30563_v15 }
 0x811   : > { %v28067_v16 = vpop.f32.mrb[221].mxu0  ;;  %v28088_v18 = vpop.f32.mrb[220].mxu1 }
 0x812   : > { %v28068_v19 = vadd.f32 %v28067_v16, %v28066_v14  ;;  %v28069_v20 = vpop.f32.mrb[222].mxu0  ;;  %v28089_v21 = vpop.f32.mrb[221].mxu1  ;;  %28369 = vmatpush3.bf16.msra.mxu0 %v30564_v17 }
 0x813   : > { %v28070_v23 = vpop.f32.mrb[223].mxu0  ;;  %v28090_v26 = vadd.f32 %v28089_v21, %v28088_v18  ;;  %v28091_v27 = vpop.f32.mrb[222].mxu1  ;;  %28370 = vmatprep.subr.bf16.mxu0 %v30566_v24  ;;  %28391 = vmatpush3.bf16.msra.mxu1 %v30565_v22  ;;  %v30598_v18 = vld [vmem:[%s30821_s9 + $0x3fa8] sm:$0xff]   ;;  %v30600_v20 = vld [vmem:[%s30821_s9 + $0x3ff0] sm:$0xff]  }
 0x814   : > { %v22782_v25 = vadd.f32 %v28068_v19, %v33160_v40  ;;  %v28092_v29 = vpop.f32.mrb[223].mxu1  ;;  %28392 = vmatprep.subr.bf16.mxu1 %v30567_v28  ;;  %v30573_v40 = vld [vmem:[%s30821_s9 + $0x3eb8] sm:$0xff]   ;;  %v30601_v22 = vld [vmem:[%s30821_s9 + $0x3f30] sm:$0xff]  }
 0x815   : > { %v30603_v23 = vld [vmem:[%s30821_s9 + $0x3f78] sm:$0xff]   ;;  %v30602_v24 = vld [vmem:[%s30821_s9 + $0x3fb0] sm:$0xff]  }
 0x816   : > { %v33198_v31 = vadd.f32 %v28090_v26, %v22782_v25  ;;  %28371 = vmatpush3.bf16.msra.mxu0 %v30568_v30  ;;  %v30604_v25 = vld [vmem:[%s30821_s9 + $0x3ff8] sm:$0xff]  }
 0x817   : > { %28372 = vmatprep.subr.bf16.mxu0 %v30570_v32  ;;  %28393 = vmatpush3.bf16.msra.mxu1 %v30569_v33  ;;  %v30605_v26 = vld [vmem:[%s30821_s9 + $0x3f38] sm:$0xff]  }
 0x818   : > { %28394 = vmatprep.subr.bf16.mxu1 %v30571_v34  ;;  %v298_v27 = vld [vmem:[%s30831_s7 + $0x1f8] sm:$0xff] }
 0x819   : > { %v1441_v28 = vrot.slane %v298_v27, %v30869_v42  ;;  %v1434_v29 = vcombine.high %v298_v27, %v298_v27  ;;  %v30606_v30 = vld [vmem:[%s30821_s9 + $0x3fb8] sm:$0xff]  }
 0x81a   : > { %28373 = vmatpush3.bf16.msra.mxu0 %v30572_v35 }
 0x81b   : > { %28402 = vmatprep.subr.bf16.mxu0 %v30575_v39  ;;  %28395 = vmatpush3.bf16.msra.mxu1 %v30573_v40  ;;  %v1448_v32 = vrot.slane %v1434_v29, %v30869_v42  ;;  %v1959_v33 = vpack.c.bf16 %v1441_v28, %v1441_v28 }
 0x81c   : > { %28424 = vmatprep.subr.bf16.mxu1 %v30576_v44 }
 0x81d   : > { %23340 = vmatmul.mubr.bf16.vlgmr.msra.gmra.mrb[248].mxu0 %v1955_v45  ;;  %v1450_v35 = vcombine.high %v1448_v32, %v1448_v32  ;;  %v1961_v36 = vpack.c.bf16 %v1448_v32, %v1448_v32 }
 0x81e   : > { %28403 = vmatpush3.bf16.msra.mxu0 %v30577_v48  ;;  %23380 = vmatmul.mubr.bf16.vlgmr.msra.gmra.mrb[248].mxu1 %v1957_v49 }
 0x81f   : > { %28404 = vmatprep.subr.bf16.mxu0 %v30579_v50  ;;  %28425 = vmatpush3.bf16.msra.mxu1 %v30578_v52  ;;  %v1962_v37 = vpack.c.bf16 %v1450_v35, %v1450_v35 }
 0x820   : > { %28426 = vmatprep.subr.bf16.mxu1 %v30580_v53 }
 0x821   : > { %23459 = vmatprep.mubr.bf16.mxu1 %v1962_v37 }
 0x822   : > { %28405 = vmatpush3.bf16.msra.mxu0 %v30581_v54 }
 0x823   : > { %28406 = vmatprep.subr.bf16.mxu0 %v30583_v55  ;;  %28427 = vmatpush3.bf16.msra.mxu1 %v30582_v56 }
 0x824   : > { %28428 = vmatprep.subr.bf16.mxu1 %v30584_v57 }
 0x826   : > { %28407 = vmatpush3.bf16.msra.mxu0 %v30585_v58 }
 0x827   : > { %28408 = vmatprep.subr.bf16.mxu0 %v30587_v59  ;;  %28429 = vmatpush3.bf16.msra.mxu1 %v30586_v60 }
 0x828   : > { %28430 = vmatprep.subr.bf16.mxu1 %v30588_v61 }
 0x82a   : > { %28409 = vmatpush3.bf16.msra.mxu0 %v30589_v62 }
 0x82b   : > { %28410 = vmatprep.subr.bf16.mxu0 %v30591_v63  ;;  %28431 = vmatpush3.bf16.msra.mxu1 %v30590_v0 }
 0x82c   : > { %28432 = vmatprep.subr.bf16.mxu1 %v30592_v1 }
 0x82e   : > { %28411 = vmatpush3.bf16.msra.mxu0 %v30593_v2 }
 0x82f   : > { %28412 = vmatprep.subr.bf16.mxu0 %v30595_v3  ;;  %28433 = vmatpush3.bf16.msra.mxu1 %v30594_v4 }
 0x830   : > { %v28110_v5 = vpop.f32.mrb[224].mxu0  ;;  %28434 = vmatprep.subr.bf16.mxu1 %v30596_v7 }
 0x831   : > { %v28111_v6 = vpop.f32.mrb[225].mxu0  ;;  %v28132_v8 = vpop.f32.mrb[224].mxu1 }
 0x832   : > { %v28112_v9 = vadd.f32 %v28111_v6, %v28110_v5  ;;  %v28113_v10 = vpop.f32.mrb[226].mxu0  ;;  %v28133_v13 = vpop.f32.mrb[225].mxu1  ;;  %28413 = vmatpush3.bf16.msra.mxu0 %v30597_v11 }
 0x833   : > { %v28114_v14 = vpop.f32.mrb[227].mxu0  ;;  %v28134_v16 = vadd.f32 %v28133_v13, %v28132_v8  ;;  %v28135_v17 = vpop.f32.mrb[226].mxu1  ;;  %28414 = vmatprep.subr.bf16.mxu0 %v30599_v12  ;;  %28435 = vmatpush3.bf16.msra.mxu1 %v30598_v18 }
 0x834   : > { %v22862_v15 = vadd.f32 %v28112_v9, %v33198_v31  ;;  %v28136_v19 = vpop.f32.mrb[227].mxu1  ;;  %28436 = vmatprep.subr.bf16.mxu1 %v30600_v20  ;;  %v1449_v31 = vcombine.high %v1441_v28, %v1441_v28 }
 0x836   : > { %v22902_v21 = vadd.f32 %v28134_v16, %v22862_v15  ;;  %28415 = vmatpush3.bf16.msra.mxu0 %v30601_v22  ;;  %v1960_v34 = vpack.c.bf16 %v1449_v31, %v1449_v31 }
 0x837   : > { %28416 = vmatprep.subr.bf16.mxu0 %v30603_v23  ;;  %28437 = vmatpush3.bf16.msra.mxu1 %v30602_v24 }
 0x838   : > { %28438 = vmatprep.subr.bf16.mxu1 %v30604_v25  ;;  %23419 = vmatprep.mubr.bf16.mxu0 %v1960_v34 }
 0x83a   : > { %28417 = vmatpush3.bf16.msra.mxu0 %v30605_v26 }
 0x83b   : > { %28439 = vmatpush3.bf16.msra.mxu1 %v30606_v30 }
 0x83d   : > { %23420 = vmatmul.mubr.bf16.vlgmr.msra.gmra.mrb[252].mxu0 %v1959_v33 }
 0x83e   : > { %23460 = vmatmul.mubr.bf16.vlgmr.msra.gmra.mrb[252].mxu1 %v1961_v36 }
 0x850   : > { %v28154_v38 = vpop.f32.mrb[228].mxu0 }
 0x851   : > { %v28155_v39 = vpop.f32.mrb[229].mxu0  ;;  %v28176_v40 = vpop.f32.mrb[228].mxu1 }
 0x852   : > { %v28156_v41 = vadd.f32 %v28155_v39, %v28154_v38  ;;  %v28157_v43 = vpop.f32.mrb[230].mxu0  ;;  %v28177_v44 = vpop.f32.mrb[229].mxu1 }
 0x853   : > { %v28158_v45 = vpop.f32.mrb[231].mxu0  ;;  %v28178_v42 = vadd.f32 %v28177_v44, %v28176_v40  ;;  %v28179_v47 = vpop.f32.mrb[230].mxu1 }
 0x854   : > { %v22942_v46 = vadd.f32 %v28156_v41, %v22902_v21  ;;  %v28180_v48 = vpop.f32.mrb[231].mxu1 }
 0x856   : > { %v22982_v49 = vadd.f32 %v28178_v42, %v22942_v46 }
 0x870   : > { %v28198_v50 = vpop.f32.mrb[232].mxu0 }
 0x871   : > { %v28199_v51 = vpop.f32.mrb[233].mxu0  ;;  %v28220_v52 = vpop.f32.mrb[232].mxu1 }
 0x872   : > { %v28200_v53 = vadd.f32 %v28199_v51, %v28198_v50  ;;  %v28201_v54 = vpop.f32.mrb[234].mxu0  ;;  %v28221_v55 = vpop.f32.mrb[233].mxu1 }
 0x873   : > { %v28202_v56 = vpop.f32.mrb[235].mxu0  ;;  %v28222_v58 = vadd.f32 %v28221_v55, %v28220_v52  ;;  %v28223_v59 = vpop.f32.mrb[234].mxu1 }
 0x874   : > { %v23022_v57 = vadd.f32 %v28200_v53, %v22982_v49  ;;  %v28224_v60 = vpop.f32.mrb[235].mxu1  ;;  %v234_v56 = vld [vmem:[#allocation2] sm:$0x3] }
 0x876   : > { %v23062_v61 = vadd.f32 %v28222_v58, %v23022_v57 }
 0x890   : > { %v28242_v62 = vpop.f32.mrb[236].mxu0 }
 0x891   : > { %v28243_v63 = vpop.f32.mrb[237].mxu0  ;;  %v28264_v0 = vpop.f32.mrb[236].mxu1 }
 0x892   : > { %v28244_v1 = vadd.f32 %v28243_v63, %v28242_v62  ;;  %v28245_v2 = vpop.f32.mrb[238].mxu0  ;;  %v28265_v3 = vpop.f32.mrb[237].mxu1  ;;  %v25624_v62 = vld [vmem:[%s33290_s3] ss:$0 sm:$0xff] (!%p25622_p7) }
 0x893   : > { %v28246_v4 = vpop.f32.mrb[239].mxu0  ;;  %v28266_v6 = vadd.f32 %v28265_v3, %v28264_v0  ;;  %v28267_v7 = vpop.f32.mrb[238].mxu1 }
 0x894   : > { %v23102_v5 = vadd.f32 %v28244_v1, %v23062_v61  ;;  %v28268_v8 = vpop.f32.mrb[239].mxu1  ;;  %v25623_v61 = vld [vmem:[%s33289_s2] ss:$0 sm:$0xff] (!%p25622_p7) }
 0x896   : > { %v23142_v9 = vadd.f32 %v28266_v6, %v23102_v5 }
 0x8b0   : > { %v28286_v10 = vpop.f32.mrb[240].mxu0 }
 0x8b1   : > { %v28287_v11 = vpop.f32.mrb[241].mxu0  ;;  %v28308_v12 = vpop.f32.mrb[240].mxu1 }
 0x8b2   : > { %v28288_v13 = vadd.f32 %v28287_v11, %v28286_v10  ;;  %v28289_v14 = vpop.f32.mrb[242].mxu0  ;;  %v28309_v15 = vpop.f32.mrb[241].mxu1 }
 0x8b3   : > { %v28290_v16 = vpop.f32.mrb[243].mxu0  ;;  %v28310_v18 = vadd.f32 %v28309_v15, %v28308_v12  ;;  %v28311_v19 = vpop.f32.mrb[242].mxu1 }
 0x8b4   : > { %v23182_v17 = vadd.f32 %v28288_v13, %v23142_v9  ;;  %v28312_v20 = vpop.f32.mrb[243].mxu1 }
 0x8b6   : > { %v23222_v21 = vadd.f32 %v28310_v18, %v23182_v17 }
 0x8d0   : > { %v28330_v22 = vpop.f32.mrb[244].mxu0 }
 0x8d1   : > { %v28331_v23 = vpop.f32.mrb[245].mxu0  ;;  %v28352_v24 = vpop.f32.mrb[244].mxu1 }
 0x8d2   : > { %v28332_v25 = vadd.f32 %v28331_v23, %v28330_v22  ;;  %v28333_v26 = vpop.f32.mrb[246].mxu0  ;;  %v28353_v27 = vpop.f32.mrb[245].mxu1 }
 0x8d3   : > { %v28334_v28 = vpop.f32.mrb[247].mxu0  ;;  %v28354_v30 = vadd.f32 %v28353_v27, %v28352_v24  ;;  %v28355_v31 = vpop.f32.mrb[246].mxu1 }
 0x8d4   : > { %v23262_v29 = vadd.f32 %v28332_v25, %v23222_v21  ;;  %v28356_v32 = vpop.f32.mrb[247].mxu1 }
 0x8d6   : > { %v23302_v33 = vadd.f32 %v28354_v30, %v23262_v29 }
 0x8f0   : > { %v28374_v34 = vpop.f32.mrb[248].mxu0 }
 0x8f1   : > { %v28375_v35 = vpop.f32.mrb[249].mxu0  ;;  %v28396_v36 = vpop.f32.mrb[248].mxu1 }
 0x8f2   : > { %v28376_v37 = vadd.f32 %v28375_v35, %v28374_v34  ;;  %v28377_v38 = vpop.f32.mrb[250].mxu0  ;;  %v28397_v39 = vpop.f32.mrb[249].mxu1 }
 0x8f3   : > { %v28378_v40 = vpop.f32.mrb[251].mxu0  ;;  %v28398_v43 = vadd.f32 %v28397_v39, %v28396_v36  ;;  %v28399_v44 = vpop.f32.mrb[250].mxu1 }
 0x8f4   : > { %v23342_v41 = vadd.f32 %v28376_v37, %v23302_v33  ;;  %v28400_v45 = vpop.f32.mrb[251].mxu1 }
 0x8f6   : > { %v23382_v46 = vadd.f32 %v28398_v43, %v23342_v41 }
 0x910   : > { %v28418_v42 = vpop.f32.mrb[252].mxu0 }
 0x911   : > { %v28419_v47 = vpop.f32.mrb[253].mxu0  ;;  %v28440_v48 = vpop.f32.mrb[252].mxu1 }
 0x912   : > { %v28420_v49 = vadd.f32 %v28419_v47, %v28418_v42  ;;  %v28421_v50 = vpop.f32.mrb[254].mxu0  ;;  %v28441_v51 = vpop.f32.mrb[253].mxu1 }
 0x913   : > { %v28422_v52 = vpop.f32.mrb[255].mxu0  ;;  %v28442_v54 = vadd.f32 %v28441_v51, %v28440_v48  ;;  %v28443_v55 = vpop.f32.mrb[254].mxu1 }
 0x914   : > { %v23422_v53 = vadd.f32 %v28420_v49, %v23382_v46  ;;  %v28444_v57 = vpop.f32.mrb[255].mxu1  ;;  %23473 = sbr.rel (%p25622_p7) target bundleno = 2344 (0x928), region = 48 }
 0x916   : > { %v23462_v58 = vadd.f32 %v28442_v54, %v23422_v53 }
 0x918   : > { %v23467_v59 = vadd.f32 %v23462_v58, %v234_v56 }
 0x91a   : > { %23469 = vst.msk [vmem:[#allocation2] sm:$0x3] %vm23468_vm1, %v23467_v59 }
 0x921   : > { %v23474_v60 = vld [vmem:[#allocation2] sm:$0x3] }
 0x922   : > { %v23482_v63 = vadd.f32 %v25623_v61, %v23474_v60 }
 0x924   : > { %vm23484_vm2 = vcmp.ge.f32.partialorder %v23482_v63, 0.0  ;;  %v23491_v0 = vmul.f32 %v25624_v62, %v23482_v63 }
 0x926   : > { %v23492_v1 = vsel %vm23484_vm2, %v23482_v63, %v23491_v0 }
 0x927   : > { %23493 = vst.msk [vmem:[#allocation6] sm:$0x3] %vm23468_vm1, %v23492_v1 }
 0x928 PF: > { %p28457_p4 = scmp.eq.s32.totalorder %s30754_s19, 23  ;;  %s30709_s13 = smov [#allocation6]  }
 0x929   : > { %s23501_s14 = sshll.u32 %s30709_s13, 4  ;;  %s23502_s14 = int_to_ptr.vmem [resolvable:$true] %s23501_s14 }
 0x92a   : > { %s30638_s15 = scalar_lea.vmem %s23502_s14, 32  ;;  %p30645_p12 = scmp.lt.s32.totalorder %s23502_s14, %s23502_s14 }
 0x92b   : > { %p30639_p5 = scmp.ne.s32.totalorder %s23502_s14, %s30638_s15  ;;  %p30646_p0 = scmp.lt.s32.totalorder %s30638_s15, %s30638_s15 }
 0x92d   : > { %p30640_p6 = pnand %p30639_p5, %p28457_p4  ;;  %p30647_p1 = por %p30646_p0, %p30645_p12 }
 0x92f   : > { %p30641_p10 = pneg %p30640_p6 }
 0x931   : > { %p30648_p2 = pnand %p30647_p1, %p30641_p10 }
 0x933   : > { %30651 = shalt.err (!%p30648_p2)
}
 0x934   : > { %s30652_s25 = scalar_lea.hbm %s33291_s4, 32 }
 0x935   : > { %p30653_p11 = scmp.ne.s32.totalorder %s33291_s4, %s30652_s25  ;;  %p30658_p9 = scmp.lt.u32.totalorder %s30652_s25, %s33291_s4 }
 0x937   : > { %p30654_p13 = pnand %p30653_p11, %p28457_p4 }
 0x939   : > { %p30655_p3 = pneg %p30654_p13 }
 0x93b   : > { %p30660_p8 = pnand %p30658_p9, %p30655_p3 }
 0x93d   : > { %30663 = shalt.err (!%p30660_p8)
}
 0x93e   : > { %28449 = dma.vmem_to_hbm [thread:$0]  (%p28457_p4), %s23502_s14, 32, %s33291_s4, [#allocation5]  }
 0x93f   : > { %30685 = dma.done.wait (%p28457_p4), [#allocation5], 32  }
 0x940   : > { %30687 = vsyncadd (%p28457_p4), [#allocation5], 4294967264 }
 0x941 PF: > { %p15_p7 = scmp.ge.s32.totalorder %s30757_s20, 26   ;;  %s33295_s15 = smov %s30694_s16 }
 0x942   : > { %s33296_s16 = smov %s30698_s17  ;;  %s33297_s17 = smov %s30767_s23 }
 0x943   : > { %s33298_s18 = smov %s30757_s20  ;;  %17 = sbr.rel (!%p15_p7) target bundleno = 4 (0x4), region = 84 }
 0x94a   :  { %23514 = vsyncpa [#allocation4], 1 }
 0x94b   :  { %23516 = vsyncpa [#allocation4 + $0x1], 1 }
 0x94c   :  { %23517 = vsyncpa [#allocation5], 1 }
 0x94d   :  { %23519 = vsyncpa [#allocation5 + $0x1], 1 }

</bundles_post_ra>
